<compile_context>
chip_gen: v6e
topology: v6e:2x2x1
jax: 0.10.0
libtpu: 0.0.40
codegen_flags: <defaults>
</compile_context>

<pallas_src>
import jax
import jax.numpy as jnp
from jax.experimental import pallas as pl
from jax.experimental.pallas import tpu as pltpu


def _round_up(x, m):
    return ((x + m - 1) // m) * m


_T_UNROLL_LIMIT = 32  # above this, use lax.fori_loop(unroll=8) instead of full unroll


def _make_fused_kernel(num_layers, T, bt, Hp):
    """Whole Loganomaly forward (post-embedding) for one batch tile of `bt` rows."""
    Gp = 4 * Hp
    bf16 = jnp.bfloat16

    def kernel(*refs):
        x0_ref, x1_ref = refs[0], refs[1]
        nw = 3 * num_layers
        tower0 = [tuple(refs[2 + 3 * l: 2 + 3 * l + 3]) for l in range(num_layers)]
        tower1 = [tuple(refs[2 + nw + 3 * l: 2 + nw + 3 * l + 3]) for l in range(num_layers)]
        fcw0_ref, fcw1_ref, fcb_ref = refs[2 + 2 * nw: 5 + 2 * nw]
        out_ref = refs[5 + 2 * nw]
        xp0_ref, xp1_ref, seq0_ref, seq1_ref = refs[6 + 2 * nw: 10 + 2 * nw]

        def cell(gates, c):
            # gates: (bt, 4Hp) f32.  One wide sigmoid + tanh(g) + tanh(c): 3 EUP pushes.
            sig = jax.nn.sigmoid(gates)
            g = jnp.tanh(gates[:, 2 * Hp:3 * Hp])
            c_new = sig[:, Hp:2 * Hp] * c + sig[:, 0:Hp] * g          # f*c + i*g
            h_new = sig[:, 3 * Hp:4 * Hp] * jnp.tanh(c_new)            # o*tanh(c)
            return h_new, c_new

        inp0 = x0_ref[...]   # (T*bt, Din0) bf16, time-major flattened
        inp1 = x1_ref[...]   # (T*bt, Din1) bf16

        h0 = h1 = None
        for li in range(num_layers):
            wih0_ref, whh0_ref, b0_ref = tower0[li]
            wih1_ref, whh1_ref, b1_ref = tower1[li]
            last = li == num_layers - 1

            # Hoisted input projection: one (T*bt, Din) @ (Din, 4Hp) MXU matmul per
            # tower per layer; only h @ W_hh remains on the serial per-step path.
            xp0_ref[...] = (jnp.dot(inp0, wih0_ref[...],
                                    preferred_element_type=jnp.float32) + b0_ref[...])
            xp1_ref[...] = (jnp.dot(inp1, wih1_ref[...],
                                    preferred_element_type=jnp.float32) + b1_ref[...])
            whh0 = whh0_ref[...]          # hoisted bf16 weight loads, reused over T steps
            whh1 = whh1_ref[...]

            h0 = jnp.zeros((bt, Hp), jnp.float32)
            c0 = jnp.zeros((bt, Hp), jnp.float32)
            h1 = jnp.zeros((bt, Hp), jnp.float32)
            c1 = jnp.zeros((bt, Hp), jnp.float32)

            def step(off, h0, c0, h1, c1):
                # Interleaved towers: two independent MXU->EUP chains per step hide
                # each other's FIFO latency.
                g0 = xp0_ref[pl.ds(off, bt), :] + jnp.dot(
                    h0.astype(bf16), whh0, preferred_element_type=jnp.float32)
                g1 = xp1_ref[pl.ds(off, bt), :] + jnp.dot(
                    h1.astype(bf16), whh1, preferred_element_type=jnp.float32)
                h0n, c0n = cell(g0, c0)
                h1n, c1n = cell(g1, c1)
                if not last:   # next layer needs the full sequence (bf16, lane-dense)
                    seq0_ref[pl.ds(off, bt), :] = h0n.astype(bf16)
                    seq1_ref[pl.ds(off, bt), :] = h1n.astype(bf16)
                return h0n, c0n, h1n, c1n

            if T <= _T_UNROLL_LIMIT:
                for t in range(T):
                    h0, c0, h1, c1 = step(t * bt, h0, c0, h1, c1)
            else:
                def body(t, carry):
                    off = pl.multiple_of(t * bt, 8)   # bt is a multiple of 8 sublanes
                    return step(off, *carry)
                h0, c0, h1, c1 = jax.lax.fori_loop(
                    0, T, body, (h0, c0, h1, c1), unroll=8)

            if not last:
                inp0 = seq0_ref[...]
                inp1 = seq1_ref[...]

        # Fused FC head: concat([h0, h1], -1) @ W == h0 @ W[:H] + h1 @ W[H:]
        out_ref[...] = (
            jnp.dot(h0.astype(bf16), fcw0_ref[...], preferred_element_type=jnp.float32)
            + jnp.dot(h1.astype(bf16), fcw1_ref[...], preferred_element_type=jnp.float32)
            + fcb_ref[...])

    return kernel


class LoganomalyPallas:
    def __init__(self, input_size, hidden_size, num_layers, vocab_size,
                 embedding_dim, key):
        self.input_size = input_size
        self.hidden_size = hidden_size
        self.num_layers = num_layers
        self.embedding_dim = embedding_dim
        self.vocab_size = vocab_size

        H = hidden_size
        Hp = max(128, _round_up(H, 128))       # lane-aligned gate width
        Vp = max(128, _round_up(vocab_size, 128))
        self.Hp, self.v_pad = Hp, Vp

        n_keys = 3 + 8 * num_layers
        keys = jax.random.split(key, n_keys)
        ki = iter(range(n_keys))

        # nn.Embedding with uniform_(0, 1)
        self.embedding = jax.random.uniform(
            keys[next(ki)], (vocab_size, embedding_dim), dtype=jnp.float32)

        k = 1.0 / float(H) ** 0.5

        def raw_lstm(in_dim):
            layers, d = [], in_dim
            for _ in range(num_layers):
                w_ih = jax.random.uniform(keys[next(ki)], (d, 4 * H), jnp.float32, -k, k)
                w_hh = jax.random.uniform(keys[next(ki)], (H, 4 * H), jnp.float32, -k, k)
                b_ih = jax.random.uniform(keys[next(ki)], (4 * H,), jnp.float32, -k, k)
                b_hh = jax.random.uniform(keys[next(ki)], (4 * H,), jnp.float32, -k, k)
                layers.append((w_ih, w_hh, b_ih + b_hh))
                d = H
            return layers

        # Raw f32 params kept for the validation reference.
        self.lstm0_raw = raw_lstm(embedding_dim)
        self.lstm1_raw = raw_lstm(input_size)

        kf = 1.0 / float(2 * H) ** 0.5
        self.fc_w_raw = jax.random.uniform(keys[next(ki)], (2 * H, vocab_size),
                                           jnp.float32, -kf, kf)
        self.fc_b_raw = jax.random.uniform(keys[next(ki)], (vocab_size,),
                                           jnp.float32, -kf, kf)

        # ---- kernel-side parameters: gate-wise lane padding H -> Hp, bf16 weights ----
        def pad_gate_cols(w):
            # (..., 4H) -> (..., 4Hp); zero bias padding keeps padded h/c lanes exactly 0
            # (sigmoid(0)=0.5 * tanh(0)=0 -> 0), so no masking is ever required.
            pad = [(0, 0)] * (w.ndim - 1) + [(0, Hp - H)]
            return jnp.concatenate(
                [jnp.pad(w[..., g * H:(g + 1) * H], pad) for g in range(4)], axis=-1)

        def pack_lstm(layers):
            out = []
            for li, (w_ih, w_hh, b) in enumerate(layers):
                w_ih = pad_gate_cols(w_ih)                              # (Din, 4Hp)
                if li > 0:
                    w_ih = jnp.pad(w_ih, ((0, Hp - H), (0, 0)))          # rows H -> Hp
                w_hh = jnp.pad(pad_gate_cols(w_hh), ((0, Hp - H), (0, 0)))  # (Hp, 4Hp)
                b = pad_gate_cols(b.reshape(1, 4 * H))                   # (1, 4Hp), f32
                out.append((w_ih.astype(jnp.bfloat16),
                            w_hh.astype(jnp.bfloat16),
                            b.astype(jnp.float32)))
            return out

        self.lstm0_p = pack_lstm(self.lstm0_raw)
        self.lstm1_p = pack_lstm(self.lstm1_raw)

        pad_v = Vp - vocab_size
        self.fc_w0 = jnp.pad(self.fc_w_raw[:H], ((0, Hp - H), (0, pad_v))).astype(jnp.bfloat16)
        self.fc_w1 = jnp.pad(self.fc_w_raw[H:], ((0, Hp - H), (0, pad_v))).astype(jnp.bfloat16)
        self.fc_b = jnp.pad(self.fc_b_raw, (0, pad_v)).reshape(1, Vp).astype(jnp.float32)

    def __call__(self, features):
        input0, input1 = features[0], features[1]
        B, T = input0.shape
        E, I = self.embedding_dim, self.input_size
        Hp, Gp, Vp = self.Hp, 4 * self.Hp, self.v_pad

        # Batch tile: sublane-aligned (>= 8 rows), capped at 256 to fill the MXU M dim
        # on v6e/v7x while bounding per-tile VMEM.  Grid over batch tiles is "parallel"
        # -> on v7x the tiles shard across the two TensorCores.
        B8 = _round_up(B, 8)
        bt = min(256, B8)
        n_bt = -(-B8 // bt)
        Btot = n_bt * bt

        # Embedding lookup kept in XLA (gather has no clean tiled BlockSpec here).
        emb = jnp.take(self.embedding, input0, axis=0)                  # (B, T, E) f32
        x0 = jnp.transpose(emb, (1, 0, 2))                              # (T, B, E)
        x1 = jnp.transpose(input1.astype(jnp.float32), (1, 0, 2))       # (T, B, I)

        def tilewise(x, d):
            # (T, B, d) -> (n_bt, T*bt, d): contiguous time-major rows per batch tile,
            # bf16 at the DMA/matmul boundary (accumulation stays f32 in-kernel).
            x = jnp.pad(x, ((0, 0), (0, Btot - B), (0, 0)))
            x = x.reshape(T, n_bt, bt, d).transpose(1, 0, 2, 3).reshape(n_bt, T * bt, d)
            return x.astype(jnp.bfloat16)

        x0 = tilewise(x0, E)
        x1 = tilewise(x1, I)

        inputs = [x0, x1]
        in_specs = [
            pl.BlockSpec((None, T * bt, E), lambda j: (j, 0, 0)),
            pl.BlockSpec((None, T * bt, I), lambda j: (j, 0, 0)),
        ]
        for (w_ih, w_hh, b) in self.lstm0_p + self.lstm1_p:
            inputs += [w_ih, w_hh, b]
            in_specs += [pl.BlockSpec(w_ih.shape, lambda j: (0, 0)),
                         pl.BlockSpec(w_hh.shape, lambda j: (0, 0)),
                         pl.BlockSpec(b.shape, lambda j: (0, 0))]
        inputs += [self.fc_w0, self.fc_w1, self.fc_b]
        in_specs += [pl.BlockSpec(self.fc_w0.shape, lambda j: (0, 0)),
                     pl.BlockSpec(self.fc_w1.shape, lambda j: (0, 0)),
                     pl.BlockSpec(self.fc_b.shape, lambda j: (0, 0))]

        out_spec = pl.BlockSpec((bt, Vp), lambda j: (j, 0))

        scratch = [
            pltpu.VMEM((T * bt, Gp), jnp.float32),    # tower-0 hoisted projections
            pltpu.VMEM((T * bt, Gp), jnp.float32),    # tower-1 hoisted projections
            pltpu.VMEM((T * bt, Hp), jnp.bfloat16),   # tower-0 inter-layer sequence
            pltpu.VMEM((T * bt, Hp), jnp.bfloat16),   # tower-1 inter-layer sequence
        ]

        # Explicit VMEM budget: double-buffered activation/out tiles + resident weights
        # + scratch, with headroom; capped at 64 MiB so the same config fits v7x.
        def _nbytes(a):
            return int(a.size) * a.dtype.itemsize
        act_bytes = 2 * (T * bt * E * 2 + T * bt * I * 2)
        w_bytes = 2 * sum(_nbytes(a) for a in inputs[2:])
        out_bytes = 2 * bt * Vp * 4
        scr_bytes = 2 * (T * bt * Gp * 4) + 2 * (T * bt * Hp * 2)
        vmem_limit = int(min(64 << 20,
                             max(int(1.5 * (act_bytes + w_bytes + out_bytes + scr_bytes)),
                                 4 << 20)))

        kernel = _make_fused_kernel(self.num_layers, T, bt, Hp)

        out_padded = pl.pallas_call(
            kernel,
            out_shape=jax.ShapeDtypeStruct((Btot, Vp), jnp.float32),
            grid_spec=pltpu.PrefetchScalarGridSpec(
                num_scalar_prefetch=0,
                grid=(n_bt,),
                in_specs=in_specs,
                out_specs=out_spec,
                scratch_shapes=scratch),
            compiler_params=pltpu.CompilerParams(
                dimension_semantics=("parallel",),
                vmem_limit_bytes=vmem_limit),
        )(*inputs)

        return out_padded[:B, :self.vocab_size]


def _reference_forward(model, input0, input1):
    """Pure-JAX reference with the SAME numerics as the kernel (bf16 matmul inputs,
    f32 accumulation/state) so it can be checked with a tight tolerance."""
    H = model.hidden_size
    bf = jnp.bfloat16

    def bdot(a, b):
        return jnp.dot(a.astype(bf), b.astype(bf), preferred_element_type=jnp.float32)

    def run(x_btd, layers):
        x = x_btd.astype(jnp.float32)
        for (w_ih, w_hh, b) in layers:
            Bc, Tc = x.shape[0], x.shape[1]
            h = jnp.zeros((Bc, H), jnp.float32)
            c = jnp.zeros((Bc, H), jnp.float32)
            outs = []
            for t in range(Tc):
                gates = bdot(x[:, t], w_ih) + bdot(h, w_hh) + b
                i_g = jax.nn.sigmoid(gates[:, :H])
                f_g = jax.nn.sigmoid(gates[:, H:2 * H])
                g_g = jnp.tanh(gates[:, 2 * H:3 * H])
                o_g = jax.nn.sigmoid(gates[:, 3 * H:])
                c = f_g * c + i_g * g_g
                h = o_g * jnp.tanh(c)
                outs.append(h)
            x = jnp.stack(outs, axis=1)
        return x

    emb = jnp.take(model.embedding, input0, axis=0)
    h0 = run(emb, model.lstm0_raw)[:, -1]
    h1 = run(input1, model.lstm1_raw)[:, -1]
    return bdot(h0, model.fc_w_raw[:H]) + bdot(h1, model.fc_w_raw[H:]) + model.fc_b_raw


if __name__ == "__main__":
    key = jax.random.PRNGKey(0)
    k_model, k_in0, k_in1 = jax.random.split(key, 3)

    input_size = 4
    hidden_size = 32
    num_layers = 2
    vocab_size = 16
    embedding_dim = 8
    B, T = 2, 8

    model = LoganomalyPallas(input_size, hidden_size, num_layers,
                             vocab_size, embedding_dim, k_model)

    input0 = jax.random.randint(k_in0, (B, T), 0, vocab_size)            # token ids
    input1 = jax.random.normal(k_in1, (B, T, input_size), jnp.float32)   # quantitative

    out = model((input0, input1))
    out = jax.block_until_ready(out)
    assert out.shape == (B, vocab_size), out.shape
    assert bool(jnp.all(jnp.isfinite(out)))

    ref = _reference_forward(model, input0, input1)
    # Tolerance sized for bf16 matmul inputs with f32 accumulation (identical casting in
    # kernel and reference; only accumulation order differs).
    max_err = float(jnp.max(jnp.abs(out - ref)))
    assert bool(jnp.allclose(out, ref, rtol=1e-3, atol=1e-3)), max_err

    print("KERNEL_OK")
</pallas_src>

<mosaic_0001>
module attributes {stable_mosaic.version = 11 : i64} {
  func.func @kernel(%arg0: i32, %arg1: memref<1x64x8xbf16, #tpu.memory_space<vmem>>, %arg2: memref<1x64x4xbf16, #tpu.memory_space<vmem>>, %arg3: memref<8x512xbf16, #tpu.memory_space<vmem>>, %arg4: memref<128x512xbf16, #tpu.memory_space<vmem>>, %arg5: memref<1x512xf32, #tpu.memory_space<vmem>>, %arg6: memref<128x512xbf16, #tpu.memory_space<vmem>>, %arg7: memref<128x512xbf16, #tpu.memory_space<vmem>>, %arg8: memref<1x512xf32, #tpu.memory_space<vmem>>, %arg9: memref<4x512xbf16, #tpu.memory_space<vmem>>, %arg10: memref<128x512xbf16, #tpu.memory_space<vmem>>, %arg11: memref<1x512xf32, #tpu.memory_space<vmem>>, %arg12: memref<128x512xbf16, #tpu.memory_space<vmem>>, %arg13: memref<128x512xbf16, #tpu.memory_space<vmem>>, %arg14: memref<1x512xf32, #tpu.memory_space<vmem>>, %arg15: memref<128x128xbf16, #tpu.memory_space<vmem>>, %arg16: memref<128x128xbf16, #tpu.memory_space<vmem>>, %arg17: memref<1x128xf32, #tpu.memory_space<vmem>>, %arg18: memref<8x128xf32, #tpu.memory_space<vmem>>, %arg19: memref<64x512xf32, #tpu.memory_space<vmem>>, %arg20: memref<64x512xf32, #tpu.memory_space<vmem>>, %arg21: memref<64x128xbf16, #tpu.memory_space<vmem>>, %arg22: memref<64x128xbf16, #tpu.memory_space<vmem>>) attributes {dimension_semantics = [#tpu.dimension_semantics<parallel>], iteration_bounds = array<i64: 1>, scalar_prefetch = 0 : i64, scratch_operands = 4 : i64, tpu.core_type = #tpu.core_type<tc>, window_params = [{transform_indices = @transform_0, window_bounds = array<i64: 1, 64, 8>}, {transform_indices = @transform_1, window_bounds = array<i64: 1, 64, 4>}, {pipeline_mode = #tpu.pipeline_mode<synchronous>, transform_indices = @transform_2, window_bounds = array<i64: 8, 512>}, {pipeline_mode = #tpu.pipeline_mode<synchronous>, transform_indices = @transform_3, window_bounds = array<i64: 128, 512>}, {pipeline_mode = #tpu.pipeline_mode<synchronous>, transform_indices = @transform_4, window_bounds = array<i64: 1, 512>}, {pipeline_mode = #tpu.pipeline_mode<synchronous>, transform_indices = @transform_5, window_bounds = array<i64: 128, 512>}, {pipeline_mode = #tpu.pipeline_mode<synchronous>, transform_indices = @transform_6, window_bounds = array<i64: 128, 512>}, {pipeline_mode = #tpu.pipeline_mode<synchronous>, transform_indices = @transform_7, window_bounds = array<i64: 1, 512>}, {pipeline_mode = #tpu.pipeline_mode<synchronous>, transform_indices = @transform_8, window_bounds = array<i64: 4, 512>}, {pipeline_mode = #tpu.pipeline_mode<synchronous>, transform_indices = @transform_9, window_bounds = array<i64: 128, 512>}, {pipeline_mode = #tpu.pipeline_mode<synchronous>, transform_indices = @transform_10, window_bounds = array<i64: 1, 512>}, {pipeline_mode = #tpu.pipeline_mode<synchronous>, transform_indices = @transform_11, window_bounds = array<i64: 128, 512>}, {pipeline_mode = #tpu.pipeline_mode<synchronous>, transform_indices = @transform_12, window_bounds = array<i64: 128, 512>}, {pipeline_mode = #tpu.pipeline_mode<synchronous>, transform_indices = @transform_13, window_bounds = array<i64: 1, 512>}, {pipeline_mode = #tpu.pipeline_mode<synchronous>, transform_indices = @transform_14, window_bounds = array<i64: 128, 128>}, {pipeline_mode = #tpu.pipeline_mode<synchronous>, transform_indices = @transform_15, window_bounds = array<i64: 128, 128>}, {pipeline_mode = #tpu.pipeline_mode<synchronous>, transform_indices = @transform_16, window_bounds = array<i64: 1, 128>}, {transform_indices = @transform_17, window_bounds = array<i64: 8, 128>}]} {
    %c0 = arith.constant 0 : index
    %c0_0 = arith.constant 0 : index
    %c0_1 = arith.constant 0 : index
    %0 = vector.load %arg1[%c0, %c0_0, %c0_1] : memref<1x64x8xbf16, #tpu.memory_space<vmem>>, vector<1x64x8xbf16>
    %1 = vector.shape_cast %0 : vector<1x64x8xbf16> to vector<64x8xbf16>
    %c0_2 = arith.constant 0 : index
    %c0_3 = arith.constant 0 : index
    %c0_4 = arith.constant 0 : index
    %2 = vector.load %arg2[%c0_2, %c0_3, %c0_4] : memref<1x64x4xbf16, #tpu.memory_space<vmem>>, vector<1x64x4xbf16>
    %3 = vector.shape_cast %2 : vector<1x64x4xbf16> to vector<64x4xbf16>
    %c0_5 = arith.constant 0 : index
    %c0_6 = arith.constant 0 : index
    %4 = vector.load %arg3[%c0_5, %c0_6] : memref<8x512xbf16, #tpu.memory_space<vmem>>, vector<8x512xbf16>
    %cst = arith.constant dense<0.000000e+00> : vector<64x512xf32>
    %5 = tpu.matmul %1, %4, %cst {dimension_numbers = #tpu.dot_dimension_numbers<[1], [0], [0], [1], [0, 0, 1, 1], [], []>} : vector<64x8xbf16>, vector<8x512xbf16>, vector<64x512xf32> -> vector<64x512xf32>
    %c0_7 = arith.constant 0 : index
    %c0_8 = arith.constant 0 : index
    %6 = vector.load %arg5[%c0_7, %c0_8] : memref<1x512xf32, #tpu.memory_space<vmem>>, vector<1x512xf32>
    %7 = vector.broadcast %6 : vector<1x512xf32> to vector<64x512xf32>
    %8 = arith.addf %5, %7 : vector<64x512xf32>
    %c0_9 = arith.constant 0 : index
    %c0_10 = arith.constant 0 : index
    %9 = vector.load %arg19[%c0_9, %c0_10] : memref<64x512xf32, #tpu.memory_space<vmem>>, vector<64x512xf32>
    tpu.vector_store %arg19[%c0_9, %c0_10], %8 {strides = array<i32>} : memref<64x512xf32, #tpu.memory_space<vmem>>, vector<64x512xf32>,
    %c0_11 = arith.constant 0 : index
    %c0_12 = arith.constant 0 : index
    %10 = vector.load %arg9[%c0_11, %c0_12] : memref<4x512xbf16, #tpu.memory_space<vmem>>, vector<4x512xbf16>
    %cst_13 = arith.constant dense<0.000000e+00> : vector<64x512xf32>
    %11 = tpu.matmul %3, %10, %cst_13 {dimension_numbers = #tpu.dot_dimension_numbers<[1], [0], [0], [1], [0, 0, 1, 1], [], []>} : vector<64x4xbf16>, vector<4x512xbf16>, vector<64x512xf32> -> vector<64x512xf32>
    %c0_14 = arith.constant 0 : index
    %c0_15 = arith.constant 0 : index
    %12 = vector.load %arg11[%c0_14, %c0_15] : memref<1x512xf32, #tpu.memory_space<vmem>>, vector<1x512xf32>
    %13 = vector.broadcast %12 : vector<1x512xf32> to vector<64x512xf32>
    %14 = arith.addf %11, %13 : vector<64x512xf32>
    %c0_16 = arith.constant 0 : index
    %c0_17 = arith.constant 0 : index
    %15 = vector.load %arg20[%c0_16, %c0_17] : memref<64x512xf32, #tpu.memory_space<vmem>>, vector<64x512xf32>
    tpu.vector_store %arg20[%c0_16, %c0_17], %14 {strides = array<i32>} : memref<64x512xf32, #tpu.memory_space<vmem>>, vector<64x512xf32>,
    %c0_18 = arith.constant 0 : index
    %c0_19 = arith.constant 0 : index
    %16 = vector.load %arg4[%c0_18, %c0_19] : memref<128x512xbf16, #tpu.memory_space<vmem>>, vector<128x512xbf16>
    %c0_20 = arith.constant 0 : index
    %c0_21 = arith.constant 0 : index
    %17 = vector.load %arg10[%c0_20, %c0_21] : memref<128x512xbf16, #tpu.memory_space<vmem>>, vector<128x512xbf16>
    %cst_22 = arith.constant 0.000000e+00 : f32
    %18 = vector.broadcast %cst_22 : f32 to vector<8x128xf32>
    %cst_23 = arith.constant 0.000000e+00 : f32
    %19 = vector.broadcast %cst_23 : f32 to vector<8x128xf32>
    %cst_24 = arith.constant 0.000000e+00 : f32
    %20 = vector.broadcast %cst_24 : f32 to vector<8x128xf32>
    %cst_25 = arith.constant 0.000000e+00 : f32
    %21 = vector.broadcast %cst_25 : f32 to vector<8x128xf32>
    %c0_26 = arith.constant 0 : index
    %c0_27 = arith.constant 0 : index
    %22 = vector.load %arg19[%c0_26, %c0_27] : memref<64x512xf32, #tpu.memory_space<vmem>>, vector<8x512xf32>
    %23 = arith.truncf %18 : vector<8x128xf32> to vector<8x128xbf16>
    %cst_28 = arith.constant dense<0.000000e+00> : vector<8x512xf32>
    %24 = tpu.matmul %23, %16, %cst_28 {dimension_numbers = #tpu.dot_dimension_numbers<[1], [0], [0], [1], [0, 0, 1, 1], [], []>} : vector<8x128xbf16>, vector<128x512xbf16>, vector<8x512xf32> -> vector<8x512xf32>
    %25 = arith.addf %22, %24 : vector<8x512xf32>
    %c0_29 = arith.constant 0 : index
    %c0_30 = arith.constant 0 : index
    %26 = vector.load %arg20[%c0_29, %c0_30] : memref<64x512xf32, #tpu.memory_space<vmem>>, vector<8x512xf32>
    %27 = arith.truncf %20 : vector<8x128xf32> to vector<8x128xbf16>
    %cst_31 = arith.constant dense<0.000000e+00> : vector<8x512xf32>
    %28 = tpu.matmul %27, %17, %cst_31 {dimension_numbers = #tpu.dot_dimension_numbers<[1], [0], [0], [1], [0, 0, 1, 1], [], []>} : vector<8x128xbf16>, vector<128x512xbf16>, vector<8x512xf32> -> vector<8x512xf32>
    %29 = arith.addf %26, %28 : vector<8x512xf32>
    %30 = arith.negf %25 : vector<8x512xf32>
    %31 = math.exp %30 : vector<8x512xf32>
    %cst_32 = arith.constant 1.000000e+00 : f32
    %32 = vector.broadcast %cst_32 : f32 to vector<8x512xf32>
    %33 = arith.addf %32, %31 : vector<8x512xf32>
    %34 = arith.divf %32, %33 : vector<8x512xf32>
    %35 = vector.extract_strided_slice %25 {offsets = [0, 256], sizes = [8, 128], strides = [1, 1]} : vector<8x512xf32> to vector<8x128xf32>
    %36 = math.tanh %35 : vector<8x128xf32>
    %37 = vector.extract_strided_slice %34 {offsets = [0, 128], sizes = [8, 128], strides = [1, 1]} : vector<8x512xf32> to vector<8x128xf32>
    %38 = arith.mulf %37, %19 : vector<8x128xf32>
    %39 = vector.extract_strided_slice %34 {offsets = [0, 0], sizes = [8, 128], strides = [1, 1]} : vector<8x512xf32> to vector<8x128xf32>
    %40 = arith.mulf %39, %36 : vector<8x128xf32>
    %41 = arith.addf %38, %40 : vector<8x128xf32>
    %42 = vector.extract_strided_slice %34 {offsets = [0, 384], sizes = [8, 128], strides = [1, 1]} : vector<8x512xf32> to vector<8x128xf32>
    %43 = math.tanh %41 : vector<8x128xf32>
    %44 = arith.mulf %42, %43 : vector<8x128xf32>
    %45 = arith.negf %29 : vector<8x512xf32>
    %46 = math.exp %45 : vector<8x512xf32>
    %cst_33 = arith.constant 1.000000e+00 : f32
    %47 = vector.broadcast %cst_33 : f32 to vector<8x512xf32>
    %48 = arith.addf %47, %46 : vector<8x512xf32>
    %49 = arith.divf %47, %48 : vector<8x512xf32>
    %50 = vector.extract_strided_slice %29 {offsets = [0, 256], sizes = [8, 128], strides = [1, 1]} : vector<8x512xf32> to vector<8x128xf32>
    %51 = math.tanh %50 : vector<8x128xf32>
    %52 = vector.extract_strided_slice %49 {offsets = [0, 128], sizes = [8, 128], strides = [1, 1]} : vector<8x512xf32> to vector<8x128xf32>
    %53 = arith.mulf %52, %21 : vector<8x128xf32>
    %54 = vector.extract_strided_slice %49 {offsets = [0, 0], sizes = [8, 128], strides = [1, 1]} : vector<8x512xf32> to vector<8x128xf32>
    %55 = arith.mulf %54, %51 : vector<8x128xf32>
    %56 = arith.addf %53, %55 : vector<8x128xf32>
    %57 = vector.extract_strided_slice %49 {offsets = [0, 384], sizes = [8, 128], strides = [1, 1]} : vector<8x512xf32> to vector<8x128xf32>
    %58 = math.tanh %56 : vector<8x128xf32>
    %59 = arith.mulf %57, %58 : vector<8x128xf32>
    %60 = arith.truncf %44 : vector<8x128xf32> to vector<8x128xbf16>
    %c0_34 = arith.constant 0 : index
    %c0_35 = arith.constant 0 : index
    %61 = vector.load %arg21[%c0_34, %c0_35] : memref<64x128xbf16, #tpu.memory_space<vmem>>, vector<8x128xbf16>
    tpu.vector_store %arg21[%c0_34, %c0_35], %60 {strides = array<i32>} : memref<64x128xbf16, #tpu.memory_space<vmem>>, vector<8x128xbf16>,
    %62 = arith.truncf %59 : vector<8x128xf32> to vector<8x128xbf16>
    %c0_36 = arith.constant 0 : index
    %c0_37 = arith.constant 0 : index
    %63 = vector.load %arg22[%c0_36, %c0_37] : memref<64x128xbf16, #tpu.memory_space<vmem>>, vector<8x128xbf16>
    tpu.vector_store %arg22[%c0_36, %c0_37], %62 {strides = array<i32>} : memref<64x128xbf16, #tpu.memory_space<vmem>>, vector<8x128xbf16>,
    %c8 = arith.constant 8 : index
    %c0_38 = arith.constant 0 : index
    %64 = vector.load %arg19[%c8, %c0_38] : memref<64x512xf32, #tpu.memory_space<vmem>>, vector<8x512xf32>
    %65 = arith.truncf %44 : vector<8x128xf32> to vector<8x128xbf16>
    %cst_39 = arith.constant dense<0.000000e+00> : vector<8x512xf32>
    %66 = tpu.matmul %65, %16, %cst_39 {dimension_numbers = #tpu.dot_dimension_numbers<[1], [0], [0], [1], [0, 0, 1, 1], [], []>} : vector<8x128xbf16>, vector<128x512xbf16>, vector<8x512xf32> -> vector<8x512xf32>
    %67 = arith.addf %64, %66 : vector<8x512xf32>
    %c8_40 = arith.constant 8 : index
    %c0_41 = arith.constant 0 : index
    %68 = vector.load %arg20[%c8_40, %c0_41] : memref<64x512xf32, #tpu.memory_space<vmem>>, vector<8x512xf32>
    %69 = arith.truncf %59 : vector<8x128xf32> to vector<8x128xbf16>
    %cst_42 = arith.constant dense<0.000000e+00> : vector<8x512xf32>
    %70 = tpu.matmul %69, %17, %cst_42 {dimension_numbers = #tpu.dot_dimension_numbers<[1], [0], [0], [1], [0, 0, 1, 1], [], []>} : vector<8x128xbf16>, vector<128x512xbf16>, vector<8x512xf32> -> vector<8x512xf32>
    %71 = arith.addf %68, %70 : vector<8x512xf32>
    %72 = arith.negf %67 : vector<8x512xf32>
    %73 = math.exp %72 : vector<8x512xf32>
    %cst_43 = arith.constant 1.000000e+00 : f32
    %74 = vector.broadcast %cst_43 : f32 to vector<8x512xf32>
    %75 = arith.addf %74, %73 : vector<8x512xf32>
    %76 = arith.divf %74, %75 : vector<8x512xf32>
    %77 = vector.extract_strided_slice %67 {offsets = [0, 256], sizes = [8, 128], strides = [1, 1]} : vector<8x512xf32> to vector<8x128xf32>
    %78 = math.tanh %77 : vector<8x128xf32>
    %79 = vector.extract_strided_slice %76 {offsets = [0, 128], sizes = [8, 128], strides = [1, 1]} : vector<8x512xf32> to vector<8x128xf32>
    %80 = arith.mulf %79, %41 : vector<8x128xf32>
    %81 = vector.extract_strided_slice %76 {offsets = [0, 0], sizes = [8, 128], strides = [1, 1]} : vector<8x512xf32> to vector<8x128xf32>
    %82 = arith.mulf %81, %78 : vector<8x128xf32>
    %83 = arith.addf %80, %82 : vector<8x128xf32>
    %84 = vector.extract_strided_slice %76 {offsets = [0, 384], sizes = [8, 128], strides = [1, 1]} : vector<8x512xf32> to vector<8x128xf32>
    %85 = math.tanh %83 : vector<8x128xf32>
    %86 = arith.mulf %84, %85 : vector<8x128xf32>
    %87 = arith.negf %71 : vector<8x512xf32>
    %88 = math.exp %87 : vector<8x512xf32>
    %cst_44 = arith.constant 1.000000e+00 : f32
    %89 = vector.broadcast %cst_44 : f32 to vector<8x512xf32>
    %90 = arith.addf %89, %88 : vector<8x512xf32>
    %91 = arith.divf %89, %90 : vector<8x512xf32>
    %92 = vector.extract_strided_slice %71 {offsets = [0, 256], sizes = [8, 128], strides = [1, 1]} : vector<8x512xf32> to vector<8x128xf32>
    %93 = math.tanh %92 : vector<8x128xf32>
    %94 = vector.extract_strided_slice %91 {offsets = [0, 128], sizes = [8, 128], strides = [1, 1]} : vector<8x512xf32> to vector<8x128xf32>
    %95 = arith.mulf %94, %56 : vector<8x128xf32>
    %96 = vector.extract_strided_slice %91 {offsets = [0, 0], sizes = [8, 128], strides = [1, 1]} : vector<8x512xf32> to vector<8x128xf32>
    %97 = arith.mulf %96, %93 : vector<8x128xf32>
    %98 = arith.addf %95, %97 : vector<8x128xf32>
    %99 = vector.extract_strided_slice %91 {offsets = [0, 384], sizes = [8, 128], strides = [1, 1]} : vector<8x512xf32> to vector<8x128xf32>
    %100 = math.tanh %98 : vector<8x128xf32>
    %101 = arith.mulf %99, %100 : vector<8x128xf32>
    %102 = arith.truncf %86 : vector<8x128xf32> to vector<8x128xbf16>
    %c8_45 = arith.constant 8 : index
    %c0_46 = arith.constant 0 : index
    %103 = vector.load %arg21[%c8_45, %c0_46] : memref<64x128xbf16, #tpu.memory_space<vmem>>, vector<8x128xbf16>
    tpu.vector_store %arg21[%c8_45, %c0_46], %102 {strides = array<i32>} : memref<64x128xbf16, #tpu.memory_space<vmem>>, vector<8x128xbf16>,
    %104 = arith.truncf %101 : vector<8x128xf32> to vector<8x128xbf16>
    %c8_47 = arith.constant 8 : index
    %c0_48 = arith.constant 0 : index
    %105 = vector.load %arg22[%c8_47, %c0_48] : memref<64x128xbf16, #tpu.memory_space<vmem>>, vector<8x128xbf16>
    tpu.vector_store %arg22[%c8_47, %c0_48], %104 {strides = array<i32>} : memref<64x128xbf16, #tpu.memory_space<vmem>>, vector<8x128xbf16>,
    %c16 = arith.constant 16 : index
    %c0_49 = arith.constant 0 : index
    %106 = vector.load %arg19[%c16, %c0_49] : memref<64x512xf32, #tpu.memory_space<vmem>>, vector<8x512xf32>
    %107 = arith.truncf %86 : vector<8x128xf32> to vector<8x128xbf16>
    %cst_50 = arith.constant dense<0.000000e+00> : vector<8x512xf32>
    %108 = tpu.matmul %107, %16, %cst_50 {dimension_numbers = #tpu.dot_dimension_numbers<[1], [0], [0], [1], [0, 0, 1, 1], [], []>} : vector<8x128xbf16>, vector<128x512xbf16>, vector<8x512xf32> -> vector<8x512xf32>
    %109 = arith.addf %106, %108 : vector<8x512xf32>
    %c16_51 = arith.constant 16 : index
    %c0_52 = arith.constant 0 : index
    %110 = vector.load %arg20[%c16_51, %c0_52] : memref<64x512xf32, #tpu.memory_space<vmem>>, vector<8x512xf32>
    %111 = arith.truncf %101 : vector<8x128xf32> to vector<8x128xbf16>
    %cst_53 = arith.constant dense<0.000000e+00> : vector<8x512xf32>
    %112 = tpu.matmul %111, %17, %cst_53 {dimension_numbers = #tpu.dot_dimension_numbers<[1], [0], [0], [1], [0, 0, 1, 1], [], []>} : vector<8x128xbf16>, vector<128x512xbf16>, vector<8x512xf32> -> vector<8x512xf32>
    %113 = arith.addf %110, %112 : vector<8x512xf32>
    %114 = arith.negf %109 : vector<8x512xf32>
    %115 = math.exp %114 : vector<8x512xf32>
    %cst_54 = arith.constant 1.000000e+00 : f32
    %116 = vector.broadcast %cst_54 : f32 to vector<8x512xf32>
    %117 = arith.addf %116, %115 : vector<8x512xf32>
    %118 = arith.divf %116, %117 : vector<8x512xf32>
    %119 = vector.extract_strided_slice %109 {offsets = [0, 256], sizes = [8, 128], strides = [1, 1]} : vector<8x512xf32> to vector<8x128xf32>
    %120 = math.tanh %119 : vector<8x128xf32>
    %121 = vector.extract_strided_slice %118 {offsets = [0, 128], sizes = [8, 128], strides = [1, 1]} : vector<8x512xf32> to vector<8x128xf32>
    %122 = arith.mulf %121, %83 : vector<8x128xf32>
    %123 = vector.extract_strided_slice %118 {offsets = [0, 0], sizes = [8, 128], strides = [1, 1]} : vector<8x512xf32> to vector<8x128xf32>
    %124 = arith.mulf %123, %120 : vector<8x128xf32>
    %125 = arith.addf %122, %124 : vector<8x128xf32>
    %126 = vector.extract_strided_slice %118 {offsets = [0, 384], sizes = [8, 128], strides = [1, 1]} : vector<8x512xf32> to vector<8x128xf32>
    %127 = math.tanh %125 : vector<8x128xf32>
    %128 = arith.mulf %126, %127 : vector<8x128xf32>
    %129 = arith.negf %113 : vector<8x512xf32>
    %130 = math.exp %129 : vector<8x512xf32>
    %cst_55 = arith.constant 1.000000e+00 : f32
    %131 = vector.broadcast %cst_55 : f32 to vector<8x512xf32>
    %132 = arith.addf %131, %130 : vector<8x512xf32>
    %133 = arith.divf %131, %132 : vector<8x512xf32>
    %134 = vector.extract_strided_slice %113 {offsets = [0, 256], sizes = [8, 128], strides = [1, 1]} : vector<8x512xf32> to vector<8x128xf32>
    %135 = math.tanh %134 : vector<8x128xf32>
    %136 = vector.extract_strided_slice %133 {offsets = [0, 128], sizes = [8, 128], strides = [1, 1]} : vector<8x512xf32> to vector<8x128xf32>
    %137 = arith.mulf %136, %98 : vector<8x128xf32>
    %138 = vector.extract_strided_slice %133 {offsets = [0, 0], sizes = [8, 128], strides = [1, 1]} : vector<8x512xf32> to vector<8x128xf32>
    %139 = arith.mulf %138, %135 : vector<8x128xf32>
    %140 = arith.addf %137, %139 : vector<8x128xf32>
    %141 = vector.extract_strided_slice %133 {offsets = [0, 384], sizes = [8, 128], strides = [1, 1]} : vector<8x512xf32> to vector<8x128xf32>
    %142 = math.tanh %140 : vector<8x128xf32>
    %143 = arith.mulf %141, %142 : vector<8x128xf32>
    %144 = arith.truncf %128 : vector<8x128xf32> to vector<8x128xbf16>
    %c16_56 = arith.constant 16 : index
    %c0_57 = arith.constant 0 : index
    %145 = vector.load %arg21[%c16_56, %c0_57] : memref<64x128xbf16, #tpu.memory_space<vmem>>, vector<8x128xbf16>
    tpu.vector_store %arg21[%c16_56, %c0_57], %144 {strides = array<i32>} : memref<64x128xbf16, #tpu.memory_space<vmem>>, vector<8x128xbf16>,
    %146 = arith.truncf %143 : vector<8x128xf32> to vector<8x128xbf16>
    %c16_58 = arith.constant 16 : index
    %c0_59 = arith.constant 0 : index
    %147 = vector.load %arg22[%c16_58, %c0_59] : memref<64x128xbf16, #tpu.memory_space<vmem>>, vector<8x128xbf16>
    tpu.vector_store %arg22[%c16_58, %c0_59], %146 {strides = array<i32>} : memref<64x128xbf16, #tpu.memory_space<vmem>>, vector<8x128xbf16>,
    %c24 = arith.constant 24 : index
    %c0_60 = arith.constant 0 : index
    %148 = vector.load %arg19[%c24, %c0_60] : memref<64x512xf32, #tpu.memory_space<vmem>>, vector<8x512xf32>
    %149 = arith.truncf %128 : vector<8x128xf32> to vector<8x128xbf16>
    %cst_61 = arith.constant dense<0.000000e+00> : vector<8x512xf32>
    %150 = tpu.matmul %149, %16, %cst_61 {dimension_numbers = #tpu.dot_dimension_numbers<[1], [0], [0], [1], [0, 0, 1, 1], [], []>} : vector<8x128xbf16>, vector<128x512xbf16>, vector<8x512xf32> -> vector<8x512xf32>
    %151 = arith.addf %148, %150 : vector<8x512xf32>
    %c24_62 = arith.constant 24 : index
    %c0_63 = arith.constant 0 : index
    %152 = vector.load %arg20[%c24_62, %c0_63] : memref<64x512xf32, #tpu.memory_space<vmem>>, vector<8x512xf32>
    %153 = arith.truncf %143 : vector<8x128xf32> to vector<8x128xbf16>
    %cst_64 = arith.constant dense<0.000000e+00> : vector<8x512xf32>
    %154 = tpu.matmul %153, %17, %cst_64 {dimension_numbers = #tpu.dot_dimension_numbers<[1], [0], [0], [1], [0, 0, 1, 1], [], []>} : vector<8x128xbf16>, vector<128x512xbf16>, vector<8x512xf32> -> vector<8x512xf32>
    %155 = arith.addf %152, %154 : vector<8x512xf32>
    %156 = arith.negf %151 : vector<8x512xf32>
    %157 = math.exp %156 : vector<8x512xf32>
    %cst_65 = arith.constant 1.000000e+00 : f32
    %158 = vector.broadcast %cst_65 : f32 to vector<8x512xf32>
    %159 = arith.addf %158, %157 : vector<8x512xf32>
    %160 = arith.divf %158, %159 : vector<8x512xf32>
    %161 = vector.extract_strided_slice %151 {offsets = [0, 256], sizes = [8, 128], strides = [1, 1]} : vector<8x512xf32> to vector<8x128xf32>
    %162 = math.tanh %161 : vector<8x128xf32>
    %163 = vector.extract_strided_slice %160 {offsets = [0, 128], sizes = [8, 128], strides = [1, 1]} : vector<8x512xf32> to vector<8x128xf32>
    %164 = arith.mulf %163, %125 : vector<8x128xf32>
    %165 = vector.extract_strided_slice %160 {offsets = [0, 0], sizes = [8, 128], strides = [1, 1]} : vector<8x512xf32> to vector<8x128xf32>
    %166 = arith.mulf %165, %162 : vector<8x128xf32>
    %167 = arith.addf %164, %166 : vector<8x128xf32>
    %168 = vector.extract_strided_slice %160 {offsets = [0, 384], sizes = [8, 128], strides = [1, 1]} : vector<8x512xf32> to vector<8x128xf32>
    %169 = math.tanh %167 : vector<8x128xf32>
    %170 = arith.mulf %168, %169 : vector<8x128xf32>
    %171 = arith.negf %155 : vector<8x512xf32>
    %172 = math.exp %171 : vector<8x512xf32>
    %cst_66 = arith.constant 1.000000e+00 : f32
    %173 = vector.broadcast %cst_66 : f32 to vector<8x512xf32>
    %174 = arith.addf %173, %172 : vector<8x512xf32>
    %175 = arith.divf %173, %174 : vector<8x512xf32>
    %176 = vector.extract_strided_slice %155 {offsets = [0, 256], sizes = [8, 128], strides = [1, 1]} : vector<8x512xf32> to vector<8x128xf32>
    %177 = math.tanh %176 : vector<8x128xf32>
    %178 = vector.extract_strided_slice %175 {offsets = [0, 128], sizes = [8, 128], strides = [1, 1]} : vector<8x512xf32> to vector<8x128xf32>
    %179 = arith.mulf %178, %140 : vector<8x128xf32>
    %180 = vector.extract_strided_slice %175 {offsets = [0, 0], sizes = [8, 128], strides = [1, 1]} : vector<8x512xf32> to vector<8x128xf32>
    %181 = arith.mulf %180, %177 : vector<8x128xf32>
    %182 = arith.addf %179, %181 : vector<8x128xf32>
    %183 = vector.extract_strided_slice %175 {offsets = [0, 384], sizes = [8, 128], strides = [1, 1]} : vector<8x512xf32> to vector<8x128xf32>
    %184 = math.tanh %182 : vector<8x128xf32>
    %185 = arith.mulf %183, %184 : vector<8x128xf32>
    %186 = arith.truncf %170 : vector<8x128xf32> to vector<8x128xbf16>
    %c24_67 = arith.constant 24 : index
    %c0_68 = arith.constant 0 : index
    %187 = vector.load %arg21[%c24_67, %c0_68] : memref<64x128xbf16, #tpu.memory_space<vmem>>, vector<8x128xbf16>
    tpu.vector_store %arg21[%c24_67, %c0_68], %186 {strides = array<i32>} : memref<64x128xbf16, #tpu.memory_space<vmem>>, vector<8x128xbf16>,
    %188 = arith.truncf %185 : vector<8x128xf32> to vector<8x128xbf16>
    %c24_69 = arith.constant 24 : index
    %c0_70 = arith.constant 0 : index
    %189 = vector.load %arg22[%c24_69, %c0_70] : memref<64x128xbf16, #tpu.memory_space<vmem>>, vector<8x128xbf16>
    tpu.vector_store %arg22[%c24_69, %c0_70], %188 {strides = array<i32>} : memref<64x128xbf16, #tpu.memory_space<vmem>>, vector<8x128xbf16>,
    %c32 = arith.constant 32 : index
    %c0_71 = arith.constant 0 : index
    %190 = vector.load %arg19[%c32, %c0_71] : memref<64x512xf32, #tpu.memory_space<vmem>>, vector<8x512xf32>
    %191 = arith.truncf %170 : vector<8x128xf32> to vector<8x128xbf16>
    %cst_72 = arith.constant dense<0.000000e+00> : vector<8x512xf32>
    %192 = tpu.matmul %191, %16, %cst_72 {dimension_numbers = #tpu.dot_dimension_numbers<[1], [0], [0], [1], [0, 0, 1, 1], [], []>} : vector<8x128xbf16>, vector<128x512xbf16>, vector<8x512xf32> -> vector<8x512xf32>
    %193 = arith.addf %190, %192 : vector<8x512xf32>
    %c32_73 = arith.constant 32 : index
    %c0_74 = arith.constant 0 : index
    %194 = vector.load %arg20[%c32_73, %c0_74] : memref<64x512xf32, #tpu.memory_space<vmem>>, vector<8x512xf32>
    %195 = arith.truncf %185 : vector<8x128xf32> to vector<8x128xbf16>
    %cst_75 = arith.constant dense<0.000000e+00> : vector<8x512xf32>
    %196 = tpu.matmul %195, %17, %cst_75 {dimension_numbers = #tpu.dot_dimension_numbers<[1], [0], [0], [1], [0, 0, 1, 1], [], []>} : vector<8x128xbf16>, vector<128x512xbf16>, vector<8x512xf32> -> vector<8x512xf32>
    %197 = arith.addf %194, %196 : vector<8x512xf32>
    %198 = arith.negf %193 : vector<8x512xf32>
    %199 = math.exp %198 : vector<8x512xf32>
    %cst_76 = arith.constant 1.000000e+00 : f32
    %200 = vector.broadcast %cst_76 : f32 to vector<8x512xf32>
    %201 = arith.addf %200, %199 : vector<8x512xf32>
    %202 = arith.divf %200, %201 : vector<8x512xf32>
    %203 = vector.extract_strided_slice %193 {offsets = [0, 256], sizes = [8, 128], strides = [1, 1]} : vector<8x512xf32> to vector<8x128xf32>
    %204 = math.tanh %203 : vector<8x128xf32>
    %205 = vector.extract_strided_slice %202 {offsets = [0, 128], sizes = [8, 128], strides = [1, 1]} : vector<8x512xf32> to vector<8x128xf32>
    %206 = arith.mulf %205, %167 : vector<8x128xf32>
    %207 = vector.extract_strided_slice %202 {offsets = [0, 0], sizes = [8, 128], strides = [1, 1]} : vector<8x512xf32> to vector<8x128xf32>
    %208 = arith.mulf %207, %204 : vector<8x128xf32>
    %209 = arith.addf %206, %208 : vector<8x128xf32>
    %210 = vector.extract_strided_slice %202 {offsets = [0, 384], sizes = [8, 128], strides = [1, 1]} : vector<8x512xf32> to vector<8x128xf32>
    %211 = math.tanh %209 : vector<8x128xf32>
    %212 = arith.mulf %210, %211 : vector<8x128xf32>
    %213 = arith.negf %197 : vector<8x512xf32>
    %214 = math.exp %213 : vector<8x512xf32>
    %cst_77 = arith.constant 1.000000e+00 : f32
    %215 = vector.broadcast %cst_77 : f32 to vector<8x512xf32>
    %216 = arith.addf %215, %214 : vector<8x512xf32>
    %217 = arith.divf %215, %216 : vector<8x512xf32>
    %218 = vector.extract_strided_slice %197 {offsets = [0, 256], sizes = [8, 128], strides = [1, 1]} : vector<8x512xf32> to vector<8x128xf32>
    %219 = math.tanh %218 : vector<8x128xf32>
    %220 = vector.extract_strided_slice %217 {offsets = [0, 128], sizes = [8, 128], strides = [1, 1]} : vector<8x512xf32> to vector<8x128xf32>
    %221 = arith.mulf %220, %182 : vector<8x128xf32>
    %222 = vector.extract_strided_slice %217 {offsets = [0, 0], sizes = [8, 128], strides = [1, 1]} : vector<8x512xf32> to vector<8x128xf32>
    %223 = arith.mulf %222, %219 : vector<8x128xf32>
    %224 = arith.addf %221, %223 : vector<8x128xf32>
    %225 = vector.extract_strided_slice %217 {offsets = [0, 384], sizes = [8, 128], strides = [1, 1]} : vector<8x512xf32> to vector<8x128xf32>
    %226 = math.tanh %224 : vector<8x128xf32>
    %227 = arith.mulf %225, %226 : vector<8x128xf32>
    %228 = arith.truncf %212 : vector<8x128xf32> to vector<8x128xbf16>
    %c32_78 = arith.constant 32 : index
    %c0_79 = arith.constant 0 : index
    %229 = vector.load %arg21[%c32_78, %c0_79] : memref<64x128xbf16, #tpu.memory_space<vmem>>, vector<8x128xbf16>
    tpu.vector_store %arg21[%c32_78, %c0_79], %228 {strides = array<i32>} : memref<64x128xbf16, #tpu.memory_space<vmem>>, vector<8x128xbf16>,
    %230 = arith.truncf %227 : vector<8x128xf32> to vector<8x128xbf16>
    %c32_80 = arith.constant 32 : index
    %c0_81 = arith.constant 0 : index
    %231 = vector.load %arg22[%c32_80, %c0_81] : memref<64x128xbf16, #tpu.memory_space<vmem>>, vector<8x128xbf16>
    tpu.vector_store %arg22[%c32_80, %c0_81], %230 {strides = array<i32>} : memref<64x128xbf16, #tpu.memory_space<vmem>>, vector<8x128xbf16>,
    %c40 = arith.constant 40 : index
    %c0_82 = arith.constant 0 : index
    %232 = vector.load %arg19[%c40, %c0_82] : memref<64x512xf32, #tpu.memory_space<vmem>>, vector<8x512xf32>
    %233 = arith.truncf %212 : vector<8x128xf32> to vector<8x128xbf16>
    %cst_83 = arith.constant dense<0.000000e+00> : vector<8x512xf32>
    %234 = tpu.matmul %233, %16, %cst_83 {dimension_numbers = #tpu.dot_dimension_numbers<[1], [0], [0], [1], [0, 0, 1, 1], [], []>} : vector<8x128xbf16>, vector<128x512xbf16>, vector<8x512xf32> -> vector<8x512xf32>
    %235 = arith.addf %232, %234 : vector<8x512xf32>
    %c40_84 = arith.constant 40 : index
    %c0_85 = arith.constant 0 : index
    %236 = vector.load %arg20[%c40_84, %c0_85] : memref<64x512xf32, #tpu.memory_space<vmem>>, vector<8x512xf32>
    %237 = arith.truncf %227 : vector<8x128xf32> to vector<8x128xbf16>
    %cst_86 = arith.constant dense<0.000000e+00> : vector<8x512xf32>
    %238 = tpu.matmul %237, %17, %cst_86 {dimension_numbers = #tpu.dot_dimension_numbers<[1], [0], [0], [1], [0, 0, 1, 1], [], []>} : vector<8x128xbf16>, vector<128x512xbf16>, vector<8x512xf32> -> vector<8x512xf32>
    %239 = arith.addf %236, %238 : vector<8x512xf32>
    %240 = arith.negf %235 : vector<8x512xf32>
    %241 = math.exp %240 : vector<8x512xf32>
    %cst_87 = arith.constant 1.000000e+00 : f32
    %242 = vector.broadcast %cst_87 : f32 to vector<8x512xf32>
    %243 = arith.addf %242, %241 : vector<8x512xf32>
    %244 = arith.divf %242, %243 : vector<8x512xf32>
    %245 = vector.extract_strided_slice %235 {offsets = [0, 256], sizes = [8, 128], strides = [1, 1]} : vector<8x512xf32> to vector<8x128xf32>
    %246 = math.tanh %245 : vector<8x128xf32>
    %247 = vector.extract_strided_slice %244 {offsets = [0, 128], sizes = [8, 128], strides = [1, 1]} : vector<8x512xf32> to vector<8x128xf32>
    %248 = arith.mulf %247, %209 : vector<8x128xf32>
    %249 = vector.extract_strided_slice %244 {offsets = [0, 0], sizes = [8, 128], strides = [1, 1]} : vector<8x512xf32> to vector<8x128xf32>
    %250 = arith.mulf %249, %246 : vector<8x128xf32>
    %251 = arith.addf %248, %250 : vector<8x128xf32>
    %252 = vector.extract_strided_slice %244 {offsets = [0, 384], sizes = [8, 128], strides = [1, 1]} : vector<8x512xf32> to vector<8x128xf32>
    %253 = math.tanh %251 : vector<8x128xf32>
    %254 = arith.mulf %252, %253 : vector<8x128xf32>
    %255 = arith.negf %239 : vector<8x512xf32>
    %256 = math.exp %255 : vector<8x512xf32>
    %cst_88 = arith.constant 1.000000e+00 : f32
    %257 = vector.broadcast %cst_88 : f32 to vector<8x512xf32>
    %258 = arith.addf %257, %256 : vector<8x512xf32>
    %259 = arith.divf %257, %258 : vector<8x512xf32>
    %260 = vector.extract_strided_slice %239 {offsets = [0, 256], sizes = [8, 128], strides = [1, 1]} : vector<8x512xf32> to vector<8x128xf32>
    %261 = math.tanh %260 : vector<8x128xf32>
    %262 = vector.extract_strided_slice %259 {offsets = [0, 128], sizes = [8, 128], strides = [1, 1]} : vector<8x512xf32> to vector<8x128xf32>
    %263 = arith.mulf %262, %224 : vector<8x128xf32>
    %264 = vector.extract_strided_slice %259 {offsets = [0, 0], sizes = [8, 128], strides = [1, 1]} : vector<8x512xf32> to vector<8x128xf32>
    %265 = arith.mulf %264, %261 : vector<8x128xf32>
    %266 = arith.addf %263, %265 : vector<8x128xf32>
    %267 = vector.extract_strided_slice %259 {offsets = [0, 384], sizes = [8, 128], strides = [1, 1]} : vector<8x512xf32> to vector<8x128xf32>
    %268 = math.tanh %266 : vector<8x128xf32>
    %269 = arith.mulf %267, %268 : vector<8x128xf32>
    %270 = arith.truncf %254 : vector<8x128xf32> to vector<8x128xbf16>
    %c40_89 = arith.constant 40 : index
    %c0_90 = arith.constant 0 : index
    %271 = vector.load %arg21[%c40_89, %c0_90] : memref<64x128xbf16, #tpu.memory_space<vmem>>, vector<8x128xbf16>
    tpu.vector_store %arg21[%c40_89, %c0_90], %270 {strides = array<i32>} : memref<64x128xbf16, #tpu.memory_space<vmem>>, vector<8x128xbf16>,
    %272 = arith.truncf %269 : vector<8x128xf32> to vector<8x128xbf16>
    %c40_91 = arith.constant 40 : index
    %c0_92 = arith.constant 0 : index
    %273 = vector.load %arg22[%c40_91, %c0_92] : memref<64x128xbf16, #tpu.memory_space<vmem>>, vector<8x128xbf16>
    tpu.vector_store %arg22[%c40_91, %c0_92], %272 {strides = array<i32>} : memref<64x128xbf16, #tpu.memory_space<vmem>>, vector<8x128xbf16>,
    %c48 = arith.constant 48 : index
    %c0_93 = arith.constant 0 : index
    %274 = vector.load %arg19[%c48, %c0_93] : memref<64x512xf32, #tpu.memory_space<vmem>>, vector<8x512xf32>
    %275 = arith.truncf %254 : vector<8x128xf32> to vector<8x128xbf16>
    %cst_94 = arith.constant dense<0.000000e+00> : vector<8x512xf32>
    %276 = tpu.matmul %275, %16, %cst_94 {dimension_numbers = #tpu.dot_dimension_numbers<[1], [0], [0], [1], [0, 0, 1, 1], [], []>} : vector<8x128xbf16>, vector<128x512xbf16>, vector<8x512xf32> -> vector<8x512xf32>
    %277 = arith.addf %274, %276 : vector<8x512xf32>
    %c48_95 = arith.constant 48 : index
    %c0_96 = arith.constant 0 : index
    %278 = vector.load %arg20[%c48_95, %c0_96] : memref<64x512xf32, #tpu.memory_space<vmem>>, vector<8x512xf32>
    %279 = arith.truncf %269 : vector<8x128xf32> to vector<8x128xbf16>
    %cst_97 = arith.constant dense<0.000000e+00> : vector<8x512xf32>
    %280 = tpu.matmul %279, %17, %cst_97 {dimension_numbers = #tpu.dot_dimension_numbers<[1], [0], [0], [1], [0, 0, 1, 1], [], []>} : vector<8x128xbf16>, vector<128x512xbf16>, vector<8x512xf32> -> vector<8x512xf32>
    %281 = arith.addf %278, %280 : vector<8x512xf32>
    %282 = arith.negf %277 : vector<8x512xf32>
    %283 = math.exp %282 : vector<8x512xf32>
    %cst_98 = arith.constant 1.000000e+00 : f32
    %284 = vector.broadcast %cst_98 : f32 to vector<8x512xf32>
    %285 = arith.addf %284, %283 : vector<8x512xf32>
    %286 = arith.divf %284, %285 : vector<8x512xf32>
    %287 = vector.extract_strided_slice %277 {offsets = [0, 256], sizes = [8, 128], strides = [1, 1]} : vector<8x512xf32> to vector<8x128xf32>
    %288 = math.tanh %287 : vector<8x128xf32>
    %289 = vector.extract_strided_slice %286 {offsets = [0, 128], sizes = [8, 128], strides = [1, 1]} : vector<8x512xf32> to vector<8x128xf32>
    %290 = arith.mulf %289, %251 : vector<8x128xf32>
    %291 = vector.extract_strided_slice %286 {offsets = [0, 0], sizes = [8, 128], strides = [1, 1]} : vector<8x512xf32> to vector<8x128xf32>
    %292 = arith.mulf %291, %288 : vector<8x128xf32>
    %293 = arith.addf %290, %292 : vector<8x128xf32>
    %294 = vector.extract_strided_slice %286 {offsets = [0, 384], sizes = [8, 128], strides = [1, 1]} : vector<8x512xf32> to vector<8x128xf32>
    %295 = math.tanh %293 : vector<8x128xf32>
    %296 = arith.mulf %294, %295 : vector<8x128xf32>
    %297 = arith.negf %281 : vector<8x512xf32>
    %298 = math.exp %297 : vector<8x512xf32>
    %cst_99 = arith.constant 1.000000e+00 : f32
    %299 = vector.broadcast %cst_99 : f32 to vector<8x512xf32>
    %300 = arith.addf %299, %298 : vector<8x512xf32>
    %301 = arith.divf %299, %300 : vector<8x512xf32>
    %302 = vector.extract_strided_slice %281 {offsets = [0, 256], sizes = [8, 128], strides = [1, 1]} : vector<8x512xf32> to vector<8x128xf32>
    %303 = math.tanh %302 : vector<8x128xf32>
    %304 = vector.extract_strided_slice %301 {offsets = [0, 128], sizes = [8, 128], strides = [1, 1]} : vector<8x512xf32> to vector<8x128xf32>
    %305 = arith.mulf %304, %266 : vector<8x128xf32>
    %306 = vector.extract_strided_slice %301 {offsets = [0, 0], sizes = [8, 128], strides = [1, 1]} : vector<8x512xf32> to vector<8x128xf32>
    %307 = arith.mulf %306, %303 : vector<8x128xf32>
    %308 = arith.addf %305, %307 : vector<8x128xf32>
    %309 = vector.extract_strided_slice %301 {offsets = [0, 384], sizes = [8, 128], strides = [1, 1]} : vector<8x512xf32> to vector<8x128xf32>
    %310 = math.tanh %308 : vector<8x128xf32>
    %311 = arith.mulf %309, %310 : vector<8x128xf32>
    %312 = arith.truncf %296 : vector<8x128xf32> to vector<8x128xbf16>
    %c48_100 = arith.constant 48 : index
    %c0_101 = arith.constant 0 : index
    %313 = vector.load %arg21[%c48_100, %c0_101] : memref<64x128xbf16, #tpu.memory_space<vmem>>, vector<8x128xbf16>
    tpu.vector_store %arg21[%c48_100, %c0_101], %312 {strides = array<i32>} : memref<64x128xbf16, #tpu.memory_space<vmem>>, vector<8x128xbf16>,
    %314 = arith.truncf %311 : vector<8x128xf32> to vector<8x128xbf16>
    %c48_102 = arith.constant 48 : index
    %c0_103 = arith.constant 0 : index
    %315 = vector.load %arg22[%c48_102, %c0_103] : memref<64x128xbf16, #tpu.memory_space<vmem>>, vector<8x128xbf16>
    tpu.vector_store %arg22[%c48_102, %c0_103], %314 {strides = array<i32>} : memref<64x128xbf16, #tpu.memory_space<vmem>>, vector<8x128xbf16>,
    %c56 = arith.constant 56 : index
    %c0_104 = arith.constant 0 : index
    %316 = vector.load %arg19[%c56, %c0_104] : memref<64x512xf32, #tpu.memory_space<vmem>>, vector<8x512xf32>
    %317 = arith.truncf %296 : vector<8x128xf32> to vector<8x128xbf16>
    %cst_105 = arith.constant dense<0.000000e+00> : vector<8x512xf32>
    %318 = tpu.matmul %317, %16, %cst_105 {dimension_numbers = #tpu.dot_dimension_numbers<[1], [0], [0], [1], [0, 0, 1, 1], [], []>} : vector<8x128xbf16>, vector<128x512xbf16>, vector<8x512xf32> -> vector<8x512xf32>
    %319 = arith.addf %316, %318 : vector<8x512xf32>
    %c56_106 = arith.constant 56 : index
    %c0_107 = arith.constant 0 : index
    %320 = vector.load %arg20[%c56_106, %c0_107] : memref<64x512xf32, #tpu.memory_space<vmem>>, vector<8x512xf32>
    %321 = arith.truncf %311 : vector<8x128xf32> to vector<8x128xbf16>
    %cst_108 = arith.constant dense<0.000000e+00> : vector<8x512xf32>
    %322 = tpu.matmul %321, %17, %cst_108 {dimension_numbers = #tpu.dot_dimension_numbers<[1], [0], [0], [1], [0, 0, 1, 1], [], []>} : vector<8x128xbf16>, vector<128x512xbf16>, vector<8x512xf32> -> vector<8x512xf32>
    %323 = arith.addf %320, %322 : vector<8x512xf32>
    %324 = arith.negf %319 : vector<8x512xf32>
    %325 = math.exp %324 : vector<8x512xf32>
    %cst_109 = arith.constant 1.000000e+00 : f32
    %326 = vector.broadcast %cst_109 : f32 to vector<8x512xf32>
    %327 = arith.addf %326, %325 : vector<8x512xf32>
    %328 = arith.divf %326, %327 : vector<8x512xf32>
    %329 = vector.extract_strided_slice %319 {offsets = [0, 256], sizes = [8, 128], strides = [1, 1]} : vector<8x512xf32> to vector<8x128xf32>
    %330 = math.tanh %329 : vector<8x128xf32>
    %331 = vector.extract_strided_slice %328 {offsets = [0, 128], sizes = [8, 128], strides = [1, 1]} : vector<8x512xf32> to vector<8x128xf32>
    %332 = arith.mulf %331, %293 : vector<8x128xf32>
    %333 = vector.extract_strided_slice %328 {offsets = [0, 0], sizes = [8, 128], strides = [1, 1]} : vector<8x512xf32> to vector<8x128xf32>
    %334 = arith.mulf %333, %330 : vector<8x128xf32>
    %335 = arith.addf %332, %334 : vector<8x128xf32>
    %336 = vector.extract_strided_slice %328 {offsets = [0, 384], sizes = [8, 128], strides = [1, 1]} : vector<8x512xf32> to vector<8x128xf32>
    %337 = math.tanh %335 : vector<8x128xf32>
    %338 = arith.mulf %336, %337 : vector<8x128xf32>
    %339 = arith.negf %323 : vector<8x512xf32>
    %340 = math.exp %339 : vector<8x512xf32>
    %cst_110 = arith.constant 1.000000e+00 : f32
    %341 = vector.broadcast %cst_110 : f32 to vector<8x512xf32>
    %342 = arith.addf %341, %340 : vector<8x512xf32>
    %343 = arith.divf %341, %342 : vector<8x512xf32>
    %344 = vector.extract_strided_slice %323 {offsets = [0, 256], sizes = [8, 128], strides = [1, 1]} : vector<8x512xf32> to vector<8x128xf32>
    %345 = math.tanh %344 : vector<8x128xf32>
    %346 = vector.extract_strided_slice %343 {offsets = [0, 128], sizes = [8, 128], strides = [1, 1]} : vector<8x512xf32> to vector<8x128xf32>
    %347 = arith.mulf %346, %308 : vector<8x128xf32>
    %348 = vector.extract_strided_slice %343 {offsets = [0, 0], sizes = [8, 128], strides = [1, 1]} : vector<8x512xf32> to vector<8x128xf32>
    %349 = arith.mulf %348, %345 : vector<8x128xf32>
    %350 = arith.addf %347, %349 : vector<8x128xf32>
    %351 = vector.extract_strided_slice %343 {offsets = [0, 384], sizes = [8, 128], strides = [1, 1]} : vector<8x512xf32> to vector<8x128xf32>
    %352 = math.tanh %350 : vector<8x128xf32>
    %353 = arith.mulf %351, %352 : vector<8x128xf32>
    %354 = arith.truncf %338 : vector<8x128xf32> to vector<8x128xbf16>
    %c56_111 = arith.constant 56 : index
    %c0_112 = arith.constant 0 : index
    %355 = vector.load %arg21[%c56_111, %c0_112] : memref<64x128xbf16, #tpu.memory_space<vmem>>, vector<8x128xbf16>
    tpu.vector_store %arg21[%c56_111, %c0_112], %354 {strides = array<i32>} : memref<64x128xbf16, #tpu.memory_space<vmem>>, vector<8x128xbf16>,
    %356 = arith.truncf %353 : vector<8x128xf32> to vector<8x128xbf16>
    %c56_113 = arith.constant 56 : index
    %c0_114 = arith.constant 0 : index
    %357 = vector.load %arg22[%c56_113, %c0_114] : memref<64x128xbf16, #tpu.memory_space<vmem>>, vector<8x128xbf16>
    tpu.vector_store %arg22[%c56_113, %c0_114], %356 {strides = array<i32>} : memref<64x128xbf16, #tpu.memory_space<vmem>>, vector<8x128xbf16>,
    %c0_115 = arith.constant 0 : index
    %c0_116 = arith.constant 0 : index
    %358 = vector.load %arg21[%c0_115, %c0_116] : memref<64x128xbf16, #tpu.memory_space<vmem>>, vector<64x128xbf16>
    %c0_117 = arith.constant 0 : index
    %c0_118 = arith.constant 0 : index
    %359 = vector.load %arg22[%c0_117, %c0_118] : memref<64x128xbf16, #tpu.memory_space<vmem>>, vector<64x128xbf16>
    %c0_119 = arith.constant 0 : index
    %c0_120 = arith.constant 0 : index
    %360 = vector.load %arg6[%c0_119, %c0_120] : memref<128x512xbf16, #tpu.memory_space<vmem>>, vector<128x512xbf16>
    %cst_121 = arith.constant dense<0.000000e+00> : vector<64x512xf32>
    %361 = tpu.matmul %358, %360, %cst_121 {dimension_numbers = #tpu.dot_dimension_numbers<[1], [0], [0], [1], [0, 0, 1, 1], [], []>} : vector<64x128xbf16>, vector<128x512xbf16>, vector<64x512xf32> -> vector<64x512xf32>
    %c0_122 = arith.constant 0 : index
    %c0_123 = arith.constant 0 : index
    %362 = vector.load %arg8[%c0_122, %c0_123] : memref<1x512xf32, #tpu.memory_space<vmem>>, vector<1x512xf32>
    %363 = vector.broadcast %362 : vector<1x512xf32> to vector<64x512xf32>
    %364 = arith.addf %361, %363 : vector<64x512xf32>
    %c0_124 = arith.constant 0 : index
    %c0_125 = arith.constant 0 : index
    %365 = vector.load %arg19[%c0_124, %c0_125] : memref<64x512xf32, #tpu.memory_space<vmem>>, vector<64x512xf32>
    tpu.vector_store %arg19[%c0_124, %c0_125], %364 {strides = array<i32>} : memref<64x512xf32, #tpu.memory_space<vmem>>, vector<64x512xf32>,
    %c0_126 = arith.constant 0 : index
    %c0_127 = arith.constant 0 : index
    %366 = vector.load %arg12[%c0_126, %c0_127] : memref<128x512xbf16, #tpu.memory_space<vmem>>, vector<128x512xbf16>
    %cst_128 = arith.constant dense<0.000000e+00> : vector<64x512xf32>
    %367 = tpu.matmul %359, %366, %cst_128 {dimension_numbers = #tpu.dot_dimension_numbers<[1], [0], [0], [1], [0, 0, 1, 1], [], []>} : vector<64x128xbf16>, vector<128x512xbf16>, vector<64x512xf32> -> vector<64x512xf32>
    %c0_129 = arith.constant 0 : index
    %c0_130 = arith.constant 0 : index
    %368 = vector.load %arg14[%c0_129, %c0_130] : memref<1x512xf32, #tpu.memory_space<vmem>>, vector<1x512xf32>
    %369 = vector.broadcast %368 : vector<1x512xf32> to vector<64x512xf32>
    %370 = arith.addf %367, %369 : vector<64x512xf32>
    %c0_131 = arith.constant 0 : index
    %c0_132 = arith.constant 0 : index
    %371 = vector.load %arg20[%c0_131, %c0_132] : memref<64x512xf32, #tpu.memory_space<vmem>>, vector<64x512xf32>
    tpu.vector_store %arg20[%c0_131, %c0_132], %370 {strides = array<i32>} : memref<64x512xf32, #tpu.memory_space<vmem>>, vector<64x512xf32>,
    %c0_133 = arith.constant 0 : index
    %c0_134 = arith.constant 0 : index
    %372 = vector.load %arg7[%c0_133, %c0_134] : memref<128x512xbf16, #tpu.memory_space<vmem>>, vector<128x512xbf16>
    %c0_135 = arith.constant 0 : index
    %c0_136 = arith.constant 0 : index
    %373 = vector.load %arg13[%c0_135, %c0_136] : memref<128x512xbf16, #tpu.memory_space<vmem>>, vector<128x512xbf16>
    %cst_137 = arith.constant 0.000000e+00 : f32
    %374 = vector.broadcast %cst_137 : f32 to vector<8x128xf32>
    %cst_138 = arith.constant 0.000000e+00 : f32
    %375 = vector.broadcast %cst_138 : f32 to vector<8x128xf32>
    %cst_139 = arith.constant 0.000000e+00 : f32
    %376 = vector.broadcast %cst_139 : f32 to vector<8x128xf32>
    %cst_140 = arith.constant 0.000000e+00 : f32
    %377 = vector.broadcast %cst_140 : f32 to vector<8x128xf32>
    %c0_141 = arith.constant 0 : index
    %c0_142 = arith.constant 0 : index
    %378 = vector.load %arg19[%c0_141, %c0_142] : memref<64x512xf32, #tpu.memory_space<vmem>>, vector<8x512xf32>
    %379 = arith.truncf %374 : vector<8x128xf32> to vector<8x128xbf16>
    %cst_143 = arith.constant dense<0.000000e+00> : vector<8x512xf32>
    %380 = tpu.matmul %379, %372, %cst_143 {dimension_numbers = #tpu.dot_dimension_numbers<[1], [0], [0], [1], [0, 0, 1, 1], [], []>} : vector<8x128xbf16>, vector<128x512xbf16>, vector<8x512xf32> -> vector<8x512xf32>
    %381 = arith.addf %378, %380 : vector<8x512xf32>
    %c0_144 = arith.constant 0 : index
    %c0_145 = arith.constant 0 : index
    %382 = vector.load %arg20[%c0_144, %c0_145] : memref<64x512xf32, #tpu.memory_space<vmem>>, vector<8x512xf32>
    %383 = arith.truncf %376 : vector<8x128xf32> to vector<8x128xbf16>
    %cst_146 = arith.constant dense<0.000000e+00> : vector<8x512xf32>
    %384 = tpu.matmul %383, %373, %cst_146 {dimension_numbers = #tpu.dot_dimension_numbers<[1], [0], [0], [1], [0, 0, 1, 1], [], []>} : vector<8x128xbf16>, vector<128x512xbf16>, vector<8x512xf32> -> vector<8x512xf32>
    %385 = arith.addf %382, %384 : vector<8x512xf32>
    %386 = arith.negf %381 : vector<8x512xf32>
    %387 = math.exp %386 : vector<8x512xf32>
    %cst_147 = arith.constant 1.000000e+00 : f32
    %388 = vector.broadcast %cst_147 : f32 to vector<8x512xf32>
    %389 = arith.addf %388, %387 : vector<8x512xf32>
    %390 = arith.divf %388, %389 : vector<8x512xf32>
    %391 = vector.extract_strided_slice %381 {offsets = [0, 256], sizes = [8, 128], strides = [1, 1]} : vector<8x512xf32> to vector<8x128xf32>
    %392 = math.tanh %391 : vector<8x128xf32>
    %393 = vector.extract_strided_slice %390 {offsets = [0, 128], sizes = [8, 128], strides = [1, 1]} : vector<8x512xf32> to vector<8x128xf32>
    %394 = arith.mulf %393, %375 : vector<8x128xf32>
    %395 = vector.extract_strided_slice %390 {offsets = [0, 0], sizes = [8, 128], strides = [1, 1]} : vector<8x512xf32> to vector<8x128xf32>
    %396 = arith.mulf %395, %392 : vector<8x128xf32>
    %397 = arith.addf %394, %396 : vector<8x128xf32>
    %398 = vector.extract_strided_slice %390 {offsets = [0, 384], sizes = [8, 128], strides = [1, 1]} : vector<8x512xf32> to vector<8x128xf32>
    %399 = math.tanh %397 : vector<8x128xf32>
    %400 = arith.mulf %398, %399 : vector<8x128xf32>
    %401 = arith.negf %385 : vector<8x512xf32>
    %402 = math.exp %401 : vector<8x512xf32>
    %cst_148 = arith.constant 1.000000e+00 : f32
    %403 = vector.broadcast %cst_148 : f32 to vector<8x512xf32>
    %404 = arith.addf %403, %402 : vector<8x512xf32>
    %405 = arith.divf %403, %404 : vector<8x512xf32>
    %406 = vector.extract_strided_slice %385 {offsets = [0, 256], sizes = [8, 128], strides = [1, 1]} : vector<8x512xf32> to vector<8x128xf32>
    %407 = math.tanh %406 : vector<8x128xf32>
    %408 = vector.extract_strided_slice %405 {offsets = [0, 128], sizes = [8, 128], strides = [1, 1]} : vector<8x512xf32> to vector<8x128xf32>
    %409 = arith.mulf %408, %377 : vector<8x128xf32>
    %410 = vector.extract_strided_slice %405 {offsets = [0, 0], sizes = [8, 128], strides = [1, 1]} : vector<8x512xf32> to vector<8x128xf32>
    %411 = arith.mulf %410, %407 : vector<8x128xf32>
    %412 = arith.addf %409, %411 : vector<8x128xf32>
    %413 = vector.extract_strided_slice %405 {offsets = [0, 384], sizes = [8, 128], strides = [1, 1]} : vector<8x512xf32> to vector<8x128xf32>
    %414 = math.tanh %412 : vector<8x128xf32>
    %415 = arith.mulf %413, %414 : vector<8x128xf32>
    %c8_149 = arith.constant 8 : index
    %c0_150 = arith.constant 0 : index
    %416 = vector.load %arg19[%c8_149, %c0_150] : memref<64x512xf32, #tpu.memory_space<vmem>>, vector<8x512xf32>
    %417 = arith.truncf %400 : vector<8x128xf32> to vector<8x128xbf16>
    %cst_151 = arith.constant dense<0.000000e+00> : vector<8x512xf32>
    %418 = tpu.matmul %417, %372, %cst_151 {dimension_numbers = #tpu.dot_dimension_numbers<[1], [0], [0], [1], [0, 0, 1, 1], [], []>} : vector<8x128xbf16>, vector<128x512xbf16>, vector<8x512xf32> -> vector<8x512xf32>
    %419 = arith.addf %416, %418 : vector<8x512xf32>
    %c8_152 = arith.constant 8 : index
    %c0_153 = arith.constant 0 : index
    %420 = vector.load %arg20[%c8_152, %c0_153] : memref<64x512xf32, #tpu.memory_space<vmem>>, vector<8x512xf32>
    %421 = arith.truncf %415 : vector<8x128xf32> to vector<8x128xbf16>
    %cst_154 = arith.constant dense<0.000000e+00> : vector<8x512xf32>
    %422 = tpu.matmul %421, %373, %cst_154 {dimension_numbers = #tpu.dot_dimension_numbers<[1], [0], [0], [1], [0, 0, 1, 1], [], []>} : vector<8x128xbf16>, vector<128x512xbf16>, vector<8x512xf32> -> vector<8x512xf32>
    %423 = arith.addf %420, %422 : vector<8x512xf32>
    %424 = arith.negf %419 : vector<8x512xf32>
    %425 = math.exp %424 : vector<8x512xf32>
    %cst_155 = arith.constant 1.000000e+00 : f32
    %426 = vector.broadcast %cst_155 : f32 to vector<8x512xf32>
    %427 = arith.addf %426, %425 : vector<8x512xf32>
    %428 = arith.divf %426, %427 : vector<8x512xf32>
    %429 = vector.extract_strided_slice %419 {offsets = [0, 256], sizes = [8, 128], strides = [1, 1]} : vector<8x512xf32> to vector<8x128xf32>
    %430 = math.tanh %429 : vector<8x128xf32>
    %431 = vector.extract_strided_slice %428 {offsets = [0, 128], sizes = [8, 128], strides = [1, 1]} : vector<8x512xf32> to vector<8x128xf32>
    %432 = arith.mulf %431, %397 : vector<8x128xf32>
    %433 = vector.extract_strided_slice %428 {offsets = [0, 0], sizes = [8, 128], strides = [1, 1]} : vector<8x512xf32> to vector<8x128xf32>
    %434 = arith.mulf %433, %430 : vector<8x128xf32>
    %435 = arith.addf %432, %434 : vector<8x128xf32>
    %436 = vector.extract_strided_slice %428 {offsets = [0, 384], sizes = [8, 128], strides = [1, 1]} : vector<8x512xf32> to vector<8x128xf32>
    %437 = math.tanh %435 : vector<8x128xf32>
    %438 = arith.mulf %436, %437 : vector<8x128xf32>
    %439 = arith.negf %423 : vector<8x512xf32>
    %440 = math.exp %439 : vector<8x512xf32>
    %cst_156 = arith.constant 1.000000e+00 : f32
    %441 = vector.broadcast %cst_156 : f32 to vector<8x512xf32>
    %442 = arith.addf %441, %440 : vector<8x512xf32>
    %443 = arith.divf %441, %442 : vector<8x512xf32>
    %444 = vector.extract_strided_slice %423 {offsets = [0, 256], sizes = [8, 128], strides = [1, 1]} : vector<8x512xf32> to vector<8x128xf32>
    %445 = math.tanh %444 : vector<8x128xf32>
    %446 = vector.extract_strided_slice %443 {offsets = [0, 128], sizes = [8, 128], strides = [1, 1]} : vector<8x512xf32> to vector<8x128xf32>
    %447 = arith.mulf %446, %412 : vector<8x128xf32>
    %448 = vector.extract_strided_slice %443 {offsets = [0, 0], sizes = [8, 128], strides = [1, 1]} : vector<8x512xf32> to vector<8x128xf32>
    %449 = arith.mulf %448, %445 : vector<8x128xf32>
    %450 = arith.addf %447, %449 : vector<8x128xf32>
    %451 = vector.extract_strided_slice %443 {offsets = [0, 384], sizes = [8, 128], strides = [1, 1]} : vector<8x512xf32> to vector<8x128xf32>
    %452 = math.tanh %450 : vector<8x128xf32>
    %453 = arith.mulf %451, %452 : vector<8x128xf32>
    %c16_157 = arith.constant 16 : index
    %c0_158 = arith.constant 0 : index
    %454 = vector.load %arg19[%c16_157, %c0_158] : memref<64x512xf32, #tpu.memory_space<vmem>>, vector<8x512xf32>
    %455 = arith.truncf %438 : vector<8x128xf32> to vector<8x128xbf16>
    %cst_159 = arith.constant dense<0.000000e+00> : vector<8x512xf32>
    %456 = tpu.matmul %455, %372, %cst_159 {dimension_numbers = #tpu.dot_dimension_numbers<[1], [0], [0], [1], [0, 0, 1, 1], [], []>} : vector<8x128xbf16>, vector<128x512xbf16>, vector<8x512xf32> -> vector<8x512xf32>
    %457 = arith.addf %454, %456 : vector<8x512xf32>
    %c16_160 = arith.constant 16 : index
    %c0_161 = arith.constant 0 : index
    %458 = vector.load %arg20[%c16_160, %c0_161] : memref<64x512xf32, #tpu.memory_space<vmem>>, vector<8x512xf32>
    %459 = arith.truncf %453 : vector<8x128xf32> to vector<8x128xbf16>
    %cst_162 = arith.constant dense<0.000000e+00> : vector<8x512xf32>
    %460 = tpu.matmul %459, %373, %cst_162 {dimension_numbers = #tpu.dot_dimension_numbers<[1], [0], [0], [1], [0, 0, 1, 1], [], []>} : vector<8x128xbf16>, vector<128x512xbf16>, vector<8x512xf32> -> vector<8x512xf32>
    %461 = arith.addf %458, %460 : vector<8x512xf32>
    %462 = arith.negf %457 : vector<8x512xf32>
    %463 = math.exp %462 : vector<8x512xf32>
    %cst_163 = arith.constant 1.000000e+00 : f32
    %464 = vector.broadcast %cst_163 : f32 to vector<8x512xf32>
    %465 = arith.addf %464, %463 : vector<8x512xf32>
    %466 = arith.divf %464, %465 : vector<8x512xf32>
    %467 = vector.extract_strided_slice %457 {offsets = [0, 256], sizes = [8, 128], strides = [1, 1]} : vector<8x512xf32> to vector<8x128xf32>
    %468 = math.tanh %467 : vector<8x128xf32>
    %469 = vector.extract_strided_slice %466 {offsets = [0, 128], sizes = [8, 128], strides = [1, 1]} : vector<8x512xf32> to vector<8x128xf32>
    %470 = arith.mulf %469, %435 : vector<8x128xf32>
    %471 = vector.extract_strided_slice %466 {offsets = [0, 0], sizes = [8, 128], strides = [1, 1]} : vector<8x512xf32> to vector<8x128xf32>
    %472 = arith.mulf %471, %468 : vector<8x128xf32>
    %473 = arith.addf %470, %472 : vector<8x128xf32>
    %474 = vector.extract_strided_slice %466 {offsets = [0, 384], sizes = [8, 128], strides = [1, 1]} : vector<8x512xf32> to vector<8x128xf32>
    %475 = math.tanh %473 : vector<8x128xf32>
    %476 = arith.mulf %474, %475 : vector<8x128xf32>
    %477 = arith.negf %461 : vector<8x512xf32>
    %478 = math.exp %477 : vector<8x512xf32>
    %cst_164 = arith.constant 1.000000e+00 : f32
    %479 = vector.broadcast %cst_164 : f32 to vector<8x512xf32>
    %480 = arith.addf %479, %478 : vector<8x512xf32>
    %481 = arith.divf %479, %480 : vector<8x512xf32>
    %482 = vector.extract_strided_slice %461 {offsets = [0, 256], sizes = [8, 128], strides = [1, 1]} : vector<8x512xf32> to vector<8x128xf32>
    %483 = math.tanh %482 : vector<8x128xf32>
    %484 = vector.extract_strided_slice %481 {offsets = [0, 128], sizes = [8, 128], strides = [1, 1]} : vector<8x512xf32> to vector<8x128xf32>
    %485 = arith.mulf %484, %450 : vector<8x128xf32>
    %486 = vector.extract_strided_slice %481 {offsets = [0, 0], sizes = [8, 128], strides = [1, 1]} : vector<8x512xf32> to vector<8x128xf32>
    %487 = arith.mulf %486, %483 : vector<8x128xf32>
    %488 = arith.addf %485, %487 : vector<8x128xf32>
    %489 = vector.extract_strided_slice %481 {offsets = [0, 384], sizes = [8, 128], strides = [1, 1]} : vector<8x512xf32> to vector<8x128xf32>
    %490 = math.tanh %488 : vector<8x128xf32>
    %491 = arith.mulf %489, %490 : vector<8x128xf32>
    %c24_165 = arith.constant 24 : index
    %c0_166 = arith.constant 0 : index
    %492 = vector.load %arg19[%c24_165, %c0_166] : memref<64x512xf32, #tpu.memory_space<vmem>>, vector<8x512xf32>
    %493 = arith.truncf %476 : vector<8x128xf32> to vector<8x128xbf16>
    %cst_167 = arith.constant dense<0.000000e+00> : vector<8x512xf32>
    %494 = tpu.matmul %493, %372, %cst_167 {dimension_numbers = #tpu.dot_dimension_numbers<[1], [0], [0], [1], [0, 0, 1, 1], [], []>} : vector<8x128xbf16>, vector<128x512xbf16>, vector<8x512xf32> -> vector<8x512xf32>
    %495 = arith.addf %492, %494 : vector<8x512xf32>
    %c24_168 = arith.constant 24 : index
    %c0_169 = arith.constant 0 : index
    %496 = vector.load %arg20[%c24_168, %c0_169] : memref<64x512xf32, #tpu.memory_space<vmem>>, vector<8x512xf32>
    %497 = arith.truncf %491 : vector<8x128xf32> to vector<8x128xbf16>
    %cst_170 = arith.constant dense<0.000000e+00> : vector<8x512xf32>
    %498 = tpu.matmul %497, %373, %cst_170 {dimension_numbers = #tpu.dot_dimension_numbers<[1], [0], [0], [1], [0, 0, 1, 1], [], []>} : vector<8x128xbf16>, vector<128x512xbf16>, vector<8x512xf32> -> vector<8x512xf32>
    %499 = arith.addf %496, %498 : vector<8x512xf32>
    %500 = arith.negf %495 : vector<8x512xf32>
    %501 = math.exp %500 : vector<8x512xf32>
    %cst_171 = arith.constant 1.000000e+00 : f32
    %502 = vector.broadcast %cst_171 : f32 to vector<8x512xf32>
    %503 = arith.addf %502, %501 : vector<8x512xf32>
    %504 = arith.divf %502, %503 : vector<8x512xf32>
    %505 = vector.extract_strided_slice %495 {offsets = [0, 256], sizes = [8, 128], strides = [1, 1]} : vector<8x512xf32> to vector<8x128xf32>
    %506 = math.tanh %505 : vector<8x128xf32>
    %507 = vector.extract_strided_slice %504 {offsets = [0, 128], sizes = [8, 128], strides = [1, 1]} : vector<8x512xf32> to vector<8x128xf32>
    %508 = arith.mulf %507, %473 : vector<8x128xf32>
    %509 = vector.extract_strided_slice %504 {offsets = [0, 0], sizes = [8, 128], strides = [1, 1]} : vector<8x512xf32> to vector<8x128xf32>
    %510 = arith.mulf %509, %506 : vector<8x128xf32>
    %511 = arith.addf %508, %510 : vector<8x128xf32>
    %512 = vector.extract_strided_slice %504 {offsets = [0, 384], sizes = [8, 128], strides = [1, 1]} : vector<8x512xf32> to vector<8x128xf32>
    %513 = math.tanh %511 : vector<8x128xf32>
    %514 = arith.mulf %512, %513 : vector<8x128xf32>
    %515 = arith.negf %499 : vector<8x512xf32>
    %516 = math.exp %515 : vector<8x512xf32>
    %cst_172 = arith.constant 1.000000e+00 : f32
    %517 = vector.broadcast %cst_172 : f32 to vector<8x512xf32>
    %518 = arith.addf %517, %516 : vector<8x512xf32>
    %519 = arith.divf %517, %518 : vector<8x512xf32>
    %520 = vector.extract_strided_slice %499 {offsets = [0, 256], sizes = [8, 128], strides = [1, 1]} : vector<8x512xf32> to vector<8x128xf32>
    %521 = math.tanh %520 : vector<8x128xf32>
    %522 = vector.extract_strided_slice %519 {offsets = [0, 128], sizes = [8, 128], strides = [1, 1]} : vector<8x512xf32> to vector<8x128xf32>
    %523 = arith.mulf %522, %488 : vector<8x128xf32>
    %524 = vector.extract_strided_slice %519 {offsets = [0, 0], sizes = [8, 128], strides = [1, 1]} : vector<8x512xf32> to vector<8x128xf32>
    %525 = arith.mulf %524, %521 : vector<8x128xf32>
    %526 = arith.addf %523, %525 : vector<8x128xf32>
    %527 = vector.extract_strided_slice %519 {offsets = [0, 384], sizes = [8, 128], strides = [1, 1]} : vector<8x512xf32> to vector<8x128xf32>
    %528 = math.tanh %526 : vector<8x128xf32>
    %529 = arith.mulf %527, %528 : vector<8x128xf32>
    %c32_173 = arith.constant 32 : index
    %c0_174 = arith.constant 0 : index
    %530 = vector.load %arg19[%c32_173, %c0_174] : memref<64x512xf32, #tpu.memory_space<vmem>>, vector<8x512xf32>
    %531 = arith.truncf %514 : vector<8x128xf32> to vector<8x128xbf16>
    %cst_175 = arith.constant dense<0.000000e+00> : vector<8x512xf32>
    %532 = tpu.matmul %531, %372, %cst_175 {dimension_numbers = #tpu.dot_dimension_numbers<[1], [0], [0], [1], [0, 0, 1, 1], [], []>} : vector<8x128xbf16>, vector<128x512xbf16>, vector<8x512xf32> -> vector<8x512xf32>
    %533 = arith.addf %530, %532 : vector<8x512xf32>
    %c32_176 = arith.constant 32 : index
    %c0_177 = arith.constant 0 : index
    %534 = vector.load %arg20[%c32_176, %c0_177] : memref<64x512xf32, #tpu.memory_space<vmem>>, vector<8x512xf32>
    %535 = arith.truncf %529 : vector<8x128xf32> to vector<8x128xbf16>
    %cst_178 = arith.constant dense<0.000000e+00> : vector<8x512xf32>
    %536 = tpu.matmul %535, %373, %cst_178 {dimension_numbers = #tpu.dot_dimension_numbers<[1], [0], [0], [1], [0, 0, 1, 1], [], []>} : vector<8x128xbf16>, vector<128x512xbf16>, vector<8x512xf32> -> vector<8x512xf32>
    %537 = arith.addf %534, %536 : vector<8x512xf32>
    %538 = arith.negf %533 : vector<8x512xf32>
    %539 = math.exp %538 : vector<8x512xf32>
    %cst_179 = arith.constant 1.000000e+00 : f32
    %540 = vector.broadcast %cst_179 : f32 to vector<8x512xf32>
    %541 = arith.addf %540, %539 : vector<8x512xf32>
    %542 = arith.divf %540, %541 : vector<8x512xf32>
    %543 = vector.extract_strided_slice %533 {offsets = [0, 256], sizes = [8, 128], strides = [1, 1]} : vector<8x512xf32> to vector<8x128xf32>
    %544 = math.tanh %543 : vector<8x128xf32>
    %545 = vector.extract_strided_slice %542 {offsets = [0, 128], sizes = [8, 128], strides = [1, 1]} : vector<8x512xf32> to vector<8x128xf32>
    %546 = arith.mulf %545, %511 : vector<8x128xf32>
    %547 = vector.extract_strided_slice %542 {offsets = [0, 0], sizes = [8, 128], strides = [1, 1]} : vector<8x512xf32> to vector<8x128xf32>
    %548 = arith.mulf %547, %544 : vector<8x128xf32>
    %549 = arith.addf %546, %548 : vector<8x128xf32>
    %550 = vector.extract_strided_slice %542 {offsets = [0, 384], sizes = [8, 128], strides = [1, 1]} : vector<8x512xf32> to vector<8x128xf32>
    %551 = math.tanh %549 : vector<8x128xf32>
    %552 = arith.mulf %550, %551 : vector<8x128xf32>
    %553 = arith.negf %537 : vector<8x512xf32>
    %554 = math.exp %553 : vector<8x512xf32>
    %cst_180 = arith.constant 1.000000e+00 : f32
    %555 = vector.broadcast %cst_180 : f32 to vector<8x512xf32>
    %556 = arith.addf %555, %554 : vector<8x512xf32>
    %557 = arith.divf %555, %556 : vector<8x512xf32>
    %558 = vector.extract_strided_slice %537 {offsets = [0, 256], sizes = [8, 128], strides = [1, 1]} : vector<8x512xf32> to vector<8x128xf32>
    %559 = math.tanh %558 : vector<8x128xf32>
    %560 = vector.extract_strided_slice %557 {offsets = [0, 128], sizes = [8, 128], strides = [1, 1]} : vector<8x512xf32> to vector<8x128xf32>
    %561 = arith.mulf %560, %526 : vector<8x128xf32>
    %562 = vector.extract_strided_slice %557 {offsets = [0, 0], sizes = [8, 128], strides = [1, 1]} : vector<8x512xf32> to vector<8x128xf32>
    %563 = arith.mulf %562, %559 : vector<8x128xf32>
    %564 = arith.addf %561, %563 : vector<8x128xf32>
    %565 = vector.extract_strided_slice %557 {offsets = [0, 384], sizes = [8, 128], strides = [1, 1]} : vector<8x512xf32> to vector<8x128xf32>
    %566 = math.tanh %564 : vector<8x128xf32>
    %567 = arith.mulf %565, %566 : vector<8x128xf32>
    %c40_181 = arith.constant 40 : index
    %c0_182 = arith.constant 0 : index
    %568 = vector.load %arg19[%c40_181, %c0_182] : memref<64x512xf32, #tpu.memory_space<vmem>>, vector<8x512xf32>
    %569 = arith.truncf %552 : vector<8x128xf32> to vector<8x128xbf16>
    %cst_183 = arith.constant dense<0.000000e+00> : vector<8x512xf32>
    %570 = tpu.matmul %569, %372, %cst_183 {dimension_numbers = #tpu.dot_dimension_numbers<[1], [0], [0], [1], [0, 0, 1, 1], [], []>} : vector<8x128xbf16>, vector<128x512xbf16>, vector<8x512xf32> -> vector<8x512xf32>
    %571 = arith.addf %568, %570 : vector<8x512xf32>
    %c40_184 = arith.constant 40 : index
    %c0_185 = arith.constant 0 : index
    %572 = vector.load %arg20[%c40_184, %c0_185] : memref<64x512xf32, #tpu.memory_space<vmem>>, vector<8x512xf32>
    %573 = arith.truncf %567 : vector<8x128xf32> to vector<8x128xbf16>
    %cst_186 = arith.constant dense<0.000000e+00> : vector<8x512xf32>
    %574 = tpu.matmul %573, %373, %cst_186 {dimension_numbers = #tpu.dot_dimension_numbers<[1], [0], [0], [1], [0, 0, 1, 1], [], []>} : vector<8x128xbf16>, vector<128x512xbf16>, vector<8x512xf32> -> vector<8x512xf32>
    %575 = arith.addf %572, %574 : vector<8x512xf32>
    %576 = arith.negf %571 : vector<8x512xf32>
    %577 = math.exp %576 : vector<8x512xf32>
    %cst_187 = arith.constant 1.000000e+00 : f32
    %578 = vector.broadcast %cst_187 : f32 to vector<8x512xf32>
    %579 = arith.addf %578, %577 : vector<8x512xf32>
    %580 = arith.divf %578, %579 : vector<8x512xf32>
    %581 = vector.extract_strided_slice %571 {offsets = [0, 256], sizes = [8, 128], strides = [1, 1]} : vector<8x512xf32> to vector<8x128xf32>
    %582 = math.tanh %581 : vector<8x128xf32>
    %583 = vector.extract_strided_slice %580 {offsets = [0, 128], sizes = [8, 128], strides = [1, 1]} : vector<8x512xf32> to vector<8x128xf32>
    %584 = arith.mulf %583, %549 : vector<8x128xf32>
    %585 = vector.extract_strided_slice %580 {offsets = [0, 0], sizes = [8, 128], strides = [1, 1]} : vector<8x512xf32> to vector<8x128xf32>
    %586 = arith.mulf %585, %582 : vector<8x128xf32>
    %587 = arith.addf %584, %586 : vector<8x128xf32>
    %588 = vector.extract_strided_slice %580 {offsets = [0, 384], sizes = [8, 128], strides = [1, 1]} : vector<8x512xf32> to vector<8x128xf32>
    %589 = math.tanh %587 : vector<8x128xf32>
    %590 = arith.mulf %588, %589 : vector<8x128xf32>
    %591 = arith.negf %575 : vector<8x512xf32>
    %592 = math.exp %591 : vector<8x512xf32>
    %cst_188 = arith.constant 1.000000e+00 : f32
    %593 = vector.broadcast %cst_188 : f32 to vector<8x512xf32>
    %594 = arith.addf %593, %592 : vector<8x512xf32>
    %595 = arith.divf %593, %594 : vector<8x512xf32>
    %596 = vector.extract_strided_slice %575 {offsets = [0, 256], sizes = [8, 128], strides = [1, 1]} : vector<8x512xf32> to vector<8x128xf32>
    %597 = math.tanh %596 : vector<8x128xf32>
    %598 = vector.extract_strided_slice %595 {offsets = [0, 128], sizes = [8, 128], strides = [1, 1]} : vector<8x512xf32> to vector<8x128xf32>
    %599 = arith.mulf %598, %564 : vector<8x128xf32>
    %600 = vector.extract_strided_slice %595 {offsets = [0, 0], sizes = [8, 128], strides = [1, 1]} : vector<8x512xf32> to vector<8x128xf32>
    %601 = arith.mulf %600, %597 : vector<8x128xf32>
    %602 = arith.addf %599, %601 : vector<8x128xf32>
    %603 = vector.extract_strided_slice %595 {offsets = [0, 384], sizes = [8, 128], strides = [1, 1]} : vector<8x512xf32> to vector<8x128xf32>
    %604 = math.tanh %602 : vector<8x128xf32>
    %605 = arith.mulf %603, %604 : vector<8x128xf32>
    %c48_189 = arith.constant 48 : index
    %c0_190 = arith.constant 0 : index
    %606 = vector.load %arg19[%c48_189, %c0_190] : memref<64x512xf32, #tpu.memory_space<vmem>>, vector<8x512xf32>
    %607 = arith.truncf %590 : vector<8x128xf32> to vector<8x128xbf16>
    %cst_191 = arith.constant dense<0.000000e+00> : vector<8x512xf32>
    %608 = tpu.matmul %607, %372, %cst_191 {dimension_numbers = #tpu.dot_dimension_numbers<[1], [0], [0], [1], [0, 0, 1, 1], [], []>} : vector<8x128xbf16>, vector<128x512xbf16>, vector<8x512xf32> -> vector<8x512xf32>
    %609 = arith.addf %606, %608 : vector<8x512xf32>
    %c48_192 = arith.constant 48 : index
    %c0_193 = arith.constant 0 : index
    %610 = vector.load %arg20[%c48_192, %c0_193] : memref<64x512xf32, #tpu.memory_space<vmem>>, vector<8x512xf32>
    %611 = arith.truncf %605 : vector<8x128xf32> to vector<8x128xbf16>
    %cst_194 = arith.constant dense<0.000000e+00> : vector<8x512xf32>
    %612 = tpu.matmul %611, %373, %cst_194 {dimension_numbers = #tpu.dot_dimension_numbers<[1], [0], [0], [1], [0, 0, 1, 1], [], []>} : vector<8x128xbf16>, vector<128x512xbf16>, vector<8x512xf32> -> vector<8x512xf32>
    %613 = arith.addf %610, %612 : vector<8x512xf32>
    %614 = arith.negf %609 : vector<8x512xf32>
    %615 = math.exp %614 : vector<8x512xf32>
    %cst_195 = arith.constant 1.000000e+00 : f32
    %616 = vector.broadcast %cst_195 : f32 to vector<8x512xf32>
    %617 = arith.addf %616, %615 : vector<8x512xf32>
    %618 = arith.divf %616, %617 : vector<8x512xf32>
    %619 = vector.extract_strided_slice %609 {offsets = [0, 256], sizes = [8, 128], strides = [1, 1]} : vector<8x512xf32> to vector<8x128xf32>
    %620 = math.tanh %619 : vector<8x128xf32>
    %621 = vector.extract_strided_slice %618 {offsets = [0, 128], sizes = [8, 128], strides = [1, 1]} : vector<8x512xf32> to vector<8x128xf32>
    %622 = arith.mulf %621, %587 : vector<8x128xf32>
    %623 = vector.extract_strided_slice %618 {offsets = [0, 0], sizes = [8, 128], strides = [1, 1]} : vector<8x512xf32> to vector<8x128xf32>
    %624 = arith.mulf %623, %620 : vector<8x128xf32>
    %625 = arith.addf %622, %624 : vector<8x128xf32>
    %626 = vector.extract_strided_slice %618 {offsets = [0, 384], sizes = [8, 128], strides = [1, 1]} : vector<8x512xf32> to vector<8x128xf32>
    %627 = math.tanh %625 : vector<8x128xf32>
    %628 = arith.mulf %626, %627 : vector<8x128xf32>
    %629 = arith.negf %613 : vector<8x512xf32>
    %630 = math.exp %629 : vector<8x512xf32>
    %cst_196 = arith.constant 1.000000e+00 : f32
    %631 = vector.broadcast %cst_196 : f32 to vector<8x512xf32>
    %632 = arith.addf %631, %630 : vector<8x512xf32>
    %633 = arith.divf %631, %632 : vector<8x512xf32>
    %634 = vector.extract_strided_slice %613 {offsets = [0, 256], sizes = [8, 128], strides = [1, 1]} : vector<8x512xf32> to vector<8x128xf32>
    %635 = math.tanh %634 : vector<8x128xf32>
    %636 = vector.extract_strided_slice %633 {offsets = [0, 128], sizes = [8, 128], strides = [1, 1]} : vector<8x512xf32> to vector<8x128xf32>
    %637 = arith.mulf %636, %602 : vector<8x128xf32>
    %638 = vector.extract_strided_slice %633 {offsets = [0, 0], sizes = [8, 128], strides = [1, 1]} : vector<8x512xf32> to vector<8x128xf32>
    %639 = arith.mulf %638, %635 : vector<8x128xf32>
    %640 = arith.addf %637, %639 : vector<8x128xf32>
    %641 = vector.extract_strided_slice %633 {offsets = [0, 384], sizes = [8, 128], strides = [1, 1]} : vector<8x512xf32> to vector<8x128xf32>
    %642 = math.tanh %640 : vector<8x128xf32>
    %643 = arith.mulf %641, %642 : vector<8x128xf32>
    %c56_197 = arith.constant 56 : index
    %c0_198 = arith.constant 0 : index
    %644 = vector.load %arg19[%c56_197, %c0_198] : memref<64x512xf32, #tpu.memory_space<vmem>>, vector<8x512xf32>
    %645 = arith.truncf %628 : vector<8x128xf32> to vector<8x128xbf16>
    %cst_199 = arith.constant dense<0.000000e+00> : vector<8x512xf32>
    %646 = tpu.matmul %645, %372, %cst_199 {dimension_numbers = #tpu.dot_dimension_numbers<[1], [0], [0], [1], [0, 0, 1, 1], [], []>} : vector<8x128xbf16>, vector<128x512xbf16>, vector<8x512xf32> -> vector<8x512xf32>
    %647 = arith.addf %644, %646 : vector<8x512xf32>
    %c56_200 = arith.constant 56 : index
    %c0_201 = arith.constant 0 : index
    %648 = vector.load %arg20[%c56_200, %c0_201] : memref<64x512xf32, #tpu.memory_space<vmem>>, vector<8x512xf32>
    %649 = arith.truncf %643 : vector<8x128xf32> to vector<8x128xbf16>
    %cst_202 = arith.constant dense<0.000000e+00> : vector<8x512xf32>
    %650 = tpu.matmul %649, %373, %cst_202 {dimension_numbers = #tpu.dot_dimension_numbers<[1], [0], [0], [1], [0, 0, 1, 1], [], []>} : vector<8x128xbf16>, vector<128x512xbf16>, vector<8x512xf32> -> vector<8x512xf32>
    %651 = arith.addf %648, %650 : vector<8x512xf32>
    %652 = arith.negf %647 : vector<8x512xf32>
    %653 = math.exp %652 : vector<8x512xf32>
    %cst_203 = arith.constant 1.000000e+00 : f32
    %654 = vector.broadcast %cst_203 : f32 to vector<8x512xf32>
    %655 = arith.addf %654, %653 : vector<8x512xf32>
    %656 = arith.divf %654, %655 : vector<8x512xf32>
    %657 = vector.extract_strided_slice %647 {offsets = [0, 256], sizes = [8, 128], strides = [1, 1]} : vector<8x512xf32> to vector<8x128xf32>
    %658 = math.tanh %657 : vector<8x128xf32>
    %659 = vector.extract_strided_slice %656 {offsets = [0, 128], sizes = [8, 128], strides = [1, 1]} : vector<8x512xf32> to vector<8x128xf32>
    %660 = arith.mulf %659, %625 : vector<8x128xf32>
    %661 = vector.extract_strided_slice %656 {offsets = [0, 0], sizes = [8, 128], strides = [1, 1]} : vector<8x512xf32> to vector<8x128xf32>
    %662 = arith.mulf %661, %658 : vector<8x128xf32>
    %663 = arith.addf %660, %662 : vector<8x128xf32>
    %664 = vector.extract_strided_slice %656 {offsets = [0, 384], sizes = [8, 128], strides = [1, 1]} : vector<8x512xf32> to vector<8x128xf32>
    %665 = math.tanh %663 : vector<8x128xf32>
    %666 = arith.mulf %664, %665 : vector<8x128xf32>
    %667 = arith.negf %651 : vector<8x512xf32>
    %668 = math.exp %667 : vector<8x512xf32>
    %cst_204 = arith.constant 1.000000e+00 : f32
    %669 = vector.broadcast %cst_204 : f32 to vector<8x512xf32>
    %670 = arith.addf %669, %668 : vector<8x512xf32>
    %671 = arith.divf %669, %670 : vector<8x512xf32>
    %672 = vector.extract_strided_slice %651 {offsets = [0, 256], sizes = [8, 128], strides = [1, 1]} : vector<8x512xf32> to vector<8x128xf32>
    %673 = math.tanh %672 : vector<8x128xf32>
    %674 = vector.extract_strided_slice %671 {offsets = [0, 128], sizes = [8, 128], strides = [1, 1]} : vector<8x512xf32> to vector<8x128xf32>
    %675 = arith.mulf %674, %640 : vector<8x128xf32>
    %676 = vector.extract_strided_slice %671 {offsets = [0, 0], sizes = [8, 128], strides = [1, 1]} : vector<8x512xf32> to vector<8x128xf32>
    %677 = arith.mulf %676, %673 : vector<8x128xf32>
    %678 = arith.addf %675, %677 : vector<8x128xf32>
    %679 = vector.extract_strided_slice %671 {offsets = [0, 384], sizes = [8, 128], strides = [1, 1]} : vector<8x512xf32> to vector<8x128xf32>
    %680 = math.tanh %678 : vector<8x128xf32>
    %681 = arith.mulf %679, %680 : vector<8x128xf32>
    %682 = arith.truncf %666 : vector<8x128xf32> to vector<8x128xbf16>
    %c0_205 = arith.constant 0 : index
    %c0_206 = arith.constant 0 : index
    %683 = vector.load %arg15[%c0_205, %c0_206] : memref<128x128xbf16, #tpu.memory_space<vmem>>, vector<128x128xbf16>
    %cst_207 = arith.constant dense<0.000000e+00> : vector<8x128xf32>
    %684 = tpu.matmul %682, %683, %cst_207 {dimension_numbers = #tpu.dot_dimension_numbers<[1], [0], [0], [1], [0, 0, 1, 1], [], []>} : vector<8x128xbf16>, vector<128x128xbf16>, vector<8x128xf32> -> vector<8x128xf32>
    %685 = arith.truncf %681 : vector<8x128xf32> to vector<8x128xbf16>
    %c0_208 = arith.constant 0 : index
    %c0_209 = arith.constant 0 : index
    %686 = vector.load %arg16[%c0_208, %c0_209] : memref<128x128xbf16, #tpu.memory_space<vmem>>, vector<128x128xbf16>
    %cst_210 = arith.constant dense<0.000000e+00> : vector<8x128xf32>
    %687 = tpu.matmul %685, %686, %cst_210 {dimension_numbers = #tpu.dot_dimension_numbers<[1], [0], [0], [1], [0, 0, 1, 1], [], []>} : vector<8x128xbf16>, vector<128x128xbf16>, vector<8x128xf32> -> vector<8x128xf32>
    %688 = arith.addf %684, %687 : vector<8x128xf32>
    %c0_211 = arith.constant 0 : index
    %c0_212 = arith.constant 0 : index
    %689 = vector.load %arg17[%c0_211, %c0_212] : memref<1x128xf32, #tpu.memory_space<vmem>>, vector<1x128xf32>
    %690 = vector.broadcast %689 : vector<1x128xf32> to vector<8x128xf32>
    %691 = arith.addf %688, %690 : vector<8x128xf32>
    %c0_213 = arith.constant 0 : index
    %c0_214 = arith.constant 0 : index
    %692 = vector.load %arg18[%c0_213, %c0_214] : memref<8x128xf32, #tpu.memory_space<vmem>>, vector<8x128xf32>
    tpu.vector_store %arg18[%c0_213, %c0_214], %691 {strides = array<i32>} : memref<8x128xf32, #tpu.memory_space<vmem>>, vector<8x128xf32>,
    return
  }
  func.func @transform_0(%arg0: i32) -> (i32, i32, i32) {
    %c0_i32 = arith.constant 0 : i32
    %c0_i32_0 = arith.constant 0 : i32
    %c0_i32_1 = arith.constant 0 : i32
    return %arg0, %c0_i32, %c0_i32_0 : i32, i32, i32
  }
  func.func @transform_1(%arg0: i32) -> (i32, i32, i32) {
    %c0_i32 = arith.constant 0 : i32
    %c0_i32_0 = arith.constant 0 : i32
    %c0_i32_1 = arith.constant 0 : i32
    return %arg0, %c0_i32, %c0_i32_0 : i32, i32, i32
  }
  func.func @transform_2(%arg0: i32) -> (i32, i32) {
    %c0_i32 = arith.constant 0 : i32
    %c0_i32_0 = arith.constant 0 : i32
    %c0_i32_1 = arith.constant 0 : i32
    return %c0_i32, %c0_i32_0 : i32, i32
  }
  func.func @transform_3(%arg0: i32) -> (i32, i32) {
    %c0_i32 = arith.constant 0 : i32
    %c0_i32_0 = arith.constant 0 : i32
    %c0_i32_1 = arith.constant 0 : i32
    return %c0_i32, %c0_i32_0 : i32, i32
  }
  func.func @transform_4(%arg0: i32) -> (i32, i32) {
    %c0_i32 = arith.constant 0 : i32
    %c0_i32_0 = arith.constant 0 : i32
    %c0_i32_1 = arith.constant 0 : i32
    return %c0_i32, %c0_i32_0 : i32, i32
  }
  func.func @transform_5(%arg0: i32) -> (i32, i32) {
    %c0_i32 = arith.constant 0 : i32
    %c0_i32_0 = arith.constant 0 : i32
    %c0_i32_1 = arith.constant 0 : i32
    return %c0_i32, %c0_i32_0 : i32, i32
  }
  func.func @transform_6(%arg0: i32) -> (i32, i32) {
    %c0_i32 = arith.constant 0 : i32
    %c0_i32_0 = arith.constant 0 : i32
    %c0_i32_1 = arith.constant 0 : i32
    return %c0_i32, %c0_i32_0 : i32, i32
  }
  func.func @transform_7(%arg0: i32) -> (i32, i32) {
    %c0_i32 = arith.constant 0 : i32
    %c0_i32_0 = arith.constant 0 : i32
    %c0_i32_1 = arith.constant 0 : i32
    return %c0_i32, %c0_i32_0 : i32, i32
  }
  func.func @transform_8(%arg0: i32) -> (i32, i32) {
    %c0_i32 = arith.constant 0 : i32
    %c0_i32_0 = arith.constant 0 : i32
    %c0_i32_1 = arith.constant 0 : i32
    return %c0_i32, %c0_i32_0 : i32, i32
  }
  func.func @transform_9(%arg0: i32) -> (i32, i32) {
    %c0_i32 = arith.constant 0 : i32
    %c0_i32_0 = arith.constant 0 : i32
    %c0_i32_1 = arith.constant 0 : i32
    return %c0_i32, %c0_i32_0 : i32, i32
  }
  func.func @transform_10(%arg0: i32) -> (i32, i32) {
    %c0_i32 = arith.constant 0 : i32
    %c0_i32_0 = arith.constant 0 : i32
    %c0_i32_1 = arith.constant 0 : i32
    return %c0_i32, %c0_i32_0 : i32, i32
  }
  func.func @transform_11(%arg0: i32) -> (i32, i32) {
    %c0_i32 = arith.constant 0 : i32
    %c0_i32_0 = arith.constant 0 : i32
    %c0_i32_1 = arith.constant 0 : i32
    return %c0_i32, %c0_i32_0 : i32, i32
  }
  func.func @transform_12(%arg0: i32) -> (i32, i32) {
    %c0_i32 = arith.constant 0 : i32
    %c0_i32_0 = arith.constant 0 : i32
    %c0_i32_1 = arith.constant 0 : i32
    return %c0_i32, %c0_i32_0 : i32, i32
  }
  func.func @transform_13(%arg0: i32) -> (i32, i32) {
    %c0_i32 = arith.constant 0 : i32
    %c0_i32_0 = arith.constant 0 : i32
    %c0_i32_1 = arith.constant 0 : i32
    return %c0_i32, %c0_i32_0 : i32, i32
  }
  func.func @transform_14(%arg0: i32) -> (i32, i32) {
    %c0_i32 = arith.constant 0 : i32
    %c0_i32_0 = arith.constant 0 : i32
    %c0_i32_1 = arith.constant 0 : i32
    return %c0_i32, %c0_i32_0 : i32, i32
  }
  func.func @transform_15(%arg0: i32) -> (i32, i32) {
    %c0_i32 = arith.constant 0 : i32
    %c0_i32_0 = arith.constant 0 : i32
    %c0_i32_1 = arith.constant 0 : i32
    return %c0_i32, %c0_i32_0 : i32, i32
  }
  func.func @transform_16(%arg0: i32) -> (i32, i32) {
    %c0_i32 = arith.constant 0 : i32
    %c0_i32_0 = arith.constant 0 : i32
    %c0_i32_1 = arith.constant 0 : i32
    return %c0_i32, %c0_i32_0 : i32, i32
  }
  func.func @transform_17(%arg0: i32) -> (i32, i32) {
    %c0_i32 = arith.constant 0 : i32
    %c0_i32_0 = arith.constant 0 : i32
    return %arg0, %c0_i32 : i32, i32
  }
}

</mosaic_0001>

<bundles_post_ra>
// kernel: tpu_custom_call.1
= control target key start
LH: loop header
LB: loop body
LE: loop exit
PB: predicated region body
PF: predicated region fallthrough
CT: control target
= control target key end

     0   :  { %s10629_s0 = inlined_call_operand.vmem [shape: bf16[1,64,8], index: 0, kind: input, shape index: {}]   ;;  %s10630_s1 = inlined_call_operand.vmem [shape: bf16[1,64,4], index: 1, kind: input, shape index: {}]   ;;  %s10631_s2 = inlined_call_operand.vmem [shape: bf16[8,512], index: 2, kind: input, shape index: {}]   ;;  %s10632_s3 = inlined_call_operand.hbm [shape: bf16[128,512], index: 3, kind: input, shape index: {}]   ;;  %s10633_s4 = inlined_call_operand.vmem [shape: f32[1,512], index: 4, kind: input, shape index: {}]   ;;  %s10634_s5 = inlined_call_operand.hbm [shape: bf16[128,512], index: 5, kind: input, shape index: {}]   ;;  %s10635_s6 = inlined_call_operand.hbm [shape: bf16[128,512], index: 6, kind: input, shape index: {}]   ;;  %s10636_s7 = inlined_call_operand.hbm [shape: f32[1,512], index: 7, kind: input, shape index: {}]   ;;  %s10637_s8 = inlined_call_operand.vmem [shape: bf16[4,512], index: 8, kind: input, shape index: {}]   ;;  %s10638_s9 = inlined_call_operand.hbm [shape: bf16[128,512], index: 9, kind: input, shape index: {}]   ;;  %s10639_s10 = inlined_call_operand.hbm [shape: f32[1,512], index: 10, kind: input, shape index: {}]   ;;  %s10640_s11 = inlined_call_operand.hbm [shape: bf16[128,512], index: 11, kind: input, shape index: {}]   ;;  %s10641_s12 = inlined_call_operand.hbm [shape: bf16[128,512], index: 12, kind: input, shape index: {}]   ;;  %s10642_s13 = inlined_call_operand.hbm [shape: f32[1,512], index: 13, kind: input, shape index: {}]   ;;  %s10643_s14 = inlined_call_operand.vmem [shape: bf16[128,128], index: 14, kind: input, shape index: {}]   ;;  %s10644_s15 = inlined_call_operand.hbm [shape: bf16[128,128], index: 15, kind: input, shape index: {}]   ;;  %s10645_s16 = inlined_call_operand.vmem [shape: f32[1,128], index: 16, kind: input, shape index: {}]   ;;  %s10646_s17 = inlined_call_operand.hbm [shape: f32[8,128], index: 17, kind: output, shape index: {}]  }
   0x1   :  { %10823 = sst [smem:[#allocation123_spill]] %s10629_s0 }
   0x2   :  { %10824 = sst [smem:[#allocation124_spill]] %s10630_s1 }
   0x3   :  { %22 = vsyncpa [#allocation7], 0 }
   0x4   :  { %23 = vsyncpa [#allocation10], 0 }
   0x5   :  { %24 = vsyncpa [#allocation13], 0 }
   0x6   :  { %25 = vsyncpa [#allocation16], 0 }
   0x7   :  { %26 = vsyncpa [#allocation19], 0 }
   0x8   :  { %27 = vsyncpa [#allocation22], 0 }
   0x9   :  { %28 = vsyncpa [#allocation8], 0  ;;  %s8025_s24 = smov [#allocation9]   ;;  %s8026_s26 = smov [#allocation12]  }
   0xa   :  { %s54_s25 = sshll.u32 %s8025_s24, 4  ;;  %s79_s27 = sshll.u32 %s8026_s26, 4  ;;  %s55_s25 = int_to_ptr.vmem [resolvable:$true] %s54_s25  ;;  %s80_s27 = int_to_ptr.vmem [resolvable:$true] %s79_s27 }
   0xb   :  { %s7799_s28 = scalar_lea.vmem %s55_s25, 4096  ;;  %p7804_p1 = scmp.lt.s32.totalorder %s55_s25, %s55_s25 }
   0xc   :  { %p7800_p0 = scmp.ne.s32.totalorder %s55_s25, %s7799_s28  ;;  %p7805_p2 = scmp.lt.s32.totalorder %s7799_s28, %s7799_s28 }
   0xe   :  { %p7806_p3 = por %p7805_p2, %p7804_p1 }
  0x10   :  { %p7807_p4 = pnand %p7806_p3, %p7800_p0 }
  0x12   :  { %7810 = shalt.err (!%p7807_p4)
}
  0x13   :  { %s8027_s29 = smov 256   ;;  %s8028_s0 = smov 16  }
  0x14   :  { %60 = dma.hbm_to_vmem [thread:$0]  %s10634_s5, 4096, %s55_s25, [#allocation10], %s8027_s29, %s8027_s29, %s8028_s0  }
  0x15   :  { %s7819_s19 = scalar_lea.vmem %s80_s27, 64  ;;  %p7824_p6 = scmp.lt.s32.totalorder %s80_s27, %s80_s27 }
  0x16   :  { %p7820_p5 = scmp.ne.s32.totalorder %s80_s27, %s7819_s19  ;;  %p7825_p7 = scmp.lt.s32.totalorder %s7819_s19, %s7819_s19 }
  0x18   :  { %p7826_p8 = por %p7825_p7, %p7824_p6 }
  0x1a   :  { %p7827_p9 = pnand %p7826_p8, %p7820_p5 }
  0x1c   :  { %7830 = shalt.err (!%p7827_p9)
}
  0x1d   :  { %82 = dma.hbm_to_vmem [thread:$0]  %s10636_s7, 64, %s80_s27, [#allocation13]  }
  0x1e   :  { %s8029_s21 = smov [#allocation15]   ;;  %s8030_s23 = smov [#allocation18]  }
  0x1f   :  { %s103_s22 = sshll.u32 %s8029_s21, 4  ;;  %s124_s24 = sshll.u32 %s8030_s23, 4  ;;  %s104_s22 = int_to_ptr.vmem [resolvable:$true] %s103_s22  ;;  %s125_s24 = int_to_ptr.vmem [resolvable:$true] %s124_s24 }
  0x20   :  { %s7839_s26 = scalar_lea.vmem %s104_s22, 64  ;;  %p7844_p11 = scmp.lt.s32.totalorder %s104_s22, %s104_s22 }
  0x21   :  { %p7840_p10 = scmp.ne.s32.totalorder %s104_s22, %s7839_s26  ;;  %p7845_p12 = scmp.lt.s32.totalorder %s7839_s26, %s7839_s26 }
  0x23   :  { %p7846_p13 = por %p7845_p12, %p7844_p11 }
  0x25   :  { %p7847_p0 = pnand %p7846_p13, %p7840_p10 }
  0x27   :  { %7850 = shalt.err (!%p7847_p0)
}
  0x28   :  { %106 = dma.hbm_to_vmem [thread:$0]  %s10639_s10, 64, %s104_s22, [#allocation16]  }
  0x29   :  { %s7859_s28 = scalar_lea.vmem %s125_s24, 4096  ;;  %p7864_p2 = scmp.lt.s32.totalorder %s125_s24, %s125_s24 }
  0x2a   :  { %p7860_p1 = scmp.ne.s32.totalorder %s125_s24, %s7859_s28  ;;  %p7865_p3 = scmp.lt.s32.totalorder %s7859_s28, %s7859_s28 }
  0x2c   :  { %p7866_p4 = por %p7865_p3, %p7864_p2 }
  0x2e   :  { %p7867_p5 = pnand %p7866_p4, %p7860_p1 }
  0x30   :  { %7870 = shalt.err (!%p7867_p5)
}
  0x31   :  { %130 = dma.hbm_to_vmem [thread:$0]  %s10641_s12, 4096, %s125_s24, [#allocation19], %s8027_s29, %s8027_s29, %s8028_s0  }
  0x32   :  { %s8031_s30 = smov [#allocation6]   ;;  %s8032_s19 = smov [#allocation11]  }
  0x33   :  { %s40_s18 = sshll.u32 %s8031_s30, 4  ;;  %s66_s1 = sshll.u32 %s8032_s19, 4  ;;  %s41_s18 = int_to_ptr.vmem [resolvable:$true] %s40_s18  ;;  %s67_s1 = int_to_ptr.vmem [resolvable:$true] %s66_s1 }
  0x34   :  { %s7879_s10 = scalar_lea.vmem %s41_s18, 4096  ;;  %p7884_p7 = scmp.lt.s32.totalorder %s41_s18, %s41_s18 }
  0x35   :  { %p7880_p6 = scmp.ne.s32.totalorder %s41_s18, %s7879_s10  ;;  %p7885_p8 = scmp.lt.s32.totalorder %s7879_s10, %s7879_s10 }
  0x37   :  { %p7886_p9 = por %p7885_p8, %p7884_p7 }
  0x39   :  { %p7887_p10 = pnand %p7886_p9, %p7880_p6 }
  0x3b   :  { %7890 = shalt.err (!%p7887_p10)
}
  0x3c   :  { %46 = dma.hbm_to_vmem [thread:$0]  %s10632_s3, 4096, %s41_s18, [#allocation7], %s8027_s29, %s8027_s29, %s8028_s0  }
  0x3d   :  { %s7899_s12 = scalar_lea.vmem %s67_s1, 4096  ;;  %p7904_p12 = scmp.lt.s32.totalorder %s67_s1, %s67_s1 }
  0x3e   :  { %p7900_p11 = scmp.ne.s32.totalorder %s67_s1, %s7899_s12  ;;  %p7905_p13 = scmp.lt.s32.totalorder %s7899_s12, %s7899_s12 }
  0x40   :  { %p7906_p0 = por %p7905_p13, %p7904_p12 }
  0x42   :  { %p7907_p1 = pnand %p7906_p0, %p7900_p11 }
  0x44   :  { %7910 = shalt.err (!%p7907_p1)
}
  0x45   :  { %72 = dma.hbm_to_vmem [thread:$0]  %s10635_s6, 4096, %s67_s1, [#allocation10], %s8027_s29, %s8027_s29, %s8028_s0  }
  0x46   :  { %s8033_s24 = smov [#allocation14]   ;;  %s8034_s5 = smov [#allocation17]  }
  0x47   :  { %s90_s26 = sshll.u32 %s8033_s24, 4  ;;  %s112_s25 = sshll.u32 %s8034_s5, 4  ;;  %s91_s26 = int_to_ptr.vmem [resolvable:$true] %s90_s26  ;;  %s113_s25 = int_to_ptr.vmem [resolvable:$true] %s112_s25 }
  0x48   :  { %s7919_s3 = scalar_lea.vmem %s91_s26, 4096  ;;  %p7924_p3 = scmp.lt.s32.totalorder %s91_s26, %s91_s26 }
  0x49   :  { %p7920_p2 = scmp.ne.s32.totalorder %s91_s26, %s7919_s3  ;;  %p7925_p4 = scmp.lt.s32.totalorder %s7919_s3, %s7919_s3 }
  0x4b   :  { %p7926_p5 = por %p7925_p4, %p7924_p3 }
  0x4d   :  { %p7927_p6 = pnand %p7926_p5, %p7920_p2 }
  0x4f   :  { %7930 = shalt.err (!%p7927_p6)
}
  0x50   :  { %96 = dma.hbm_to_vmem [thread:$0]  %s10638_s9, 4096, %s91_s26, [#allocation13], %s8027_s29, %s8027_s29, %s8028_s0  }
  0x51   :  { %s7939_s6 = scalar_lea.vmem %s113_s25, 4096  ;;  %p7944_p8 = scmp.lt.s32.totalorder %s113_s25, %s113_s25 }
  0x52   :  { %p7940_p7 = scmp.ne.s32.totalorder %s113_s25, %s7939_s6  ;;  %p7945_p9 = scmp.lt.s32.totalorder %s7939_s6, %s7939_s6 }
  0x54   :  { %p7946_p10 = por %p7945_p9, %p7944_p8 }
  0x56   :  { %p7947_p11 = pnand %p7946_p10, %p7940_p7 }
  0x58   :  { %7950 = shalt.err (!%p7947_p11)
}
  0x59   :  { %118 = dma.hbm_to_vmem [thread:$0]  %s10640_s11, 4096, %s113_s25, [#allocation16], %s8027_s29, %s8027_s29, %s8028_s0  }
  0x5a   :  { %s8035_s18 = smov [#allocation20]   ;;  %s8036_s1 = smov [#allocation21]  }
  0x5b   :  { %s137_s19 = sshll.u32 %s8035_s18, 4  ;;  %s148_s10 = sshll.u32 %s8036_s1, 4  ;;  %s138_s19 = int_to_ptr.vmem [resolvable:$true] %s137_s19  ;;  %s149_s10 = int_to_ptr.vmem [resolvable:$true] %s148_s10 }
  0x5c   :  { %s7959_s9 = scalar_lea.vmem %s138_s19, 64  ;;  %p7964_p13 = scmp.lt.s32.totalorder %s138_s19, %s138_s19 }
  0x5d   :  { %p7960_p12 = scmp.ne.s32.totalorder %s138_s19, %s7959_s9  ;;  %p7965_p0 = scmp.lt.s32.totalorder %s7959_s9, %s7959_s9 }
  0x5f   :  { %p7966_p1 = por %p7965_p0, %p7964_p13 }
  0x61   :  { %p7967_p2 = pnand %p7966_p1, %p7960_p12 }
  0x63   :  { %7970 = shalt.err (!%p7967_p2)
}
  0x64   :  { %140 = dma.hbm_to_vmem [thread:$0]  %s10642_s13, 64, %s138_s19, [#allocation19]  }
  0x65   :  { %s7979_s12 = scalar_lea.vmem %s149_s10, 1024  ;;  %p7984_p4 = scmp.lt.s32.totalorder %s149_s10, %s149_s10 }
  0x66   :  { %p7980_p3 = scmp.ne.s32.totalorder %s149_s10, %s7979_s12  ;;  %p7985_p5 = scmp.lt.s32.totalorder %s7979_s12, %s7979_s12 }
  0x68   :  { %p7986_p6 = por %p7985_p5, %p7984_p4 }
  0x6a   :  { %p7987_p7 = pnand %p7986_p6, %p7980_p3 }
  0x6c   :  { %7990 = shalt.err (!%p7987_p7)
}
  0x6d   :  { %s8037_s11 = smov 64   ;;  %s8038_s29 = smov 4  }
  0x6e   :  { %154 = dma.hbm_to_vmem [thread:$0]  %s10644_s15, 1024, %s149_s10, [#allocation22], %s8037_s11, %s8037_s11, %s8038_s29  }
  0x6f   :  { %8011 = dma.done.wait [#allocation7], 4096  }
  0x70   :  { %8012 = vsyncadd [#allocation7], 4294963200 }
  0x71   :  { %8013 = dma.done.wait [#allocation10], 8192  }
  0x72   :  { %8014 = vsyncadd [#allocation10], 4294959104 }
  0x73   :  { %8015 = dma.done.wait [#allocation13], 4160  }
  0x74   :  { %8016 = vsyncadd [#allocation13], 4294963136 }
  0x75   :  { %8017 = dma.done.wait [#allocation16], 4160  }
  0x76   :  { %8018 = vsyncadd [#allocation16], 4294963136 }
  0x77   :  { %8019 = dma.done.wait [#allocation19], 4160  }
  0x78   :  { %8020 = vsyncadd [#allocation19], 4294963136 }
  0x79   :  { %8021 = dma.done.wait [#allocation22], 1024  }
  0x7a   :  { %8022 = vsyncadd [#allocation22], 4294966272  ;;  %v208_v0 = vlaneseq  ;;  %v10649_v1 = vmov 0   ;;  %v8040_v3 = vmov 1983009808   ;;  %v204_v7 = vld [vmem:[%s10631_s2] sm:$0xff] }
  0x7b   :  { %316 = vmatprep.mubr.bf16.mxu0 %v10649_v1  ;;  %389 = vmatprep.mubr.bf16.mxu1 %v10649_v1  ;;  %v508_v4 = vunpack.c.l.s4 %v8040_v3  ;;  %vm271_vm0 = vcmask 1043456   ;;  %v205_v8 = vld [vmem:[%s10631_s2 + $0x8] sm:$0xff]  ;;  %v6281_v9 = vcombine.high %v204_v7, %v204_v7  ;;  %v6280_v11 = vcombine.low %v204_v7, %v204_v7  ;;  %v462_v13 = vld [vmem:[%s10637_s8] sm:$0xff]  ;;  %s10825_s28 = sld [smem:[#allocation123_spill]]  ;;  %s8043_s18 = smov [#allocation23]  }
  0x7c   :  { %v8184_v2 = vshrl.u32 %v208_v0, 7  ;;  %v6283_v10 = vcombine.high %v205_v8, %v205_v8  ;;  %v6282_v12 = vcombine.low %v205_v8, %v205_v8  ;;  %vm536_vm1 = vcmask 1041408   ;;  %v8202_v24 = vld [vmem:[#allocation6 + $0xe4] ss:$16 sps:$4 sm:$0xff]   ;;  %v8206_v25 = vld [vmem:[#allocation6 + $0xec] ss:$16 sps:$4 sm:$0xff]  }
  0x7d   :  { %v509_v5 = vunpack.c.0.s8 %v508_v4  ;;  %v506_v16 = vcombine.high %v462_v13, %v462_v13  ;;  %6284 = vmatprep.subr.msk.bf16.mxu0 %vm271_vm0, %v6281_v9  ;;  %v273_v17 = vsel %vm271_vm0, %v6280_v11, 0  ;;  %vm258_vm2 = vcmask 64512   ;;  %s10826_s1 = sld [smem:[#allocation124_spill]]  ;;  %v8237_v30 = vld [vmem:[#allocation6 + $0xe0] ss:$16 sps:$4 sm:$0xff]   ;;  %s6262_s19 = sshll.u32 %s8043_s18, 4  ;;  %s6263_s19 = int_to_ptr.vmem [resolvable:$true] %s6262_s19 }
  0x7e   :  { %6289 = vmatprep.subr.msk.bf16.mxu1 %vm271_vm0, %v6283_v10  ;;  %v279_v18 = vsel %vm271_vm0, %v6282_v12, 0  ;;  %299 = vmatpush1.bf16.msra.mxu0 %v273_v17  ;;  %v8239_v31 = vld [vmem:[#allocation6 + $0xe8] ss:$16 sps:$4 sm:$0xff]   ;;  %vm523_vm3 = vcmask 31744   ;;  %v8241_v32 = vld [vmem:[#allocation6 + $0xc4] ss:$16 sps:$4 sm:$0xff]   ;;  %p7996_p9 = scmp.lt.s32.totalorder %s6263_s19, %s6263_s19 }
  0x7f   :  { %v512_v6 = vsub.s32 %v509_v5, %v8184_v2  ;;  %372 = vmatpush1.bf16.msra.mxu1 %v279_v18  ;;  %v8243_v33 = vld [vmem:[#allocation6 + $0xcc] ss:$16 sps:$4 sm:$0xff]   ;;  %v8247_v34 = vld [vmem:[#allocation6 + $0xc0] ss:$16 sps:$4 sm:$0xff]   ;;  %v8251_v35 = vld [vmem:[#allocation6 + $0xc8] ss:$16 sps:$4 sm:$0xff]  }
  0x80   :  { %v8253_v36 = vld [vmem:[#allocation6 + $0xa4] ss:$16 sps:$4 sm:$0xff]   ;;  %v8257_v37 = vld [vmem:[#allocation6 + $0xac] ss:$16 sps:$4 sm:$0xff]   ;;  %v8264_v39 = vld [vmem:[#allocation6 + $0xa0] ss:$16 sps:$4 sm:$0xff]  }
  0x81   :  { %v6702_v14 = vld [vmem:[%s10825_s28] sm:$0xff]   ;;  %v513_v15 = vrot.slane %v462_v13, %v512_v6  ;;  %v520_v20 = vrot.slane %v506_v16, %v512_v6  ;;  %v6703_v26 = vld [vmem:[%s10825_s28 + $0x8] sm:$0xff]   ;;  %v6704_v27 = vld [vmem:[%s10825_s28 + $0x10] sm:$0xff]   ;;  %vm8042_vm4 = vmmov 0  }
  0x82   :  { %6285 = vmatmul.mubr.msk.bf16.vlgmr.msra.gmra.mxu0 %vm258_vm2, %v6702_v14  ;;  %6290 = vmatmul.mubr.msk.bf16.vlgmr.msra.gmra.mxu1 %vm258_vm2, %v6702_v14  ;;  %v6706_v28 = vld [vmem:[%s10825_s28 + $0x18] sm:$0xff]   ;;  %v8270_v41 = vld [vmem:[#allocation6 + $0x84] ss:$16 sps:$4 sm:$0xff]   ;;  %v8278_v43 = vld [vmem:[#allocation6 + $0x80] ss:$16 sps:$4 sm:$0xff]  }
  0x83   :  { %v521_v19 = vcombine.high %v513_v15, %v513_v15  ;;  %v538_v21 = vsel %vm536_vm1, %v513_v15, 0  ;;  %v522_v22 = vcombine.high %v520_v20, %v520_v20  ;;  %v544_v23 = vsel %vm536_vm1, %v520_v20, 0  ;;  %326 = vmatprep.mubr.bf16.mxu0 %v10649_v1  ;;  %399 = vmatprep.mubr.bf16.mxu1 %v10649_v1  ;;  %v6711_v29 = vld [vmem:[%s10826_s1] sm:$0xff]   ;;  %v6724_v38 = vld [vmem:[%s10826_s1 + $0x8] sm:$0xff]   ;;  %v6737_v47 = vld [vmem:[%s10826_s1 + $0x10] sm:$0xff]  }
  0x84   :  { %v8266_v40 = vld [vmem:[#allocation6 + $0xa8] ss:$16 sps:$4 sm:$0xff]   ;;  %v8274_v42 = vld [vmem:[#allocation6 + $0x8c] ss:$16 sps:$4 sm:$0xff]   ;;  %v8284_v45 = vld [vmem:[#allocation6 + $0x64] ss:$16 sps:$4 sm:$0xff]  }
  0x85   :  { %6298 = vmatprep.subr.msk.bf16.mxu0 %vm536_vm1, %v521_v19  ;;  %6303 = vmatprep.subr.msk.bf16.mxu1 %vm536_vm1, %v522_v22  ;;  %v8282_v44 = vld [vmem:[#allocation6 + $0x88] ss:$16 sps:$4 sm:$0xff]   ;;  %v8288_v46 = vld [vmem:[#allocation6 + $0x6c] ss:$16 sps:$4 sm:$0xff]   ;;  %v8295_v48 = vld [vmem:[#allocation6 + $0x60] ss:$16 sps:$4 sm:$0xff]  }
  0x86   :  { %564 = vmatpush1.bf16.msra.mxu0 %v538_v21  ;;  %637 = vmatpush1.bf16.msra.mxu1 %v544_v23  ;;  %v8297_v49 = vld [vmem:[#allocation6 + $0x68] ss:$16 sps:$4 sm:$0xff]   ;;  %v8299_v50 = vld [vmem:[#allocation6 + $0x44] ss:$16 sps:$4 sm:$0xff]   ;;  %v8303_v51 = vld [vmem:[#allocation6 + $0x4c] ss:$16 sps:$4 sm:$0xff]  }
  0x87   :  { %955 = vmatprep.subr.bf16.mxu0 %v8202_v24  ;;  %996 = vmatprep.subr.bf16.mxu1 %v8206_v25  ;;  %v8307_v52 = vld [vmem:[#allocation6 + $0x40] ss:$16 sps:$4 sm:$0xff]   ;;  %v8309_v53 = vld [vmem:[#allocation6 + $0x48] ss:$16 sps:$4 sm:$0xff]   ;;  %v8313_v54 = vld [vmem:[#allocation6 + $0x24] ss:$16 sps:$4 sm:$0xff]  }
  0x88   :  { %v8315_v55 = vld [vmem:[#allocation6 + $0x2c] ss:$16 sps:$4 sm:$0xff]   ;;  %v8326_v57 = vld [vmem:[#allocation6 + $0x20] ss:$16 sps:$4 sm:$0xff]   ;;  %v8328_v58 = vld [vmem:[#allocation6 + $0x28] ss:$16 sps:$4 sm:$0xff]  }
  0x89   :  { %v6750_v56 = vld [vmem:[%s10826_s1 + $0x18] sm:$0xff]   ;;  %v8330_v59 = vld [vmem:[#allocation6 + $0x4] ss:$16 sps:$4 sm:$0xff]   ;;  %v8338_v61 = vld [vmem:[#allocation6] ss:$16 sps:$4 sm:$0xff]   ;;  %s7991_s1 = scalar_lea.vmem %s6263_s19, 128 }
  0x8a   :  { %6286 = vmatmul.mubr.msk.bf16.gmra.mxu0 %vm258_vm2, %v6703_v26  ;;  %6291 = vmatmul.mubr.msk.bf16.gmra.mxu1 %vm258_vm2, %v6703_v26  ;;  %v8332_v60 = vld [vmem:[#allocation6 + $0xc] ss:$16 sps:$4 sm:$0xff]   ;;  %v8340_v62 = vld [vmem:[#allocation6 + $0x8] ss:$16 sps:$4 sm:$0xff]   ;;  %v8346_v0 = vld [vmem:[#allocation14 + $0xec] ss:$16 sps:$4 sm:$0xff]   ;;  %p7992_p8 = scmp.ne.s32.totalorder %s6263_s19, %s7991_s1  ;;  %p7997_p10 = scmp.lt.s32.totalorder %s7991_s1, %s7991_s1 }
  0x8b   :  { %336 = vmatprep.mubr.bf16.mxu0 %v10649_v1  ;;  %409 = vmatprep.mubr.bf16.mxu1 %v10649_v1  ;;  %v8344_v63 = vld [vmem:[#allocation14 + $0xe4] ss:$16 sps:$4 sm:$0xff]   ;;  %v8354_v3 = vld [vmem:[#allocation14 + $0xe0] ss:$16 sps:$4 sm:$0xff]   ;;  %v8356_v4 = vld [vmem:[#allocation14 + $0xe8] ss:$16 sps:$4 sm:$0xff]  }
  0x8c   :  { %v8358_v5 = vld [vmem:[#allocation14 + $0xc4] ss:$16 sps:$4 sm:$0xff]   ;;  %v8360_v6 = vld [vmem:[#allocation14 + $0xcc] ss:$16 sps:$4 sm:$0xff]   ;;  %v8366_v7 = vld [vmem:[#allocation14 + $0xc0] ss:$16 sps:$4 sm:$0xff]   ;;  %p7998_p11 = por %p7997_p10, %p7996_p9 }
  0x8d   :  { %v8368_v8 = vld [vmem:[#allocation14 + $0xc8] ss:$16 sps:$4 sm:$0xff]   ;;  %v8372_v9 = vld [vmem:[#allocation14 + $0xa4] ss:$16 sps:$4 sm:$0xff]   ;;  %v8374_v10 = vld [vmem:[#allocation14 + $0xac] ss:$16 sps:$4 sm:$0xff]  }
  0x8e   :  { %v8380_v11 = vld [vmem:[#allocation14 + $0xa0] ss:$16 sps:$4 sm:$0xff]   ;;  %v8382_v12 = vld [vmem:[#allocation14 + $0xa8] ss:$16 sps:$4 sm:$0xff]   ;;  %v8386_v13 = vld [vmem:[#allocation14 + $0x84] ss:$16 sps:$4 sm:$0xff]   ;;  %p7999_p12 = pnand %p7998_p11, %p7992_p8 }
  0x8f   :  { %v8388_v14 = vld [vmem:[#allocation14 + $0x8c] ss:$16 sps:$4 sm:$0xff]   ;;  %v8394_v15 = vld [vmem:[#allocation14 + $0x80] ss:$16 sps:$4 sm:$0xff]   ;;  %v8396_v16 = vld [vmem:[#allocation14 + $0x88] ss:$16 sps:$4 sm:$0xff]  }
  0x90   :  { %v8398_v17 = vld [vmem:[#allocation14 + $0x64] ss:$16 sps:$4 sm:$0xff]   ;;  %v8400_v18 = vld [vmem:[#allocation14 + $0x6c] ss:$16 sps:$4 sm:$0xff]   ;;  %v8406_v19 = vld [vmem:[#allocation14 + $0x60] ss:$16 sps:$4 sm:$0xff]  }
  0x91   :  { %v8408_v20 = vld [vmem:[#allocation14 + $0x68] ss:$16 sps:$4 sm:$0xff]   ;;  %v8410_v21 = vld [vmem:[#allocation14 + $0x44] ss:$16 sps:$4 sm:$0xff]   ;;  %v8412_v22 = vld [vmem:[#allocation14 + $0x4c] ss:$16 sps:$4 sm:$0xff]  }
  0x92   :  { %6287 = vmatmul.mubr.msk.bf16.gmra.mxu0 %vm258_vm2, %v6704_v27  ;;  %6292 = vmatmul.mubr.msk.bf16.gmra.mxu1 %vm258_vm2, %v6704_v27  ;;  %10827 = vst [vmem:[#allocation31_spill] sm:$0xff] %v8410_v21  ;;  %v8418_v23 = vld [vmem:[#allocation14 + $0x40] ss:$16 sps:$4 sm:$0xff]   ;;  %v8420_v26 = vld [vmem:[#allocation14 + $0x48] ss:$16 sps:$4 sm:$0xff]  }
  0x93   :  { %346 = vmatprep.mubr.bf16.mxu0 %v10649_v1  ;;  %419 = vmatprep.mubr.bf16.mxu1 %v10649_v1  ;;  %v8422_v27 = vld [vmem:[#allocation14 + $0x24] ss:$16 sps:$4 sm:$0xff]  }
  0x9a   :  { %6288 = vmatmul.mubr.msk.bf16.gmra.mxu0 %vm258_vm2, %v6706_v28  ;;  %6293 = vmatmul.mubr.msk.bf16.gmra.mxu1 %vm258_vm2, %v6706_v28  ;;  %v8424_v28 = vld [vmem:[#allocation14 + $0x2c] ss:$16 sps:$4 sm:$0xff]  }
  0x9b   :  { %581 = vmatprep.mubr.bf16.mxu0 %v10649_v1  ;;  %654 = vmatprep.mubr.bf16.mxu1 %v10649_v1  ;;  %10828 = vst [vmem:[#allocation32_spill] sm:$0xff] %v8424_v28 }
  0xa2   :  { %6299 = vmatmul.mubr.msk.bf16.vlgmr.msra.gmra.mxu0 %vm523_vm3, %v6711_v29  ;;  %6304 = vmatmul.mubr.msk.bf16.vlgmr.msra.gmra.mxu1 %vm523_vm3, %v6711_v29  ;;  %v8430_v29 = vld [vmem:[#allocation14 + $0x20] ss:$16 sps:$4 sm:$0xff]  }
  0xa3   :  { %956 = vmatpush1.bf16.msra.mxu0 %v8237_v30  ;;  %997 = vmatpush1.bf16.msra.mxu1 %v8239_v31 }
  0xa4   :  { %957 = vmatprep.subr.bf16.mxu0 %v8241_v32  ;;  %998 = vmatprep.subr.bf16.mxu1 %v8243_v33 }
  0xa5   :  { %591 = vmatprep.mubr.bf16.mxu0 %v10649_v1  ;;  %664 = vmatprep.mubr.bf16.mxu1 %v10649_v1 }
  0xa7   :  { %958 = vmatpush1.bf16.msra.mxu0 %v8247_v34  ;;  %999 = vmatpush1.bf16.msra.mxu1 %v8251_v35 }
  0xa8   :  { %959 = vmatprep.subr.bf16.mxu0 %v8253_v36  ;;  %1000 = vmatprep.subr.bf16.mxu1 %v8257_v37 }
  0xaa   :  { %6300 = vmatmul.mubr.msk.bf16.gmra.mxu0 %vm523_vm3, %v6724_v38  ;;  %6305 = vmatmul.mubr.msk.bf16.gmra.mxu1 %vm523_vm3, %v6724_v38  ;;  %v8432_v38 = vld [vmem:[#allocation14 + $0x28] ss:$16 sps:$4 sm:$0xff]  }
  0xab   :  { %960 = vmatpush1.bf16.msra.mxu0 %v8264_v39  ;;  %1001 = vmatpush1.bf16.msra.mxu1 %v8266_v40 }
  0xac   :  { %961 = vmatprep.subr.bf16.mxu0 %v8270_v41  ;;  %1002 = vmatprep.subr.bf16.mxu1 %v8274_v42 }
  0xad   :  { %601 = vmatprep.mubr.bf16.mxu0 %v10649_v1  ;;  %674 = vmatprep.mubr.bf16.mxu1 %v10649_v1 }
  0xaf   :  { %962 = vmatpush1.bf16.msra.mxu0 %v8278_v43  ;;  %1003 = vmatpush1.bf16.msra.mxu1 %v8282_v44 }
  0xb0   :  { %963 = vmatprep.subr.bf16.mxu0 %v8284_v45  ;;  %1004 = vmatprep.subr.bf16.mxu1 %v8288_v46 }
  0xb2   :  { %6301 = vmatmul.mubr.msk.bf16.gmra.mxu0 %vm523_vm3, %v6737_v47  ;;  %6306 = vmatmul.mubr.msk.bf16.gmra.mxu1 %vm523_vm3, %v6737_v47  ;;  %v8434_v47 = vld [vmem:[#allocation14 + $0x4] ss:$16 sps:$4 sm:$0xff]  }
  0xb3   :  { %964 = vmatpush1.bf16.msra.mxu0 %v8295_v48  ;;  %1005 = vmatpush1.bf16.msra.mxu1 %v8297_v49 }
  0xb4   :  { %965 = vmatprep.subr.bf16.mxu0 %v8299_v50  ;;  %1006 = vmatprep.subr.bf16.mxu1 %v8303_v51 }
  0xb5   :  { %611 = vmatprep.mubr.bf16.mxu0 %v10649_v1  ;;  %684 = vmatprep.mubr.bf16.mxu1 %v10649_v1 }
  0xb7   :  { %966 = vmatpush1.bf16.msra.mxu0 %v8307_v52  ;;  %1007 = vmatpush1.bf16.msra.mxu1 %v8309_v53 }
  0xb8   :  { %967 = vmatprep.subr.bf16.mxu0 %v8313_v54  ;;  %1008 = vmatprep.subr.bf16.mxu1 %v8315_v55 }
  0xba   :  { %6302 = vmatmul.mubr.msk.bf16.gmra.mxu0 %vm523_vm3, %v6750_v56  ;;  %6307 = vmatmul.mubr.msk.bf16.gmra.mxu1 %vm523_vm3, %v6750_v56  ;;  %v8436_v56 = vld [vmem:[#allocation14 + $0xc] ss:$16 sps:$4 sm:$0xff]  }
  0xbb   :  { %968 = vmatpush1.bf16.msra.mxu0 %v8326_v57  ;;  %1009 = vmatpush1.bf16.msra.mxu1 %v8328_v58 }
  0xbc   :  { %969 = vmatprep.subr.bf16.mxu0 %v8330_v59  ;;  %1010 = vmatprep.subr.bf16.mxu1 %v8332_v60 }
  0xbd   :  { %987 = vmatprep.mubr.bf16.mxu0 %v10649_v1  ;;  %1028 = vmatprep.mubr.bf16.mxu1 %v10649_v1 }
  0xbf   :  { %970 = vmatpush1.bf16.msra.mxu0 %v8338_v61  ;;  %1011 = vmatpush1.bf16.msra.mxu1 %v8340_v62 }
  0xc0   :  { %1205 = vmatprep.subr.bf16.mxu0 %v8344_v63  ;;  %1246 = vmatprep.subr.bf16.mxu1 %v8346_v0 }
  0xc2   :  { %988 = vmatmul.mubr.bf16.vlgmr.msra.gmra.mxu0 %v10649_v1  ;;  %1029 = vmatmul.mubr.bf16.vlgmr.msra.gmra.mxu1 %v10649_v1 }
  0xc3   :  { %1206 = vmatpush1.bf16.msra.mxu0 %v8354_v3  ;;  %1247 = vmatpush1.bf16.msra.mxu1 %v8356_v4 }
  0xc4   :  { %1207 = vmatprep.subr.bf16.mxu0 %v8358_v5  ;;  %1248 = vmatprep.subr.bf16.mxu1 %v8360_v6 }
  0xc5   :  { %1237 = vmatprep.mubr.bf16.mxu0 %v10649_v1  ;;  %1278 = vmatprep.mubr.bf16.mxu1 %v10649_v1  ;;  %v8442_v1 = vld [vmem:[#allocation14] ss:$16 sps:$4 sm:$0xff]  }
  0xc7   :  { %1208 = vmatpush1.bf16.msra.mxu0 %v8366_v7  ;;  %1249 = vmatpush1.bf16.msra.mxu1 %v8368_v8 }
  0xc8   :  { %1209 = vmatprep.subr.bf16.mxu0 %v8372_v9  ;;  %1250 = vmatprep.subr.bf16.mxu1 %v8374_v10 }
  0xcb   :  { %1210 = vmatpush1.bf16.msra.mxu0 %v8380_v11  ;;  %1251 = vmatpush1.bf16.msra.mxu1 %v8382_v12 }
  0xcc   :  { %1211 = vmatprep.subr.bf16.mxu0 %v8386_v13  ;;  %1252 = vmatprep.subr.bf16.mxu1 %v8388_v14 }
  0xcf   :  { %1212 = vmatpush1.bf16.msra.mxu0 %v8394_v15  ;;  %1253 = vmatpush1.bf16.msra.mxu1 %v8396_v16 }
  0xd0   :  { %1213 = vmatprep.subr.bf16.mxu0 %v8398_v17  ;;  %1254 = vmatprep.subr.bf16.mxu1 %v8400_v18 }
  0xd3   :  { %1214 = vmatpush1.bf16.msra.mxu0 %v8406_v19  ;;  %1255 = vmatpush1.bf16.msra.mxu1 %v8408_v20 }
  0xd4   :  { %1215 = vmatprep.subr.bf16.mxu0 %v8410_v21  ;;  %1256 = vmatprep.subr.bf16.mxu1 %v8412_v22  ;;  %v8444_v21 = vld [vmem:[#allocation14 + $0x8] ss:$16 sps:$4 sm:$0xff]  }
  0xd7   :  { %1216 = vmatpush1.bf16.msra.mxu0 %v8418_v23  ;;  %1257 = vmatpush1.bf16.msra.mxu1 %v8420_v26 }
  0xd8   :  { %1217 = vmatprep.subr.bf16.mxu0 %v8422_v27  ;;  %1258 = vmatprep.subr.bf16.mxu1 %v8424_v28  ;;  %v10829_v28 = vmov 0  }
  0xdb   :  { %1218 = vmatpush1.bf16.msra.mxu0 %v8430_v29  ;;  %1259 = vmatpush1.bf16.msra.mxu1 %v8432_v38 }
  0xdc   :  { %1219 = vmatprep.subr.bf16.mxu0 %v8434_v47  ;;  %1260 = vmatprep.subr.bf16.mxu1 %v8436_v56 }
  0xdf   :  { %1220 = vmatpush1.bf16.msra.mxu0 %v8442_v1  ;;  %1261 = vmatpush1.bf16.msra.mxu1 %v8444_v21 }
  0xe0   :  { %1347 = vmatprep.subr.bf16.mxu0 %v8202_v24  ;;  %1388 = vmatprep.subr.bf16.mxu1 %v8206_v25  ;;  %v8491_v24 = vsub.s32 2, %v8184_v2  ;;  %v8494_v25 = vsub.s32 0, %v8184_v2 }
  0xe2   :  { %1238 = vmatmul.mubr.bf16.vlgmr.msra.gmra.mxu0 %v10829_v28  ;;  %1279 = vmatmul.mubr.bf16.vlgmr.msra.gmra.mxu1 %v10829_v28  ;;  %10830 = vst [vmem:[#allocation33_spill] sm:$0xff] %v8491_v24  ;;  %10831 = vst [vmem:[#allocation34_spill] sm:$0xff] %v8494_v25 }
  0xe3   :  { %1348 = vmatpush1.bf16.msra.mxu0 %v8237_v30  ;;  %1389 = vmatpush1.bf16.msra.mxu1 %v8239_v31  ;;  %v206_v30 = vld [vmem:[%s10633_s4] sm:$0xf] }
  0xe4   :  { %1349 = vmatprep.subr.bf16.mxu0 %v8241_v32  ;;  %1390 = vmatprep.subr.bf16.mxu1 %v8243_v33  ;;  %v8504_v33 = vrot.slane %v206_v30, %v8491_v24 }
  0xe5   :  { %1379 = vmatprep.mubr.bf16.mxu0 %v10829_v28  ;;  %1420 = vmatprep.mubr.bf16.mxu1 %v10829_v28 }
  0xe7   :  { %1350 = vmatpush1.bf16.msra.mxu0 %v8247_v34  ;;  %1391 = vmatpush1.bf16.msra.mxu1 %v8251_v35 }
  0xe8   :  { %1351 = vmatprep.subr.bf16.mxu0 %v8253_v36  ;;  %1392 = vmatprep.subr.bf16.mxu1 %v8257_v37  ;;  %v8511_v36 = vrot.slane %v206_v30, %v8494_v25 }
  0xeb   :  { %1352 = vmatpush1.bf16.msra.mxu0 %v8264_v39  ;;  %1393 = vmatpush1.bf16.msra.mxu1 %v8266_v40  ;;  %v8514_v40 = vsub.s32 1, %v8184_v2 }
  0xec   :  { %1353 = vmatprep.subr.bf16.mxu0 %v8270_v41  ;;  %1394 = vmatprep.subr.bf16.mxu1 %v8274_v42  ;;  %v8517_v41 = vsub.s32 3, %v8184_v2 }
  0xed   :  { %10832 = vst [vmem:[#allocation35_spill] sm:$0xff] %v8514_v40 }
  0xee   :  { %10833 = vst [vmem:[#allocation36_spill] sm:$0xff] %v8517_v41 }
  0xef   :  { %1354 = vmatpush1.bf16.msra.mxu0 %v8278_v43  ;;  %1395 = vmatpush1.bf16.msra.mxu1 %v8282_v44 }
  0xf0   :  { %1355 = vmatprep.subr.bf16.mxu0 %v8284_v45  ;;  %1396 = vmatprep.subr.bf16.mxu1 %v8288_v46 }
  0xf3   :  { %1356 = vmatpush1.bf16.msra.mxu0 %v8295_v48  ;;  %1397 = vmatpush1.bf16.msra.mxu1 %v8297_v49  ;;  %v8530_v49 = vrot.slane %v206_v30, %v8514_v40 }
  0xf4   :  { %1357 = vmatprep.subr.bf16.mxu0 %v8299_v50  ;;  %1398 = vmatprep.subr.bf16.mxu1 %v8303_v51  ;;  %v8533_v50 = vrot.slane %v206_v30, %v8517_v41 }
  0xf5   :  { %10835 = vst [vmem:[#allocation38_spill] sm:$0xff] %v8530_v49 }
  0xf6   :  { %10836 = vst [vmem:[#allocation39_spill] sm:$0xff] %v8533_v50 }
  0xf7   :  { %1358 = vmatpush1.bf16.msra.mxu0 %v8307_v52  ;;  %1399 = vmatpush1.bf16.msra.mxu1 %v8309_v53 }
  0xf8   :  { %1359 = vmatprep.subr.bf16.mxu0 %v8313_v54  ;;  %1400 = vmatprep.subr.bf16.mxu1 %v8315_v55 }
  0xfb   :  { %1360 = vmatpush1.bf16.msra.mxu0 %v8326_v57  ;;  %1401 = vmatpush1.bf16.msra.mxu1 %v8328_v58 }
  0xfc   :  { %1361 = vmatprep.subr.bf16.mxu0 %v8330_v59  ;;  %1402 = vmatprep.subr.bf16.mxu1 %v8332_v60 }
  0xff   :  { %1362 = vmatpush1.bf16.msra.mxu0 %v8338_v61  ;;  %1403 = vmatpush1.bf16.msra.mxu1 %v8340_v62 }
 0x100   :  { %1437 = vmatprep.subr.bf16.mxu0 %v8344_v63  ;;  %1478 = vmatprep.subr.bf16.mxu1 %v8346_v0 }
 0x142   :  { %v8499_v31 = vpop.f32.mrf.mxu0  ;;  %v8501_v32 = vpop.f32.mrf.mxu1 }
 0x144   :  { %v8506_v34 = vpop.f32.mrf.mxu0  ;;  %v8508_v35 = vpop.f32.mrf.mxu1 }
 0x146   :  { %v322_v37 = vpop.f32.mrf.mxu0  ;;  %v395_v39 = vpop.f32.mrf.mxu1 }
 0x147   :  { %v8520_v42 = vadd.f32 %v322_v37, %v8511_v36  ;;  %v8523_v43 = vadd.f32 %v395_v39, %v8504_v33 }
 0x148   :  { %v8525_v44 = vpop.f32.mrf.mxu0  ;;  %v8527_v45 = vpop.f32.mrf.mxu1 }
 0x149   :  { %10834 = vst [vmem:[#allocation37_spill] sm:$0xff] %v8523_v43 }
 0x14a   :  { %v328_v46 = vpop.f32.mrf.mxu0  ;;  %v401_v48 = vpop.f32.mrf.mxu1 }
 0x14b   :  { %v8536_v2 = vadd.f32 %v328_v46, %v8511_v36  ;;  %v8539_v51 = vadd.f32 %v401_v48, %v8504_v33 }
 0x14c   :  { %v330_v52 = vpop.f32.mrf.mxu0  ;;  %v403_v53 = vpop.f32.mrf.mxu1 }
 0x14d   :  { %10837 = vst [vmem:[#allocation40_spill] sm:$0xff] %v8536_v2  ;;  %10838 = vst [vmem:[#allocation41_spill] sm:$0xff] %v8539_v51  ;;  %v8542_v54 = vadd.f32 %v330_v52, %v8530_v49  ;;  %v8545_v55 = vadd.f32 %v403_v53, %v8533_v50 }
 0x14e   :  { %v332_v57 = vpop.f32.mrf.mxu0  ;;  %v405_v58 = vpop.f32.mrf.mxu1 }
 0x14f   :  { %10839 = vst [vmem:[#allocation42_spill] sm:$0xff] %v8542_v54  ;;  %10840 = vst [vmem:[#allocation43_spill] sm:$0xff] %v8545_v55  ;;  %v8548_v59 = vadd.f32 %v332_v57, %v8511_v36  ;;  %v8551_v60 = vadd.f32 %v405_v58, %v8504_v33 }
 0x150   :  { %v8553_v61 = vpop.f32.mrf.mxu0  ;;  %v8555_v62 = vpop.f32.mrf.mxu1 }
 0x151   :  { %10841 = vst [vmem:[#allocation44_spill] sm:$0xff] %v8548_v59  ;;  %10842 = vst [vmem:[#allocation45_spill] sm:$0xff] %v8551_v60 }
 0x152   :  { %10843 = vst [vmem:[#allocation46_spill] sm:$0xff] %v8553_v61  ;;  %10844 = vst [vmem:[#allocation47_spill] sm:$0xff] %v8555_v62  ;;  %v338_v63 = vpop.f32.mrf.mxu0  ;;  %v411_v0 = vpop.f32.mrf.mxu1 }
 0x153   :  { %v8558_v30 = vadd.f32 %v338_v63, %v8511_v36  ;;  %v8561_v37 = vadd.f32 %v411_v0, %v8504_v33 }
 0x154   :  { %v340_v39 = vpop.f32.mrf.mxu0  ;;  %v413_v46 = vpop.f32.mrf.mxu1 }
 0x155   :  { %10845 = vst [vmem:[#allocation48_spill] sm:$0xff] %v8558_v30  ;;  %10846 = vst [vmem:[#allocation49_spill] sm:$0xff] %v8561_v37  ;;  %v8564_v48 = vadd.f32 %v340_v39, %v8530_v49  ;;  %v8567_v52 = vadd.f32 %v413_v46, %v8533_v50 }
 0x156   :  { %v342_v53 = vpop.f32.mrf.mxu0  ;;  %v415_v57 = vpop.f32.mrf.mxu1 }
 0x157   :  { %10847 = vst [vmem:[#allocation50_spill] sm:$0xff] %v8564_v48  ;;  %10848 = vst [vmem:[#allocation51_spill] sm:$0xff] %v8567_v52  ;;  %v8570_v58 = vadd.f32 %v342_v53, %v8511_v36  ;;  %v8573_v60 = vadd.f32 %v415_v57, %v8504_v33 }
 0x158   :  { %v8575_v63 = vpop.f32.mrf.mxu0  ;;  %v8577_v0 = vpop.f32.mrf.mxu1 }
 0x159   :  { %10849 = vst [vmem:[#allocation52_spill] sm:$0xff] %v8570_v58  ;;  %10850 = vst [vmem:[#allocation53_spill] sm:$0xff] %v8573_v60 }
 0x15a   :  { %10851 = vst [vmem:[#allocation54_spill] sm:$0xff] %v8575_v63  ;;  %10852 = vst [vmem:[#allocation55_spill] sm:$0xff] %v8577_v0  ;;  %v348_v37 = vpop.f32.mrf.mxu0  ;;  %v421_v30 = vpop.f32.mrf.mxu1 }
 0x15b   :  { %v8580_v39 = vadd.f32 %v348_v37, %v8511_v36  ;;  %v8583_v46 = vadd.f32 %v421_v30, %v8504_v33 }
 0x15c   :  { %v350_v52 = vpop.f32.mrf.mxu0  ;;  %v423_v48 = vpop.f32.mrf.mxu1 }
 0x15d   :  { %10853 = vst [vmem:[#allocation56_spill] sm:$0xff] %v8580_v39  ;;  %10854 = vst [vmem:[#allocation57_spill] sm:$0xff] %v8583_v46  ;;  %v8586_v53 = vadd.f32 %v350_v52, %v8530_v49  ;;  %v8589_v57 = vadd.f32 %v423_v48, %v8533_v50  ;;  %v463_v46 = vld [vmem:[#allocation15] sm:$0xf] }
 0x15e   :  { %v352_v60 = vpop.f32.mrf.mxu0  ;;  %v425_v58 = vpop.f32.mrf.mxu1  ;;  %v8606_v48 = vrot.slane %v463_v46, %v8491_v24  ;;  %v8626_v61 = vrot.slane %v463_v46, %v8514_v40 }
 0x15f   :  { %10855 = vst [vmem:[#allocation58_spill] sm:$0xff] %v8586_v53  ;;  %10856 = vst [vmem:[#allocation59_spill] sm:$0xff] %v8589_v57  ;;  %v8592_v0 = vadd.f32 %v352_v60, %v8511_v36  ;;  %v8595_v63 = vadd.f32 %v425_v58, %v8504_v33  ;;  %v8613_v60 = vrot.slane %v463_v46, %v8494_v25 }
 0x160   :  { %v8597_v37 = vpop.f32.mrf.mxu0  ;;  %v8599_v30 = vpop.f32.mrf.mxu1  ;;  %10865 = vst [vmem:[#allocation68_spill] sm:$0xff] %v8626_v61  ;;  %v8629_v25 = vrot.slane %v463_v46, %v8517_v41 }
 0x161   :  { %10857 = vst [vmem:[#allocation60_spill] sm:$0xff] %v8592_v0  ;;  %10858 = vst [vmem:[#allocation61_spill] sm:$0xff] %v8595_v63 }
 0x162   :  { %10859 = vst [vmem:[#allocation62_spill] sm:$0xff] %v8597_v37  ;;  %10860 = vst [vmem:[#allocation63_spill] sm:$0xff] %v8599_v30  ;;  %v8601_v39 = vpop.f32.mrf.mxu0  ;;  %v8603_v52 = vpop.f32.mrf.mxu1 }
 0x163   :  { %10866 = vst [vmem:[#allocation69_spill] sm:$0xff] %v8629_v25 }
 0x164   :  { %v8608_v57 = vpop.f32.mrf.mxu0  ;;  %v8610_v53 = vpop.f32.mrf.mxu1 }
 0x166   :  { %v587_v58 = vpop.f32.mrf.mxu0  ;;  %v660_v63 = vpop.f32.mrf.mxu1 }
 0x167   :  { %v8616_v0 = vadd.f32 %v587_v58, %v8613_v60  ;;  %v8619_v30 = vadd.f32 %v660_v63, %v8606_v48 }
 0x168   :  { %v8621_v37 = vpop.f32.mrf.mxu0  ;;  %v8623_v62 = vpop.f32.mrf.mxu1 }
 0x169   :  { %10861 = vst [vmem:[#allocation64_spill] sm:$0xff] %v8616_v0  ;;  %10862 = vst [vmem:[#allocation65_spill] sm:$0xff] %v8619_v30 }
 0x16a   :  { %10863 = vst [vmem:[#allocation66_spill] sm:$0xff] %v8621_v37  ;;  %10864 = vst [vmem:[#allocation67_spill] sm:$0xff] %v8623_v62  ;;  %v593_v24 = vpop.f32.mrf.mxu0  ;;  %v666_v59 = vpop.f32.mrf.mxu1 }
 0x16b   :  { %v8632_v51 = vadd.f32 %v593_v24, %v8613_v60  ;;  %v8635_v58 = vadd.f32 %v666_v59, %v8606_v48 }
 0x16c   :  { %v595_v63 = vpop.f32.mrf.mxu0  ;;  %v668_v55 = vpop.f32.mrf.mxu1 }
 0x16d   :  { %10867 = vst [vmem:[#allocation70_spill] sm:$0xff] %v8632_v51  ;;  %10868 = vst [vmem:[#allocation71_spill] sm:$0xff] %v8635_v58  ;;  %v8638_v54 = vadd.f32 %v595_v63, %v8626_v61  ;;  %v8641_v2 = vadd.f32 %v668_v55, %v8629_v25 }
 0x16e   :  { %v597_v30 = vpop.f32.mrf.mxu0  ;;  %v670_v40 = vpop.f32.mrf.mxu1 }
 0x16f   :  { %10869 = vst [vmem:[#allocation72_spill] sm:$0xff] %v8638_v54  ;;  %10870 = vst [vmem:[#allocation73_spill] sm:$0xff] %v8641_v2  ;;  %v8644_v62 = vadd.f32 %v597_v30, %v8613_v60  ;;  %v8647_v46 = vadd.f32 %v670_v40, %v8606_v48 }
 0x170   :  { %v8649_v24 = vpop.f32.mrf.mxu0  ;;  %v8651_v59 = vpop.f32.mrf.mxu1 }
 0x171   :  { %10871 = vst [vmem:[#allocation74_spill] sm:$0xff] %v8644_v62  ;;  %10872 = vst [vmem:[#allocation75_spill] sm:$0xff] %v8647_v46 }
 0x172   :  { %10873 = vst [vmem:[#allocation76_spill] sm:$0xff] %v8649_v24  ;;  %10874 = vst [vmem:[#allocation77_spill] sm:$0xff] %v8651_v59  ;;  %v603_v41 = vpop.f32.mrf.mxu0  ;;  %v676_v58 = vpop.f32.mrf.mxu1 }
 0x173   :  { %v8654_v63 = vadd.f32 %v603_v41, %v8613_v60  ;;  %v8657_v55 = vadd.f32 %v676_v58, %v8606_v48 }
 0x174   :  { %v605_v2 = vpop.f32.mrf.mxu0  ;;  %v678_v54 = vpop.f32.mrf.mxu1 }
 0x175   :  { %10875 = vst [vmem:[#allocation78_spill] sm:$0xff] %v8654_v63  ;;  %10876 = vst [vmem:[#allocation79_spill] sm:$0xff] %v8657_v55  ;;  %v8660_v30 = vadd.f32 %v605_v2, %v8626_v61  ;;  %v8663_v40 = vadd.f32 %v678_v54, %v8629_v25 }
 0x176   :  { %v607_v46 = vpop.f32.mrf.mxu0  ;;  %v680_v62 = vpop.f32.mrf.mxu1 }
 0x177   :  { %10877 = vst [vmem:[#allocation80_spill] sm:$0xff] %v8660_v30  ;;  %10878 = vst [vmem:[#allocation81_spill] sm:$0xff] %v8663_v40  ;;  %v8666_v59 = vadd.f32 %v607_v46, %v8613_v60  ;;  %v8669_v24 = vadd.f32 %v680_v62, %v8606_v48 }
 0x178   :  { %v8671_v41 = vpop.f32.mrf.mxu0  ;;  %v8673_v58 = vpop.f32.mrf.mxu1 }
 0x179   :  { %10879 = vst [vmem:[#allocation82_spill] sm:$0xff] %v8666_v59  ;;  %10880 = vst [vmem:[#allocation83_spill] sm:$0xff] %v8669_v24 }
 0x17a   :  { %10881 = vst [vmem:[#allocation84_spill] sm:$0xff] %v8671_v41  ;;  %10882 = vst [vmem:[#allocation85_spill] sm:$0xff] %v8673_v58  ;;  %v613_v55 = vpop.f32.mrf.mxu0  ;;  %v686_v63 = vpop.f32.mrf.mxu1 }
 0x17b   :  { %v8676_v2 = vadd.f32 %v613_v55, %v8613_v60  ;;  %v8679_v54 = vadd.f32 %v686_v63, %v8606_v48 }
 0x17c   :  { %v615_v40 = vpop.f32.mrf.mxu0  ;;  %v688_v30 = vpop.f32.mrf.mxu1 }
 0x17d   :  { %10883 = vst [vmem:[#allocation86_spill] sm:$0xff] %v8676_v2  ;;  %10884 = vst [vmem:[#allocation87_spill] sm:$0xff] %v8679_v54  ;;  %v8682_v46 = vadd.f32 %v615_v40, %v8626_v61  ;;  %v8685_v62 = vadd.f32 %v688_v30, %v8629_v25  ;;  %v319_v54 = vadd.f32 %v8499_v31, %v8511_v36 }
 0x17e   :  { %v617_v24 = vpop.f32.mrf.mxu0  ;;  %v690_v59 = vpop.f32.mrf.mxu1  ;;  %v321_v30 = vadd.f32 %v8506_v34, %v8530_v49  ;;  %v394_v31 = vadd.f32 %v8508_v35, %v8533_v50 }
 0x17f   :  { %10885 = vst [vmem:[#allocation88_spill] sm:$0xff] %v8682_v46  ;;  %10886 = vst [vmem:[#allocation89_spill] sm:$0xff] %v8685_v62  ;;  %v8688_v58 = vadd.f32 %v617_v24, %v8613_v60  ;;  %v8691_v41 = vadd.f32 %v690_v59, %v8606_v48 }
 0x180   :  { %v8693_v55 = vpop.f32.mrf.mxu0  ;;  %v8695_v63 = vpop.f32.mrf.mxu1 }
 0x181   :  { %10887 = vst [vmem:[#allocation90_spill] sm:$0xff] %v8688_v58  ;;  %10888 = vst [vmem:[#allocation91_spill] sm:$0xff] %v8691_v41 }
 0x182   :  { %10889 = vst [vmem:[#allocation92_spill] sm:$0xff] %v8693_v55  ;;  %10890 = vst [vmem:[#allocation93_spill] sm:$0xff] %v8695_v63  ;;  %v989_v40 = vpop.f32.mrf.mxu0  ;;  %v1030_v46 = vpop.f32.mrf.mxu1  ;;  %v392_v63 = vadd.f32 %v8501_v32, %v8504_v33  ;;  %v586_v32 = vadd.f32 %v8608_v57, %v8626_v61  ;;  %v659_v57 = vadd.f32 %v8610_v53, %v8629_v25 }
 0x183   :  { %v1037_v62 = vadd.f32 %v989_v40, %v319_v54 }
 0x184   :  { %v991_v2 = vpop.f32.mrf.mxu0  ;;  %v1032_v51 = vpop.f32.mrf.mxu1  ;;  %v1039_v34 = vadd.f32 %v1030_v46, %v392_v63 }
 0x185   :  { %v6372_v24 = vmul.f32 -1.442695, %v1037_v62  ;;  %v1038_v58 = vadd.f32 %v991_v2, %v321_v30  ;;  %v1040_v36 = vadd.f32 %v1032_v51, %v394_v31 }
 0x186   :  { %v993_v0 = vpop.f32.mrf.mxu0  ;;  %v1034_v59 = vpop.f32.mrf.mxu1 }
 0x187   :  { %7023 = vpow2.f32 %v6372_v24  ;;  %v6373_v41 = vmul.f32 -1.442695, %v1038_v58  ;;  %v6374_v54 = vmul.f32 -1.442695, %v1040_v36 }
 0x188   :  { %v994_v55 = vpop.f32.mrf.mxu0  ;;  %v1035_v37 = vpop.f32.mrf.mxu1 }
 0x189   :  { %7025 = vpow2.f32 %v6373_v41  ;;  %v584_v37 = vadd.f32 %v8601_v39, %v8613_v60 }
 0x18a   :  { %7027 = vtanh.f32 %v1039_v34 }
 0x18b   :  { %7029 = vpow2.f32 %v6374_v54 }
 0x194   :  { %v7024_v40 = vpop.eup %7023 }
 0x195   :  { %v1300_v43 = vadd.f32 1.0, %v7024_v40 }
 0x196   :  { %v7026_v2 = vpop.eup %7025 }
 0x197   :  { %7031 = vrcp.f32 %v1300_v43  ;;  %v1301_v0 = vadd.f32 1.0, %v7026_v2  ;;  %v7028_v41 = vpop.eup %7027 }
 0x198   :  { %v7030_v51 = vpop.eup %7029 }
 0x199   :  { %7033 = vrcp.f32 %v1301_v0  ;;  %v1302_v59 = vadd.f32 1.0, %v7030_v51  ;;  %v657_v0 = vadd.f32 %v8603_v52, %v8606_v48 }
 0x1a2   :  { %v1239_v58 = vpop.f32.mrf.mxu0  ;;  %v1280_v35 = vpop.f32.mrf.mxu1 }
 0x1a3   :  { %v1287_v33 = vadd.f32 %v1239_v58, %v584_v37  ;;  %v1289_v37 = vadd.f32 %v1280_v35, %v657_v0  ;;  %v8777_v35 = vld [vmem:[#allocation6 + $0xa4] ss:$16 sps:$4 sm:$0xff]   ;;  %v8816_v0 = vld [vmem:[#allocation6 + $0x4c] ss:$16 sps:$4 sm:$0xff]  }
 0x1a4   :  { %v7032_v46 = vpop.eup %7031  ;;  %v1241_v62 = vpop.f32.mrf.mxu0  ;;  %10907 = vst [vmem:[#allocation106_spill] sm:$0xff] %v8816_v0 }
 0x1a5   :  { %v1282_v55 = vpop.f32.mrf.mxu1  ;;  %v1311_v63 = vmul.f32 %v7032_v46, %v7028_v41  ;;  %v6375_v30 = vmul.f32 -1.442695, %v1287_v33  ;;  %v1288_v24 = vadd.f32 %v1241_v62, %v586_v32 }
 0x1a6   :  { %v7034_v43 = vpop.eup %7033  ;;  %v1243_v31 = vpop.f32.mrf.mxu0  ;;  %v1290_v2 = vadd.f32 %v1282_v55, %v659_v57  ;;  %v8780_v55 = vld [vmem:[#allocation6 + $0xac] ss:$16 sps:$4 sm:$0xff]   ;;  %v8810_v57 = vld [vmem:[#allocation6 + $0x68] ss:$16 sps:$4 sm:$0xff]  }
 0x1a7   :  { %v1284_v36 = vpop.f32.mrf.mxu1  ;;  %v1310_v34 = vmul.f32 0.0, %v7034_v43  ;;  %7035 = vpow2.f32 %v6375_v30  ;;  %v6376_v39 = vmul.f32 -1.442695, %v1288_v24  ;;  %10895 = vst [vmem:[#allocation94_spill] sm:$0xff] %v8780_v55  ;;  %v8783_v24 = vld [vmem:[#allocation6 + $0xa0] ss:$16 sps:$4 sm:$0xff]  }
 0x1a8   :  { %v1244_v60 = vpop.f32.mrf.mxu0  ;;  %v6377_v41 = vmul.f32 -1.442695, %v1290_v2  ;;  %10896 = vst [vmem:[#allocation95_spill] sm:$0xff] %v8783_v24  ;;  %v8786_v43 = vld [vmem:[#allocation6 + $0xa8] ss:$16 sps:$4 sm:$0xff]   ;;  %10905 = vst [vmem:[#allocation104_spill] sm:$0xff] %v8810_v57 }
 0x1a9   :  { %v1285_v54 = vpop.f32.mrf.mxu1  ;;  %v8709_v40 = vadd.f32 %v1311_v63, %v1310_v34  ;;  %7037 = vpow2.f32 %v6376_v39  ;;  %10897 = vst [vmem:[#allocation96_spill] sm:$0xff] %v8786_v43  ;;  %v8792_v31 = vld [vmem:[#allocation6 + $0x8c] ss:$16 sps:$4 sm:$0xff]   ;;  %v8795_v36 = vld [vmem:[#allocation6 + $0x80] ss:$16 sps:$4 sm:$0xff]  }
 0x1aa   :  { %7039 = vrcp.f32 %v1302_v59  ;;  %v8789_v59 = vld [vmem:[#allocation6 + $0x84] ss:$16 sps:$4 sm:$0xff]   ;;  %10899 = vst [vmem:[#allocation98_spill] sm:$0xff] %v8792_v31  ;;  %10900 = vst [vmem:[#allocation99_spill] sm:$0xff] %v8795_v36  ;;  %v8798_v34 = vld [vmem:[#allocation6 + $0x88] ss:$16 sps:$4 sm:$0xff]  }
 0x1ab   :  { %7041 = vtanh.f32 %v8709_v40  ;;  %10898 = vst [vmem:[#allocation97_spill] sm:$0xff] %v8789_v59  ;;  %10901 = vst [vmem:[#allocation100_spill] sm:$0xff] %v8798_v34  ;;  %v8801_v39 = vld [vmem:[#allocation6 + $0x64] ss:$16 sps:$4 sm:$0xff]   ;;  %v8804_v60 = vld [vmem:[#allocation6 + $0x6c] ss:$16 sps:$4 sm:$0xff]  }
 0x1ac   :  { %7043 = vtanh.f32 %v1289_v37  ;;  %10902 = vst [vmem:[#allocation101_spill] sm:$0xff] %v8801_v39  ;;  %10903 = vst [vmem:[#allocation102_spill] sm:$0xff] %v8804_v60  ;;  %v8807_v54 = vld [vmem:[#allocation6 + $0x60] ss:$16 sps:$4 sm:$0xff]   ;;  %v8813_v2 = vld [vmem:[#allocation6 + $0x44] ss:$16 sps:$4 sm:$0xff]  }
 0x1ad   :  { %7045 = vpow2.f32 %v6377_v41  ;;  %10904 = vst [vmem:[#allocation103_spill] sm:$0xff] %v8807_v54  ;;  %10906 = vst [vmem:[#allocation105_spill] sm:$0xff] %v8813_v2  ;;  %v8819_v37 = vld [vmem:[#allocation6 + $0x40] ss:$16 sps:$4 sm:$0xff]   ;;  %v8822_v41 = vld [vmem:[#allocation6 + $0x48] ss:$16 sps:$4 sm:$0xff]  }
 0x1ae   :  { %10908 = vst [vmem:[#allocation107_spill] sm:$0xff] %v8819_v37  ;;  %10909 = vst [vmem:[#allocation108_spill] sm:$0xff] %v8822_v41 }
 0x1b4   :  { %v7036_v58 = vpop.eup %7035 }
 0x1b5   :  { %v1324_v51 = vadd.f32 1.0, %v7036_v58  ;;  %v8825_v58 = vld [vmem:[#allocation6 + $0x24] ss:$16 sps:$4 sm:$0xff]  }
 0x1b6   :  { %v7038_v32 = vpop.eup %7037  ;;  %10910 = vst [vmem:[#allocation109_spill] sm:$0xff] %v8825_v58 }
 0x1b7   :  { %v7040_v33 = vpop.eup %7039  ;;  %7047 = vrcp.f32 %v1324_v51  ;;  %v1325_v46 = vadd.f32 1.0, %v7038_v32  ;;  %v8828_v51 = vld [vmem:[#allocation6 + $0x2c] ss:$16 sps:$4 sm:$0xff]   ;;  %v8831_v32 = vld [vmem:[#allocation6 + $0x20] ss:$16 sps:$4 sm:$0xff]  }
 0x1b8   :  { %v7042_v62 = vpop.eup %7041  ;;  %10911 = vst [vmem:[#allocation110_spill] sm:$0xff] %v8828_v51  ;;  %10912 = vst [vmem:[#allocation111_spill] sm:$0xff] %v8831_v32 }
 0x1b9   :  { %7049 = vrcp.f32 %v1325_v46  ;;  %v1314_v63 = vmul.f32 %v7042_v62, %v7040_v33  ;;  %v7044_v53 = vpop.eup %7043  ;;  %v8834_v33 = vld [vmem:[#allocation6 + $0x28] ss:$16 sps:$4 sm:$0xff]   ;;  %v8837_v46 = vld [vmem:[#allocation6 + $0x4] ss:$16 sps:$4 sm:$0xff]   ;;  %v8840_v62 = vld [vmem:[#allocation6 + $0xc] ss:$16 sps:$4 sm:$0xff]  }
 0x1ba   :  { %v7046_v52 = vpop.eup %7045  ;;  %10913 = vst [vmem:[#allocation112_spill] sm:$0xff] %v8834_v33  ;;  %10914 = vst [vmem:[#allocation113_spill] sm:$0xff] %v8837_v46 }
 0x1bb   :  { %v1339_v30 = vpack.c.bf16 %v1314_v63, %v1314_v63  ;;  %10915 = vst [vmem:[#allocation114_spill] sm:$0xff] %v8840_v62  ;;  %v8843_v63 = vld [vmem:[#allocation6] ss:$16 sps:$4 sm:$0xff]  }
 0x1bc   :  { %10916 = vst [vmem:[#allocation115_spill] sm:$0xff] %v8843_v63 }
 0x1bd   :  { %1340 = vst [vmem:[#allocation4] sm:$0xf] %v1339_v30  ;;  %1380 = vmatmul.mubr.bf16.vlgmr.msra.gmra.mxu0 %v1339_v30  ;;  %1421 = vmatmul.mubr.bf16.vlgmr.msra.gmra.mxu1 %v1339_v30  ;;  %v8846_v30 = vld [vmem:[#allocation6 + $0x8] ss:$16 sps:$4 sm:$0xff]  }
 0x1be   :  { %1438 = vmatpush1.bf16.msra.mxu0 %v8354_v3  ;;  %1479 = vmatpush1.bf16.msra.mxu1 %v8356_v4  ;;  %10917 = vst [vmem:[#allocation116_spill] sm:$0xff] %v8846_v30 }
 0x1bf   :  { %1439 = vmatprep.subr.bf16.mxu0 %v8358_v5  ;;  %1480 = vmatprep.subr.bf16.mxu1 %v8360_v6  ;;  %v1326_v5 = vadd.f32 1.0, %v7046_v52  ;;  %v8852_v52 = vld [vmem:[#allocation14 + $0xec] ss:$16 sps:$4 sm:$0xff]  }
 0x1c0   :  { %1469 = vmatprep.mubr.bf16.mxu0 %v10829_v28  ;;  %1510 = vmatprep.mubr.bf16.mxu1 %v10829_v28  ;;  %10919 = vst [vmem:[#allocation118_spill] sm:$0xff] %v8852_v52 }
 0x1c1   :  { %7051 = vrcp.f32 %v1326_v5 }
 0x1c2   :  { %1440 = vmatpush1.bf16.msra.mxu0 %v8366_v7  ;;  %1481 = vmatpush1.bf16.msra.mxu1 %v8368_v8  ;;  %v10891_v8 = vld [vmem:[#allocation31_spill] sm:$0xff] }
 0x1c3   :  { %1441 = vmatprep.subr.bf16.mxu0 %v8372_v9  ;;  %1482 = vmatprep.subr.bf16.mxu1 %v8374_v10  ;;  %v10892_v9 = vld [vmem:[#allocation32_spill] sm:$0xff] }
 0x1c4   :  { %v7048_v3 = vpop.eup %7047  ;;  %10894 = vst [vmem:[#allocation32_spill] sm:$0xff] %v8777_v35 }
 0x1c5   :  { %v1335_v4 = vmul.f32 %v7048_v3, %v7044_v53  ;;  %v8849_v53 = vld [vmem:[#allocation14 + $0xe4] ss:$16 sps:$4 sm:$0xff]  }
 0x1c6   :  { %v7050_v48 = vpop.eup %7049  ;;  %1442 = vmatpush1.bf16.msra.mxu0 %v8380_v11  ;;  %1483 = vmatpush1.bf16.msra.mxu1 %v8382_v12  ;;  %10918 = vst [vmem:[#allocation117_spill] sm:$0xff] %v8849_v53 }
 0x1c7   :  { %v1334_v6 = vmul.f32 0.0, %v7050_v48  ;;  %1443 = vmatprep.subr.bf16.mxu0 %v8386_v13  ;;  %1484 = vmatprep.subr.bf16.mxu1 %v8388_v14  ;;  %v8751_v14 = vld [vmem:[#allocation6 + $0xe4] ss:$16 sps:$4 sm:$0xff]   ;;  %v325_v48 = vadd.f32 %v8525_v44, %v8530_v49 }
 0x1c9   :  { %v8730_v7 = vadd.f32 %v1335_v4, %v1334_v6 }
 0x1ca   :  { %1444 = vmatpush1.bf16.msra.mxu0 %v8394_v15  ;;  %1485 = vmatpush1.bf16.msra.mxu1 %v8396_v16  ;;  %v8754_v15 = vld [vmem:[#allocation6 + $0xec] ss:$16 sps:$4 sm:$0xff]   ;;  %v8757_v16 = vld [vmem:[#allocation6 + $0xe0] ss:$16 sps:$4 sm:$0xff]  }
 0x1cb   :  { %7053 = vtanh.f32 %v8730_v7  ;;  %1445 = vmatprep.subr.bf16.mxu0 %v8398_v17  ;;  %1486 = vmatprep.subr.bf16.mxu1 %v8400_v18  ;;  %v8760_v17 = vld [vmem:[#allocation6 + $0xe8] ss:$16 sps:$4 sm:$0xff]   ;;  %v8763_v18 = vld [vmem:[#allocation6 + $0xc4] ss:$16 sps:$4 sm:$0xff]  }
 0x1ce   :  { %1446 = vmatpush1.bf16.msra.mxu0 %v8406_v19  ;;  %1487 = vmatpush1.bf16.msra.mxu1 %v8408_v20  ;;  %v7052_v10 = vpop.eup %7051  ;;  %v8766_v19 = vld [vmem:[#allocation6 + $0xcc] ss:$16 sps:$4 sm:$0xff]   ;;  %v8771_v20 = vld [vmem:[#allocation6 + $0xc0] ss:$16 sps:$4 sm:$0xff]  }
 0x1cf   :  { %1447 = vmatprep.subr.bf16.mxu0 %v10891_v8  ;;  %1488 = vmatprep.subr.bf16.mxu1 %v8412_v22  ;;  %v8774_v22 = vld [vmem:[#allocation6 + $0xc8] ss:$16 sps:$4 sm:$0xff]  }
 0x1d0   :  { %10893 = vst [vmem:[#allocation31_spill] sm:$0xff] %v8774_v22 }
 0x1d2   :  { %1448 = vmatpush1.bf16.msra.mxu0 %v8418_v23  ;;  %1489 = vmatpush1.bf16.msra.mxu1 %v8420_v26 }
 0x1d3   :  { %1449 = vmatprep.subr.bf16.mxu0 %v8422_v27  ;;  %1490 = vmatprep.subr.bf16.mxu1 %v10892_v9 }
 0x1d6   :  { %1450 = vmatpush1.bf16.msra.mxu0 %v8430_v29  ;;  %1491 = vmatpush1.bf16.msra.mxu1 %v8432_v38 }
 0x1d7   :  { %1451 = vmatprep.subr.bf16.mxu0 %v8434_v47  ;;  %1492 = vmatprep.subr.bf16.mxu1 %v8436_v56 }
 0x1d8   :  { %v7054_v11 = vpop.eup %7053 }
 0x1d9   :  { %v1338_v12 = vmul.f32 %v7054_v11, %v7052_v10 }
 0x1da   :  { %1452 = vmatpush1.bf16.msra.mxu0 %v8442_v1  ;;  %1493 = vmatpush1.bf16.msra.mxu1 %v8444_v21 }
 0x1db   :  { %v1341_v13 = vpack.c.bf16 %v1338_v12, %v1338_v12  ;;  %1579 = vmatprep.subr.bf16.mxu0 %v8751_v14  ;;  %1620 = vmatprep.subr.bf16.mxu1 %v8754_v15 }
 0x1dd   :  { %1342 = vst [vmem:[#allocation5] sm:$0xf] %v1341_v13  ;;  %1470 = vmatmul.mubr.bf16.vlgmr.msra.gmra.mxu0 %v1341_v13  ;;  %1511 = vmatmul.mubr.bf16.vlgmr.msra.gmra.mxu1 %v1341_v13 }
 0x1de   :  { %1580 = vmatpush1.bf16.msra.mxu0 %v8757_v16  ;;  %1621 = vmatpush1.bf16.msra.mxu1 %v8760_v17 }
 0x1df   :  { %1581 = vmatprep.subr.bf16.mxu0 %v8763_v18  ;;  %1622 = vmatprep.subr.bf16.mxu1 %v8766_v19 }
 0x1e0   :  { %1611 = vmatprep.mubr.bf16.mxu0 %v10829_v28  ;;  %1652 = vmatprep.mubr.bf16.mxu1 %v10829_v28 }
 0x1e2   :  { %1582 = vmatpush1.bf16.msra.mxu0 %v8771_v20  ;;  %1623 = vmatpush1.bf16.msra.mxu1 %v8774_v22 }
 0x1e3   :  { %1583 = vmatprep.subr.bf16.mxu0 %v8777_v35  ;;  %1624 = vmatprep.subr.bf16.mxu1 %v8780_v55 }
 0x1e6   :  { %1584 = vmatpush1.bf16.msra.mxu0 %v8783_v24  ;;  %1625 = vmatpush1.bf16.msra.mxu1 %v8786_v43 }
 0x1e7   :  { %1585 = vmatprep.subr.bf16.mxu0 %v8789_v59  ;;  %1626 = vmatprep.subr.bf16.mxu1 %v8792_v31 }
 0x1ea   :  { %1586 = vmatpush1.bf16.msra.mxu0 %v8795_v36  ;;  %1627 = vmatpush1.bf16.msra.mxu1 %v8798_v34 }
 0x1eb   :  { %1587 = vmatprep.subr.bf16.mxu0 %v8801_v39  ;;  %1628 = vmatprep.subr.bf16.mxu1 %v8804_v60 }
 0x1ee   :  { %1588 = vmatpush1.bf16.msra.mxu0 %v8807_v54  ;;  %1629 = vmatpush1.bf16.msra.mxu1 %v8810_v57 }
 0x1ef   :  { %1589 = vmatprep.subr.bf16.mxu0 %v8813_v2  ;;  %1630 = vmatprep.subr.bf16.mxu1 %v8816_v0 }
 0x1f2   :  { %1590 = vmatpush1.bf16.msra.mxu0 %v8819_v37  ;;  %1631 = vmatpush1.bf16.msra.mxu1 %v8822_v41 }
 0x1f3   :  { %1591 = vmatprep.subr.bf16.mxu0 %v8825_v58  ;;  %1632 = vmatprep.subr.bf16.mxu1 %v8828_v51 }
 0x1f6   :  { %1592 = vmatpush1.bf16.msra.mxu0 %v8831_v32  ;;  %1633 = vmatpush1.bf16.msra.mxu1 %v8834_v33 }
 0x1f7   :  { %1593 = vmatprep.subr.bf16.mxu0 %v8837_v46  ;;  %1634 = vmatprep.subr.bf16.mxu1 %v8840_v62  ;;  %v10920_v46 = vld [vmem:[#allocation37_spill] sm:$0xff] }
 0x1fa   :  { %1594 = vmatpush1.bf16.msra.mxu0 %v8843_v63  ;;  %1635 = vmatpush1.bf16.msra.mxu1 %v8846_v30 }
 0x1fb   :  { %1669 = vmatprep.subr.bf16.mxu0 %v8849_v53  ;;  %1710 = vmatprep.subr.bf16.mxu1 %v8852_v52  ;;  %v398_v52 = vadd.f32 %v8527_v45, %v8533_v50  ;;  %v10922_v45 = vld [vmem:[#allocation64_spill] sm:$0xff] }
 0x27d   :  { %v1381_v3 = vpop.f32.mrf.mxu0  ;;  %v1422_v4 = vpop.f32.mrf.mxu1 }
 0x27e   :  { %v1429_v5 = vadd.f32 %v1381_v3, %v8520_v42  ;;  %v1431_v33 = vadd.f32 %v1422_v4, %v10920_v46 }
 0x27f   :  { %v1383_v6 = vpop.f32.mrf.mxu0  ;;  %v1424_v8 = vpop.f32.mrf.mxu1 }
 0x280   :  { %v6378_v10 = vmul.f32 -1.442695, %v1429_v5  ;;  %v1430_v11 = vadd.f32 %v1383_v6, %v325_v48  ;;  %v1432_v62 = vadd.f32 %v1424_v8, %v398_v52 }
 0x281   :  { %v1385_v12 = vpop.f32.mrf.mxu0  ;;  %v1426_v13 = vpop.f32.mrf.mxu1 }
 0x282   :  { %7055 = vpow2.f32 %v6378_v10  ;;  %v6379_v30 = vmul.f32 -1.442695, %v1430_v11  ;;  %v6380_v44 = vmul.f32 -1.442695, %v1432_v62 }
 0x283   :  { %v1386_v53 = vpop.f32.mrf.mxu0  ;;  %v1427_v63 = vpop.f32.mrf.mxu1 }
 0x284   :  { %7057 = vpow2.f32 %v6379_v30  ;;  %v10921_v30 = vld [vmem:[#allocation66_spill] sm:$0xff] }
 0x285   :  { %7059 = vtanh.f32 %v1431_v33  ;;  %v590_v10 = vadd.f32 %v10921_v30, %v8626_v61 }
 0x286   :  { %7061 = vpow2.f32 %v6380_v44 }
 0x28f   :  { %v7056_v49 = vpop.eup %7055 }
 0x290   :  { %v1532_v42 = vadd.f32 1.0, %v7056_v49 }
 0x291   :  { %v7058_v3 = vpop.eup %7057 }
 0x292   :  { %7063 = vrcp.f32 %v1532_v42  ;;  %v1533_v48 = vadd.f32 1.0, %v7058_v3  ;;  %v7060_v5 = vpop.eup %7059 }
 0x293   :  { %v7062_v63 = vpop.eup %7061 }
 0x294   :  { %7065 = vrcp.f32 %v1533_v48  ;;  %v1534_v12 = vadd.f32 1.0, %v7062_v63 }
 0x29d   :  { %v1471_v6 = vpop.f32.mrf.mxu0  ;;  %v1512_v53 = vpop.f32.mrf.mxu1 }
 0x29e   :  { %v1519_v52 = vadd.f32 %v1471_v6, %v10922_v45 }
 0x29f   :  { %v7064_v8 = vpop.eup %7063  ;;  %v1473_v46 = vpop.f32.mrf.mxu0 }
 0x2a0   :  { %v1514_v62 = vpop.f32.mrf.mxu1  ;;  %v1543_v4 = vmul.f32 %v7064_v8, %v7060_v5  ;;  %v6381_v49 = vmul.f32 -1.442695, %v1519_v52  ;;  %v1520_v33 = vadd.f32 %v1473_v46, %v590_v10  ;;  %v10923_v5 = vld [vmem:[#allocation67_spill] sm:$0xff]  ;;  %v10924_v10 = vld [vmem:[#allocation65_spill] sm:$0xff] }
 0x2a1   :  { %v7066_v11 = vpop.eup %7065  ;;  %v1475_v13 = vpop.f32.mrf.mxu0  ;;  %v663_v6 = vadd.f32 %v10923_v5, %v8629_v25  ;;  %v1521_v63 = vadd.f32 %v1512_v53, %v10924_v10  ;;  %v8874_v53 = vld [vmem:[#allocation14 + $0xe8] ss:$16 sps:$4 sm:$0xff]   ;;  %v8894_v5 = vld [vmem:[#allocation14 + $0xac] ss:$16 sps:$4 sm:$0xff]  }
 0x2a2   :  { %v1516_v44 = vpop.f32.mrf.mxu1  ;;  %v1542_v42 = vmul.f32 %v7066_v11, %v8709_v40  ;;  %7067 = vpow2.f32 %v6381_v49  ;;  %v6382_v3 = vmul.f32 -1.442695, %v1520_v33  ;;  %v8871_v11 = vld [vmem:[#allocation14 + $0xe0] ss:$16 sps:$4 sm:$0xff]  }
 0x2a3   :  { %v1476_v48 = vpop.f32.mrf.mxu0  ;;  %v1522_v30 = vadd.f32 %v1514_v62, %v663_v6  ;;  %v8877_v62 = vld [vmem:[#allocation14 + $0xc4] ss:$16 sps:$4 sm:$0xff]   ;;  %v8885_v44 = vld [vmem:[#allocation14 + $0xc0] ss:$16 sps:$4 sm:$0xff]  }
 0x2a4   :  { %v1517_v50 = vpop.f32.mrf.mxu1  ;;  %v8865_v32 = vadd.f32 %v1543_v4, %v1542_v42  ;;  %7069 = vpow2.f32 %v6382_v3  ;;  %v8888_v42 = vld [vmem:[#allocation14 + $0xc8] ss:$16 sps:$4 sm:$0xff]   ;;  %v8891_v48 = vld [vmem:[#allocation14 + $0xa4] ss:$16 sps:$4 sm:$0xff]  }
 0x2a5   :  { %7071 = vrcp.f32 %v1534_v12  ;;  %v6383_v45 = vmul.f32 -1.442695, %v1522_v30  ;;  %v8880_v12 = vld [vmem:[#allocation14 + $0xcc] ss:$16 sps:$4 sm:$0xff]  }
 0x2a6   :  { %7073 = vtanh.f32 %v8865_v32 }
 0x2a7   :  { %7075 = vtanh.f32 %v1521_v63 }
 0x2a8   :  { %7077 = vpow2.f32 %v6383_v45  ;;  %v8897_v45 = vld [vmem:[#allocation14 + $0xa0] ss:$16 sps:$4 sm:$0xff]  }
 0x2af   :  { %v7068_v52 = vpop.eup %7067 }
 0x2b0   :  { %v1556_v8 = vadd.f32 1.0, %v7068_v52  ;;  %v8900_v52 = vld [vmem:[#allocation14 + $0xa8] ss:$16 sps:$4 sm:$0xff]  }
 0x2b1   :  { %v7070_v40 = vpop.eup %7069 }
 0x2b2   :  { %v7072_v46 = vpop.eup %7071  ;;  %7079 = vrcp.f32 %v1556_v8  ;;  %v1557_v50 = vadd.f32 1.0, %v7070_v40  ;;  %v8904_v40 = vld [vmem:[#allocation14 + $0x84] ss:$16 sps:$4 sm:$0xff]  }
 0x2b3   :  { %v7074_v4 = vpop.eup %7073 }
 0x2b4   :  { %7081 = vrcp.f32 %v1557_v50  ;;  %v1546_v49 = vmul.f32 %v7074_v4, %v7072_v46  ;;  %v7076_v13 = vpop.eup %7075  ;;  %v8907_v46 = vld [vmem:[#allocation14 + $0x8c] ss:$16 sps:$4 sm:$0xff]   ;;  %v8912_v4 = vld [vmem:[#allocation14 + $0x80] ss:$16 sps:$4 sm:$0xff]  }
 0x2b5   :  { %v7078_v3 = vpop.eup %7077 }
 0x2b6   :  { %v1571_v33 = vpack.c.bf16 %v1546_v49, %v1546_v49  ;;  %v1558_v63 = vadd.f32 1.0, %v7078_v3  ;;  %v8915_v49 = vld [vmem:[#allocation14 + $0x88] ss:$16 sps:$4 sm:$0xff]  }
 0x2b7   :  { %v8928_v3 = vld [vmem:[#allocation14 + $0x68] ss:$16 sps:$4 sm:$0xff]  }
 0x2b8   :  { %1572 = vst [vmem:[#allocation4 + $0x4] sm:$0xf] %v1571_v33  ;;  %1612 = vmatmul.mubr.bf16.vlgmr.msra.gmra.mxu0 %v1571_v33  ;;  %1653 = vmatmul.mubr.bf16.vlgmr.msra.gmra.mxu1 %v1571_v33  ;;  %7083 = vrcp.f32 %v1558_v63  ;;  %v8921_v33 = vld [vmem:[#allocation14 + $0x6c] ss:$16 sps:$4 sm:$0xff]  }
 0x2b9   :  { %1670 = vmatpush1.bf16.msra.mxu0 %v8871_v11  ;;  %1711 = vmatpush1.bf16.msra.mxu1 %v8874_v53 }
 0x2ba   :  { %1671 = vmatprep.subr.bf16.mxu0 %v8877_v62  ;;  %1712 = vmatprep.subr.bf16.mxu1 %v8880_v12 }
 0x2bb   :  { %1701 = vmatprep.mubr.bf16.mxu0 %v10829_v28  ;;  %1742 = vmatprep.mubr.bf16.mxu1 %v10829_v28 }
 0x2bd   :  { %1672 = vmatpush1.bf16.msra.mxu0 %v8885_v44  ;;  %1713 = vmatpush1.bf16.msra.mxu1 %v8888_v42 }
 0x2be   :  { %1673 = vmatprep.subr.bf16.mxu0 %v8891_v48  ;;  %1714 = vmatprep.subr.bf16.mxu1 %v8894_v5 }
 0x2bf   :  { %v7080_v6 = vpop.eup %7079 }
 0x2c0   :  { %v1567_v30 = vmul.f32 %v7080_v6, %v7076_v13  ;;  %v8925_v13 = vld [vmem:[#allocation14 + $0x60] ss:$16 sps:$4 sm:$0xff]   ;;  %v8931_v6 = vld [vmem:[#allocation14 + $0x44] ss:$16 sps:$4 sm:$0xff]  }
 0x2c1   :  { %v7082_v10 = vpop.eup %7081  ;;  %1674 = vmatpush1.bf16.msra.mxu0 %v8897_v45  ;;  %1715 = vmatpush1.bf16.msra.mxu1 %v8900_v52 }
 0x2c2   :  { %v1566_v8 = vmul.f32 %v7082_v10, %v8730_v7  ;;  %1675 = vmatprep.subr.bf16.mxu0 %v8904_v40  ;;  %1716 = vmatprep.subr.bf16.mxu1 %v8907_v46  ;;  %v8918_v7 = vld [vmem:[#allocation14 + $0x64] ss:$16 sps:$4 sm:$0xff]  }
 0x2c4   :  { %v8910_v50 = vadd.f32 %v1567_v30, %v1566_v8  ;;  %v8934_v30 = vld [vmem:[#allocation14 + $0x4c] ss:$16 sps:$4 sm:$0xff]  }
 0x2c5   :  { %1676 = vmatpush1.bf16.msra.mxu0 %v8912_v4  ;;  %1717 = vmatpush1.bf16.msra.mxu1 %v8915_v49  ;;  %v7084_v10 = vpop.eup %7083 }
 0x2c6   :  { %1677 = vmatprep.subr.bf16.mxu0 %v8918_v7  ;;  %1718 = vmatprep.subr.bf16.mxu1 %v8921_v33  ;;  %7085 = vtanh.f32 %v8910_v50 }
 0x2c9   :  { %1678 = vmatpush1.bf16.msra.mxu0 %v8925_v13  ;;  %1719 = vmatpush1.bf16.msra.mxu1 %v8928_v3 }
 0x2ca   :  { %1679 = vmatprep.subr.bf16.mxu0 %v8931_v6  ;;  %1720 = vmatprep.subr.bf16.mxu1 %v8934_v30 }
 0x2cd   :  { %1680 = vmatpush1.bf16.msra.mxu0 %v8418_v23  ;;  %1721 = vmatpush1.bf16.msra.mxu1 %v8420_v26  ;;  %v10927_v26 = vld [vmem:[#allocation113_spill] sm:$0xff] }
 0x2ce   :  { %1681 = vmatprep.subr.bf16.mxu0 %v8422_v27  ;;  %1722 = vmatprep.subr.bf16.mxu1 %v10892_v9  ;;  %v10928_v27 = vld [vmem:[#allocation114_spill] sm:$0xff] }
 0x2d1   :  { %1682 = vmatpush1.bf16.msra.mxu0 %v8430_v29  ;;  %1723 = vmatpush1.bf16.msra.mxu1 %v8432_v38  ;;  %v10929_v29 = vld [vmem:[#allocation115_spill] sm:$0xff]  ;;  %v10930_v38 = vld [vmem:[#allocation116_spill] sm:$0xff] }
 0x2d2   :  { %1683 = vmatprep.subr.bf16.mxu0 %v8434_v47  ;;  %1724 = vmatprep.subr.bf16.mxu1 %v8436_v56  ;;  %v10931_v47 = vld [vmem:[#allocation117_spill] sm:$0xff]  ;;  %v10932_v56 = vld [vmem:[#allocation118_spill] sm:$0xff] }
 0x2d3   :  { %v7086_v63 = vpop.eup %7085 }
 0x2d4   :  { %v1570_v8 = vmul.f32 %v7086_v63, %v7084_v10  ;;  %v10933_v63 = vld [vmem:[#allocation40_spill] sm:$0xff] }
 0x2d5   :  { %1684 = vmatpush1.bf16.msra.mxu0 %v8442_v1  ;;  %1725 = vmatpush1.bf16.msra.mxu1 %v8444_v21  ;;  %v10925_v1 = vld [vmem:[#allocation111_spill] sm:$0xff]  ;;  %v10926_v21 = vld [vmem:[#allocation112_spill] sm:$0xff] }
 0x2d6   :  { %v1573_v23 = vpack.c.bf16 %v1570_v8, %v1570_v8  ;;  %1811 = vmatprep.subr.bf16.mxu0 %v8751_v14  ;;  %1852 = vmatprep.subr.bf16.mxu1 %v8754_v15 }
 0x2d8   :  { %1574 = vst [vmem:[#allocation5 + $0x4] sm:$0xf] %v1573_v23  ;;  %1702 = vmatmul.mubr.bf16.vlgmr.msra.gmra.mxu0 %v1573_v23  ;;  %1743 = vmatmul.mubr.bf16.vlgmr.msra.gmra.mxu1 %v1573_v23 }
 0x2d9   :  { %1812 = vmatpush1.bf16.msra.mxu0 %v8757_v16  ;;  %1853 = vmatpush1.bf16.msra.mxu1 %v8760_v17 }
 0x2da   :  { %1813 = vmatprep.subr.bf16.mxu0 %v8763_v18  ;;  %1854 = vmatprep.subr.bf16.mxu1 %v8766_v19 }
 0x2db   :  { %1843 = vmatprep.mubr.bf16.mxu0 %v10829_v28  ;;  %1884 = vmatprep.mubr.bf16.mxu1 %v10829_v28 }
 0x2dd   :  { %1814 = vmatpush1.bf16.msra.mxu0 %v8771_v20  ;;  %1855 = vmatpush1.bf16.msra.mxu1 %v8774_v22 }
 0x2de   :  { %1815 = vmatprep.subr.bf16.mxu0 %v8777_v35  ;;  %1856 = vmatprep.subr.bf16.mxu1 %v8780_v55 }
 0x2e1   :  { %1816 = vmatpush1.bf16.msra.mxu0 %v8783_v24  ;;  %1857 = vmatpush1.bf16.msra.mxu1 %v8786_v43 }
 0x2e2   :  { %1817 = vmatprep.subr.bf16.mxu0 %v8789_v59  ;;  %1858 = vmatprep.subr.bf16.mxu1 %v8792_v31 }
 0x2e5   :  { %1818 = vmatpush1.bf16.msra.mxu0 %v8795_v36  ;;  %1859 = vmatpush1.bf16.msra.mxu1 %v8798_v34 }
 0x2e6   :  { %1819 = vmatprep.subr.bf16.mxu0 %v8801_v39  ;;  %1860 = vmatprep.subr.bf16.mxu1 %v8804_v60 }
 0x2e9   :  { %1820 = vmatpush1.bf16.msra.mxu0 %v8807_v54  ;;  %1861 = vmatpush1.bf16.msra.mxu1 %v8810_v57 }
 0x2ea   :  { %1821 = vmatprep.subr.bf16.mxu0 %v8813_v2  ;;  %1862 = vmatprep.subr.bf16.mxu1 %v8816_v0 }
 0x2ed   :  { %1822 = vmatpush1.bf16.msra.mxu0 %v8819_v37  ;;  %1863 = vmatpush1.bf16.msra.mxu1 %v8822_v41  ;;  %v10936_v41 = vld [vmem:[#allocation41_spill] sm:$0xff] }
 0x2ee   :  { %1823 = vmatprep.subr.bf16.mxu0 %v8825_v58  ;;  %1864 = vmatprep.subr.bf16.mxu1 %v8828_v51 }
 0x2f1   :  { %1824 = vmatpush1.bf16.msra.mxu0 %v10925_v1  ;;  %1865 = vmatpush1.bf16.msra.mxu1 %v10926_v21  ;;  %v10934_v21 = vld [vmem:[#allocation42_spill] sm:$0xff] }
 0x2f2   :  { %1825 = vmatprep.subr.bf16.mxu0 %v10927_v26  ;;  %1866 = vmatprep.subr.bf16.mxu1 %v10928_v27 }
 0x2f5   :  { %1826 = vmatpush1.bf16.msra.mxu0 %v10929_v29  ;;  %1867 = vmatpush1.bf16.msra.mxu1 %v10930_v38  ;;  %v10935_v38 = vld [vmem:[#allocation43_spill] sm:$0xff] }
 0x2f6   :  { %1901 = vmatprep.subr.bf16.mxu0 %v10931_v47  ;;  %1942 = vmatprep.subr.bf16.mxu1 %v10932_v56 }
 0x378   :  { %v1613_v9 = vpop.f32.mrf.mxu0  ;;  %v1654_v10 = vpop.f32.mrf.mxu1 }
 0x379   :  { %v1661_v8 = vadd.f32 %v1613_v9, %v10933_v63  ;;  %v1663_v56 = vadd.f32 %v1654_v10, %v10936_v41 }
 0x37a   :  { %v1615_v23 = vpop.f32.mrf.mxu0  ;;  %v1656_v25 = vpop.f32.mrf.mxu1 }
 0x37b   :  { %v6384_v61 = vmul.f32 -1.442695, %v1661_v8  ;;  %v1662_v1 = vadd.f32 %v1615_v23, %v10934_v21  ;;  %v1664_v47 = vadd.f32 %v1656_v25, %v10935_v38 }
 0x37c   :  { %v1617_v26 = vpop.f32.mrf.mxu0  ;;  %v1658_v51 = vpop.f32.mrf.mxu1 }
 0x37d   :  { %7087 = vpow2.f32 %v6384_v61  ;;  %v6385_v27 = vmul.f32 -1.442695, %v1662_v1  ;;  %v6386_v37 = vmul.f32 -1.442695, %v1664_v47  ;;  %v10937_v26 = vld [vmem:[#allocation70_spill] sm:$0xff]  ;;  %v10938_v47 = vld [vmem:[#allocation72_spill] sm:$0xff] }
 0x37e   :  { %v1618_v29 = vpop.f32.mrf.mxu0  ;;  %v1659_v58 = vpop.f32.mrf.mxu1 }
 0x37f   :  { %7089 = vpow2.f32 %v6385_v27 }
 0x380   :  { %7091 = vtanh.f32 %v1663_v56 }
 0x381   :  { %7093 = vpow2.f32 %v6386_v37 }
 0x38a   :  { %v7088_v0 = vpop.eup %7087 }
 0x38b   :  { %v1764_v2 = vadd.f32 1.0, %v7088_v0 }
 0x38c   :  { %v7090_v9 = vpop.eup %7089 }
 0x38d   :  { %7095 = vrcp.f32 %v1764_v2  ;;  %v1765_v63 = vadd.f32 1.0, %v7090_v9  ;;  %v7092_v21 = vpop.eup %7091 }
 0x38e   :  { %v7094_v1 = vpop.eup %7093 }
 0x38f   :  { %7097 = vrcp.f32 %v1765_v63  ;;  %v1766_v56 = vadd.f32 1.0, %v7094_v1 }
 0x398   :  { %v1703_v51 = vpop.f32.mrf.mxu0  ;;  %v1744_v61 = vpop.f32.mrf.mxu1 }
 0x399   :  { %v1751_v58 = vadd.f32 %v1703_v51, %v10937_v26  ;;  %v10940_v26 = vld [vmem:[#allocation71_spill] sm:$0xff] }
 0x39a   :  { %v7096_v27 = vpop.eup %7095  ;;  %v1705_v29 = vpop.f32.mrf.mxu0 }
 0x39b   :  { %v1746_v25 = vpop.f32.mrf.mxu1  ;;  %v1775_v38 = vmul.f32 %v7096_v27, %v7092_v21  ;;  %v6387_v41 = vmul.f32 -1.442695, %v1751_v58  ;;  %v1752_v10 = vadd.f32 %v1705_v29, %v10938_v47  ;;  %v10939_v21 = vld [vmem:[#allocation73_spill] sm:$0xff]  ;;  %v1753_v58 = vadd.f32 %v1744_v61, %v10940_v26 }
 0x39c   :  { %v7098_v0 = vpop.eup %7097  ;;  %v1707_v8 = vpop.f32.mrf.mxu0  ;;  %v1754_v51 = vadd.f32 %v1746_v25, %v10939_v21  ;;  %v9027_v21 = vld [vmem:[#allocation14 + $0x24] ss:$16 sps:$4 sm:$0xff]   ;;  %v9033_v26 = vld [vmem:[#allocation14 + $0x20] ss:$16 sps:$4 sm:$0xff]  }
 0x39d   :  { %v1748_v37 = vpop.f32.mrf.mxu1  ;;  %v1774_v2 = vmul.f32 %v7098_v0, %v8865_v32  ;;  %7099 = vpow2.f32 %v6387_v41  ;;  %v6388_v23 = vmul.f32 -1.442695, %v1752_v10 }
 0x39e   :  { %v1708_v9 = vpop.f32.mrf.mxu0  ;;  %v6389_v27 = vmul.f32 -1.442695, %v1754_v51  ;;  %v9030_v51 = vld [vmem:[#allocation14 + $0x2c] ss:$16 sps:$4 sm:$0xff]  }
 0x39f   :  { %v1749_v63 = vpop.f32.mrf.mxu1  ;;  %v8990_v57 = vadd.f32 %v1775_v38, %v1774_v2  ;;  %7101 = vpow2.f32 %v6388_v23 }
 0x3a0   :  { %7103 = vrcp.f32 %v1766_v56  ;;  %v9024_v63 = vld [vmem:[#allocation14 + $0x48] ss:$16 sps:$4 sm:$0xff]  }
 0x3a1   :  { %7105 = vtanh.f32 %v8990_v57 }
 0x3a2   :  { %7107 = vtanh.f32 %v1753_v58  ;;  %v9036_v58 = vld [vmem:[#allocation14 + $0x28] ss:$16 sps:$4 sm:$0xff]  }
 0x3a3   :  { %7109 = vpow2.f32 %v6389_v27 }
 0x3aa   :  { %v7100_v1 = vpop.eup %7099 }
 0x3ab   :  { %v1788_v29 = vadd.f32 1.0, %v7100_v1  ;;  %v9039_v1 = vld [vmem:[#allocation14 + $0x4] ss:$16 sps:$4 sm:$0xff]  }
 0x3ac   :  { %v7102_v47 = vpop.eup %7101 }
 0x3ad   :  { %v7104_v32 = vpop.eup %7103  ;;  %7111 = vrcp.f32 %v1788_v29  ;;  %v1789_v41 = vadd.f32 1.0, %v7102_v47  ;;  %v9042_v29 = vld [vmem:[#allocation14 + $0xc] ss:$16 sps:$4 sm:$0xff]  }
 0x3ae   :  { %v7106_v10 = vpop.eup %7105 }
 0x3af   :  { %7113 = vrcp.f32 %v1789_v41  ;;  %v1778_v38 = vmul.f32 %v7106_v10, %v7104_v32  ;;  %v7108_v61 = vpop.eup %7107  ;;  %v9045_v41 = vld [vmem:[#allocation14] ss:$16 sps:$4 sm:$0xff]   ;;  %v9048_v10 = vld [vmem:[#allocation14 + $0x8] ss:$16 sps:$4 sm:$0xff]  }
 0x3b0   :  { %v7110_v25 = vpop.eup %7109 }
 0x3b1   :  { %v1803_v0 = vpack.c.bf16 %v1778_v38, %v1778_v38  ;;  %v1790_v2 = vadd.f32 1.0, %v7110_v25  ;;  %v10943_v25 = vld [vmem:[#allocation106_spill] sm:$0xff] }
 0x3b3   :  { %1804 = vst [vmem:[#allocation4 + $0x8] sm:$0xf] %v1803_v0  ;;  %1844 = vmatmul.mubr.bf16.vlgmr.msra.gmra.mxu0 %v1803_v0  ;;  %1885 = vmatmul.mubr.bf16.vlgmr.msra.gmra.mxu1 %v1803_v0  ;;  %7115 = vrcp.f32 %v1790_v2  ;;  %v10941_v0 = vld [vmem:[#allocation104_spill] sm:$0xff]  ;;  %v10947_v2 = vld [vmem:[#allocation110_spill] sm:$0xff] }
 0x3b4   :  { %1902 = vmatpush1.bf16.msra.mxu0 %v8871_v11  ;;  %1943 = vmatpush1.bf16.msra.mxu1 %v8874_v53 }
 0x3b5   :  { %1903 = vmatprep.subr.bf16.mxu0 %v8877_v62  ;;  %1944 = vmatprep.subr.bf16.mxu1 %v8880_v12 }
 0x3b6   :  { %1933 = vmatprep.mubr.bf16.mxu0 %v10829_v28  ;;  %1974 = vmatprep.mubr.bf16.mxu1 %v10829_v28 }
 0x3b8   :  { %1904 = vmatpush1.bf16.msra.mxu0 %v8885_v44  ;;  %1945 = vmatpush1.bf16.msra.mxu1 %v8888_v42 }
 0x3b9   :  { %1905 = vmatprep.subr.bf16.mxu0 %v8891_v48  ;;  %1946 = vmatprep.subr.bf16.mxu1 %v8894_v5 }
 0x3ba   :  { %v7112_v56 = vpop.eup %7111 }
 0x3bb   :  { %v1799_v8 = vmul.f32 %v7112_v56, %v7108_v61  ;;  %v10942_v61 = vld [vmem:[#allocation105_spill] sm:$0xff]  ;;  %v10944_v56 = vld [vmem:[#allocation107_spill] sm:$0xff] }
 0x3bc   :  { %v7114_v37 = vpop.eup %7113  ;;  %1906 = vmatpush1.bf16.msra.mxu0 %v8897_v45  ;;  %1947 = vmatpush1.bf16.msra.mxu1 %v8900_v52 }
 0x3bd   :  { %v1798_v23 = vmul.f32 %v7114_v37, %v8910_v50  ;;  %1907 = vmatprep.subr.bf16.mxu0 %v8904_v40  ;;  %1948 = vmatprep.subr.bf16.mxu1 %v8907_v46  ;;  %v9021_v50 = vld [vmem:[#allocation14 + $0x40] ss:$16 sps:$4 sm:$0xff]  }
 0x3be   :  { %v10946_v37 = vld [vmem:[#allocation109_spill] sm:$0xff] }
 0x3bf   :  { %v9010_v9 = vadd.f32 %v1799_v8, %v1798_v23  ;;  %v10945_v8 = vld [vmem:[#allocation108_spill] sm:$0xff]  ;;  %v10948_v23 = vld [vmem:[#allocation111_spill] sm:$0xff] }
 0x3c0   :  { %1908 = vmatpush1.bf16.msra.mxu0 %v8912_v4  ;;  %1949 = vmatpush1.bf16.msra.mxu1 %v8915_v49  ;;  %v7116_v27 = vpop.eup %7115 }
 0x3c1   :  { %1909 = vmatprep.subr.bf16.mxu0 %v8918_v7  ;;  %1950 = vmatprep.subr.bf16.mxu1 %v8921_v33  ;;  %7117 = vtanh.f32 %v9010_v9 }
 0x3c4   :  { %1910 = vmatpush1.bf16.msra.mxu0 %v8925_v13  ;;  %1951 = vmatpush1.bf16.msra.mxu1 %v8928_v3 }
 0x3c5   :  { %1911 = vmatprep.subr.bf16.mxu0 %v8931_v6  ;;  %1952 = vmatprep.subr.bf16.mxu1 %v8934_v30 }
 0x3c8   :  { %1912 = vmatpush1.bf16.msra.mxu0 %v9021_v50  ;;  %1953 = vmatpush1.bf16.msra.mxu1 %v9024_v63 }
 0x3c9   :  { %1913 = vmatprep.subr.bf16.mxu0 %v9027_v21  ;;  %1954 = vmatprep.subr.bf16.mxu1 %v9030_v51 }
 0x3cc   :  { %1914 = vmatpush1.bf16.msra.mxu0 %v9033_v26  ;;  %1955 = vmatpush1.bf16.msra.mxu1 %v9036_v58 }
 0x3cd   :  { %1915 = vmatprep.subr.bf16.mxu0 %v9039_v1  ;;  %1956 = vmatprep.subr.bf16.mxu1 %v9042_v29 }
 0x3ce   :  { %v7118_v47 = vpop.eup %7117 }
 0x3cf   :  { %v1802_v32 = vmul.f32 %v7118_v47, %v7116_v27  ;;  %v10949_v27 = vld [vmem:[#allocation112_spill] sm:$0xff]  ;;  %v10950_v47 = vld [vmem:[#allocation113_spill] sm:$0xff] }
 0x3d0   :  { %1916 = vmatpush1.bf16.msra.mxu0 %v9045_v41  ;;  %1957 = vmatpush1.bf16.msra.mxu1 %v9048_v10 }
 0x3d1   :  { %v1805_v38 = vpack.c.bf16 %v1802_v32, %v1802_v32  ;;  %2043 = vmatprep.subr.bf16.mxu0 %v8751_v14  ;;  %2084 = vmatprep.subr.bf16.mxu1 %v8754_v15  ;;  %v10951_v32 = vld [vmem:[#allocation114_spill] sm:$0xff] }
 0x3d3   :  { %1806 = vst [vmem:[#allocation5 + $0x8] sm:$0xf] %v1805_v38  ;;  %1934 = vmatmul.mubr.bf16.vlgmr.msra.gmra.mxu0 %v1805_v38  ;;  %1975 = vmatmul.mubr.bf16.vlgmr.msra.gmra.mxu1 %v1805_v38  ;;  %v10952_v38 = vld [vmem:[#allocation115_spill] sm:$0xff] }
 0x3d4   :  { %2044 = vmatpush1.bf16.msra.mxu0 %v8757_v16  ;;  %2085 = vmatpush1.bf16.msra.mxu1 %v8760_v17 }
 0x3d5   :  { %2045 = vmatprep.subr.bf16.mxu0 %v8763_v18  ;;  %2086 = vmatprep.subr.bf16.mxu1 %v8766_v19 }
 0x3d6   :  { %2075 = vmatprep.mubr.bf16.mxu0 %v10829_v28  ;;  %2116 = vmatprep.mubr.bf16.mxu1 %v10829_v28 }
 0x3d8   :  { %2046 = vmatpush1.bf16.msra.mxu0 %v8771_v20  ;;  %2087 = vmatpush1.bf16.msra.mxu1 %v8774_v22 }
 0x3d9   :  { %2047 = vmatprep.subr.bf16.mxu0 %v8777_v35  ;;  %2088 = vmatprep.subr.bf16.mxu1 %v8780_v55 }
 0x3dc   :  { %2048 = vmatpush1.bf16.msra.mxu0 %v8783_v24  ;;  %2089 = vmatpush1.bf16.msra.mxu1 %v8786_v43  ;;  %v10961_v24 = vld [vmem:[#allocation45_spill] sm:$0xff] }
 0x3dd   :  { %2049 = vmatprep.subr.bf16.mxu0 %v8789_v59  ;;  %2090 = vmatprep.subr.bf16.mxu1 %v8792_v31 }
 0x3e0   :  { %2050 = vmatpush1.bf16.msra.mxu0 %v8795_v36  ;;  %2091 = vmatpush1.bf16.msra.mxu1 %v8798_v34 }
 0x3e1   :  { %2051 = vmatprep.subr.bf16.mxu0 %v8801_v39  ;;  %2092 = vmatprep.subr.bf16.mxu1 %v8804_v60 }
 0x3e4   :  { %2052 = vmatpush1.bf16.msra.mxu0 %v8807_v54  ;;  %2093 = vmatpush1.bf16.msra.mxu1 %v10941_v0  ;;  %v10956_v0 = vld [vmem:[#allocation38_spill] sm:$0xff] }
 0x3e5   :  { %2053 = vmatprep.subr.bf16.mxu0 %v10942_v61  ;;  %2094 = vmatprep.subr.bf16.mxu1 %v10943_v25  ;;  %v10953_v61 = vld [vmem:[#allocation116_spill] sm:$0xff]  ;;  %v10954_v25 = vld [vmem:[#allocation117_spill] sm:$0xff] }
 0x3e8   :  { %2054 = vmatpush1.bf16.msra.mxu0 %v10944_v56  ;;  %2095 = vmatpush1.bf16.msra.mxu1 %v10945_v8  ;;  %v10955_v56 = vld [vmem:[#allocation118_spill] sm:$0xff] }
 0x3e9   :  { %2055 = vmatprep.subr.bf16.mxu0 %v10946_v37  ;;  %2096 = vmatprep.subr.bf16.mxu1 %v10947_v2  ;;  %v10957_v2 = vld [vmem:[#allocation46_spill] sm:$0xff] }
 0x3ea   :  { %v335_v54 = vadd.f32 %v10957_v2, %v10956_v0 }
 0x3ec   :  { %2056 = vmatpush1.bf16.msra.mxu0 %v10948_v23  ;;  %2097 = vmatpush1.bf16.msra.mxu1 %v10949_v27  ;;  %v10958_v23 = vld [vmem:[#allocation44_spill] sm:$0xff] }
 0x3ed   :  { %2057 = vmatprep.subr.bf16.mxu0 %v10950_v47  ;;  %2098 = vmatprep.subr.bf16.mxu1 %v10951_v32 }
 0x3f0   :  { %2058 = vmatpush1.bf16.msra.mxu0 %v10952_v38  ;;  %2099 = vmatpush1.bf16.msra.mxu1 %v10953_v61 }
 0x3f1   :  { %2133 = vmatprep.subr.bf16.mxu0 %v10954_v25  ;;  %2174 = vmatprep.subr.bf16.mxu1 %v10955_v56  ;;  %v10959_v25 = vld [vmem:[#allocation39_spill] sm:$0xff] }
 0x3f2   :  { %v10960_v56 = vld [vmem:[#allocation47_spill] sm:$0xff] }
 0x3f3   :  { %v408_v59 = vadd.f32 %v10960_v56, %v10959_v25  ;;  %v10964_v56 = vld [vmem:[#allocation74_spill] sm:$0xff] }
 0x473   :  { %v1845_v8 = vpop.f32.mrf.mxu0  ;;  %v1886_v37 = vpop.f32.mrf.mxu1 }
 0x474   :  { %v1893_v60 = vadd.f32 %v1845_v8, %v10958_v23  ;;  %v1895_v55 = vadd.f32 %v1886_v37, %v10961_v24 }
 0x475   :  { %v1847_v27 = vpop.f32.mrf.mxu0  ;;  %v1888_v39 = vpop.f32.mrf.mxu1 }
 0x476   :  { %v6390_v47 = vmul.f32 -1.442695, %v1893_v60  ;;  %v1894_v34 = vadd.f32 %v1847_v27, %v335_v54  ;;  %v1896_v43 = vadd.f32 %v1888_v39, %v408_v59  ;;  %v10963_v27 = vld [vmem:[#allocation76_spill] sm:$0xff] }
 0x477   :  { %v1849_v32 = vpop.f32.mrf.mxu0  ;;  %v1890_v36 = vpop.f32.mrf.mxu1 }
 0x478   :  { %7119 = vpow2.f32 %v6390_v47  ;;  %v6391_v38 = vmul.f32 -1.442695, %v1894_v34  ;;  %v6392_v2 = vmul.f32 -1.442695, %v1896_v43 }
 0x479   :  { %v1850_v61 = vpop.f32.mrf.mxu0  ;;  %v1891_v31 = vpop.f32.mrf.mxu1 }
 0x47a   :  { %7121 = vpow2.f32 %v6391_v38  ;;  %v10962_v61 = vld [vmem:[#allocation68_spill] sm:$0xff] }
 0x47b   :  { %7123 = vtanh.f32 %v1895_v55  ;;  %v600_v47 = vadd.f32 %v10963_v27, %v10962_v61 }
 0x47c   :  { %7125 = vpow2.f32 %v6392_v2 }
 0x485   :  { %v7120_v0 = vpop.eup %7119 }
 0x486   :  { %v1996_v8 = vadd.f32 1.0, %v7120_v0 }
 0x487   :  { %v7122_v23 = vpop.eup %7121 }
 0x488   :  { %7127 = vrcp.f32 %v1996_v8  ;;  %v1997_v60 = vadd.f32 1.0, %v7122_v23  ;;  %v7124_v36 = vpop.eup %7123 }
 0x489   :  { %v7126_v31 = vpop.eup %7125 }
 0x48a   :  { %7129 = vrcp.f32 %v1997_v60  ;;  %v1998_v38 = vadd.f32 1.0, %v7126_v31 }
 0x493   :  { %v1935_v34 = vpop.f32.mrf.mxu0  ;;  %v1976_v54 = vpop.f32.mrf.mxu1 }
 0x494   :  { %v1983_v59 = vadd.f32 %v1935_v34, %v10964_v56  ;;  %v10965_v34 = vld [vmem:[#allocation69_spill] sm:$0xff]  ;;  %v10967_v56 = vld [vmem:[#allocation75_spill] sm:$0xff] }
 0x495   :  { %v7128_v39 = vpop.eup %7127  ;;  %v1937_v24 = vpop.f32.mrf.mxu0  ;;  %v1985_v31 = vadd.f32 %v1976_v54, %v10967_v56  ;;  %v10970_v56 = vld [vmem:[#allocation94_spill] sm:$0xff] }
 0x496   :  { %v1978_v43 = vpop.f32.mrf.mxu1  ;;  %v2007_v37 = vmul.f32 %v7128_v39, %v7124_v36  ;;  %v6393_v0 = vmul.f32 -1.442695, %v1983_v59  ;;  %v1984_v55 = vadd.f32 %v1937_v24, %v600_v47  ;;  %v10966_v36 = vld [vmem:[#allocation77_spill] sm:$0xff] }
 0x497   :  { %v7130_v32 = vpop.eup %7129  ;;  %v1939_v2 = vpop.f32.mrf.mxu0  ;;  %v673_v27 = vadd.f32 %v10966_v36, %v10965_v34 }
 0x498   :  { %v1980_v8 = vpop.f32.mrf.mxu1  ;;  %v2006_v23 = vmul.f32 %v7130_v32, %v8990_v57  ;;  %7131 = vpow2.f32 %v6393_v0  ;;  %v6394_v60 = vmul.f32 -1.442695, %v1984_v55 }
 0x499   :  { %v1940_v25 = vpop.f32.mrf.mxu0  ;;  %v1986_v47 = vadd.f32 %v1978_v43, %v673_v27 }
 0x49a   :  { %v1981_v35 = vpop.f32.mrf.mxu1  ;;  %v9097_v22 = vadd.f32 %v2007_v37, %v2006_v23  ;;  %7133 = vpow2.f32 %v6394_v60 }
 0x49b   :  { %7135 = vrcp.f32 %v1998_v38  ;;  %v6395_v59 = vmul.f32 -1.442695, %v1986_v47 }
 0x49c   :  { %7137 = vtanh.f32 %v9097_v22 }
 0x49d   :  { %7139 = vtanh.f32 %v1985_v31  ;;  %v10971_v31 = vld [vmem:[#allocation95_spill] sm:$0xff] }
 0x49e   :  { %7141 = vpow2.f32 %v6395_v59  ;;  %v10976_v59 = vld [vmem:[#allocation100_spill] sm:$0xff] }
 0x4a5   :  { %v7132_v39 = vpop.eup %7131 }
 0x4a6   :  { %v2020_v24 = vadd.f32 1.0, %v7132_v39  ;;  %v10977_v39 = vld [vmem:[#allocation101_spill] sm:$0xff] }
 0x4a7   :  { %v7134_v57 = vpop.eup %7133 }
 0x4a8   :  { %v7136_v25 = vpop.eup %7135  ;;  %7143 = vrcp.f32 %v2020_v24  ;;  %v2021_v35 = vadd.f32 1.0, %v7134_v57  ;;  %v10979_v24 = vld [vmem:[#allocation103_spill] sm:$0xff]  ;;  %v10980_v57 = vld [vmem:[#allocation104_spill] sm:$0xff] }
 0x4a9   :  { %v7138_v37 = vpop.eup %7137 }
 0x4aa   :  { %7145 = vrcp.f32 %v2021_v35  ;;  %v2010_v0 = vmul.f32 %v7138_v37, %v7136_v25  ;;  %v7140_v54 = vpop.eup %7139  ;;  %v10981_v25 = vld [vmem:[#allocation105_spill] sm:$0xff]  ;;  %v10982_v35 = vld [vmem:[#allocation106_spill] sm:$0xff]  ;;  %v10983_v37 = vld [vmem:[#allocation107_spill] sm:$0xff] }
 0x4ab   :  { %v7142_v43 = vpop.eup %7141 }
 0x4ac   :  { %v2035_v55 = vpack.c.bf16 %v2010_v0, %v2010_v0  ;;  %v2022_v8 = vadd.f32 1.0, %v7142_v43  ;;  %v10984_v0 = vld [vmem:[#allocation108_spill] sm:$0xff]  ;;  %v10987_v43 = vld [vmem:[#allocation111_spill] sm:$0xff] }
 0x4ae   :  { %2036 = vst [vmem:[#allocation4 + $0xc] sm:$0xf] %v2035_v55  ;;  %2076 = vmatmul.mubr.bf16.vlgmr.msra.gmra.mxu0 %v2035_v55  ;;  %2117 = vmatmul.mubr.bf16.vlgmr.msra.gmra.mxu1 %v2035_v55  ;;  %7147 = vrcp.f32 %v2022_v8  ;;  %v10985_v55 = vld [vmem:[#allocation109_spill] sm:$0xff]  ;;  %v10991_v8 = vld [vmem:[#allocation115_spill] sm:$0xff] }
 0x4af   :  { %2134 = vmatpush1.bf16.msra.mxu0 %v8871_v11  ;;  %2175 = vmatpush1.bf16.msra.mxu1 %v8874_v53 }
 0x4b0   :  { %2135 = vmatprep.subr.bf16.mxu0 %v8877_v62  ;;  %2176 = vmatprep.subr.bf16.mxu1 %v8880_v12 }
 0x4b1   :  { %2165 = vmatprep.mubr.bf16.mxu0 %v10829_v28  ;;  %2206 = vmatprep.mubr.bf16.mxu1 %v10829_v28 }
 0x4b3   :  { %2136 = vmatpush1.bf16.msra.mxu0 %v8885_v44  ;;  %2177 = vmatpush1.bf16.msra.mxu1 %v8888_v42 }
 0x4b4   :  { %2137 = vmatprep.subr.bf16.mxu0 %v8891_v48  ;;  %2178 = vmatprep.subr.bf16.mxu1 %v8894_v5 }
 0x4b5   :  { %v7144_v32 = vpop.eup %7143 }
 0x4b6   :  { %v2031_v38 = vmul.f32 %v7144_v32, %v7140_v54  ;;  %v10986_v54 = vld [vmem:[#allocation110_spill] sm:$0xff]  ;;  %v10988_v32 = vld [vmem:[#allocation112_spill] sm:$0xff] }
 0x4b7   :  { %v7146_v2 = vpop.eup %7145  ;;  %2138 = vmatpush1.bf16.msra.mxu0 %v8897_v45  ;;  %2179 = vmatpush1.bf16.msra.mxu1 %v8900_v52 }
 0x4b8   :  { %v2030_v23 = vmul.f32 %v7146_v2, %v9010_v9  ;;  %2139 = vmatprep.subr.bf16.mxu0 %v8904_v40  ;;  %2180 = vmatprep.subr.bf16.mxu1 %v8907_v46  ;;  %v10990_v2 = vld [vmem:[#allocation114_spill] sm:$0xff] }
 0x4ba   :  { %v9118_v60 = vadd.f32 %v2031_v38, %v2030_v23  ;;  %v10989_v38 = vld [vmem:[#allocation113_spill] sm:$0xff]  ;;  %v10992_v23 = vld [vmem:[#allocation116_spill] sm:$0xff] }
 0x4bb   :  { %2140 = vmatpush1.bf16.msra.mxu0 %v8912_v4  ;;  %2181 = vmatpush1.bf16.msra.mxu1 %v8915_v49  ;;  %v7148_v9 = vpop.eup %7147 }
 0x4bc   :  { %2141 = vmatprep.subr.bf16.mxu0 %v8918_v7  ;;  %2182 = vmatprep.subr.bf16.mxu1 %v8921_v33  ;;  %7149 = vtanh.f32 %v9118_v60 }
 0x4bf   :  { %2142 = vmatpush1.bf16.msra.mxu0 %v8925_v13  ;;  %2183 = vmatpush1.bf16.msra.mxu1 %v8928_v3 }
 0x4c0   :  { %2143 = vmatprep.subr.bf16.mxu0 %v8931_v6  ;;  %2184 = vmatprep.subr.bf16.mxu1 %v8934_v30 }
 0x4c3   :  { %2144 = vmatpush1.bf16.msra.mxu0 %v9021_v50  ;;  %2185 = vmatpush1.bf16.msra.mxu1 %v9024_v63 }
 0x4c4   :  { %2145 = vmatprep.subr.bf16.mxu0 %v9027_v21  ;;  %2186 = vmatprep.subr.bf16.mxu1 %v9030_v51 }
 0x4c7   :  { %2146 = vmatpush1.bf16.msra.mxu0 %v9033_v26  ;;  %2187 = vmatpush1.bf16.msra.mxu1 %v9036_v58 }
 0x4c8   :  { %2147 = vmatprep.subr.bf16.mxu0 %v9039_v1  ;;  %2188 = vmatprep.subr.bf16.mxu1 %v9042_v29 }
 0x4c9   :  { %v7150_v36 = vpop.eup %7149 }
 0x4ca   :  { %v2034_v27 = vmul.f32 %v7150_v36, %v7148_v9  ;;  %v10993_v9 = vld [vmem:[#allocation117_spill] sm:$0xff]  ;;  %v10994_v36 = vld [vmem:[#allocation118_spill] sm:$0xff] }
 0x4cb   :  { %2148 = vmatpush1.bf16.msra.mxu0 %v9045_v41  ;;  %2189 = vmatpush1.bf16.msra.mxu1 %v9048_v10 }
 0x4cc   :  { %v2037_v47 = vpack.c.bf16 %v2034_v27, %v2034_v27  ;;  %2275 = vmatprep.subr.bf16.mxu0 %v8751_v14  ;;  %2316 = vmatprep.subr.bf16.mxu1 %v8754_v15  ;;  %v10968_v14 = vld [vmem:[#allocation31_spill] sm:$0xff]  ;;  %v10969_v15 = vld [vmem:[#allocation32_spill] sm:$0xff] }
 0x4ce   :  { %2038 = vst [vmem:[#allocation5 + $0xc] sm:$0xf] %v2037_v47  ;;  %2166 = vmatmul.mubr.bf16.vlgmr.msra.gmra.mxu0 %v2037_v47  ;;  %2207 = vmatmul.mubr.bf16.vlgmr.msra.gmra.mxu1 %v2037_v47 }
 0x4cf   :  { %2276 = vmatpush1.bf16.msra.mxu0 %v8757_v16  ;;  %2317 = vmatpush1.bf16.msra.mxu1 %v8760_v17  ;;  %v10972_v16 = vld [vmem:[#allocation96_spill] sm:$0xff]  ;;  %v10973_v17 = vld [vmem:[#allocation97_spill] sm:$0xff] }
 0x4d0   :  { %2277 = vmatprep.subr.bf16.mxu0 %v8763_v18  ;;  %2318 = vmatprep.subr.bf16.mxu1 %v8766_v19  ;;  %v10974_v18 = vld [vmem:[#allocation98_spill] sm:$0xff]  ;;  %v10975_v19 = vld [vmem:[#allocation99_spill] sm:$0xff] }
 0x4d1   :  { %2307 = vmatprep.mubr.bf16.mxu0 %v10829_v28  ;;  %2348 = vmatprep.mubr.bf16.mxu1 %v10829_v28 }
 0x4d3   :  { %2278 = vmatpush1.bf16.msra.mxu0 %v8771_v20  ;;  %2319 = vmatpush1.bf16.msra.mxu1 %v10968_v14  ;;  %v10978_v20 = vld [vmem:[#allocation102_spill] sm:$0xff]  ;;  %v10995_v14 = vld [vmem:[#allocation48_spill] sm:$0xff] }
 0x4d4   :  { %2279 = vmatprep.subr.bf16.mxu0 %v10969_v15  ;;  %2320 = vmatprep.subr.bf16.mxu1 %v10970_v56 }
 0x4d7   :  { %2280 = vmatpush1.bf16.msra.mxu0 %v10971_v31  ;;  %2321 = vmatpush1.bf16.msra.mxu1 %v10972_v16 }
 0x4d8   :  { %2281 = vmatprep.subr.bf16.mxu0 %v10973_v17  ;;  %2322 = vmatprep.subr.bf16.mxu1 %v10974_v18  ;;  %v10996_v17 = vld [vmem:[#allocation50_spill] sm:$0xff] }
 0x4db   :  { %2282 = vmatpush1.bf16.msra.mxu0 %v10975_v19  ;;  %2323 = vmatpush1.bf16.msra.mxu1 %v10976_v59 }
 0x4dc   :  { %2283 = vmatprep.subr.bf16.mxu0 %v10977_v39  ;;  %2324 = vmatprep.subr.bf16.mxu1 %v10978_v20 }
 0x4df   :  { %2284 = vmatpush1.bf16.msra.mxu0 %v10979_v24  ;;  %2325 = vmatpush1.bf16.msra.mxu1 %v10980_v57  ;;  %v10997_v57 = vld [vmem:[#allocation51_spill] sm:$0xff] }
 0x4e0   :  { %2285 = vmatprep.subr.bf16.mxu0 %v10981_v25  ;;  %2326 = vmatprep.subr.bf16.mxu1 %v10982_v35  ;;  %v10998_v35 = vld [vmem:[#allocation49_spill] sm:$0xff] }
 0x4e3   :  { %2286 = vmatpush1.bf16.msra.mxu0 %v10983_v37  ;;  %2327 = vmatpush1.bf16.msra.mxu1 %v10984_v0 }
 0x4e4   :  { %2287 = vmatprep.subr.bf16.mxu0 %v10985_v55  ;;  %2328 = vmatprep.subr.bf16.mxu1 %v10986_v54 }
 0x4e7   :  { %2288 = vmatpush1.bf16.msra.mxu0 %v10987_v43  ;;  %2329 = vmatpush1.bf16.msra.mxu1 %v10988_v32 }
 0x4e8   :  { %2289 = vmatprep.subr.bf16.mxu0 %v10989_v38  ;;  %2330 = vmatprep.subr.bf16.mxu1 %v10990_v2 }
 0x4eb   :  { %2290 = vmatpush1.bf16.msra.mxu0 %v10991_v8  ;;  %2331 = vmatpush1.bf16.msra.mxu1 %v10992_v23 }
 0x4ec   :  { %2365 = vmatprep.subr.bf16.mxu0 %v10993_v9  ;;  %2406 = vmatprep.subr.bf16.mxu1 %v10994_v36  ;;  %v10999_v9 = vld [vmem:[#allocation78_spill] sm:$0xff] }
 0x56e   :  { %v2077_v27 = vpop.f32.mrf.mxu0  ;;  %v2118_v47 = vpop.f32.mrf.mxu1 }
 0x56f   :  { %v2125_v15 = vadd.f32 %v2077_v27, %v10995_v14  ;;  %v2127_v37 = vadd.f32 %v2118_v47, %v10998_v35  ;;  %v11001_v35 = vld [vmem:[#allocation81_spill] sm:$0xff] }
 0x570   :  { %v2079_v56 = vpop.f32.mrf.mxu0  ;;  %v2120_v31 = vpop.f32.mrf.mxu1 }
 0x571   :  { %v6396_v16 = vmul.f32 -1.442695, %v2125_v15  ;;  %v2126_v18 = vadd.f32 %v2079_v56, %v10996_v17  ;;  %v2128_v25 = vadd.f32 %v2120_v31, %v10997_v57  ;;  %v11000_v31 = vld [vmem:[#allocation80_spill] sm:$0xff] }
 0x572   :  { %v2081_v19 = vpop.f32.mrf.mxu0  ;;  %v2122_v59 = vpop.f32.mrf.mxu1 }
 0x573   :  { %7151 = vpow2.f32 %v6396_v16  ;;  %v6397_v39 = vmul.f32 -1.442695, %v2126_v18  ;;  %v6398_v0 = vmul.f32 -1.442695, %v2128_v25 }
 0x574   :  { %v2082_v20 = vpop.f32.mrf.mxu0  ;;  %v2123_v24 = vpop.f32.mrf.mxu1 }
 0x575   :  { %7153 = vpow2.f32 %v6397_v39 }
 0x576   :  { %7155 = vtanh.f32 %v2127_v37 }
 0x577   :  { %7157 = vpow2.f32 %v6398_v0  ;;  %v11002_v0 = vld [vmem:[#allocation79_spill] sm:$0xff] }
 0x580   :  { %v7152_v55 = vpop.eup %7151 }
 0x581   :  { %v2228_v54 = vadd.f32 1.0, %v7152_v55 }
 0x582   :  { %v7154_v43 = vpop.eup %7153 }
 0x583   :  { %7159 = vrcp.f32 %v2228_v54  ;;  %v2229_v32 = vadd.f32 1.0, %v7154_v43  ;;  %v7156_v38 = vpop.eup %7155 }
 0x584   :  { %v7158_v23 = vpop.eup %7157 }
 0x585   :  { %7161 = vrcp.f32 %v2229_v32  ;;  %v2230_v18 = vadd.f32 1.0, %v7158_v23 }
 0x58e   :  { %v2167_v2 = vpop.f32.mrf.mxu0  ;;  %v2208_v8 = vpop.f32.mrf.mxu1 }
 0x58f   :  { %v2215_v36 = vadd.f32 %v2167_v2, %v10999_v9  ;;  %v2217_v55 = vadd.f32 %v2208_v8, %v11002_v0  ;;  %v9306_v0 = vld [vmem:[#allocation6 + $0x28] ss:$16 sps:$4 sm:$0xff]  }
 0x590   :  { %v7160_v27 = vpop.eup %7159  ;;  %v2169_v14 = vpop.f32.mrf.mxu0  ;;  %11004 = vst [vmem:[#allocation66_spill] sm:$0xff] %v9306_v0 }
 0x591   :  { %v2210_v15 = vpop.f32.mrf.mxu1  ;;  %v2239_v56 = vmul.f32 %v7160_v27, %v7156_v38  ;;  %v6399_v47 = vmul.f32 -1.442695, %v2215_v36  ;;  %v2216_v16 = vadd.f32 %v2169_v14, %v11000_v31  ;;  %v9270_v31 = vld [vmem:[#allocation6 + $0x88] ss:$16 sps:$4 sm:$0xff]  }
 0x592   :  { %v7162_v17 = vpop.eup %7161  ;;  %v2171_v19 = vpop.f32.mrf.mxu0  ;;  %v2218_v37 = vadd.f32 %v2210_v15, %v11001_v35  ;;  %v9261_v15 = vld [vmem:[#allocation6 + $0x84] ss:$16 sps:$4 sm:$0xff]   ;;  %v9300_v35 = vld [vmem:[#allocation6 + $0x2c] ss:$16 sps:$4 sm:$0xff]  }
 0x593   :  { %v2212_v59 = vpop.f32.mrf.mxu1  ;;  %v2238_v39 = vmul.f32 %v7162_v17, %v9097_v22  ;;  %7163 = vpow2.f32 %v6399_v47  ;;  %v6400_v20 = vmul.f32 -1.442695, %v2216_v16  ;;  %v9267_v47 = vld [vmem:[#allocation6 + $0x80] ss:$16 sps:$4 sm:$0xff]   ;;  %v9273_v16 = vld [vmem:[#allocation6 + $0x64] ss:$16 sps:$4 sm:$0xff]  }
 0x594   :  { %v2172_v24 = vpop.f32.mrf.mxu0  ;;  %v6401_v54 = vmul.f32 -1.442695, %v2218_v37  ;;  %v9276_v17 = vld [vmem:[#allocation6 + $0x6c] ss:$16 sps:$4 sm:$0xff]   ;;  %v9282_v19 = vld [vmem:[#allocation6 + $0x68] ss:$16 sps:$4 sm:$0xff]  }
 0x595   :  { %v2213_v57 = vpop.f32.mrf.mxu1  ;;  %v9182_v25 = vadd.f32 %v2239_v56, %v2238_v39  ;;  %7165 = vpow2.f32 %v6400_v20  ;;  %v9264_v56 = vld [vmem:[#allocation6 + $0x8c] ss:$16 sps:$4 sm:$0xff]   ;;  %v9285_v59 = vld [vmem:[#allocation6 + $0x44] ss:$16 sps:$4 sm:$0xff]   ;;  %v9291_v20 = vld [vmem:[#allocation6 + $0x40] ss:$16 sps:$4 sm:$0xff]  }
 0x596   :  { %7167 = vrcp.f32 %v2230_v18  ;;  %v9279_v18 = vld [vmem:[#allocation6 + $0x60] ss:$16 sps:$4 sm:$0xff]   ;;  %v9288_v39 = vld [vmem:[#allocation6 + $0x4c] ss:$16 sps:$4 sm:$0xff]   ;;  %v9294_v24 = vld [vmem:[#allocation6 + $0x48] ss:$16 sps:$4 sm:$0xff]  }
 0x597   :  { %7169 = vtanh.f32 %v9182_v25  ;;  %v9297_v57 = vld [vmem:[#allocation6 + $0x24] ss:$16 sps:$4 sm:$0xff]   ;;  %v9303_v37 = vld [vmem:[#allocation6 + $0x20] ss:$16 sps:$4 sm:$0xff]  }
 0x598   :  { %7171 = vtanh.f32 %v2217_v55  ;;  %11003 = vst [vmem:[#allocation37_spill] sm:$0xff] %v9303_v37  ;;  %v9309_v55 = vld [vmem:[#allocation6 + $0x4] ss:$16 sps:$4 sm:$0xff]  }
 0x599   :  { %7173 = vpow2.f32 %v6401_v54  ;;  %11005 = vst [vmem:[#allocation64_spill] sm:$0xff] %v9309_v55  ;;  %v9312_v54 = vld [vmem:[#allocation6 + $0xc] ss:$16 sps:$4 sm:$0xff]  }
 0x59a   :  { %11006 = vst [vmem:[#allocation67_spill] sm:$0xff] %v9312_v54 }
 0x5a0   :  { %v7164_v43 = vpop.eup %7163 }
 0x5a1   :  { %v2252_v32 = vadd.f32 1.0, %v7164_v43  ;;  %v9315_v43 = vld [vmem:[#allocation6] ss:$16 sps:$4 sm:$0xff]  }
 0x5a2   :  { %v7166_v38 = vpop.eup %7165  ;;  %11007 = vst [vmem:[#allocation65_spill] sm:$0xff] %v9315_v43 }
 0x5a3   :  { %v7168_v22 = vpop.eup %7167  ;;  %7175 = vrcp.f32 %v2252_v32  ;;  %v2253_v2 = vadd.f32 1.0, %v7166_v38  ;;  %v9318_v32 = vld [vmem:[#allocation6 + $0x8] ss:$16 sps:$4 sm:$0xff]  }
 0x5a4   :  { %v7170_v23 = vpop.eup %7169  ;;  %11008 = vst [vmem:[#allocation40_spill] sm:$0xff] %v9318_v32  ;;  %v9321_v38 = vld [vmem:[#allocation14 + $0xe4] ss:$16 sps:$4 sm:$0xff]  }
 0x5a5   :  { %7177 = vrcp.f32 %v2253_v2  ;;  %v2242_v9 = vmul.f32 %v7170_v23, %v7168_v22  ;;  %v7172_v8 = vpop.eup %7171  ;;  %11009 = vst [vmem:[#allocation42_spill] sm:$0xff] %v9321_v38  ;;  %v9324_v22 = vld [vmem:[#allocation14 + $0xec] ss:$16 sps:$4 sm:$0xff]  }
 0x5a6   :  { %v7174_v27 = vpop.eup %7173  ;;  %11010 = vst [vmem:[#allocation43_spill] sm:$0xff] %v9324_v22 }
 0x5a7   :  { %v2267_v36 = vpack.c.bf16 %v2242_v9, %v2242_v9  ;;  %v11011_v9 = vld [vmem:[#allocation38_spill] sm:$0xff] }
 0x5a9   :  { %2268 = vst [vmem:[#allocation4 + $0x10] sm:$0xf] %v2267_v36  ;;  %2308 = vmatmul.mubr.bf16.vlgmr.msra.gmra.mxu0 %v2267_v36  ;;  %2349 = vmatmul.mubr.bf16.vlgmr.msra.gmra.mxu1 %v2267_v36  ;;  %v11012_v36 = vld [vmem:[#allocation54_spill] sm:$0xff] }
 0x5aa   :  { %2366 = vmatpush1.bf16.msra.mxu0 %v8871_v11  ;;  %2407 = vmatpush1.bf16.msra.mxu1 %v8874_v53 }
 0x5ab   :  { %2367 = vmatprep.subr.bf16.mxu0 %v8877_v62  ;;  %2408 = vmatprep.subr.bf16.mxu1 %v8880_v12  ;;  %v2254_v62 = vadd.f32 1.0, %v7174_v27  ;;  %v11013_v27 = vld [vmem:[#allocation52_spill] sm:$0xff] }
 0x5ac   :  { %2397 = vmatprep.mubr.bf16.mxu0 %v10829_v28  ;;  %2438 = vmatprep.mubr.bf16.mxu1 %v10829_v28 }
 0x5ad   :  { %7179 = vrcp.f32 %v2254_v62 }
 0x5ae   :  { %2368 = vmatpush1.bf16.msra.mxu0 %v8885_v44  ;;  %2409 = vmatpush1.bf16.msra.mxu1 %v8888_v42 }
 0x5af   :  { %2369 = vmatprep.subr.bf16.mxu0 %v8891_v48  ;;  %2410 = vmatprep.subr.bf16.mxu1 %v8894_v5 }
 0x5b0   :  { %v7176_v11 = vpop.eup %7175 }
 0x5b1   :  { %v2263_v53 = vmul.f32 %v7176_v11, %v7172_v8  ;;  %v345_v8 = vadd.f32 %v11012_v36, %v11011_v9 }
 0x5b2   :  { %v7178_v14 = vpop.eup %7177  ;;  %2370 = vmatpush1.bf16.msra.mxu0 %v8897_v45  ;;  %2411 = vmatpush1.bf16.msra.mxu1 %v8900_v52  ;;  %v9223_v52 = vld [vmem:[#allocation6 + $0xe4] ss:$16 sps:$4 sm:$0xff]  }
 0x5b3   :  { %v2262_v12 = vmul.f32 %v7178_v14, %v9118_v60  ;;  %2371 = vmatprep.subr.bf16.mxu0 %v8904_v40  ;;  %2412 = vmatprep.subr.bf16.mxu1 %v8907_v46  ;;  %v9226_v40 = vld [vmem:[#allocation6 + $0xec] ss:$16 sps:$4 sm:$0xff]   ;;  %v9229_v46 = vld [vmem:[#allocation6 + $0xe0] ss:$16 sps:$4 sm:$0xff]   ;;  %v9258_v60 = vld [vmem:[#allocation6 + $0xa8] ss:$16 sps:$4 sm:$0xff]  }
 0x5b5   :  { %v9202_v44 = vadd.f32 %v2263_v53, %v2262_v12 }
 0x5b6   :  { %2372 = vmatpush1.bf16.msra.mxu0 %v8912_v4  ;;  %2413 = vmatpush1.bf16.msra.mxu1 %v8915_v49  ;;  %v9232_v4 = vld [vmem:[#allocation6 + $0xe8] ss:$16 sps:$4 sm:$0xff]   ;;  %v9235_v49 = vld [vmem:[#allocation6 + $0xc4] ss:$16 sps:$4 sm:$0xff]  }
 0x5b7   :  { %2373 = vmatprep.subr.bf16.mxu0 %v8918_v7  ;;  %2414 = vmatprep.subr.bf16.mxu1 %v8921_v33  ;;  %7181 = vtanh.f32 %v9202_v44  ;;  %v9238_v7 = vld [vmem:[#allocation6 + $0xcc] ss:$16 sps:$4 sm:$0xff]   ;;  %v9243_v33 = vld [vmem:[#allocation6 + $0xc0] ss:$16 sps:$4 sm:$0xff]  }
 0x5ba   :  { %2374 = vmatpush1.bf16.msra.mxu0 %v8925_v13  ;;  %2415 = vmatpush1.bf16.msra.mxu1 %v8928_v3  ;;  %v7180_v42 = vpop.eup %7179  ;;  %v9246_v13 = vld [vmem:[#allocation6 + $0xc8] ss:$16 sps:$4 sm:$0xff]   ;;  %v9249_v3 = vld [vmem:[#allocation6 + $0xa4] ss:$16 sps:$4 sm:$0xff]  }
 0x5bb   :  { %2375 = vmatprep.subr.bf16.mxu0 %v8931_v6  ;;  %2416 = vmatprep.subr.bf16.mxu1 %v8934_v30  ;;  %v9252_v6 = vld [vmem:[#allocation6 + $0xac] ss:$16 sps:$4 sm:$0xff]   ;;  %v9255_v30 = vld [vmem:[#allocation6 + $0xa0] ss:$16 sps:$4 sm:$0xff]  }
 0x5be   :  { %2376 = vmatpush1.bf16.msra.mxu0 %v9021_v50  ;;  %2417 = vmatpush1.bf16.msra.mxu1 %v9024_v63 }
 0x5bf   :  { %2377 = vmatprep.subr.bf16.mxu0 %v9027_v21  ;;  %2418 = vmatprep.subr.bf16.mxu1 %v9030_v51 }
 0x5c2   :  { %2378 = vmatpush1.bf16.msra.mxu0 %v9033_v26  ;;  %2419 = vmatpush1.bf16.msra.mxu1 %v9036_v58 }
 0x5c3   :  { %2379 = vmatprep.subr.bf16.mxu0 %v9039_v1  ;;  %2420 = vmatprep.subr.bf16.mxu1 %v9042_v29 }
 0x5c4   :  { %v7182_v48 = vpop.eup %7181 }
 0x5c5   :  { %v2266_v5 = vmul.f32 %v7182_v48, %v7180_v42 }
 0x5c6   :  { %2380 = vmatpush1.bf16.msra.mxu0 %v9045_v41  ;;  %2421 = vmatpush1.bf16.msra.mxu1 %v9048_v10 }
 0x5c7   :  { %v2269_v45 = vpack.c.bf16 %v2266_v5, %v2266_v5  ;;  %2507 = vmatprep.subr.bf16.mxu0 %v9223_v52  ;;  %2548 = vmatprep.subr.bf16.mxu1 %v9226_v40 }
 0x5c9   :  { %2270 = vst [vmem:[#allocation5 + $0x10] sm:$0xf] %v2269_v45  ;;  %2398 = vmatmul.mubr.bf16.vlgmr.msra.gmra.mxu0 %v2269_v45  ;;  %2439 = vmatmul.mubr.bf16.vlgmr.msra.gmra.mxu1 %v2269_v45 }
 0x5ca   :  { %2508 = vmatpush1.bf16.msra.mxu0 %v9229_v46  ;;  %2549 = vmatpush1.bf16.msra.mxu1 %v9232_v4 }
 0x5cb   :  { %2509 = vmatprep.subr.bf16.mxu0 %v9235_v49  ;;  %2550 = vmatprep.subr.bf16.mxu1 %v9238_v7 }
 0x5cc   :  { %2539 = vmatprep.mubr.bf16.mxu0 %v10829_v28  ;;  %2580 = vmatprep.mubr.bf16.mxu1 %v10829_v28 }
 0x5ce   :  { %2510 = vmatpush1.bf16.msra.mxu0 %v9243_v33  ;;  %2551 = vmatpush1.bf16.msra.mxu1 %v9246_v13 }
 0x5cf   :  { %2511 = vmatprep.subr.bf16.mxu0 %v9249_v3  ;;  %2552 = vmatprep.subr.bf16.mxu1 %v9252_v6 }
 0x5d2   :  { %2512 = vmatpush1.bf16.msra.mxu0 %v9255_v30  ;;  %2553 = vmatpush1.bf16.msra.mxu1 %v9258_v60 }
 0x5d3   :  { %2513 = vmatprep.subr.bf16.mxu0 %v9261_v15  ;;  %2554 = vmatprep.subr.bf16.mxu1 %v9264_v56 }
 0x5d6   :  { %2514 = vmatpush1.bf16.msra.mxu0 %v9267_v47  ;;  %2555 = vmatpush1.bf16.msra.mxu1 %v9270_v31 }
 0x5d7   :  { %2515 = vmatprep.subr.bf16.mxu0 %v9273_v16  ;;  %2556 = vmatprep.subr.bf16.mxu1 %v9276_v17 }
 0x5da   :  { %2516 = vmatpush1.bf16.msra.mxu0 %v9279_v18  ;;  %2557 = vmatpush1.bf16.msra.mxu1 %v9282_v19 }
 0x5db   :  { %2517 = vmatprep.subr.bf16.mxu0 %v9285_v59  ;;  %2558 = vmatprep.subr.bf16.mxu1 %v9288_v39 }
 0x5de   :  { %2518 = vmatpush1.bf16.msra.mxu0 %v9291_v20  ;;  %2559 = vmatpush1.bf16.msra.mxu1 %v9294_v24 }
 0x5df   :  { %2519 = vmatprep.subr.bf16.mxu0 %v9297_v57  ;;  %2560 = vmatprep.subr.bf16.mxu1 %v9300_v35 }
 0x5e2   :  { %2520 = vmatpush1.bf16.msra.mxu0 %v9303_v37  ;;  %2561 = vmatpush1.bf16.msra.mxu1 %v9306_v0 }
 0x5e3   :  { %2521 = vmatprep.subr.bf16.mxu0 %v9309_v55  ;;  %2562 = vmatprep.subr.bf16.mxu1 %v9312_v54  ;;  %v11016_v55 = vld [vmem:[#allocation53_spill] sm:$0xff] }
 0x5e6   :  { %2522 = vmatpush1.bf16.msra.mxu0 %v9315_v43  ;;  %2563 = vmatpush1.bf16.msra.mxu1 %v9318_v32  ;;  %v11014_v32 = vld [vmem:[#allocation39_spill] sm:$0xff] }
 0x5e7   :  { %2597 = vmatprep.subr.bf16.mxu0 %v9321_v38  ;;  %2638 = vmatprep.subr.bf16.mxu1 %v9324_v22  ;;  %v11015_v22 = vld [vmem:[#allocation55_spill] sm:$0xff] }
 0x5e8   :  { %v418_v43 = vadd.f32 %v11015_v22, %v11014_v32  ;;  %v11018_v22 = vld [vmem:[#allocation82_spill] sm:$0xff] }
 0x669   :  { %v2309_v2 = vpop.f32.mrf.mxu0  ;;  %v2350_v23 = vpop.f32.mrf.mxu1 }
 0x66a   :  { %v2357_v11 = vadd.f32 %v2309_v2, %v11013_v27  ;;  %v2359_v0 = vadd.f32 %v2350_v23, %v11016_v55 }
 0x66b   :  { %v2311_v53 = vpop.f32.mrf.mxu0  ;;  %v2352_v14 = vpop.f32.mrf.mxu1 }
 0x66c   :  { %v6402_v62 = vmul.f32 -1.442695, %v2357_v11  ;;  %v2358_v12 = vadd.f32 %v2311_v53, %v345_v8  ;;  %v2360_v54 = vadd.f32 %v2352_v14, %v418_v43 }
 0x66d   :  { %v2313_v42 = vpop.f32.mrf.mxu0  ;;  %v2354_v48 = vpop.f32.mrf.mxu1 }
 0x66e   :  { %7183 = vpow2.f32 %v6402_v62  ;;  %v6403_v5 = vmul.f32 -1.442695, %v2358_v12  ;;  %v6404_v36 = vmul.f32 -1.442695, %v2360_v54  ;;  %v11017_v12 = vld [vmem:[#allocation84_spill] sm:$0xff] }
 0x66f   :  { %v2314_v45 = vpop.f32.mrf.mxu0  ;;  %v2355_v38 = vpop.f32.mrf.mxu1  ;;  %v610_v42 = vadd.f32 %v11017_v12, %v10962_v61 }
 0x670   :  { %7185 = vpow2.f32 %v6403_v5 }
 0x671   :  { %7187 = vtanh.f32 %v2359_v0 }
 0x672   :  { %7189 = vpow2.f32 %v6404_v36 }
 0x67b   :  { %v7184_v9 = vpop.eup %7183 }
 0x67c   :  { %v2460_v2 = vadd.f32 1.0, %v7184_v9 }
 0x67d   :  { %v7186_v27 = vpop.eup %7185 }
 0x67e   :  { %7191 = vrcp.f32 %v2460_v2  ;;  %v2461_v8 = vadd.f32 1.0, %v7186_v27  ;;  %v7188_v11 = vpop.eup %7187 }
 0x67f   :  { %v7190_v38 = vpop.eup %7189 }
 0x680   :  { %7193 = vrcp.f32 %v2461_v8  ;;  %v2462_v5 = vadd.f32 1.0, %v7190_v38 }
 0x689   :  { %v2399_v53 = vpop.f32.mrf.mxu0  ;;  %v2440_v62 = vpop.f32.mrf.mxu1 }
 0x68a   :  { %v2447_v43 = vadd.f32 %v2399_v53, %v11018_v22 }
 0x68b   :  { %v7192_v14 = vpop.eup %7191  ;;  %v2401_v55 = vpop.f32.mrf.mxu0 }
 0x68c   :  { %v2442_v54 = vpop.f32.mrf.mxu1  ;;  %v2471_v23 = vmul.f32 %v7192_v14, %v7188_v11  ;;  %v6405_v9 = vmul.f32 -1.442695, %v2447_v43  ;;  %v2448_v0 = vadd.f32 %v2401_v55, %v610_v42  ;;  %v11019_v11 = vld [vmem:[#allocation85_spill] sm:$0xff]  ;;  %v11020_v42 = vld [vmem:[#allocation83_spill] sm:$0xff] }
 0x68d   :  { %v7194_v48 = vpop.eup %7193  ;;  %v2403_v45 = vpop.f32.mrf.mxu0  ;;  %v683_v53 = vadd.f32 %v11019_v11, %v10965_v34  ;;  %v2449_v38 = vadd.f32 %v2440_v62, %v11020_v42  ;;  %v9346_v62 = vld [vmem:[#allocation14 + $0xe8] ss:$16 sps:$4 sm:$0xff]   ;;  %v9366_v11 = vld [vmem:[#allocation14 + $0xac] ss:$16 sps:$4 sm:$0xff]  }
 0x68e   :  { %v2444_v36 = vpop.f32.mrf.mxu1  ;;  %v2470_v2 = vmul.f32 %v7194_v48, %v9182_v25  ;;  %7195 = vpow2.f32 %v6405_v9  ;;  %v6406_v27 = vmul.f32 -1.442695, %v2448_v0  ;;  %v9343_v48 = vld [vmem:[#allocation14 + $0xe0] ss:$16 sps:$4 sm:$0xff]  }
 0x68f   :  { %v2404_v8 = vpop.f32.mrf.mxu0  ;;  %v2450_v12 = vadd.f32 %v2442_v54, %v683_v53  ;;  %v9349_v54 = vld [vmem:[#allocation14 + $0xc4] ss:$16 sps:$4 sm:$0xff]   ;;  %v9357_v36 = vld [vmem:[#allocation14 + $0xc0] ss:$16 sps:$4 sm:$0xff]  }
 0x690   :  { %v2445_v32 = vpop.f32.mrf.mxu1  ;;  %v9337_v37 = vadd.f32 %v2471_v23, %v2470_v2  ;;  %7197 = vpow2.f32 %v6406_v27  ;;  %v9360_v2 = vld [vmem:[#allocation14 + $0xc8] ss:$16 sps:$4 sm:$0xff]   ;;  %v9363_v8 = vld [vmem:[#allocation14 + $0xa4] ss:$16 sps:$4 sm:$0xff]  }
 0x691   :  { %7199 = vrcp.f32 %v2462_v5  ;;  %v6407_v22 = vmul.f32 -1.442695, %v2450_v12  ;;  %v9352_v5 = vld [vmem:[#allocation14 + $0xcc] ss:$16 sps:$4 sm:$0xff]  }
 0x692   :  { %7201 = vtanh.f32 %v9337_v37 }
 0x693   :  { %7203 = vtanh.f32 %v2449_v38 }
 0x694   :  { %7205 = vpow2.f32 %v6407_v22  ;;  %v9369_v22 = vld [vmem:[#allocation14 + $0xa0] ss:$16 sps:$4 sm:$0xff]  }
 0x69b   :  { %v7196_v43 = vpop.eup %7195 }
 0x69c   :  { %v2484_v14 = vadd.f32 1.0, %v7196_v43  ;;  %v9372_v43 = vld [vmem:[#allocation14 + $0xa8] ss:$16 sps:$4 sm:$0xff]  }
 0x69d   :  { %v7198_v25 = vpop.eup %7197 }
 0x69e   :  { %v7200_v55 = vpop.eup %7199  ;;  %7207 = vrcp.f32 %v2484_v14  ;;  %v2485_v32 = vadd.f32 1.0, %v7198_v25  ;;  %v9376_v25 = vld [vmem:[#allocation14 + $0x84] ss:$16 sps:$4 sm:$0xff]  }
 0x69f   :  { %v7202_v23 = vpop.eup %7201 }
 0x6a0   :  { %7209 = vrcp.f32 %v2485_v32  ;;  %v2474_v9 = vmul.f32 %v7202_v23, %v7200_v55  ;;  %v7204_v45 = vpop.eup %7203  ;;  %v9379_v55 = vld [vmem:[#allocation14 + $0x8c] ss:$16 sps:$4 sm:$0xff]   ;;  %v9384_v23 = vld [vmem:[#allocation14 + $0x80] ss:$16 sps:$4 sm:$0xff]  }
 0x6a1   :  { %v7206_v27 = vpop.eup %7205 }
 0x6a2   :  { %v2499_v0 = vpack.c.bf16 %v2474_v9, %v2474_v9  ;;  %v2486_v38 = vadd.f32 1.0, %v7206_v27  ;;  %v9387_v9 = vld [vmem:[#allocation14 + $0x88] ss:$16 sps:$4 sm:$0xff]  }
 0x6a3   :  { %v9400_v27 = vld [vmem:[#allocation14 + $0x68] ss:$16 sps:$4 sm:$0xff]  }
 0x6a4   :  { %2500 = vst [vmem:[#allocation4 + $0x14] sm:$0xf] %v2499_v0  ;;  %2540 = vmatmul.mubr.bf16.vlgmr.msra.gmra.mxu0 %v2499_v0  ;;  %2581 = vmatmul.mubr.bf16.vlgmr.msra.gmra.mxu1 %v2499_v0  ;;  %7211 = vrcp.f32 %v2486_v38  ;;  %v9393_v0 = vld [vmem:[#allocation14 + $0x6c] ss:$16 sps:$4 sm:$0xff]  }
 0x6a5   :  { %2598 = vmatpush1.bf16.msra.mxu0 %v9343_v48  ;;  %2639 = vmatpush1.bf16.msra.mxu1 %v9346_v62 }
 0x6a6   :  { %2599 = vmatprep.subr.bf16.mxu0 %v9349_v54  ;;  %2640 = vmatprep.subr.bf16.mxu1 %v9352_v5 }
 0x6a7   :  { %2629 = vmatprep.mubr.bf16.mxu0 %v10829_v28  ;;  %2670 = vmatprep.mubr.bf16.mxu1 %v10829_v28 }
 0x6a9   :  { %2600 = vmatpush1.bf16.msra.mxu0 %v9357_v36  ;;  %2641 = vmatpush1.bf16.msra.mxu1 %v9360_v2 }
 0x6aa   :  { %2601 = vmatprep.subr.bf16.mxu0 %v9363_v8  ;;  %2642 = vmatprep.subr.bf16.mxu1 %v9366_v11 }
 0x6ab   :  { %v7208_v53 = vpop.eup %7207 }
 0x6ac   :  { %v2495_v12 = vmul.f32 %v7208_v53, %v7204_v45  ;;  %v9397_v45 = vld [vmem:[#allocation14 + $0x60] ss:$16 sps:$4 sm:$0xff]   ;;  %v9403_v53 = vld [vmem:[#allocation14 + $0x44] ss:$16 sps:$4 sm:$0xff]  }
 0x6ad   :  { %v7210_v42 = vpop.eup %7209  ;;  %2602 = vmatpush1.bf16.msra.mxu0 %v9369_v22  ;;  %2643 = vmatpush1.bf16.msra.mxu1 %v9372_v43 }
 0x6ae   :  { %v2494_v14 = vmul.f32 %v7210_v42, %v9202_v44  ;;  %2603 = vmatprep.subr.bf16.mxu0 %v9376_v25  ;;  %2644 = vmatprep.subr.bf16.mxu1 %v9379_v55  ;;  %v9390_v44 = vld [vmem:[#allocation14 + $0x64] ss:$16 sps:$4 sm:$0xff]  }
 0x6b0   :  { %v9382_v32 = vadd.f32 %v2495_v12, %v2494_v14  ;;  %v9406_v12 = vld [vmem:[#allocation14 + $0x4c] ss:$16 sps:$4 sm:$0xff]  }
 0x6b1   :  { %2604 = vmatpush1.bf16.msra.mxu0 %v9384_v23  ;;  %2645 = vmatpush1.bf16.msra.mxu1 %v9387_v9  ;;  %v7212_v42 = vpop.eup %7211 }
 0x6b2   :  { %2605 = vmatprep.subr.bf16.mxu0 %v9390_v44  ;;  %2646 = vmatprep.subr.bf16.mxu1 %v9393_v0  ;;  %7213 = vtanh.f32 %v9382_v32 }
 0x6b5   :  { %2606 = vmatpush1.bf16.msra.mxu0 %v9397_v45  ;;  %2647 = vmatpush1.bf16.msra.mxu1 %v9400_v27 }
 0x6b6   :  { %2607 = vmatprep.subr.bf16.mxu0 %v9403_v53  ;;  %2648 = vmatprep.subr.bf16.mxu1 %v9406_v12 }
 0x6b9   :  { %2608 = vmatpush1.bf16.msra.mxu0 %v9021_v50  ;;  %2649 = vmatpush1.bf16.msra.mxu1 %v9024_v63  ;;  %v11021_v63 = vld [vmem:[#allocation37_spill] sm:$0xff] }
 0x6ba   :  { %2609 = vmatprep.subr.bf16.mxu0 %v9027_v21  ;;  %2650 = vmatprep.subr.bf16.mxu1 %v9030_v51  ;;  %v11022_v21 = vld [vmem:[#allocation66_spill] sm:$0xff]  ;;  %v11023_v51 = vld [vmem:[#allocation64_spill] sm:$0xff] }
 0x6bd   :  { %2610 = vmatpush1.bf16.msra.mxu0 %v9033_v26  ;;  %2651 = vmatpush1.bf16.msra.mxu1 %v9036_v58  ;;  %v11024_v26 = vld [vmem:[#allocation67_spill] sm:$0xff]  ;;  %v11025_v58 = vld [vmem:[#allocation65_spill] sm:$0xff] }
 0x6be   :  { %2611 = vmatprep.subr.bf16.mxu0 %v9039_v1  ;;  %2652 = vmatprep.subr.bf16.mxu1 %v9042_v29  ;;  %v11026_v1 = vld [vmem:[#allocation40_spill] sm:$0xff]  ;;  %v11027_v29 = vld [vmem:[#allocation42_spill] sm:$0xff] }
 0x6bf   :  { %v7214_v38 = vpop.eup %7213 }
 0x6c0   :  { %v2498_v14 = vmul.f32 %v7214_v38, %v7212_v42  ;;  %v11033_v42 = vld [vmem:[#allocation86_spill] sm:$0xff] }
 0x6c1   :  { %2612 = vmatpush1.bf16.msra.mxu0 %v9045_v41  ;;  %2653 = vmatpush1.bf16.msra.mxu1 %v9048_v10  ;;  %v11028_v41 = vld [vmem:[#allocation43_spill] sm:$0xff] }
 0x6c2   :  { %v2501_v50 = vpack.c.bf16 %v2498_v14, %v2498_v14  ;;  %2739 = vmatprep.subr.bf16.mxu0 %v9223_v52  ;;  %2780 = vmatprep.subr.bf16.mxu1 %v9226_v40  ;;  %v11029_v40 = vld [vmem:[#allocation56_spill] sm:$0xff] }
 0x6c4   :  { %2502 = vst [vmem:[#allocation5 + $0x14] sm:$0xf] %v2501_v50  ;;  %2630 = vmatmul.mubr.bf16.vlgmr.msra.gmra.mxu0 %v2501_v50  ;;  %2671 = vmatmul.mubr.bf16.vlgmr.msra.gmra.mxu1 %v2501_v50 }
 0x6c5   :  { %2740 = vmatpush1.bf16.msra.mxu0 %v9229_v46  ;;  %2781 = vmatpush1.bf16.msra.mxu1 %v9232_v4 }
 0x6c6   :  { %2741 = vmatprep.subr.bf16.mxu0 %v9235_v49  ;;  %2782 = vmatprep.subr.bf16.mxu1 %v9238_v7 }
 0x6c7   :  { %2771 = vmatprep.mubr.bf16.mxu0 %v10829_v28  ;;  %2812 = vmatprep.mubr.bf16.mxu1 %v10829_v28 }
 0x6c9   :  { %2742 = vmatpush1.bf16.msra.mxu0 %v9243_v33  ;;  %2783 = vmatpush1.bf16.msra.mxu1 %v9246_v13  ;;  %v11030_v33 = vld [vmem:[#allocation58_spill] sm:$0xff] }
 0x6ca   :  { %2743 = vmatprep.subr.bf16.mxu0 %v9249_v3  ;;  %2784 = vmatprep.subr.bf16.mxu1 %v9252_v6 }
 0x6cd   :  { %2744 = vmatpush1.bf16.msra.mxu0 %v9255_v30  ;;  %2785 = vmatpush1.bf16.msra.mxu1 %v9258_v60 }
 0x6ce   :  { %2745 = vmatprep.subr.bf16.mxu0 %v9261_v15  ;;  %2786 = vmatprep.subr.bf16.mxu1 %v9264_v56  ;;  %v11031_v56 = vld [vmem:[#allocation59_spill] sm:$0xff] }
 0x6d1   :  { %2746 = vmatpush1.bf16.msra.mxu0 %v9267_v47  ;;  %2787 = vmatpush1.bf16.msra.mxu1 %v9270_v31  ;;  %v11032_v31 = vld [vmem:[#allocation57_spill] sm:$0xff] }
 0x6d2   :  { %2747 = vmatprep.subr.bf16.mxu0 %v9273_v16  ;;  %2788 = vmatprep.subr.bf16.mxu1 %v9276_v17 }
 0x6d5   :  { %2748 = vmatpush1.bf16.msra.mxu0 %v9279_v18  ;;  %2789 = vmatpush1.bf16.msra.mxu1 %v9282_v19 }
 0x6d6   :  { %2749 = vmatprep.subr.bf16.mxu0 %v9285_v59  ;;  %2790 = vmatprep.subr.bf16.mxu1 %v9288_v39 }
 0x6d9   :  { %2750 = vmatpush1.bf16.msra.mxu0 %v9291_v20  ;;  %2791 = vmatpush1.bf16.msra.mxu1 %v9294_v24 }
 0x6da   :  { %2751 = vmatprep.subr.bf16.mxu0 %v9297_v57  ;;  %2792 = vmatprep.subr.bf16.mxu1 %v9300_v35 }
 0x6dd   :  { %2752 = vmatpush1.bf16.msra.mxu0 %v11021_v63  ;;  %2793 = vmatpush1.bf16.msra.mxu1 %v11022_v21 }
 0x6de   :  { %2753 = vmatprep.subr.bf16.mxu0 %v11023_v51  ;;  %2794 = vmatprep.subr.bf16.mxu1 %v11024_v26  ;;  %v11034_v26 = vld [vmem:[#allocation88_spill] sm:$0xff] }
 0x6e1   :  { %2754 = vmatpush1.bf16.msra.mxu0 %v11025_v58  ;;  %2795 = vmatpush1.bf16.msra.mxu1 %v11026_v1 }
 0x6e2   :  { %2829 = vmatprep.subr.bf16.mxu0 %v11027_v29  ;;  %2870 = vmatprep.subr.bf16.mxu1 %v11028_v41 }
 0x764   :  { %v2541_v10 = vpop.f32.mrf.mxu0  ;;  %v2582_v52 = vpop.f32.mrf.mxu1 }
 0x765   :  { %v2589_v46 = vadd.f32 %v2541_v10, %v11029_v40  ;;  %v2591_v16 = vadd.f32 %v2582_v52, %v11032_v31 }
 0x766   :  { %v2543_v4 = vpop.f32.mrf.mxu0  ;;  %v2584_v49 = vpop.f32.mrf.mxu1 }
 0x767   :  { %v6408_v7 = vmul.f32 -1.442695, %v2589_v46  ;;  %v2590_v13 = vadd.f32 %v2543_v4, %v11030_v33  ;;  %v2592_v47 = vadd.f32 %v2584_v49, %v11031_v56 }
 0x768   :  { %v2545_v3 = vpop.f32.mrf.mxu0  ;;  %v2586_v6 = vpop.f32.mrf.mxu1 }
 0x769   :  { %7215 = vpow2.f32 %v6408_v7  ;;  %v6409_v30 = vmul.f32 -1.442695, %v2590_v13  ;;  %v6410_v17 = vmul.f32 -1.442695, %v2592_v47  ;;  %v11035_v7 = vld [vmem:[#allocation89_spill] sm:$0xff]  ;;  %v11036_v13 = vld [vmem:[#allocation87_spill] sm:$0xff] }
 0x76a   :  { %v2546_v60 = vpop.f32.mrf.mxu0  ;;  %v2587_v15 = vpop.f32.mrf.mxu1 }
 0x76b   :  { %7217 = vpow2.f32 %v6409_v30 }
 0x76c   :  { %7219 = vtanh.f32 %v2591_v16 }
 0x76d   :  { %7221 = vpow2.f32 %v6410_v17 }
 0x776   :  { %v7216_v18 = vpop.eup %7215 }
 0x777   :  { %v2692_v19 = vadd.f32 1.0, %v7216_v18 }
 0x778   :  { %v7218_v59 = vpop.eup %7217 }
 0x779   :  { %7223 = vrcp.f32 %v2692_v19  ;;  %v2693_v39 = vadd.f32 1.0, %v7218_v59  ;;  %v7220_v20 = vpop.eup %7219  ;;  %v6810_v59 = vld [vmem:[#allocation9 + $0xe8] ss:$16 sps:$4 sm:$0xff]  }
 0x77a   :  { %v7222_v35 = vpop.eup %7221 }
 0x77b   :  { %7225 = vrcp.f32 %v2693_v39  ;;  %v2694_v29 = vadd.f32 1.0, %v7222_v35  ;;  %v6816_v35 = vld [vmem:[#allocation9 + $0xc8] ss:$16 sps:$4 sm:$0xff]  }
 0x784   :  { %v2631_v24 = vpop.f32.mrf.mxu0  ;;  %v2672_v57 = vpop.f32.mrf.mxu1 }
 0x785   :  { %v2679_v38 = vadd.f32 %v2631_v24, %v11033_v42  ;;  %v2681_v3 = vadd.f32 %v2672_v57, %v11036_v13  ;;  %v6818_v24 = vld [vmem:[#allocation9 + $0xcc] ss:$16 sps:$4 sm:$0xff]   ;;  %v6813_v57 = vld [vmem:[#allocation9 + $0xc0] ss:$16 sps:$4 sm:$0xff]   ;;  %v6821_v42 = vld [vmem:[#allocation9 + $0xa4] ss:$16 sps:$4 sm:$0xff]  }
 0x786   :  { %v7224_v14 = vpop.eup %7223  ;;  %v2633_v50 = vpop.f32.mrf.mxu0  ;;  %v6846_v13 = vld [vmem:[#allocation9 + $0x28] ss:$16 sps:$4 sm:$0xff]  }
 0x787   :  { %v2674_v63 = vpop.f32.mrf.mxu1  ;;  %v2703_v21 = vmul.f32 %v7224_v14, %v7220_v20  ;;  %v6411_v51 = vmul.f32 -1.442695, %v2679_v38  ;;  %v2680_v58 = vadd.f32 %v2633_v50, %v11034_v26  ;;  %v6815_v20 = vld [vmem:[#allocation9 + $0xc4] ss:$16 sps:$4 sm:$0xff]   ;;  %v6824_v38 = vld [vmem:[#allocation9 + $0xac] ss:$16 sps:$4 sm:$0xff]  }
 0x788   :  { %v7226_v1 = vpop.eup %7225  ;;  %v2635_v41 = vpop.f32.mrf.mxu0  ;;  %v2682_v33 = vadd.f32 %v2674_v63, %v11035_v7  ;;  %v6819_v14 = vld [vmem:[#allocation9 + $0xa0] ss:$16 sps:$4 sm:$0xff]   ;;  %v6822_v50 = vld [vmem:[#allocation9 + $0xa8] ss:$16 sps:$4 sm:$0xff]   ;;  %v6827_v63 = vld [vmem:[#allocation9 + $0x84] ss:$16 sps:$4 sm:$0xff]  }
 0x789   :  { %v2676_v10 = vpop.f32.mrf.mxu1  ;;  %v2702_v52 = vmul.f32 %v7226_v1, %v9337_v37  ;;  %7227 = vpow2.f32 %v6411_v51  ;;  %v6412_v40 = vmul.f32 -1.442695, %v2680_v58  ;;  %v6825_v51 = vld [vmem:[#allocation9 + $0x80] ss:$16 sps:$4 sm:$0xff]   ;;  %v6828_v26 = vld [vmem:[#allocation9 + $0x88] ss:$16 sps:$4 sm:$0xff]  }
 0x78a   :  { %v2636_v46 = vpop.f32.mrf.mxu0  ;;  %v6413_v6 = vmul.f32 -1.442695, %v2682_v33  ;;  %v6833_v58 = vld [vmem:[#allocation9 + $0x64] ss:$16 sps:$4 sm:$0xff]   ;;  %v6836_v1 = vld [vmem:[#allocation9 + $0x6c] ss:$16 sps:$4 sm:$0xff]  }
 0x78b   :  { %v2677_v4 = vpop.f32.mrf.mxu1  ;;  %v9462_v49 = vadd.f32 %v2703_v21, %v2702_v52  ;;  %7229 = vpow2.f32 %v6412_v40  ;;  %v6830_v21 = vld [vmem:[#allocation9 + $0x8c] ss:$16 sps:$4 sm:$0xff]   ;;  %v6834_v41 = vld [vmem:[#allocation9 + $0x68] ss:$16 sps:$4 sm:$0xff]   ;;  %v6839_v10 = vld [vmem:[#allocation9 + $0x44] ss:$16 sps:$4 sm:$0xff]  }
 0x78c   :  { %7231 = vrcp.f32 %v2694_v29  ;;  %v6831_v29 = vld [vmem:[#allocation9 + $0x60] ss:$16 sps:$4 sm:$0xff]   ;;  %v6842_v52 = vld [vmem:[#allocation9 + $0x4c] ss:$16 sps:$4 sm:$0xff]   ;;  %v6840_v46 = vld [vmem:[#allocation9 + $0x48] ss:$16 sps:$4 sm:$0xff]  }
 0x78d   :  { %7233 = vtanh.f32 %v9462_v49  ;;  %v6837_v40 = vld [vmem:[#allocation9 + $0x40] ss:$16 sps:$4 sm:$0xff]   ;;  %v6845_v4 = vld [vmem:[#allocation9 + $0x24] ss:$16 sps:$4 sm:$0xff]   ;;  %v6848_v7 = vld [vmem:[#allocation9 + $0x2c] ss:$16 sps:$4 sm:$0xff]  }
 0x78e   :  { %7235 = vtanh.f32 %v2681_v3  ;;  %v6843_v33 = vld [vmem:[#allocation9 + $0x20] ss:$16 sps:$4 sm:$0xff]   ;;  %v6851_v3 = vld [vmem:[#allocation9 + $0x4] ss:$16 sps:$4 sm:$0xff]  }
 0x78f   :  { %7237 = vpow2.f32 %v6413_v6  ;;  %v6854_v6 = vld [vmem:[#allocation9 + $0xc] ss:$16 sps:$4 sm:$0xff]  }
 0x796   :  { %v7228_v30 = vpop.eup %7227 }
 0x797   :  { %v2716_v60 = vadd.f32 1.0, %v7228_v30  ;;  %v6849_v30 = vld [vmem:[#allocation9] ss:$16 sps:$4 sm:$0xff]  }
 0x798   :  { %v7230_v15 = vpop.eup %7229 }
 0x799   :  { %v7232_v37 = vpop.eup %7231  ;;  %7239 = vrcp.f32 %v2716_v60  ;;  %v2717_v56 = vadd.f32 1.0, %v7230_v15  ;;  %v6852_v60 = vld [vmem:[#allocation9 + $0x8] ss:$16 sps:$4 sm:$0xff]   ;;  %v6855_v15 = vld [vmem:[#allocation4] sm:$0xff]  }
 0x79a   :  { %v7234_v47 = vpop.eup %7233 }
 0x79b   :  { %7241 = vrcp.f32 %v2717_v56  ;;  %v2706_v31 = vmul.f32 %v7234_v47, %v7232_v37  ;;  %v7236_v17 = vpop.eup %7235  ;;  %v6856_v37 = vld [vmem:[#allocation4 + $0x8] sm:$0xff]   ;;  %v6857_v56 = vld [vmem:[#allocation4 + $0x10] sm:$0xff]  }
 0x79c   :  { %v7238_v18 = vpop.eup %7237  ;;  %v6860_v47 = vld [vmem:[#allocation17 + $0xe4] ss:$16 sps:$4 sm:$0xff]  }
 0x79d   :  { %v2731_v16 = vpack.c.bf16 %v2706_v31, %v2706_v31  ;;  %v6863_v31 = vld [vmem:[#allocation17 + $0xec] ss:$16 sps:$4 sm:$0xff]  }
 0x79f   :  { %2732 = vst [vmem:[#allocation4 + $0x18] sm:$0xf] %v2731_v16  ;;  %2772 = vmatmul.mubr.bf16.vlgmr.msra.gmra.mxu0 %v2731_v16  ;;  %2813 = vmatmul.mubr.bf16.vlgmr.msra.gmra.mxu1 %v2731_v16  ;;  %v6858_v16 = vld [vmem:[#allocation17 + $0xe0] ss:$16 sps:$4 sm:$0xff]  }
 0x7a0   :  { %2830 = vmatpush1.bf16.msra.mxu0 %v9343_v48  ;;  %2871 = vmatpush1.bf16.msra.mxu1 %v9346_v62 }
 0x7a1   :  { %2831 = vmatprep.subr.bf16.mxu0 %v9349_v54  ;;  %2872 = vmatprep.subr.bf16.mxu1 %v9352_v5  ;;  %v2718_v54 = vadd.f32 1.0, %v7238_v18  ;;  %v6866_v18 = vld [vmem:[#allocation17 + $0xc4] ss:$16 sps:$4 sm:$0xff]  }
 0x7a2   :  { %2861 = vmatprep.mubr.bf16.mxu0 %v10829_v28  ;;  %2902 = vmatprep.mubr.bf16.mxu1 %v10829_v28 }
 0x7a3   :  { %7243 = vrcp.f32 %v2718_v54  ;;  %v6872_v54 = vld [vmem:[#allocation17 + $0xa4] ss:$16 sps:$4 sm:$0xff]  }
 0x7a4   :  { %2832 = vmatpush1.bf16.msra.mxu0 %v9357_v36  ;;  %2873 = vmatpush1.bf16.msra.mxu1 %v9360_v2  ;;  %v7653_v2 = vld [vmem:[#allocation14 + $0x40] ss:$16 sps:$4 sm:$0xff]  }
 0x7a5   :  { %2833 = vmatprep.subr.bf16.mxu0 %v9363_v8  ;;  %2874 = vmatprep.subr.bf16.mxu1 %v9366_v11  ;;  %v7654_v8 = vld [vmem:[#allocation14 + $0x48] ss:$16 sps:$4 sm:$0xff]   ;;  %v7655_v11 = vld [vmem:[#allocation14 + $0x24] ss:$16 sps:$4 sm:$0xff]  }
 0x7a6   :  { %v7240_v48 = vpop.eup %7239 }
 0x7a7   :  { %v2727_v62 = vmul.f32 %v7240_v48, %v7236_v17  ;;  %v6861_v17 = vld [vmem:[#allocation17 + $0xe8] ss:$16 sps:$4 sm:$0xff]   ;;  %v6869_v48 = vld [vmem:[#allocation17 + $0xcc] ss:$16 sps:$4 sm:$0xff]  }
 0x7a8   :  { %v7242_v19 = vpop.eup %7241  ;;  %2834 = vmatpush1.bf16.msra.mxu0 %v9369_v22  ;;  %2875 = vmatpush1.bf16.msra.mxu1 %v9372_v43  ;;  %v7656_v22 = vld [vmem:[#allocation14 + $0x2c] ss:$16 sps:$4 sm:$0xff]   ;;  %v7657_v43 = vld [vmem:[#allocation14 + $0x20] ss:$16 sps:$4 sm:$0xff]  }
 0x7a9   :  { %v2726_v5 = vmul.f32 %v7242_v19, %v9382_v32  ;;  %2835 = vmatprep.subr.bf16.mxu0 %v9376_v25  ;;  %2876 = vmatprep.subr.bf16.mxu1 %v9379_v55  ;;  %v7658_v25 = vld [vmem:[#allocation14 + $0x28] ss:$16 sps:$4 sm:$0xff]   ;;  %v7659_v32 = vld [vmem:[#allocation14 + $0x4] ss:$16 sps:$4 sm:$0xff]   ;;  %v6867_v19 = vld [vmem:[#allocation17 + $0xc8] ss:$16 sps:$4 sm:$0xff]  }
 0x7ab   :  { %v9482_v36 = vadd.f32 %v2727_v62, %v2726_v5  ;;  %v6864_v62 = vld [vmem:[#allocation17 + $0xc0] ss:$16 sps:$4 sm:$0xff]   ;;  %v6875_v5 = vld [vmem:[#allocation17 + $0xac] ss:$16 sps:$4 sm:$0xff]  }
 0x7ac   :  { %2836 = vmatpush1.bf16.msra.mxu0 %v9384_v23  ;;  %2877 = vmatpush1.bf16.msra.mxu1 %v9387_v9  ;;  %v7660_v23 = vld [vmem:[#allocation14 + $0xc] ss:$16 sps:$4 sm:$0xff]   ;;  %v6809_v9 = vld [vmem:[#allocation9 + $0xe4] ss:$16 sps:$4 sm:$0xff]  }
 0x7ad   :  { %2837 = vmatprep.subr.bf16.mxu0 %v9390_v44  ;;  %2878 = vmatprep.subr.bf16.mxu1 %v9393_v0  ;;  %7245 = vtanh.f32 %v9482_v36  ;;  %v6812_v44 = vld [vmem:[#allocation9 + $0xec] ss:$16 sps:$4 sm:$0xff]  }
 0x7b0   :  { %2838 = vmatpush1.bf16.msra.mxu0 %v9397_v45  ;;  %2879 = vmatpush1.bf16.msra.mxu1 %v9400_v27  ;;  %v7244_v55 = vpop.eup %7243  ;;  %v7661_v27 = vld [vmem:[#allocation14] ss:$16 sps:$4 sm:$0xff]  }
 0x7b1   :  { %2839 = vmatprep.subr.bf16.mxu0 %v9403_v53  ;;  %2880 = vmatprep.subr.bf16.mxu1 %v9406_v12  ;;  %v7662_v53 = vld [vmem:[#allocation14 + $0x8] ss:$16 sps:$4 sm:$0xff]   ;;  %v6807_v12 = vld [vmem:[#allocation9 + $0xe0] ss:$16 sps:$4 sm:$0xff]  }
 0x7b4   :  { %2840 = vmatpush1.bf16.msra.mxu0 %v7653_v2  ;;  %2881 = vmatpush1.bf16.msra.mxu1 %v7654_v8  ;;  %v6870_v2 = vld [vmem:[#allocation17 + $0xa0] ss:$16 sps:$4 sm:$0xff]   ;;  %v6873_v8 = vld [vmem:[#allocation17 + $0xa8] ss:$16 sps:$4 sm:$0xff]  }
 0x7b5   :  { %2841 = vmatprep.subr.bf16.mxu0 %v7655_v11  ;;  %2882 = vmatprep.subr.bf16.mxu1 %v7656_v22  ;;  %v6878_v11 = vld [vmem:[#allocation17 + $0x84] ss:$16 sps:$4 sm:$0xff]   ;;  %v6881_v22 = vld [vmem:[#allocation17 + $0x8c] ss:$16 sps:$4 sm:$0xff]  }
 0x7b8   :  { %2842 = vmatpush1.bf16.msra.mxu0 %v7657_v43  ;;  %2883 = vmatpush1.bf16.msra.mxu1 %v7658_v25  ;;  %v6876_v43 = vld [vmem:[#allocation17 + $0x80] ss:$16 sps:$4 sm:$0xff]   ;;  %v6879_v25 = vld [vmem:[#allocation17 + $0x88] ss:$16 sps:$4 sm:$0xff]  }
 0x7b9   :  { %2843 = vmatprep.subr.bf16.mxu0 %v7659_v32  ;;  %2884 = vmatprep.subr.bf16.mxu1 %v7660_v23  ;;  %v6887_v32 = vld [vmem:[#allocation17 + $0x6c] ss:$16 sps:$4 sm:$0xff]   ;;  %v6882_v23 = vld [vmem:[#allocation17 + $0x60] ss:$16 sps:$4 sm:$0xff]  }
 0x7ba   :  { %v7246_v0 = vpop.eup %7245 }
 0x7bb   :  { %v2730_v45 = vmul.f32 %v7246_v0, %v7244_v55  ;;  %v6884_v55 = vld [vmem:[#allocation17 + $0x64] ss:$16 sps:$4 sm:$0xff]   ;;  %v6893_v0 = vld [vmem:[#allocation17 + $0x4c] ss:$16 sps:$4 sm:$0xff]  }
 0x7bc   :  { %2844 = vmatpush1.bf16.msra.mxu0 %v7661_v27  ;;  %2885 = vmatpush1.bf16.msra.mxu1 %v7662_v53  ;;  %v6891_v27 = vld [vmem:[#allocation17 + $0x48] ss:$16 sps:$4 sm:$0xff]   ;;  %v6896_v53 = vld [vmem:[#allocation17 + $0x24] ss:$16 sps:$4 sm:$0xff]  }
 0x7bd   :  { %v2733_v39 = vpack.c.bf16 %v2730_v45, %v2730_v45  ;;  %3221 = vmatprep.subr.bf16.mxu0 %v6809_v9  ;;  %3294 = vmatprep.subr.bf16.mxu1 %v6812_v44  ;;  %v6885_v9 = vld [vmem:[#allocation17 + $0x68] ss:$16 sps:$4 sm:$0xff]   ;;  %v6890_v44 = vld [vmem:[#allocation17 + $0x44] ss:$16 sps:$4 sm:$0xff]   ;;  %v6888_v45 = vld [vmem:[#allocation17 + $0x40] ss:$16 sps:$4 sm:$0xff]  }
 0x7bf   :  { %2734 = vst [vmem:[#allocation5 + $0x18] sm:$0xf] %v2733_v39  ;;  %2862 = vmatmul.mubr.bf16.vlgmr.msra.gmra.mxu0 %v2733_v39  ;;  %2903 = vmatmul.mubr.bf16.vlgmr.msra.gmra.mxu1 %v2733_v39  ;;  %v6897_v39 = vld [vmem:[#allocation17 + $0x28] ss:$16 sps:$4 sm:$0xff]  }
 0x7c0   :  { %3222 = vmatpush1.bf16.msra.mxu0 %v6807_v12  ;;  %3295 = vmatpush1.bf16.msra.mxu1 %v6810_v59  ;;  %v6899_v12 = vld [vmem:[#allocation17 + $0x2c] ss:$16 sps:$4 sm:$0xff]   ;;  %v6894_v59 = vld [vmem:[#allocation17 + $0x20] ss:$16 sps:$4 sm:$0xff]  }
 0x7c1   :  { %3223 = vmatprep.subr.bf16.mxu0 %v6815_v20  ;;  %3296 = vmatprep.subr.bf16.mxu1 %v6818_v24  ;;  %v6903_v20 = vld [vmem:[#allocation17 + $0x4] ss:$16 sps:$4 sm:$0xff]   ;;  %v6906_v24 = vld [vmem:[#allocation17 + $0xc] ss:$16 sps:$4 sm:$0xff]  }
 0x7c2   :  { %3253 = vmatprep.mubr.bf16.mxu0 %v10829_v28  ;;  %3326 = vmatprep.mubr.bf16.mxu1 %v10829_v28 }
 0x7c4   :  { %3224 = vmatpush1.bf16.msra.mxu0 %v6813_v57  ;;  %3297 = vmatpush1.bf16.msra.mxu1 %v6816_v35  ;;  %v6901_v57 = vld [vmem:[#allocation17] ss:$16 sps:$4 sm:$0xff]   ;;  %v6904_v35 = vld [vmem:[#allocation17 + $0x8] ss:$16 sps:$4 sm:$0xff]  }
 0x7c5   :  { %3225 = vmatprep.subr.bf16.mxu0 %v6821_v42  ;;  %3298 = vmatprep.subr.bf16.mxu1 %v6824_v38  ;;  %v9501_v42 = vld [vmem:[#allocation11 + $0xe4] ss:$16 sps:$4 sm:$0xff]   ;;  %v9503_v38 = vld [vmem:[#allocation11 + $0xec] ss:$16 sps:$4 sm:$0xff]  }
 0x7c8   :  { %3226 = vmatpush1.bf16.msra.mxu0 %v6819_v14  ;;  %3299 = vmatpush1.bf16.msra.mxu1 %v6822_v50 }
 0x7c9   :  { %3227 = vmatprep.subr.bf16.mxu0 %v6827_v63  ;;  %3300 = vmatprep.subr.bf16.mxu1 %v6830_v21  ;;  %v11037_v63 = vld [vmem:[#allocation38_spill] sm:$0xff] }
 0x7ca   :  { %v11038_v21 = vld [vmem:[#allocation62_spill] sm:$0xff] }
 0x7cc   :  { %3228 = vmatpush1.bf16.msra.mxu0 %v6825_v51  ;;  %3301 = vmatpush1.bf16.msra.mxu1 %v6828_v26  ;;  %v355_v51 = vadd.f32 %v11038_v21, %v11037_v63  ;;  %v11039_v26 = vld [vmem:[#allocation60_spill] sm:$0xff] }
 0x7cd   :  { %3229 = vmatprep.subr.bf16.mxu0 %v6833_v58  ;;  %3302 = vmatprep.subr.bf16.mxu1 %v6836_v1 }
 0x7d0   :  { %3230 = vmatpush1.bf16.msra.mxu0 %v6831_v29  ;;  %3303 = vmatpush1.bf16.msra.mxu1 %v6834_v41 }
 0x7d1   :  { %3231 = vmatprep.subr.bf16.mxu0 %v6839_v10  ;;  %3304 = vmatprep.subr.bf16.mxu1 %v6842_v52 }
 0x7d4   :  { %3232 = vmatpush1.bf16.msra.mxu0 %v6837_v40  ;;  %3305 = vmatpush1.bf16.msra.mxu1 %v6840_v46 }
 0x7d5   :  { %3233 = vmatprep.subr.bf16.mxu0 %v6845_v4  ;;  %3306 = vmatprep.subr.bf16.mxu1 %v6848_v7 }
 0x7d8   :  { %3234 = vmatpush1.bf16.msra.mxu0 %v6843_v33  ;;  %3307 = vmatpush1.bf16.msra.mxu1 %v6846_v13  ;;  %v11040_v33 = vld [vmem:[#allocation39_spill] sm:$0xff] }
 0x7d9   :  { %3235 = vmatprep.subr.bf16.mxu0 %v6851_v3  ;;  %3308 = vmatprep.subr.bf16.mxu1 %v6854_v6  ;;  %v11041_v13 = vld [vmem:[#allocation63_spill] sm:$0xff] }
 0x7da   :  { %v428_v3 = vadd.f32 %v11041_v13, %v11040_v33  ;;  %v9527_v33 = vld [vmem:[#allocation11 + $0xc4] ss:$16 sps:$4 sm:$0xff]   ;;  %v9529_v13 = vld [vmem:[#allocation11 + $0xcc] ss:$16 sps:$4 sm:$0xff]  }
 0x7db   :  { %11049 = vst [vmem:[#allocation72_spill] sm:$0xff] %v9527_v33  ;;  %11050 = vst [vmem:[#allocation73_spill] sm:$0xff] %v9529_v13 }
 0x7dc   :  { %3236 = vmatpush1.bf16.msra.mxu0 %v6849_v30  ;;  %3309 = vmatpush1.bf16.msra.mxu1 %v6852_v60  ;;  %v11042_v30 = vld [vmem:[#allocation61_spill] sm:$0xff] }
 0x7dd   :  { %3637 = vmatprep.subr.bf16.mxu0 %v6860_v47  ;;  %3710 = vmatprep.subr.bf16.mxu1 %v6863_v31 }
 0x7df   :  { %3254 = vmatmul.mubr.bf16.vlgmr.msra.gmra.mxu0 %v6855_v15  ;;  %3327 = vmatmul.mubr.bf16.vlgmr.msra.gmra.mxu1 %v6855_v15 }
 0x7e0   :  { %3263 = vmatprep.mubr.bf16.mxu0 %v10829_v28  ;;  %3336 = vmatprep.mubr.bf16.mxu1 %v10829_v28 }
 0x7e1   :  { %3638 = vmatpush1.bf16.msra.mxu0 %v6858_v16  ;;  %3711 = vmatpush1.bf16.msra.mxu1 %v6861_v17 }
 0x7e2   :  { %3639 = vmatprep.subr.bf16.mxu0 %v6866_v18  ;;  %3712 = vmatprep.subr.bf16.mxu1 %v6869_v48 }
 0x7e5   :  { %3640 = vmatpush1.bf16.msra.mxu0 %v6864_v62  ;;  %3713 = vmatpush1.bf16.msra.mxu1 %v6867_v19  ;;  %v11043_v62 = vld [vmem:[#allocation92_spill] sm:$0xff] }
 0x7e6   :  { %3641 = vmatprep.subr.bf16.mxu0 %v6872_v54  ;;  %3714 = vmatprep.subr.bf16.mxu1 %v6875_v5  ;;  %v620_v19 = vadd.f32 %v11043_v62, %v10962_v61  ;;  %v11044_v54 = vld [vmem:[#allocation90_spill] sm:$0xff]  ;;  %v11045_v61 = vld [vmem:[#allocation93_spill] sm:$0xff] }
 0x7e7   :  { %3264 = vmatmul.mubr.bf16.gmra.mxu0 %v6856_v37  ;;  %3337 = vmatmul.mubr.bf16.gmra.mxu1 %v6856_v37  ;;  %v9567_v62 = vld [vmem:[#allocation11 + $0x6c] ss:$16 sps:$4 sm:$0xff]  }
 0x7e8   :  { %3273 = vmatprep.mubr.bf16.mxu0 %v10829_v28  ;;  %3346 = vmatprep.mubr.bf16.mxu1 %v10829_v28  ;;  %11062 = vst [vmem:[#allocation31_spill] sm:$0xff] %v9567_v62 }
 0x7e9   :  { %3642 = vmatpush1.bf16.msra.mxu0 %v6870_v2  ;;  %3715 = vmatpush1.bf16.msra.mxu1 %v6873_v8 }
 0x7ea   :  { %3643 = vmatprep.subr.bf16.mxu0 %v6878_v11  ;;  %3716 = vmatprep.subr.bf16.mxu1 %v6881_v22 }
 0x7ed   :  { %3644 = vmatpush1.bf16.msra.mxu0 %v6876_v43  ;;  %3717 = vmatpush1.bf16.msra.mxu1 %v6879_v25 }
 0x7ee   :  { %3645 = vmatprep.subr.bf16.mxu0 %v6884_v55  ;;  %3718 = vmatprep.subr.bf16.mxu1 %v6887_v32 }
 0x7ef   :  { %3274 = vmatmul.mubr.bf16.gmra.mxu0 %v6857_v56  ;;  %3347 = vmatmul.mubr.bf16.gmra.mxu1 %v6857_v56 }
 0x7f0   :  { %3283 = vmatprep.mubr.bf16.mxu0 %v10829_v28  ;;  %3356 = vmatprep.mubr.bf16.mxu1 %v10829_v28 }
 0x7f1   :  { %3646 = vmatpush1.bf16.msra.mxu0 %v6882_v23  ;;  %3719 = vmatpush1.bf16.msra.mxu1 %v6885_v9 }
 0x7f2   :  { %3647 = vmatprep.subr.bf16.mxu0 %v6890_v44  ;;  %3720 = vmatprep.subr.bf16.mxu1 %v6893_v0 }
 0x7f5   :  { %3648 = vmatpush1.bf16.msra.mxu0 %v6888_v45  ;;  %3721 = vmatpush1.bf16.msra.mxu1 %v6891_v27 }
 0x7f6   :  { %3649 = vmatprep.subr.bf16.mxu0 %v6896_v53  ;;  %3722 = vmatprep.subr.bf16.mxu1 %v6899_v12  ;;  %v693_v12 = vadd.f32 %v11045_v61, %v10965_v34  ;;  %v9617_v61 = vld [vmem:[#allocation18 + $0xe4] ss:$16 sps:$4 sm:$0xff]  }
 0x7f7   :  { %11077 = vst [vmem:[#allocation107_spill] sm:$0xff] %v9617_v61 }
 0x7f9   :  { %3650 = vmatpush1.bf16.msra.mxu0 %v6894_v59  ;;  %3723 = vmatpush1.bf16.msra.mxu1 %v6897_v39  ;;  %v11046_v39 = vld [vmem:[#allocation91_spill] sm:$0xff] }
 0x7fa   :  { %3651 = vmatprep.subr.bf16.mxu0 %v6903_v20  ;;  %3724 = vmatprep.subr.bf16.mxu1 %v6906_v24 }
 0x7fd   :  { %3652 = vmatpush1.bf16.msra.mxu0 %v6901_v57  ;;  %3725 = vmatpush1.bf16.msra.mxu1 %v6904_v35 }
 0x7fe   :  { %4043 = vmatprep.subr.bf16.mxu0 %v9501_v42  ;;  %4084 = vmatprep.subr.bf16.mxu1 %v9503_v38 }
 0x85f   :  { %v2773_v14 = vpop.f32.mrf.mxu0  ;;  %v2814_v50 = vpop.f32.mrf.mxu1 }
 0x860   :  { %v2821_v58 = vadd.f32 %v2773_v14, %v11039_v26  ;;  %v2823_v60 = vadd.f32 %v2814_v50, %v11042_v30  ;;  %v9541_v30 = vld [vmem:[#allocation11 + $0xac] ss:$16 sps:$4 sm:$0xff]  }
 0x861   :  { %v2775_v1 = vpop.f32.mrf.mxu0  ;;  %v2816_v29 = vpop.f32.mrf.mxu1  ;;  %11054 = vst [vmem:[#allocation47_spill] sm:$0xff] %v9541_v30 }
 0x862   :  { %v6414_v41 = vmul.f32 -1.442695, %v2821_v58  ;;  %v2822_v10 = vadd.f32 %v2775_v1, %v355_v51  ;;  %v2824_v6 = vadd.f32 %v2816_v29, %v428_v3  ;;  %v9535_v3 = vld [vmem:[#allocation11 + $0xc8] ss:$16 sps:$4 sm:$0xff]  }
 0x863   :  { %v2777_v52 = vpop.f32.mrf.mxu0  ;;  %v2818_v40 = vpop.f32.mrf.mxu1  ;;  %11052 = vst [vmem:[#allocation46_spill] sm:$0xff] %v9535_v3 }
 0x864   :  { %7247 = vpow2.f32 %v6414_v41  ;;  %v6415_v46 = vmul.f32 -1.442695, %v2822_v10  ;;  %v6416_v15 = vmul.f32 -1.442695, %v2824_v6  ;;  %v9539_v6 = vld [vmem:[#allocation11 + $0xa4] ss:$16 sps:$4 sm:$0xff]  }
 0x865   :  { %v2778_v4 = vpop.f32.mrf.mxu0  ;;  %v2819_v7 = vpop.f32.mrf.mxu1  ;;  %11053 = vst [vmem:[#allocation44_spill] sm:$0xff] %v9539_v6 }
 0x866   :  { %7249 = vpow2.f32 %v6415_v46  ;;  %v9523_v46 = vld [vmem:[#allocation11 + $0xe0] ss:$16 sps:$4 sm:$0xff]   ;;  %v9525_v4 = vld [vmem:[#allocation11 + $0xe8] ss:$16 sps:$4 sm:$0xff]  }
 0x867   :  { %7251 = vtanh.f32 %v2823_v60  ;;  %11047 = vst [vmem:[#allocation41_spill] sm:$0xff] %v9523_v46  ;;  %11048 = vst [vmem:[#allocation70_spill] sm:$0xff] %v9525_v4  ;;  %v6911_v7 = vld [vmem:[#allocation5] sm:$0xff]  }
 0x868   :  { %7253 = vpow2.f32 %v6416_v15  ;;  %v9547_v60 = vld [vmem:[#allocation11 + $0xa0] ss:$16 sps:$4 sm:$0xff]   ;;  %v9549_v15 = vld [vmem:[#allocation11 + $0xa8] ss:$16 sps:$4 sm:$0xff]  }
 0x869   :  { %11055 = vst [vmem:[#allocation45_spill] sm:$0xff] %v9547_v60  ;;  %11056 = vst [vmem:[#allocation68_spill] sm:$0xff] %v9549_v15 }
 0x871   :  { %v7248_v37 = vpop.eup %7247 }
 0x872   :  { %v2924_v56 = vadd.f32 1.0, %v7248_v37  ;;  %v6924_v37 = vld [vmem:[#allocation5 + $0x8] sm:$0xff]  }
 0x873   :  { %v7250_v47 = vpop.eup %7249 }
 0x874   :  { %7255 = vrcp.f32 %v2924_v56  ;;  %v2925_v31 = vadd.f32 1.0, %v7250_v47  ;;  %v7252_v16 = vpop.eup %7251  ;;  %v9553_v56 = vld [vmem:[#allocation11 + $0x84] ss:$16 sps:$4 sm:$0xff]   ;;  %v9555_v47 = vld [vmem:[#allocation11 + $0x8c] ss:$16 sps:$4 sm:$0xff]  }
 0x875   :  { %v7254_v48 = vpop.eup %7253  ;;  %11057 = vst [vmem:[#allocation76_spill] sm:$0xff] %v9553_v56  ;;  %11058 = vst [vmem:[#allocation74_spill] sm:$0xff] %v9555_v47 }
 0x876   :  { %7257 = vrcp.f32 %v2925_v31  ;;  %v2926_v32 = vadd.f32 1.0, %v7254_v48  ;;  %v9565_v48 = vld [vmem:[#allocation11 + $0x64] ss:$16 sps:$4 sm:$0xff]  }
 0x877   :  { %11061 = vst [vmem:[#allocation75_spill] sm:$0xff] %v9565_v48 }
 0x87f   :  { %v2863_v17 = vpop.f32.mrf.mxu0  ;;  %v2904_v18 = vpop.f32.mrf.mxu1 }
 0x880   :  { %v2911_v5 = vadd.f32 %v2863_v17, %v11044_v54  ;;  %v2913_v20 = vadd.f32 %v2904_v18, %v11046_v39  ;;  %v9561_v17 = vld [vmem:[#allocation11 + $0x88] ss:$16 sps:$4 sm:$0xff]   ;;  %v9627_v39 = vld [vmem:[#allocation18 + $0xe8] ss:$16 sps:$4 sm:$0xff]  }
 0x881   :  { %v7256_v2 = vpop.eup %7255  ;;  %v2865_v8 = vpop.f32.mrf.mxu0  ;;  %11060 = vst [vmem:[#allocation77_spill] sm:$0xff] %v9561_v17 }
 0x882   :  { %v2906_v11 = vpop.f32.mrf.mxu1  ;;  %v2935_v22 = vmul.f32 %v7256_v2, %v7252_v16  ;;  %v6417_v43 = vmul.f32 -1.442695, %v2911_v5  ;;  %v2912_v25 = vadd.f32 %v2865_v8, %v620_v19  ;;  %v9559_v16 = vld [vmem:[#allocation11 + $0x80] ss:$16 sps:$4 sm:$0xff]   ;;  %v9575_v2 = vld [vmem:[#allocation11 + $0x68] ss:$16 sps:$4 sm:$0xff]  }
 0x883   :  { %v7258_v55 = vpop.eup %7257  ;;  %v2867_v23 = vpop.f32.mrf.mxu0  ;;  %v2914_v59 = vadd.f32 %v2906_v11, %v693_v12  ;;  %11059 = vst [vmem:[#allocation69_spill] sm:$0xff] %v9559_v16  ;;  %v9573_v5 = vld [vmem:[#allocation11 + $0x60] ss:$16 sps:$4 sm:$0xff]   ;;  %11064 = vst [vmem:[#allocation94_spill] sm:$0xff] %v9575_v2  ;;  %v9579_v11 = vld [vmem:[#allocation11 + $0x44] ss:$16 sps:$4 sm:$0xff]  }
 0x884   :  { %v2908_v9 = vpop.f32.mrf.mxu1  ;;  %v2934_v44 = vmul.f32 %v7258_v55, %v9462_v49  ;;  %7259 = vpow2.f32 %v6417_v43  ;;  %v6418_v0 = vmul.f32 -1.442695, %v2912_v25  ;;  %11063 = vst [vmem:[#allocation32_spill] sm:$0xff] %v9573_v5  ;;  %v6937_v8 = vld [vmem:[#allocation5 + $0x10] sm:$0xff]   ;;  %11065 = vst [vmem:[#allocation95_spill] sm:$0xff] %v9579_v11 }
 0x885   :  { %v2868_v45 = vpop.f32.mrf.mxu0  ;;  %v6419_v24 = vmul.f32 -1.442695, %v2914_v59  ;;  %v9585_v43 = vld [vmem:[#allocation11 + $0x40] ss:$16 sps:$4 sm:$0xff]   ;;  %v9587_v25 = vld [vmem:[#allocation11 + $0x48] ss:$16 sps:$4 sm:$0xff]  }
 0x886   :  { %v2909_v27 = vpop.f32.mrf.mxu1  ;;  %v2936_v53 = vadd.f32 %v2935_v22, %v2934_v44  ;;  %7261 = vpow2.f32 %v6418_v0  ;;  %v9581_v22 = vld [vmem:[#allocation11 + $0x4c] ss:$16 sps:$4 sm:$0xff]   ;;  %11067 = vst [vmem:[#allocation97_spill] sm:$0xff] %v9585_v43  ;;  %11068 = vst [vmem:[#allocation98_spill] sm:$0xff] %v9587_v25  ;;  %v9591_v55 = vld [vmem:[#allocation11 + $0x24] ss:$16 sps:$4 sm:$0xff]  }
 0x887   :  { %7263 = vrcp.f32 %v2926_v32  ;;  %11066 = vst [vmem:[#allocation96_spill] sm:$0xff] %v9581_v22  ;;  %11069 = vst [vmem:[#allocation99_spill] sm:$0xff] %v9591_v55  ;;  %v9593_v32 = vld [vmem:[#allocation11 + $0x2c] ss:$16 sps:$4 sm:$0xff]   ;;  %v9599_v23 = vld [vmem:[#allocation11 + $0x20] ss:$16 sps:$4 sm:$0xff]  }
 0x888   :  { %7265 = vtanh.f32 %v2936_v53  ;;  %11070 = vst [vmem:[#allocation100_spill] sm:$0xff] %v9593_v32  ;;  %11071 = vst [vmem:[#allocation101_spill] sm:$0xff] %v9599_v23  ;;  %v9601_v9 = vld [vmem:[#allocation11 + $0x28] ss:$16 sps:$4 sm:$0xff]   ;;  %v9603_v44 = vld [vmem:[#allocation11 + $0x4] ss:$16 sps:$4 sm:$0xff]  }
 0x889   :  { %7267 = vtanh.f32 %v2913_v20  ;;  %11072 = vst [vmem:[#allocation102_spill] sm:$0xff] %v9601_v9  ;;  %11073 = vst [vmem:[#allocation103_spill] sm:$0xff] %v9603_v44  ;;  %v9607_v45 = vld [vmem:[#allocation11 + $0xc] ss:$16 sps:$4 sm:$0xff]   ;;  %v9611_v27 = vld [vmem:[#allocation11] ss:$16 sps:$4 sm:$0xff]  }
 0x88a   :  { %7269 = vpow2.f32 %v6419_v24  ;;  %11074 = vst [vmem:[#allocation104_spill] sm:$0xff] %v9607_v45  ;;  %11075 = vst [vmem:[#allocation105_spill] sm:$0xff] %v9611_v27  ;;  %v9613_v53 = vld [vmem:[#allocation11 + $0x8] ss:$16 sps:$4 sm:$0xff]   ;;  %v9619_v12 = vld [vmem:[#allocation18 + $0xec] ss:$16 sps:$4 sm:$0xff]  }
 0x88b   :  { %11076 = vst [vmem:[#allocation106_spill] sm:$0xff] %v9613_v53  ;;  %11078 = vst [vmem:[#allocation108_spill] sm:$0xff] %v9619_v12  ;;  %v9625_v59 = vld [vmem:[#allocation18 + $0xe0] ss:$16 sps:$4 sm:$0xff]   ;;  %v9631_v20 = vld [vmem:[#allocation18 + $0xc4] ss:$16 sps:$4 sm:$0xff]  }
 0x88c   :  { %v9633_v24 = vld [vmem:[#allocation18 + $0xcc] ss:$16 sps:$4 sm:$0xff]  }
 0x891   :  { %v7260_v57 = vpop.eup %7259 }
 0x892   :  { %v2948_v35 = vadd.f32 1.0, %v7260_v57  ;;  %v9639_v57 = vld [vmem:[#allocation18 + $0xc0] ss:$16 sps:$4 sm:$0xff]  }
 0x893   :  { %v7262_v14 = vpop.eup %7261 }
 0x894   :  { %v7264_v49 = vpop.eup %7263  ;;  %7271 = vrcp.f32 %v2948_v35  ;;  %v2949_v50 = vadd.f32 1.0, %v7262_v14  ;;  %v9641_v35 = vld [vmem:[#allocation18 + $0xc8] ss:$16 sps:$4 sm:$0xff]   ;;  %v9645_v14 = vld [vmem:[#allocation18 + $0xa4] ss:$16 sps:$4 sm:$0xff]  }
 0x895   :  { %v7266_v63 = vpop.eup %7265 }
 0x896   :  { %v2938_v21 = vmul.f32 %v7266_v63, %v7264_v49  ;;  %7273 = vrcp.f32 %v2949_v50  ;;  %v7268_v26 = vpop.eup %7267  ;;  %v9647_v49 = vld [vmem:[#allocation18 + $0xac] ss:$16 sps:$4 sm:$0xff]   ;;  %v9653_v50 = vld [vmem:[#allocation18 + $0xa0] ss:$16 sps:$4 sm:$0xff]   ;;  %v9655_v63 = vld [vmem:[#allocation18 + $0xa8] ss:$16 sps:$4 sm:$0xff]  }
 0x897   :  { %v7270_v58 = vpop.eup %7269 }
 0x898   :  { %v2963_v51 = vpack.c.bf16 %v2938_v21, %v2938_v21  ;;  %v2950_v10 = vadd.f32 1.0, %v7270_v58  ;;  %v9659_v21 = vld [vmem:[#allocation18 + $0x84] ss:$16 sps:$4 sm:$0xff]   ;;  %v9667_v58 = vld [vmem:[#allocation18 + $0x88] ss:$16 sps:$4 sm:$0xff]  }
 0x89a   :  { %2964 = vst [vmem:[#allocation4 + $0x1c] sm:$0xf] %v2963_v51  ;;  %7275 = vrcp.f32 %v2950_v10  ;;  %v9661_v51 = vld [vmem:[#allocation18 + $0x8c] ss:$16 sps:$4 sm:$0xff]   ;;  %v9683_v10 = vld [vmem:[#allocation18 + $0x44] ss:$16 sps:$4 sm:$0xff]  }
 0x8a1   :  { %v7272_v34 = vpop.eup %7271  ;;  %v6900_v1 = vld [vmem:[#allocation4 + $0x18] sm:$0xff]  }
 0x8a2   :  { %v2959_v29 = vmul.f32 %v7272_v34, %v7268_v26  ;;  %3284 = vmatmul.mubr.bf16.gmra.mxu0 %v6900_v1  ;;  %3357 = vmatmul.mubr.bf16.gmra.mxu1 %v6900_v1  ;;  %v9665_v26 = vld [vmem:[#allocation18 + $0x80] ss:$16 sps:$4 sm:$0xff]   ;;  %v9671_v34 = vld [vmem:[#allocation18 + $0x64] ss:$16 sps:$4 sm:$0xff]   ;;  %v9673_v1 = vld [vmem:[#allocation18 + $0x6c] ss:$16 sps:$4 sm:$0xff]  }
 0x8a3   :  { %v7274_v41 = vpop.eup %7273  ;;  %3669 = vmatprep.mubr.bf16.mxu0 %v10829_v28  ;;  %3742 = vmatprep.mubr.bf16.mxu1 %v10829_v28 }
 0x8a4   :  { %v2958_v52 = vmul.f32 %v7274_v41, %v9482_v36  ;;  %v9533_v36 = vld [vmem:[#allocation11 + $0xc0] ss:$16 sps:$4 sm:$0xff]  }
 0x8a5   :  { %11051 = vst [vmem:[#allocation71_spill] sm:$0xff] %v9533_v36  ;;  %v9679_v41 = vld [vmem:[#allocation18 + $0x68] ss:$16 sps:$4 sm:$0xff]  }
 0x8a6   :  { %v2960_v40 = vadd.f32 %v2959_v29, %v2958_v52  ;;  %v9677_v29 = vld [vmem:[#allocation18 + $0x60] ss:$16 sps:$4 sm:$0xff]   ;;  %v9685_v52 = vld [vmem:[#allocation18 + $0x4c] ss:$16 sps:$4 sm:$0xff]  }
 0x8a7   :  { %v7276_v31 = vpop.eup %7275 }
 0x8a8   :  { %7277 = vtanh.f32 %v2960_v40  ;;  %v9689_v40 = vld [vmem:[#allocation18 + $0x40] ss:$16 sps:$4 sm:$0xff]  }
 0x8a9   :  { %11079 = vst [vmem:[#allocation109_spill] sm:$0xff] %v9689_v40 }
 0x8aa   :  { %3670 = vmatmul.mubr.bf16.vlgmr.msra.gmra.mxu0 %v6911_v7  ;;  %3743 = vmatmul.mubr.bf16.vlgmr.msra.gmra.mxu1 %v6911_v7  ;;  %v9691_v7 = vld [vmem:[#allocation18 + $0x48] ss:$16 sps:$4 sm:$0xff]  }
 0x8ab   :  { %4044 = vmatpush1.bf16.msra.mxu0 %v9523_v46  ;;  %4085 = vmatpush1.bf16.msra.mxu1 %v9525_v4 }
 0x8ac   :  { %4045 = vmatprep.subr.bf16.mxu0 %v9527_v33  ;;  %4086 = vmatprep.subr.bf16.mxu1 %v9529_v13 }
 0x8ad   :  { %3679 = vmatprep.mubr.bf16.mxu0 %v10829_v28  ;;  %3752 = vmatprep.mubr.bf16.mxu1 %v10829_v28 }
 0x8af   :  { %4046 = vmatpush1.bf16.msra.mxu0 %v9533_v36  ;;  %4087 = vmatpush1.bf16.msra.mxu1 %v9535_v3 }
 0x8b0   :  { %4047 = vmatprep.subr.bf16.mxu0 %v9539_v6  ;;  %4088 = vmatprep.subr.bf16.mxu1 %v9541_v30 }
 0x8b2   :  { %3680 = vmatmul.mubr.bf16.gmra.mxu0 %v6924_v37  ;;  %3753 = vmatmul.mubr.bf16.gmra.mxu1 %v6924_v37  ;;  %v9695_v37 = vld [vmem:[#allocation18 + $0x24] ss:$16 sps:$4 sm:$0xff]  }
 0x8b3   :  { %4048 = vmatpush1.bf16.msra.mxu0 %v9547_v60  ;;  %4089 = vmatpush1.bf16.msra.mxu1 %v9549_v15 }
 0x8b4   :  { %4049 = vmatprep.subr.bf16.mxu0 %v9553_v56  ;;  %4090 = vmatprep.subr.bf16.mxu1 %v9555_v47 }
 0x8b5   :  { %v7278_v18 = vpop.eup %7277  ;;  %3689 = vmatprep.mubr.bf16.mxu0 %v10829_v28  ;;  %3762 = vmatprep.mubr.bf16.mxu1 %v10829_v28 }
 0x8b6   :  { %v2962_v19 = vmul.f32 %v7278_v18, %v7276_v31  ;;  %v9697_v31 = vld [vmem:[#allocation18 + $0x2c] ss:$16 sps:$4 sm:$0xff]   ;;  %v9701_v18 = vld [vmem:[#allocation18 + $0x20] ss:$16 sps:$4 sm:$0xff]  }
 0x8b7   :  { %4050 = vmatpush1.bf16.msra.mxu0 %v9559_v16  ;;  %4091 = vmatpush1.bf16.msra.mxu1 %v9561_v17 }
 0x8b8   :  { %v2965_v54 = vpack.c.bf16 %v2962_v19, %v2962_v19  ;;  %4051 = vmatprep.subr.bf16.mxu0 %v9565_v48  ;;  %4092 = vmatprep.subr.bf16.mxu1 %v9567_v62  ;;  %v9703_v19 = vld [vmem:[#allocation18 + $0x28] ss:$16 sps:$4 sm:$0xff]  }
 0x8ba   :  { %2966 = vst [vmem:[#allocation5 + $0x1c] sm:$0xf] %v2965_v54  ;;  %3690 = vmatmul.mubr.bf16.gmra.mxu0 %v6937_v8  ;;  %3763 = vmatmul.mubr.bf16.gmra.mxu1 %v6937_v8  ;;  %v9707_v54 = vld [vmem:[#allocation18 + $0x4] ss:$16 sps:$4 sm:$0xff]   ;;  %v9709_v8 = vld [vmem:[#allocation18 + $0xc] ss:$16 sps:$4 sm:$0xff]  }
 0x8bb   :  { %4052 = vmatpush1.bf16.msra.mxu0 %v9573_v5  ;;  %4093 = vmatpush1.bf16.msra.mxu1 %v9575_v2 }
 0x8bc   :  { %4053 = vmatprep.subr.bf16.mxu0 %v9579_v11  ;;  %4094 = vmatprep.subr.bf16.mxu1 %v9581_v22 }
 0x8bd   :  { %3699 = vmatprep.mubr.bf16.mxu0 %v10829_v28  ;;  %3772 = vmatprep.mubr.bf16.mxu1 %v10829_v28 }
 0x8bf   :  { %4054 = vmatpush1.bf16.msra.mxu0 %v9585_v43  ;;  %4095 = vmatpush1.bf16.msra.mxu1 %v9587_v25 }
 0x8c0   :  { %4055 = vmatprep.subr.bf16.mxu0 %v9591_v55  ;;  %4096 = vmatprep.subr.bf16.mxu1 %v9593_v32 }
 0x8c1   :  { %v6950_v0 = vld [vmem:[#allocation5 + $0x18] sm:$0xff]  }
 0x8c2   :  { %3700 = vmatmul.mubr.bf16.gmra.mxu0 %v6950_v0  ;;  %3773 = vmatmul.mubr.bf16.gmra.mxu1 %v6950_v0  ;;  %v9713_v0 = vld [vmem:[#allocation18] ss:$16 sps:$4 sm:$0xff]  }
 0x8c3   :  { %4056 = vmatpush1.bf16.msra.mxu0 %v9599_v23  ;;  %4097 = vmatpush1.bf16.msra.mxu1 %v9601_v9 }
 0x8c4   :  { %4057 = vmatprep.subr.bf16.mxu0 %v9603_v44  ;;  %4098 = vmatprep.subr.bf16.mxu1 %v9607_v45 }
 0x8c5   :  { %4075 = vmatprep.mubr.bf16.mxu0 %v10829_v28  ;;  %4116 = vmatprep.mubr.bf16.mxu1 %v10829_v28 }
 0x8c7   :  { %4058 = vmatpush1.bf16.msra.mxu0 %v9611_v27  ;;  %4099 = vmatpush1.bf16.msra.mxu1 %v9613_v53 }
 0x8c8   :  { %4293 = vmatprep.subr.bf16.mxu0 %v9617_v61  ;;  %4334 = vmatprep.subr.bf16.mxu1 %v9619_v12 }
 0x8ca   :  { %4076 = vmatmul.mubr.bf16.vlgmr.msra.gmra.mxu0 %v10829_v28  ;;  %4117 = vmatmul.mubr.bf16.vlgmr.msra.gmra.mxu1 %v10829_v28 }
 0x8cb   :  { %4294 = vmatpush1.bf16.msra.mxu0 %v9625_v59  ;;  %4335 = vmatpush1.bf16.msra.mxu1 %v9627_v39 }
 0x8cc   :  { %4295 = vmatprep.subr.bf16.mxu0 %v9631_v20  ;;  %4336 = vmatprep.subr.bf16.mxu1 %v9633_v24 }
 0x8cd   :  { %4325 = vmatprep.mubr.bf16.mxu0 %v10829_v28  ;;  %4366 = vmatprep.mubr.bf16.mxu1 %v10829_v28 }
 0x8cf   :  { %4296 = vmatpush1.bf16.msra.mxu0 %v9639_v57  ;;  %4337 = vmatpush1.bf16.msra.mxu1 %v9641_v35 }
 0x8d0   :  { %4297 = vmatprep.subr.bf16.mxu0 %v9645_v14  ;;  %4338 = vmatprep.subr.bf16.mxu1 %v9647_v49 }
 0x8d3   :  { %4298 = vmatpush1.bf16.msra.mxu0 %v9653_v50  ;;  %4339 = vmatpush1.bf16.msra.mxu1 %v9655_v63 }
 0x8d4   :  { %4299 = vmatprep.subr.bf16.mxu0 %v9659_v21  ;;  %4340 = vmatprep.subr.bf16.mxu1 %v9661_v51 }
 0x8d7   :  { %4300 = vmatpush1.bf16.msra.mxu0 %v9665_v26  ;;  %4341 = vmatpush1.bf16.msra.mxu1 %v9667_v58 }
 0x8d8   :  { %4301 = vmatprep.subr.bf16.mxu0 %v9671_v34  ;;  %4342 = vmatprep.subr.bf16.mxu1 %v9673_v1 }
 0x8db   :  { %4302 = vmatpush1.bf16.msra.mxu0 %v9677_v29  ;;  %4343 = vmatpush1.bf16.msra.mxu1 %v9679_v41 }
 0x8dc   :  { %4303 = vmatprep.subr.bf16.mxu0 %v9683_v10  ;;  %4344 = vmatprep.subr.bf16.mxu1 %v9685_v52 }
 0x8df   :  { %4304 = vmatpush1.bf16.msra.mxu0 %v9689_v40  ;;  %4345 = vmatpush1.bf16.msra.mxu1 %v9691_v7  ;;  %v9715_v40 = vld [vmem:[#allocation18 + $0x8] ss:$16 sps:$4 sm:$0xff]  }
 0x8e0   :  { %4305 = vmatprep.subr.bf16.mxu0 %v9695_v37  ;;  %4346 = vmatprep.subr.bf16.mxu1 %v9697_v31 }
 0x8e3   :  { %4306 = vmatpush1.bf16.msra.mxu0 %v9701_v18  ;;  %4347 = vmatpush1.bf16.msra.mxu1 %v9703_v19 }
 0x8e4   :  { %4307 = vmatprep.subr.bf16.mxu0 %v9707_v54  ;;  %4348 = vmatprep.subr.bf16.mxu1 %v9709_v8 }
 0x8e7   :  { %4308 = vmatpush1.bf16.msra.mxu0 %v9713_v0  ;;  %4349 = vmatpush1.bf16.msra.mxu1 %v9715_v40 }
 0x8e8   :  { %4432 = vmatprep.subr.bf16.mxu0 %v9501_v42  ;;  %4473 = vmatprep.subr.bf16.mxu1 %v9503_v38 }
 0x8ea   :  { %4326 = vmatmul.mubr.bf16.vlgmr.msra.gmra.mxu0 %v10829_v28  ;;  %4367 = vmatmul.mubr.bf16.vlgmr.msra.gmra.mxu1 %v10829_v28 }
 0x8eb   :  { %4433 = vmatpush1.bf16.msra.mxu0 %v9523_v46  ;;  %4474 = vmatpush1.bf16.msra.mxu1 %v9525_v4 }
 0x8ec   :  { %4434 = vmatprep.subr.bf16.mxu0 %v9527_v33  ;;  %4475 = vmatprep.subr.bf16.mxu1 %v9529_v13 }
 0x8ed   :  { %4464 = vmatprep.mubr.bf16.mxu0 %v10829_v28  ;;  %4505 = vmatprep.mubr.bf16.mxu1 %v10829_v28 }
 0x8ef   :  { %4435 = vmatpush1.bf16.msra.mxu0 %v9533_v36  ;;  %4476 = vmatpush1.bf16.msra.mxu1 %v9535_v3 }
 0x8f0   :  { %4436 = vmatprep.subr.bf16.mxu0 %v9539_v6  ;;  %4477 = vmatprep.subr.bf16.mxu1 %v9541_v30 }
 0x8f3   :  { %4437 = vmatpush1.bf16.msra.mxu0 %v9547_v60  ;;  %4478 = vmatpush1.bf16.msra.mxu1 %v9549_v15 }
 0x8f4   :  { %4438 = vmatprep.subr.bf16.mxu0 %v9553_v56  ;;  %4479 = vmatprep.subr.bf16.mxu1 %v9555_v47 }
 0x8f7   :  { %4439 = vmatpush1.bf16.msra.mxu0 %v9559_v16  ;;  %4480 = vmatpush1.bf16.msra.mxu1 %v9561_v17 }
 0x8f8   :  { %4440 = vmatprep.subr.bf16.mxu0 %v9565_v48  ;;  %4481 = vmatprep.subr.bf16.mxu1 %v9567_v62 }
 0x8fb   :  { %4441 = vmatpush1.bf16.msra.mxu0 %v9573_v5  ;;  %4482 = vmatpush1.bf16.msra.mxu1 %v9575_v2 }
 0x8fc   :  { %4442 = vmatprep.subr.bf16.mxu0 %v9579_v11  ;;  %4483 = vmatprep.subr.bf16.mxu1 %v9581_v22 }
 0x8ff   :  { %4443 = vmatpush1.bf16.msra.mxu0 %v9585_v43  ;;  %4484 = vmatpush1.bf16.msra.mxu1 %v9587_v25  ;;  %v9759_v25 = vpop.f32.mrf.mxu0 }
 0x900   :  { %4444 = vmatprep.subr.bf16.mxu0 %v9591_v55  ;;  %4485 = vmatprep.subr.bf16.mxu1 %v9593_v32  ;;  %v9761_v55 = vpop.f32.mrf.mxu1 }
 0x901   :  { %v9763_v32 = vpop.f32.mrf.mxu0 }
 0x903   :  { %4445 = vmatpush1.bf16.msra.mxu0 %v9599_v23  ;;  %4486 = vmatpush1.bf16.msra.mxu1 %v9601_v9  ;;  %v9765_v23 = vpop.f32.mrf.mxu1  ;;  %v9767_v9 = vpop.f32.mrf.mxu0 }
 0x904   :  { %4446 = vmatprep.subr.bf16.mxu0 %v9603_v44  ;;  %4487 = vmatprep.subr.bf16.mxu1 %v9607_v45  ;;  %11080 = vst [vmem:[#allocation110_spill] sm:$0xff] %v9767_v9 }
 0x905   :  { %v9769_v44 = vpop.f32.mrf.mxu1  ;;  %v9771_v45 = vpop.f32.mrf.mxu0 }
 0x906   :  { %11081 = vst [vmem:[#allocation111_spill] sm:$0xff] %v9769_v44  ;;  %11082 = vst [vmem:[#allocation112_spill] sm:$0xff] %v9771_v45 }
 0x907   :  { %4447 = vmatpush1.bf16.msra.mxu0 %v9611_v27  ;;  %4488 = vmatpush1.bf16.msra.mxu1 %v9613_v53  ;;  %v9773_v27 = vpop.f32.mrf.mxu1  ;;  %v9775_v53 = vpop.f32.mrf.mxu0 }
 0x908   :  { %4523 = vmatprep.subr.bf16.mxu0 %v9617_v61  ;;  %4564 = vmatprep.subr.bf16.mxu1 %v9619_v12  ;;  %11083 = vst [vmem:[#allocation113_spill] sm:$0xff] %v9773_v27  ;;  %11084 = vst [vmem:[#allocation114_spill] sm:$0xff] %v9775_v53 }
 0x909   :  { %v9777_v61 = vpop.f32.mrf.mxu1  ;;  %v9779_v12 = vpop.f32.mrf.mxu0 }
 0x90a   :  { %11085 = vst [vmem:[#allocation115_spill] sm:$0xff] %v9777_v61  ;;  %11086 = vst [vmem:[#allocation116_spill] sm:$0xff] %v9779_v12 }
 0x90b   :  { %v9781_v43 = vpop.f32.mrf.mxu1  ;;  %v9783_v22 = vpop.f32.mrf.mxu0 }
 0x90c   :  { %11087 = vst [vmem:[#allocation117_spill] sm:$0xff] %v9781_v43  ;;  %11088 = vst [vmem:[#allocation118_spill] sm:$0xff] %v9783_v22 }
 0x90d   :  { %v9785_v11 = vpop.f32.mrf.mxu1  ;;  %v9787_v2 = vpop.f32.mrf.mxu0 }
 0x90e   :  { %11089 = vst [vmem:[#allocation48_spill] sm:$0xff] %v9785_v11  ;;  %11090 = vst [vmem:[#allocation50_spill] sm:$0xff] %v9787_v2 }
 0x90f   :  { %v9789_v9 = vpop.f32.mrf.mxu1  ;;  %v9791_v44 = vpop.f32.mrf.mxu0 }
 0x910   :  { %11091 = vst [vmem:[#allocation51_spill] sm:$0xff] %v9789_v9  ;;  %11092 = vst [vmem:[#allocation49_spill] sm:$0xff] %v9791_v44 }
 0x911   :  { %v9793_v45 = vpop.f32.mrf.mxu1  ;;  %v9795_v27 = vpop.f32.mrf.mxu0 }
 0x912   :  { %11093 = vst [vmem:[#allocation78_spill] sm:$0xff] %v9793_v45  ;;  %11094 = vst [vmem:[#allocation80_spill] sm:$0xff] %v9795_v27 }
 0x913   :  { %v9797_v53 = vpop.f32.mrf.mxu1  ;;  %v9799_v61 = vpop.f32.mrf.mxu0 }
 0x914   :  { %11095 = vst [vmem:[#allocation81_spill] sm:$0xff] %v9797_v53  ;;  %11096 = vst [vmem:[#allocation79_spill] sm:$0xff] %v9799_v61 }
 0x915   :  { %v9801_v12 = vpop.f32.mrf.mxu1  ;;  %v9803_v43 = vpop.f32.mrf.mxu0 }
 0x916   :  { %11097 = vst [vmem:[#allocation54_spill] sm:$0xff] %v9801_v12  ;;  %11098 = vst [vmem:[#allocation52_spill] sm:$0xff] %v9803_v43  ;;  %v3431_v12 = vld [vmem:[#allocation20] sm:$0xf] }
 0x917   :  { %v9805_v22 = vpop.f32.mrf.mxu1 }
 0x918   :  { %11099 = vst [vmem:[#allocation55_spill] sm:$0xff] %v9805_v22 }
 0x962   :  { %v9807_v11 = vpop.f32.mrf.mxu0  ;;  %v9809_v2 = vpop.f32.mrf.mxu1 }
 0x963   :  { %11100 = vst [vmem:[#allocation53_spill] sm:$0xff] %v9807_v11  ;;  %11101 = vst [vmem:[#allocation84_spill] sm:$0xff] %v9809_v2 }
 0x964   :  { %v9811_v9 = vpop.f32.mrf.mxu0  ;;  %v9813_v44 = vpop.f32.mrf.mxu1 }
 0x965   :  { %11102 = vst [vmem:[#allocation82_spill] sm:$0xff] %v9811_v9  ;;  %11103 = vst [vmem:[#allocation85_spill] sm:$0xff] %v9813_v44  ;;  %v11108_v9 = vld [vmem:[#allocation34_spill] sm:$0xff]  ;;  %v11109_v44 = vld [vmem:[#allocation33_spill] sm:$0xff] }
 0x966   :  { %v9815_v45 = vpop.f32.mrf.mxu0  ;;  %v9817_v27 = vpop.f32.mrf.mxu1  ;;  %v9832_v5 = vrot.slane %v3431_v12, %v11108_v9 }
 0x967   :  { %11104 = vst [vmem:[#allocation83_spill] sm:$0xff] %v9815_v45  ;;  %11105 = vst [vmem:[#allocation37_spill] sm:$0xff] %v9817_v27  ;;  %v9835_v45 = vrot.slane %v3431_v12, %v11109_v44 }
 0x968   :  { %v9819_v53 = vpop.f32.mrf.mxu0  ;;  %v9821_v61 = vpop.f32.mrf.mxu1 }
 0x969   :  { %11106 = vst [vmem:[#allocation66_spill] sm:$0xff] %v9819_v53  ;;  %11107 = vst [vmem:[#allocation64_spill] sm:$0xff] %v9821_v61  ;;  %v11110_v53 = vld [vmem:[#allocation35_spill] sm:$0xff]  ;;  %v11111_v61 = vld [vmem:[#allocation36_spill] sm:$0xff] }
 0x96a   :  { %v9823_v43 = vpop.f32.mrf.mxu0  ;;  %v9825_v22 = vpop.f32.mrf.mxu1  ;;  %v9838_v48 = vrot.slane %v3431_v12, %v11110_v53  ;;  %v9841_v17 = vrot.slane %v3431_v12, %v11111_v61 }
 0x96c   :  { %v9827_v11 = vpop.f32.mrf.mxu0  ;;  %v9829_v2 = vpop.f32.mrf.mxu1 }
 0x96e   :  { %v3675_v27 = vpop.f32.mrf.mxu0  ;;  %v3748_v62 = vpop.f32.mrf.mxu1 }
 0x96f   :  { %v9844_v16 = vadd.f32 %v3675_v27, %v9832_v5  ;;  %v9847_v47 = vadd.f32 %v3748_v62, %v9835_v45 }
 0x970   :  { %v3677_v56 = vpop.f32.mrf.mxu0  ;;  %v3750_v15 = vpop.f32.mrf.mxu1 }
 0x971   :  { %11112 = vst [vmem:[#allocation67_spill] sm:$0xff] %v9844_v16  ;;  %11113 = vst [vmem:[#allocation65_spill] sm:$0xff] %v9847_v47  ;;  %v9850_v60 = vadd.f32 %v3677_v56, %v9838_v48  ;;  %v9853_v30 = vadd.f32 %v3750_v15, %v9841_v17 }
 0x972   :  { %v3681_v6 = vpop.f32.mrf.mxu0  ;;  %v3754_v3 = vpop.f32.mrf.mxu1 }
 0x973   :  { %11114 = vst [vmem:[#allocation40_spill] sm:$0xff] %v9850_v60  ;;  %11115 = vst [vmem:[#allocation42_spill] sm:$0xff] %v9853_v30  ;;  %v9856_v36 = vadd.f32 %v3681_v6, %v9832_v5  ;;  %v9859_v12 = vadd.f32 %v3754_v3, %v9835_v45 }
 0x974   :  { %v3683_v27 = vpop.f32.mrf.mxu0  ;;  %v3756_v16 = vpop.f32.mrf.mxu1 }
 0x975   :  { %11116 = vst [vmem:[#allocation43_spill] sm:$0xff] %v9856_v36  ;;  %11117 = vst [vmem:[#allocation56_spill] sm:$0xff] %v9859_v12  ;;  %v9862_v62 = vadd.f32 %v3683_v27, %v9838_v48  ;;  %v9865_v47 = vadd.f32 %v3756_v16, %v9841_v17 }
 0x976   :  { %v3685_v56 = vpop.f32.mrf.mxu0  ;;  %v3758_v60 = vpop.f32.mrf.mxu1 }
 0x977   :  { %11118 = vst [vmem:[#allocation58_spill] sm:$0xff] %v9862_v62  ;;  %11119 = vst [vmem:[#allocation59_spill] sm:$0xff] %v9865_v47  ;;  %v9868_v15 = vadd.f32 %v3685_v56, %v9832_v5  ;;  %v9871_v30 = vadd.f32 %v3758_v60, %v9835_v45 }
 0x978   :  { %v3687_v6 = vpop.f32.mrf.mxu0  ;;  %v3760_v36 = vpop.f32.mrf.mxu1 }
 0x979   :  { %11120 = vst [vmem:[#allocation57_spill] sm:$0xff] %v9868_v15  ;;  %11121 = vst [vmem:[#allocation86_spill] sm:$0xff] %v9871_v30  ;;  %v9874_v3 = vadd.f32 %v3687_v6, %v9838_v48  ;;  %v9877_v12 = vadd.f32 %v3760_v36, %v9841_v17 }
 0x97a   :  { %v3691_v27 = vpop.f32.mrf.mxu0  ;;  %v3764_v62 = vpop.f32.mrf.mxu1 }
 0x97b   :  { %11122 = vst [vmem:[#allocation88_spill] sm:$0xff] %v9874_v3  ;;  %11123 = vst [vmem:[#allocation89_spill] sm:$0xff] %v9877_v12  ;;  %v9880_v16 = vadd.f32 %v3691_v27, %v9832_v5  ;;  %v9883_v47 = vadd.f32 %v3764_v62, %v9835_v45 }
 0x97c   :  { %v3693_v56 = vpop.f32.mrf.mxu0  ;;  %v3766_v15 = vpop.f32.mrf.mxu1 }
 0x97d   :  { %11124 = vst [vmem:[#allocation87_spill] sm:$0xff] %v9880_v16  ;;  %11125 = vst [vmem:[#allocation38_spill] sm:$0xff] %v9883_v47  ;;  %v9886_v60 = vadd.f32 %v3693_v56, %v9838_v48  ;;  %v9889_v30 = vadd.f32 %v3766_v15, %v9841_v17  ;;  %v3015_v56 = vld [vmem:[#allocation12] sm:$0xf] }
 0x97e   :  { %v3695_v6 = vpop.f32.mrf.mxu0  ;;  %v3768_v3 = vpop.f32.mrf.mxu1  ;;  %v9919_v13 = vrot.slane %v3015_v56, %v11110_v53 }
 0x97f   :  { %11126 = vst [vmem:[#allocation62_spill] sm:$0xff] %v9886_v60  ;;  %11127 = vst [vmem:[#allocation60_spill] sm:$0xff] %v9889_v30  ;;  %v9892_v36 = vadd.f32 %v3695_v6, %v9832_v5  ;;  %v9895_v12 = vadd.f32 %v3768_v3, %v9835_v45 }
 0x980   :  { %v3697_v27 = vpop.f32.mrf.mxu0  ;;  %v3770_v16 = vpop.f32.mrf.mxu1  ;;  %11137 = vst [vmem:[#allocation35_spill] sm:$0xff] %v9919_v13 }
 0x981   :  { %11128 = vst [vmem:[#allocation39_spill] sm:$0xff] %v9892_v36  ;;  %11129 = vst [vmem:[#allocation63_spill] sm:$0xff] %v9895_v12  ;;  %v9898_v62 = vadd.f32 %v3697_v27, %v9838_v48  ;;  %v9901_v47 = vadd.f32 %v3770_v16, %v9841_v17  ;;  %v9910_v12 = vrot.slane %v3015_v56, %v11108_v9 }
 0x982   :  { %v3701_v60 = vpop.f32.mrf.mxu0  ;;  %v3774_v15 = vpop.f32.mrf.mxu1 }
 0x983   :  { %11130 = vst [vmem:[#allocation61_spill] sm:$0xff] %v9898_v62  ;;  %11131 = vst [vmem:[#allocation92_spill] sm:$0xff] %v9901_v47  ;;  %v9904_v30 = vadd.f32 %v3701_v60, %v9832_v5  ;;  %v9907_v6 = vadd.f32 %v3774_v15, %v9835_v45 }
 0x984   :  { %v3703_v36 = vpop.f32.mrf.mxu0  ;;  %v3776_v3 = vpop.f32.mrf.mxu1  ;;  %11134 = vst [vmem:[#allocation91_spill] sm:$0xff] %v9910_v12 }
 0x985   :  { %11132 = vst [vmem:[#allocation90_spill] sm:$0xff] %v9904_v30  ;;  %11133 = vst [vmem:[#allocation93_spill] sm:$0xff] %v9907_v6  ;;  %v9913_v27 = vadd.f32 %v3703_v36, %v9838_v48  ;;  %v9916_v16 = vadd.f32 %v3776_v3, %v9841_v17  ;;  %v3256_v36 = vadd.f32 %v9759_v25, %v9910_v12 }
 0x986   :  { %v3705_v47 = vpop.f32.mrf.mxu0  ;;  %v3778_v62 = vpop.f32.mrf.mxu1 }
 0x987   :  { %11135 = vst [vmem:[#allocation34_spill] sm:$0xff] %v9913_v27  ;;  %11136 = vst [vmem:[#allocation33_spill] sm:$0xff] %v9916_v16  ;;  %v9922_v60 = vadd.f32 %v3705_v47, %v9832_v5  ;;  %v9925_v15 = vadd.f32 %v3778_v62, %v9835_v45  ;;  %v3258_v47 = vadd.f32 %v9763_v32, %v9919_v13 }
 0x988   :  { %v3707_v6 = vpop.f32.mrf.mxu0  ;;  %v3780_v9 = vpop.f32.mrf.mxu1 }
 0x989   :  { %11138 = vst [vmem:[#allocation36_spill] sm:$0xff] %v9922_v60  ;;  %11139 = vst [vmem:[#allocation119_spill] sm:$0xff] %v9925_v15  ;;  %v9930_v27 = vadd.f32 %v3707_v6, %v9838_v48  ;;  %v9933_v3 = vadd.f32 %v3780_v9, %v9841_v17  ;;  %v9938_v6 = vrot.slane %v3015_v56, %v11111_v61 }
 0x98a   :  { %v4077_v16 = vpop.f32.mrf.mxu0  ;;  %v4118_v53 = vpop.f32.mrf.mxu1 }
 0x98b   :  { %11140 = vst [vmem:[#allocation120_spill] sm:$0xff] %v9930_v27  ;;  %11141 = vst [vmem:[#allocation121_spill] sm:$0xff] %v9933_v3  ;;  %v4125_v60 = vadd.f32 %v4077_v16, %v3256_v36  ;;  %v9941_v3 = vrot.slane %v3015_v56, %v11109_v44  ;;  %v3331_v32 = vadd.f32 %v9765_v23, %v9938_v6 }
 0x98c   :  { %v4079_v30 = vpop.f32.mrf.mxu0  ;;  %v4120_v62 = vpop.f32.mrf.mxu1  ;;  %v3672_v44 = vadd.f32 %v9823_v43, %v9832_v5 }
 0x98d   :  { %v6556_v15 = vmul.f32 -1.442695, %v4125_v60  ;;  %v4126_v33 = vadd.f32 %v4079_v30, %v3258_v47  ;;  %11142 = vst [vmem:[#allocation122_spill] sm:$0xff] %v9941_v3  ;;  %v4128_v16 = vadd.f32 %v4120_v62, %v3331_v32  ;;  %v3329_v30 = vadd.f32 %v9761_v55, %v9941_v3 }
 0x98e   :  { %v4081_v4 = vpop.f32.mrf.mxu0  ;;  %v4122_v46 = vpop.f32.mrf.mxu1  ;;  %v3674_v55 = vadd.f32 %v9827_v11, %v9838_v48  ;;  %v3747_v48 = vadd.f32 %v9829_v2, %v9841_v17 }
 0x98f   :  { %7279 = vpow2.f32 %v6556_v15  ;;  %v6557_v25 = vmul.f32 -1.442695, %v4126_v33  ;;  %v4127_v4 = vadd.f32 %v4118_v53, %v3329_v30  ;;  %v6558_v46 = vmul.f32 -1.442695, %v4128_v16 }
 0x990   :  { %v4082_v27 = vpop.f32.mrf.mxu0  ;;  %v4123_v9 = vpop.f32.mrf.mxu1 }
 0x991   :  { %7281 = vpow2.f32 %v6557_v25 }
 0x992   :  { %7283 = vtanh.f32 %v4127_v4 }
 0x993   :  { %7285 = vpow2.f32 %v6558_v46 }
 0x99c   :  { %v7280_v60 = vpop.eup %7279 }
 0x99d   :  { %v4388_v33 = vadd.f32 1.0, %v7280_v60 }
 0x99e   :  { %v7282_v61 = vpop.eup %7281 }
 0x99f   :  { %7287 = vrcp.f32 %v4388_v33  ;;  %v4389_v27 = vadd.f32 1.0, %v7282_v61  ;;  %v7284_v56 = vpop.eup %7283 }
 0x9a0   :  { %v7286_v36 = vpop.eup %7285 }
 0x9a1   :  { %7289 = vrcp.f32 %v4389_v27  ;;  %v4390_v4 = vadd.f32 1.0, %v7286_v36 }
 0x9aa   :  { %v4327_v15 = vpop.f32.mrf.mxu0  ;;  %v4368_v23 = vpop.f32.mrf.mxu1 }
 0x9ab   :  { %v4375_v53 = vadd.f32 %v4327_v15, %v3672_v44  ;;  %v3745_v44 = vadd.f32 %v9825_v22, %v9835_v45 }
 0x9ac   :  { %v7288_v47 = vpop.eup %7287  ;;  %v4329_v62 = vpop.f32.mrf.mxu0 }
 0x9ad   :  { %v4370_v25 = vpop.f32.mrf.mxu1  ;;  %v4399_v9 = vmul.f32 %v7288_v47, %v7284_v56  ;;  %v6559_v32 = vmul.f32 -1.442695, %v4375_v53  ;;  %v4376_v16 = vadd.f32 %v4329_v62, %v3674_v55  ;;  %v4377_v56 = vadd.f32 %v4368_v23, %v3745_v44  ;;  %v11147_v44 = vld [vmem:[#allocation73_spill] sm:$0xff] }
 0x9ae   :  { %v7290_v30 = vpop.eup %7289  ;;  %v4331_v46 = vpop.f32.mrf.mxu0  ;;  %v4378_v11 = vadd.f32 %v4370_v25, %v3747_v48  ;;  %v11145_v48 = vld [vmem:[#allocation70_spill] sm:$0xff] }
 0x9af   :  { %v4372_v60 = vpop.f32.mrf.mxu1  ;;  %v4398_v33 = vmul.f32 0.0, %v7290_v30  ;;  %7291 = vpow2.f32 %v6559_v32  ;;  %v6560_v5 = vmul.f32 -1.442695, %v4376_v16  ;;  %v11143_v46 = vld [vmem:[#allocation109_spill] sm:$0xff] }
 0x9b0   :  { %v4332_v43 = vpop.f32.mrf.mxu0  ;;  %v6561_v15 = vmul.f32 -1.442695, %v4378_v11  ;;  %v11146_v11 = vld [vmem:[#allocation72_spill] sm:$0xff] }
 0x9b1   :  { %v4373_v61 = vpop.f32.mrf.mxu1  ;;  %v9951_v27 = vadd.f32 %v4399_v9, %v4398_v33  ;;  %7293 = vpow2.f32 %v6560_v5 }
 0x9b2   :  { %7295 = vrcp.f32 %v4390_v4  ;;  %v11144_v61 = vld [vmem:[#allocation41_spill] sm:$0xff] }
 0x9b3   :  { %7297 = vtanh.f32 %v9951_v27 }
 0x9b4   :  { %7299 = vtanh.f32 %v4377_v56  ;;  %v11148_v56 = vld [vmem:[#allocation71_spill] sm:$0xff] }
 0x9b5   :  { %7301 = vpow2.f32 %v6561_v15  ;;  %v11149_v15 = vld [vmem:[#allocation46_spill] sm:$0xff] }
 0x9bc   :  { %v7292_v36 = vpop.eup %7291 }
 0x9bd   :  { %v4412_v55 = vadd.f32 1.0, %v7292_v36  ;;  %v11152_v36 = vld [vmem:[#allocation45_spill] sm:$0xff] }
 0x9be   :  { %v7294_v53 = vpop.eup %7293 }
 0x9bf   :  { %v7296_v47 = vpop.eup %7295  ;;  %7303 = vrcp.f32 %v4412_v55  ;;  %v4413_v62 = vadd.f32 1.0, %v7294_v53  ;;  %v11153_v55 = vld [vmem:[#allocation68_spill] sm:$0xff] }
 0x9c0   :  { %v7298_v9 = vpop.eup %7297  ;;  %v11154_v53 = vld [vmem:[#allocation76_spill] sm:$0xff] }
 0x9c1   :  { %7305 = vrcp.f32 %v4413_v62  ;;  %v4402_v32 = vmul.f32 %v7298_v9, %v7296_v47  ;;  %v7300_v17 = vpop.eup %7299  ;;  %v11155_v47 = vld [vmem:[#allocation74_spill] sm:$0xff]  ;;  %v11156_v62 = vld [vmem:[#allocation69_spill] sm:$0xff] }
 0x9c2   :  { %v7302_v2 = vpop.eup %7301  ;;  %v11157_v9 = vld [vmem:[#allocation77_spill] sm:$0xff] }
 0x9c3   :  { %v4431_v16 = vpack.c.bf16 %v4402_v32, %v4402_v32  ;;  %v4414_v25 = vadd.f32 1.0, %v7302_v2  ;;  %v11158_v32 = vld [vmem:[#allocation75_spill] sm:$0xff]  ;;  %v11161_v2 = vld [vmem:[#allocation94_spill] sm:$0xff] }
 0x9c5   :  { %4465 = vmatmul.mubr.bf16.vlgmr.msra.gmra.mxu0 %v4431_v16  ;;  %4506 = vmatmul.mubr.bf16.vlgmr.msra.gmra.mxu1 %v4431_v16  ;;  %7307 = vrcp.f32 %v4414_v25  ;;  %v11159_v16 = vld [vmem:[#allocation31_spill] sm:$0xff]  ;;  %v11165_v25 = vld [vmem:[#allocation98_spill] sm:$0xff] }
 0x9c6   :  { %4524 = vmatpush1.bf16.msra.mxu0 %v9625_v59  ;;  %4565 = vmatpush1.bf16.msra.mxu1 %v9627_v39 }
 0x9c7   :  { %4525 = vmatprep.subr.bf16.mxu0 %v9631_v20  ;;  %4566 = vmatprep.subr.bf16.mxu1 %v9633_v24 }
 0x9c8   :  { %4555 = vmatprep.mubr.bf16.mxu0 %v10829_v28  ;;  %4596 = vmatprep.mubr.bf16.mxu1 %v10829_v28 }
 0x9ca   :  { %4526 = vmatpush1.bf16.msra.mxu0 %v9639_v57  ;;  %4567 = vmatpush1.bf16.msra.mxu1 %v9641_v35 }
 0x9cb   :  { %4527 = vmatprep.subr.bf16.mxu0 %v9645_v14  ;;  %4568 = vmatprep.subr.bf16.mxu1 %v9647_v49 }
 0x9cc   :  { %v7304_v22 = vpop.eup %7303 }
 0x9cd   :  { %v4423_v45 = vmul.f32 %v7304_v22, %v7300_v17  ;;  %v11160_v17 = vld [vmem:[#allocation32_spill] sm:$0xff]  ;;  %v11162_v22 = vld [vmem:[#allocation95_spill] sm:$0xff] }
 0x9ce   :  { %v7306_v23 = vpop.eup %7305  ;;  %4528 = vmatpush1.bf16.msra.mxu0 %v9653_v50  ;;  %4569 = vmatpush1.bf16.msra.mxu1 %v9655_v63 }
 0x9cf   :  { %v4422_v30 = vmul.f32 0.0, %v7306_v23  ;;  %4529 = vmatprep.subr.bf16.mxu0 %v9659_v21  ;;  %4570 = vmatprep.subr.bf16.mxu1 %v9661_v51  ;;  %v11164_v23 = vld [vmem:[#allocation97_spill] sm:$0xff] }
 0x9d1   :  { %v9972_v4 = vadd.f32 %v4423_v45, %v4422_v30  ;;  %v11163_v45 = vld [vmem:[#allocation96_spill] sm:$0xff]  ;;  %v11166_v30 = vld [vmem:[#allocation99_spill] sm:$0xff] }
 0x9d2   :  { %4530 = vmatpush1.bf16.msra.mxu0 %v9665_v26  ;;  %4571 = vmatpush1.bf16.msra.mxu1 %v9667_v58  ;;  %v7308_v60 = vpop.eup %7307 }
 0x9d3   :  { %7309 = vtanh.f32 %v9972_v4  ;;  %4531 = vmatprep.subr.bf16.mxu0 %v9671_v34  ;;  %4572 = vmatprep.subr.bf16.mxu1 %v9673_v1 }
 0x9d6   :  { %4532 = vmatpush1.bf16.msra.mxu0 %v9677_v29  ;;  %4573 = vmatpush1.bf16.msra.mxu1 %v9679_v41 }
 0x9d7   :  { %4533 = vmatprep.subr.bf16.mxu0 %v9683_v10  ;;  %4574 = vmatprep.subr.bf16.mxu1 %v9685_v52 }
 0x9da   :  { %4534 = vmatpush1.bf16.msra.mxu0 %v11143_v46  ;;  %4575 = vmatpush1.bf16.msra.mxu1 %v9691_v7 }
 0x9db   :  { %4535 = vmatprep.subr.bf16.mxu0 %v9695_v37  ;;  %4576 = vmatprep.subr.bf16.mxu1 %v9697_v31 }
 0x9de   :  { %4536 = vmatpush1.bf16.msra.mxu0 %v9701_v18  ;;  %4577 = vmatpush1.bf16.msra.mxu1 %v9703_v19 }
 0x9df   :  { %4537 = vmatprep.subr.bf16.mxu0 %v9707_v54  ;;  %4578 = vmatprep.subr.bf16.mxu1 %v9709_v8 }
 0x9e0   :  { %v7310_v33 = vpop.eup %7309 }
 0x9e1   :  { %v4426_v5 = vmul.f32 %v7310_v33, %v7308_v60  ;;  %v11167_v60 = vld [vmem:[#allocation100_spill] sm:$0xff]  ;;  %v11168_v33 = vld [vmem:[#allocation101_spill] sm:$0xff] }
 0x9e2   :  { %4538 = vmatpush1.bf16.msra.mxu0 %v9713_v0  ;;  %4579 = vmatpush1.bf16.msra.mxu1 %v9715_v40 }
 0x9e3   :  { %v4522_v43 = vpack.c.bf16 %v4426_v5, %v4426_v5  ;;  %4662 = vmatprep.subr.bf16.mxu0 %v9501_v42  ;;  %4703 = vmatprep.subr.bf16.mxu1 %v9503_v38  ;;  %v11150_v42 = vld [vmem:[#allocation44_spill] sm:$0xff]  ;;  %v11151_v38 = vld [vmem:[#allocation47_spill] sm:$0xff]  ;;  %v11169_v5 = vld [vmem:[#allocation102_spill] sm:$0xff] }
 0x9e5   :  { %4556 = vmatmul.mubr.bf16.vlgmr.msra.gmra.mxu0 %v4522_v43  ;;  %4597 = vmatmul.mubr.bf16.vlgmr.msra.gmra.mxu1 %v4522_v43  ;;  %v11170_v43 = vld [vmem:[#allocation103_spill] sm:$0xff] }
 0x9e6   :  { %4663 = vmatpush1.bf16.msra.mxu0 %v11144_v61  ;;  %4704 = vmatpush1.bf16.msra.mxu1 %v11145_v48  ;;  %v11171_v61 = vld [vmem:[#allocation104_spill] sm:$0xff]  ;;  %v11172_v48 = vld [vmem:[#allocation105_spill] sm:$0xff] }
 0x9e7   :  { %4664 = vmatprep.subr.bf16.mxu0 %v11146_v11  ;;  %4705 = vmatprep.subr.bf16.mxu1 %v11147_v44  ;;  %v11173_v11 = vld [vmem:[#allocation106_spill] sm:$0xff]  ;;  %v11174_v44 = vld [vmem:[#allocation107_spill] sm:$0xff] }
 0x9e8   :  { %4694 = vmatprep.mubr.bf16.mxu0 %v10829_v28  ;;  %4735 = vmatprep.mubr.bf16.mxu1 %v10829_v28 }
 0x9ea   :  { %4665 = vmatpush1.bf16.msra.mxu0 %v11148_v56  ;;  %4706 = vmatpush1.bf16.msra.mxu1 %v11149_v15  ;;  %v11175_v56 = vld [vmem:[#allocation108_spill] sm:$0xff]  ;;  %v11176_v15 = vld [vmem:[#allocation110_spill] sm:$0xff] }
 0x9eb   :  { %4666 = vmatprep.subr.bf16.mxu0 %v11150_v42  ;;  %4707 = vmatprep.subr.bf16.mxu1 %v11151_v38  ;;  %v3260_v42 = vadd.f32 %v11176_v15, %v9910_v12 }
 0x9ee   :  { %4667 = vmatpush1.bf16.msra.mxu0 %v11152_v36  ;;  %4708 = vmatpush1.bf16.msra.mxu1 %v11153_v55  ;;  %v11177_v55 = vld [vmem:[#allocation112_spill] sm:$0xff] }
 0x9ef   :  { %4668 = vmatprep.subr.bf16.mxu0 %v11154_v53  ;;  %4709 = vmatprep.subr.bf16.mxu1 %v11155_v47  ;;  %v3262_v53 = vadd.f32 %v11177_v55, %v9919_v13 }
 0x9f2   :  { %4669 = vmatpush1.bf16.msra.mxu0 %v11156_v62  ;;  %4710 = vmatpush1.bf16.msra.mxu1 %v11157_v9 }
 0x9f3   :  { %4670 = vmatprep.subr.bf16.mxu0 %v11158_v32  ;;  %4711 = vmatprep.subr.bf16.mxu1 %v11159_v16 }
 0x9f6   :  { %4671 = vmatpush1.bf16.msra.mxu0 %v11160_v17  ;;  %4712 = vmatpush1.bf16.msra.mxu1 %v11161_v2 }
 0x9f7   :  { %4672 = vmatprep.subr.bf16.mxu0 %v11162_v22  ;;  %4713 = vmatprep.subr.bf16.mxu1 %v11163_v45 }
 0x9fa   :  { %4673 = vmatpush1.bf16.msra.mxu0 %v11164_v23  ;;  %4714 = vmatpush1.bf16.msra.mxu1 %v11165_v25  ;;  %v11178_v25 = vld [vmem:[#allocation113_spill] sm:$0xff] }
 0x9fb   :  { %4674 = vmatprep.subr.bf16.mxu0 %v11166_v30  ;;  %4715 = vmatprep.subr.bf16.mxu1 %v11167_v60  ;;  %v3335_v30 = vadd.f32 %v11178_v25, %v9938_v6 }
 0x9fe   :  { %4675 = vmatpush1.bf16.msra.mxu0 %v11168_v33  ;;  %4716 = vmatpush1.bf16.msra.mxu1 %v11169_v5  ;;  %v11179_v33 = vld [vmem:[#allocation111_spill] sm:$0xff] }
 0x9ff   :  { %4676 = vmatprep.subr.bf16.mxu0 %v11170_v43  ;;  %4717 = vmatprep.subr.bf16.mxu1 %v11171_v61  ;;  %v3333_v5 = vadd.f32 %v11179_v33, %v9941_v3 }
 0xa02   :  { %4677 = vmatpush1.bf16.msra.mxu0 %v11172_v48  ;;  %4718 = vmatpush1.bf16.msra.mxu1 %v11173_v11 }
 0xa03   :  { %4753 = vmatprep.subr.bf16.mxu0 %v11174_v44  ;;  %4794 = vmatprep.subr.bf16.mxu1 %v11175_v56 }
 0xa85   :  { %v4466_v38 = vpop.f32.mrf.mxu0  ;;  %v4507_v36 = vpop.f32.mrf.mxu1 }
 0xa86   :  { %v4514_v47 = vadd.f32 %v4466_v38, %v3260_v42  ;;  %v4516_v43 = vadd.f32 %v4507_v36, %v3333_v5 }
 0xa87   :  { %v4468_v62 = vpop.f32.mrf.mxu0  ;;  %v4509_v9 = vpop.f32.mrf.mxu1 }
 0xa88   :  { %v6562_v32 = vmul.f32 -1.442695, %v4514_v47  ;;  %v4515_v16 = vadd.f32 %v4468_v62, %v3262_v53  ;;  %v4517_v60 = vadd.f32 %v4509_v9, %v3335_v30  ;;  %v11180_v53 = vld [vmem:[#allocation67_spill] sm:$0xff] }
 0xa89   :  { %v4470_v17 = vpop.f32.mrf.mxu0  ;;  %v4511_v2 = vpop.f32.mrf.mxu1 }
 0xa8a   :  { %7311 = vpow2.f32 %v6562_v32  ;;  %v6563_v22 = vmul.f32 -1.442695, %v4515_v16  ;;  %v6564_v61 = vmul.f32 -1.442695, %v4517_v60  ;;  %v11181_v17 = vld [vmem:[#allocation40_spill] sm:$0xff] }
 0xa8b   :  { %v4471_v45 = vpop.f32.mrf.mxu0  ;;  %v4512_v23 = vpop.f32.mrf.mxu1 }
 0xa8c   :  { %7313 = vpow2.f32 %v6563_v22 }
 0xa8d   :  { %7315 = vtanh.f32 %v4516_v43 }
 0xa8e   :  { %7317 = vpow2.f32 %v6564_v61  ;;  %v11182_v61 = vld [vmem:[#allocation42_spill] sm:$0xff] }
 0xa97   :  { %v7312_v48 = vpop.eup %7311 }
 0xa98   :  { %v4618_v11 = vadd.f32 1.0, %v7312_v48 }
 0xa99   :  { %v7314_v44 = vpop.eup %7313 }
 0xa9a   :  { %7319 = vrcp.f32 %v4618_v11  ;;  %v4619_v56 = vadd.f32 1.0, %v7314_v44  ;;  %v7316_v15 = vpop.eup %7315  ;;  %v11183_v11 = vld [vmem:[#allocation65_spill] sm:$0xff] }
 0xa9b   :  { %v7318_v55 = vpop.eup %7317 }
 0xa9c   :  { %7321 = vrcp.f32 %v4619_v56  ;;  %v4620_v45 = vadd.f32 1.0, %v7318_v55 }
 0xaa5   :  { %v4557_v42 = vpop.f32.mrf.mxu0  ;;  %v4598_v38 = vpop.f32.mrf.mxu1 }
 0xaa6   :  { %v4605_v47 = vadd.f32 %v4557_v42, %v11180_v53  ;;  %v4607_v44 = vadd.f32 %v4598_v38, %v11183_v11 }
 0xaa7   :  { %v7320_v62 = vpop.eup %7319  ;;  %v4559_v9 = vpop.f32.mrf.mxu0 }
 0xaa8   :  { %v4600_v32 = vpop.f32.mrf.mxu1  ;;  %v4629_v16 = vmul.f32 %v7320_v62, %v7316_v15  ;;  %v6565_v36 = vmul.f32 -1.442695, %v4605_v47  ;;  %v4606_v2 = vadd.f32 %v4559_v9, %v11181_v17  ;;  %v10152_v17 = vld [vmem:[#allocation11 + $0x48] ss:$16 sps:$4 sm:$0xff]  }
 0xaa9   :  { %v7322_v22 = vpop.eup %7321  ;;  %v4561_v23 = vpop.f32.mrf.mxu0  ;;  %v4608_v48 = vadd.f32 %v4600_v32, %v11182_v61  ;;  %11199 = vst [vmem:[#allocation75_spill] sm:$0xff] %v10152_v17  ;;  %v10182_v61 = vld [vmem:[#allocation18 + $0xec] ss:$16 sps:$4 sm:$0xff]  }
 0xaaa   :  { %v4602_v25 = vpop.f32.mrf.mxu1  ;;  %v4628_v30 = vmul.f32 %v7322_v22, %v9951_v27  ;;  %7323 = vpow2.f32 %v6565_v36  ;;  %v6566_v60 = vmul.f32 -1.442695, %v4606_v2  ;;  %v10149_v36 = vld [vmem:[#allocation11 + $0x40] ss:$16 sps:$4 sm:$0xff]   ;;  %v10155_v2 = vld [vmem:[#allocation11 + $0x24] ss:$16 sps:$4 sm:$0xff]  }
 0xaab   :  { %v4562_v33 = vpop.f32.mrf.mxu0  ;;  %v6567_v56 = vmul.f32 -1.442695, %v4608_v48  ;;  %11198 = vst [vmem:[#allocation77_spill] sm:$0xff] %v10149_v36  ;;  %11200 = vst [vmem:[#allocation31_spill] sm:$0xff] %v10155_v2  ;;  %v10158_v22 = vld [vmem:[#allocation11 + $0x2c] ss:$16 sps:$4 sm:$0xff]  }
 0xaac   :  { %v4603_v5 = vpop.f32.mrf.mxu1  ;;  %v10040_v43 = vadd.f32 %v4629_v16, %v4628_v30  ;;  %7325 = vpow2.f32 %v6566_v60  ;;  %11201 = vst [vmem:[#allocation32_spill] sm:$0xff] %v10158_v22  ;;  %v10164_v23 = vld [vmem:[#allocation11 + $0x28] ss:$16 sps:$4 sm:$0xff]   ;;  %v10167_v25 = vld [vmem:[#allocation11 + $0x4] ss:$16 sps:$4 sm:$0xff]   ;;  %11209 = vst [vmem:[#allocation101_spill] sm:$0xff] %v10182_v61 }
 0xaad   :  { %7327 = vrcp.f32 %v4620_v45  ;;  %v10161_v45 = vld [vmem:[#allocation11 + $0x20] ss:$16 sps:$4 sm:$0xff]   ;;  %11203 = vst [vmem:[#allocation95_spill] sm:$0xff] %v10164_v23  ;;  %11204 = vst [vmem:[#allocation96_spill] sm:$0xff] %v10167_v25  ;;  %v10170_v30 = vld [vmem:[#allocation11 + $0xc] ss:$16 sps:$4 sm:$0xff]  }
 0xaae   :  { %7329 = vtanh.f32 %v10040_v43  ;;  %11202 = vst [vmem:[#allocation94_spill] sm:$0xff] %v10161_v45  ;;  %11205 = vst [vmem:[#allocation97_spill] sm:$0xff] %v10170_v30  ;;  %v10173_v60 = vld [vmem:[#allocation11] ss:$16 sps:$4 sm:$0xff]   ;;  %v10176_v33 = vld [vmem:[#allocation11 + $0x8] ss:$16 sps:$4 sm:$0xff]  }
 0xaaf   :  { %7331 = vtanh.f32 %v4607_v44  ;;  %11206 = vst [vmem:[#allocation98_spill] sm:$0xff] %v10173_v60  ;;  %11207 = vst [vmem:[#allocation99_spill] sm:$0xff] %v10176_v33  ;;  %v10179_v5 = vld [vmem:[#allocation18 + $0xe4] ss:$16 sps:$4 sm:$0xff]  }
 0xab0   :  { %7333 = vpow2.f32 %v6567_v56  ;;  %11208 = vst [vmem:[#allocation100_spill] sm:$0xff] %v10179_v5  ;;  %v11210_v48 = vld [vmem:[#allocation114_spill] sm:$0xff] }
 0xab1   :  { %v3266_v11 = vadd.f32 %v11210_v48, %v9910_v12 }
 0xab7   :  { %v7324_v15 = vpop.eup %7323 }
 0xab8   :  { %v4642_v42 = vadd.f32 1.0, %v7324_v15  ;;  %v11211_v15 = vld [vmem:[#allocation116_spill] sm:$0xff] }
 0xab9   :  { %v7326_v55 = vpop.eup %7325 }
 0xaba   :  { %v7328_v27 = vpop.eup %7327  ;;  %7335 = vrcp.f32 %v4642_v42  ;;  %v4643_v53 = vadd.f32 1.0, %v7326_v55  ;;  %v3268_v42 = vadd.f32 %v11211_v15, %v9919_v13 }
 0xabb   :  { %v7330_v47 = vpop.eup %7329 }
 0xabc   :  { %7337 = vrcp.f32 %v4643_v53  ;;  %v4632_v62 = vmul.f32 %v7330_v47, %v7328_v27  ;;  %v7332_v38 = vpop.eup %7331 }
 0xabd   :  { %v7334_v32 = vpop.eup %7333 }
 0xabe   :  { %v4661_v9 = vpack.c.bf16 %v4632_v62, %v4632_v62 }
 0xac0   :  { %4695 = vmatmul.mubr.bf16.vlgmr.msra.gmra.mxu0 %v4661_v9  ;;  %4736 = vmatmul.mubr.bf16.vlgmr.msra.gmra.mxu1 %v4661_v9 }
 0xac1   :  { %4754 = vmatpush1.bf16.msra.mxu0 %v9625_v59  ;;  %4795 = vmatpush1.bf16.msra.mxu1 %v9627_v39 }
 0xac2   :  { %4755 = vmatprep.subr.bf16.mxu0 %v9631_v20  ;;  %4796 = vmatprep.subr.bf16.mxu1 %v9633_v24  ;;  %v4644_v20 = vadd.f32 1.0, %v7334_v32 }
 0xac3   :  { %4785 = vmatprep.mubr.bf16.mxu0 %v10829_v28  ;;  %4826 = vmatprep.mubr.bf16.mxu1 %v10829_v28 }
 0xac4   :  { %7339 = vrcp.f32 %v4644_v20 }
 0xac5   :  { %4756 = vmatpush1.bf16.msra.mxu0 %v9639_v57  ;;  %4797 = vmatpush1.bf16.msra.mxu1 %v9641_v35 }
 0xac6   :  { %4757 = vmatprep.subr.bf16.mxu0 %v9645_v14  ;;  %4798 = vmatprep.subr.bf16.mxu1 %v9647_v49 }
 0xac7   :  { %v7336_v59 = vpop.eup %7335 }
 0xac8   :  { %v4653_v39 = vmul.f32 %v7336_v59, %v7332_v38 }
 0xac9   :  { %v7338_v16 = vpop.eup %7337  ;;  %4758 = vmatpush1.bf16.msra.mxu0 %v9653_v50  ;;  %4799 = vmatpush1.bf16.msra.mxu1 %v9655_v63  ;;  %v10081_v63 = vld [vmem:[#allocation11 + $0xe4] ss:$16 sps:$4 sm:$0xff]  }
 0xaca   :  { %v4652_v24 = vmul.f32 %v7338_v16, %v9972_v4  ;;  %4759 = vmatprep.subr.bf16.mxu0 %v9659_v21  ;;  %4800 = vmatprep.subr.bf16.mxu1 %v9661_v51  ;;  %v10084_v21 = vld [vmem:[#allocation11 + $0xec] ss:$16 sps:$4 sm:$0xff]   ;;  %v10087_v51 = vld [vmem:[#allocation11 + $0xe0] ss:$16 sps:$4 sm:$0xff]   ;;  %v10143_v4 = vld [vmem:[#allocation11 + $0x44] ss:$16 sps:$4 sm:$0xff]  }
 0xacb   :  { %11196 = vst [vmem:[#allocation74_spill] sm:$0xff] %v10143_v4  ;;  %v11212_v16 = vld [vmem:[#allocation117_spill] sm:$0xff] }
 0xacc   :  { %v10060_v57 = vadd.f32 %v4653_v39, %v4652_v24  ;;  %v3341_v20 = vadd.f32 %v11212_v16, %v9938_v6 }
 0xacd   :  { %4760 = vmatpush1.bf16.msra.mxu0 %v9665_v26  ;;  %4801 = vmatpush1.bf16.msra.mxu1 %v9667_v58  ;;  %v10090_v26 = vld [vmem:[#allocation11 + $0xe8] ss:$16 sps:$4 sm:$0xff]   ;;  %v10093_v58 = vld [vmem:[#allocation11 + $0xc4] ss:$16 sps:$4 sm:$0xff]  }
 0xace   :  { %7341 = vtanh.f32 %v10060_v57  ;;  %4761 = vmatprep.subr.bf16.mxu0 %v9671_v34  ;;  %4802 = vmatprep.subr.bf16.mxu1 %v9673_v1  ;;  %v10096_v34 = vld [vmem:[#allocation11 + $0xcc] ss:$16 sps:$4 sm:$0xff]   ;;  %v10101_v1 = vld [vmem:[#allocation11 + $0xc0] ss:$16 sps:$4 sm:$0xff]  }
 0xad1   :  { %4762 = vmatpush1.bf16.msra.mxu0 %v9677_v29  ;;  %4803 = vmatpush1.bf16.msra.mxu1 %v9679_v41  ;;  %v7340_v35 = vpop.eup %7339  ;;  %v10104_v29 = vld [vmem:[#allocation11 + $0xc8] ss:$16 sps:$4 sm:$0xff]   ;;  %v10107_v41 = vld [vmem:[#allocation11 + $0xa4] ss:$16 sps:$4 sm:$0xff]  }
 0xad2   :  { %4763 = vmatprep.subr.bf16.mxu0 %v9683_v10  ;;  %4804 = vmatprep.subr.bf16.mxu1 %v9685_v52  ;;  %11184 = vst [vmem:[#allocation109_spill] sm:$0xff] %v10107_v41  ;;  %v10110_v10 = vld [vmem:[#allocation11 + $0xac] ss:$16 sps:$4 sm:$0xff]   ;;  %v10113_v52 = vld [vmem:[#allocation11 + $0xa0] ss:$16 sps:$4 sm:$0xff]  }
 0xad3   :  { %11185 = vst [vmem:[#allocation41_spill] sm:$0xff] %v10110_v10  ;;  %11186 = vst [vmem:[#allocation70_spill] sm:$0xff] %v10113_v52 }
 0xad5   :  { %4764 = vmatpush1.bf16.msra.mxu0 %v11143_v46  ;;  %4805 = vmatpush1.bf16.msra.mxu1 %v9691_v7  ;;  %v10119_v7 = vld [vmem:[#allocation11 + $0x84] ss:$16 sps:$4 sm:$0xff]   ;;  %v10146_v46 = vld [vmem:[#allocation11 + $0x4c] ss:$16 sps:$4 sm:$0xff]  }
 0xad6   :  { %4765 = vmatprep.subr.bf16.mxu0 %v9695_v37  ;;  %4806 = vmatprep.subr.bf16.mxu1 %v9697_v31  ;;  %11188 = vst [vmem:[#allocation73_spill] sm:$0xff] %v10119_v7  ;;  %v10122_v37 = vld [vmem:[#allocation11 + $0x8c] ss:$16 sps:$4 sm:$0xff]   ;;  %v10125_v31 = vld [vmem:[#allocation11 + $0x80] ss:$16 sps:$4 sm:$0xff]   ;;  %11197 = vst [vmem:[#allocation69_spill] sm:$0xff] %v10146_v46 }
 0xad7   :  { %11189 = vst [vmem:[#allocation71_spill] sm:$0xff] %v10122_v37  ;;  %11190 = vst [vmem:[#allocation46_spill] sm:$0xff] %v10125_v31 }
 0xad9   :  { %4766 = vmatpush1.bf16.msra.mxu0 %v9701_v18  ;;  %4807 = vmatpush1.bf16.msra.mxu1 %v9703_v19  ;;  %v10128_v18 = vld [vmem:[#allocation11 + $0x88] ss:$16 sps:$4 sm:$0xff]   ;;  %v10131_v19 = vld [vmem:[#allocation11 + $0x64] ss:$16 sps:$4 sm:$0xff]  }
 0xada   :  { %4767 = vmatprep.subr.bf16.mxu0 %v9707_v54  ;;  %4808 = vmatprep.subr.bf16.mxu1 %v9709_v8  ;;  %11191 = vst [vmem:[#allocation44_spill] sm:$0xff] %v10128_v18  ;;  %11192 = vst [vmem:[#allocation47_spill] sm:$0xff] %v10131_v19  ;;  %v10134_v54 = vld [vmem:[#allocation11 + $0x6c] ss:$16 sps:$4 sm:$0xff]   ;;  %v10137_v8 = vld [vmem:[#allocation11 + $0x60] ss:$16 sps:$4 sm:$0xff]  }
 0xadb   :  { %v7342_v14 = vpop.eup %7341  ;;  %11193 = vst [vmem:[#allocation45_spill] sm:$0xff] %v10134_v54  ;;  %11194 = vst [vmem:[#allocation68_spill] sm:$0xff] %v10137_v8 }
 0xadc   :  { %v4656_v49 = vmul.f32 %v7342_v14, %v7340_v35  ;;  %v11213_v35 = vld [vmem:[#allocation115_spill] sm:$0xff] }
 0xadd   :  { %4768 = vmatpush1.bf16.msra.mxu0 %v9713_v0  ;;  %4809 = vmatpush1.bf16.msra.mxu1 %v9715_v40  ;;  %v10116_v40 = vld [vmem:[#allocation11 + $0xa8] ss:$16 sps:$4 sm:$0xff]   ;;  %v3339_v14 = vadd.f32 %v11213_v35, %v9941_v3 }
 0xade   :  { %v4752_v50 = vpack.c.bf16 %v4656_v49, %v4656_v49  ;;  %4892 = vmatprep.subr.bf16.mxu0 %v10081_v63  ;;  %4933 = vmatprep.subr.bf16.mxu1 %v10084_v21  ;;  %11187 = vst [vmem:[#allocation72_spill] sm:$0xff] %v10116_v40  ;;  %v10140_v0 = vld [vmem:[#allocation11 + $0x68] ss:$16 sps:$4 sm:$0xff]  }
 0xadf   :  { %11195 = vst [vmem:[#allocation76_spill] sm:$0xff] %v10140_v0 }
 0xae0   :  { %4786 = vmatmul.mubr.bf16.vlgmr.msra.gmra.mxu0 %v4752_v50  ;;  %4827 = vmatmul.mubr.bf16.vlgmr.msra.gmra.mxu1 %v4752_v50 }
 0xae1   :  { %4893 = vmatpush1.bf16.msra.mxu0 %v10087_v51  ;;  %4934 = vmatpush1.bf16.msra.mxu1 %v10090_v26 }
 0xae2   :  { %4894 = vmatprep.subr.bf16.mxu0 %v10093_v58  ;;  %4935 = vmatprep.subr.bf16.mxu1 %v10096_v34 }
 0xae3   :  { %4924 = vmatprep.mubr.bf16.mxu0 %v10829_v28  ;;  %4965 = vmatprep.mubr.bf16.mxu1 %v10829_v28 }
 0xae5   :  { %4895 = vmatpush1.bf16.msra.mxu0 %v10101_v1  ;;  %4936 = vmatpush1.bf16.msra.mxu1 %v10104_v29 }
 0xae6   :  { %4896 = vmatprep.subr.bf16.mxu0 %v10107_v41  ;;  %4937 = vmatprep.subr.bf16.mxu1 %v10110_v10 }
 0xae9   :  { %4897 = vmatpush1.bf16.msra.mxu0 %v10113_v52  ;;  %4938 = vmatpush1.bf16.msra.mxu1 %v10116_v40 }
 0xaea   :  { %4898 = vmatprep.subr.bf16.mxu0 %v10119_v7  ;;  %4939 = vmatprep.subr.bf16.mxu1 %v10122_v37 }
 0xaed   :  { %4899 = vmatpush1.bf16.msra.mxu0 %v10125_v31  ;;  %4940 = vmatpush1.bf16.msra.mxu1 %v10128_v18 }
 0xaee   :  { %4900 = vmatprep.subr.bf16.mxu0 %v10131_v19  ;;  %4941 = vmatprep.subr.bf16.mxu1 %v10134_v54 }
 0xaf1   :  { %4901 = vmatpush1.bf16.msra.mxu0 %v10137_v8  ;;  %4942 = vmatpush1.bf16.msra.mxu1 %v10140_v0 }
 0xaf2   :  { %4902 = vmatprep.subr.bf16.mxu0 %v10143_v4  ;;  %4943 = vmatprep.subr.bf16.mxu1 %v10146_v46 }
 0xaf5   :  { %4903 = vmatpush1.bf16.msra.mxu0 %v10149_v36  ;;  %4944 = vmatpush1.bf16.msra.mxu1 %v10152_v17 }
 0xaf6   :  { %4904 = vmatprep.subr.bf16.mxu0 %v10155_v2  ;;  %4945 = vmatprep.subr.bf16.mxu1 %v10158_v22 }
 0xaf9   :  { %4905 = vmatpush1.bf16.msra.mxu0 %v10161_v45  ;;  %4946 = vmatpush1.bf16.msra.mxu1 %v10164_v23 }
 0xafa   :  { %4906 = vmatprep.subr.bf16.mxu0 %v10167_v25  ;;  %4947 = vmatprep.subr.bf16.mxu1 %v10170_v30 }
 0xafd   :  { %4907 = vmatpush1.bf16.msra.mxu0 %v10173_v60  ;;  %4948 = vmatpush1.bf16.msra.mxu1 %v10176_v33 }
 0xafe   :  { %4983 = vmatprep.subr.bf16.mxu0 %v10179_v5  ;;  %5024 = vmatprep.subr.bf16.mxu1 %v10182_v61 }
 0xb80   :  { %v4696_v44 = vpop.f32.mrf.mxu0  ;;  %v4737_v56 = vpop.f32.mrf.mxu1 }
 0xb81   :  { %v4744_v55 = vadd.f32 %v4696_v44, %v3266_v11  ;;  %v4746_v49 = vadd.f32 %v4737_v56, %v3339_v14 }
 0xb82   :  { %v4698_v27 = vpop.f32.mrf.mxu0  ;;  %v4739_v53 = vpop.f32.mrf.mxu1 }
 0xb83   :  { %v6568_v47 = vmul.f32 -1.442695, %v4744_v55  ;;  %v4745_v62 = vadd.f32 %v4698_v27, %v3268_v42  ;;  %v4747_v24 = vadd.f32 %v4739_v53, %v3341_v20 }
 0xb84   :  { %v4700_v9 = vpop.f32.mrf.mxu0  ;;  %v4741_v38 = vpop.f32.mrf.mxu1 }
 0xb85   :  { %7343 = vpow2.f32 %v6568_v47  ;;  %v6569_v32 = vmul.f32 -1.442695, %v4745_v62  ;;  %v6570_v50 = vmul.f32 -1.442695, %v4747_v24  ;;  %v11214_v62 = vld [vmem:[#allocation43_spill] sm:$0xff] }
 0xb86   :  { %v4701_v59 = vpop.f32.mrf.mxu0  ;;  %v4742_v39 = vpop.f32.mrf.mxu1 }
 0xb87   :  { %7345 = vpow2.f32 %v6569_v32  ;;  %v11215_v39 = vld [vmem:[#allocation58_spill] sm:$0xff] }
 0xb88   :  { %7347 = vtanh.f32 %v4746_v49 }
 0xb89   :  { %7349 = vpow2.f32 %v6570_v50 }
 0xb92   :  { %v7344_v48 = vpop.eup %7343 }
 0xb93   :  { %v4848_v11 = vadd.f32 1.0, %v7344_v48 }
 0xb94   :  { %v7346_v44 = vpop.eup %7345 }
 0xb95   :  { %7351 = vrcp.f32 %v4848_v11  ;;  %v4849_v15 = vadd.f32 1.0, %v7346_v44  ;;  %v7348_v42 = vpop.eup %7347 }
 0xb96   :  { %v7350_v47 = vpop.eup %7349 }
 0xb97   :  { %7353 = vrcp.f32 %v4849_v15  ;;  %v4850_v24 = vadd.f32 1.0, %v7350_v47  ;;  %v11216_v15 = vld [vmem:[#allocation59_spill] sm:$0xff] }
 0xba0   :  { %v4787_v55 = vpop.f32.mrf.mxu0  ;;  %v4828_v27 = vpop.f32.mrf.mxu1 }
 0xba1   :  { %v4835_v9 = vadd.f32 %v4787_v55, %v11214_v62  ;;  %v11217_v55 = vld [vmem:[#allocation56_spill] sm:$0xff] }
 0xba2   :  { %v7352_v53 = vpop.eup %7351  ;;  %v4789_v38 = vpop.f32.mrf.mxu0  ;;  %v4837_v62 = vadd.f32 %v4828_v27, %v11217_v55  ;;  %v10204_v27 = vld [vmem:[#allocation18 + $0xe8] ss:$16 sps:$4 sm:$0xff]  }
 0xba3   :  { %v4830_v32 = vpop.f32.mrf.mxu1  ;;  %v4859_v59 = vmul.f32 %v7352_v53, %v7348_v42  ;;  %v6571_v56 = vmul.f32 -1.442695, %v4835_v9  ;;  %v4836_v16 = vadd.f32 %v4789_v38, %v11215_v39 }
 0xba4   :  { %v7354_v20 = vpop.eup %7353  ;;  %v4791_v35 = vpop.f32.mrf.mxu0  ;;  %v4838_v42 = vadd.f32 %v4830_v32, %v11216_v15  ;;  %v10207_v32 = vld [vmem:[#allocation18 + $0xc4] ss:$16 sps:$4 sm:$0xff]  }
 0xba5   :  { %v4832_v14 = vpop.f32.mrf.mxu1  ;;  %v4858_v49 = vmul.f32 %v7354_v20, %v10040_v43  ;;  %7355 = vpow2.f32 %v6571_v56  ;;  %v6572_v50 = vmul.f32 -1.442695, %v4836_v16  ;;  %v10201_v20 = vld [vmem:[#allocation18 + $0xe0] ss:$16 sps:$4 sm:$0xff]  }
 0xba6   :  { %v4792_v48 = vpop.f32.mrf.mxu0  ;;  %v6573_v9 = vmul.f32 -1.442695, %v4838_v42  ;;  %v10215_v14 = vld [vmem:[#allocation18 + $0xc0] ss:$16 sps:$4 sm:$0xff]  }
 0xba7   :  { %v4833_v11 = vpop.f32.mrf.mxu1  ;;  %v10196_v44 = vadd.f32 %v4859_v59, %v4858_v49  ;;  %7357 = vpow2.f32 %v6572_v50  ;;  %v10218_v49 = vld [vmem:[#allocation18 + $0xc8] ss:$16 sps:$4 sm:$0xff]   ;;  %v10221_v48 = vld [vmem:[#allocation18 + $0xa4] ss:$16 sps:$4 sm:$0xff]  }
 0xba8   :  { %7359 = vrcp.f32 %v4850_v24  ;;  %v10210_v24 = vld [vmem:[#allocation18 + $0xcc] ss:$16 sps:$4 sm:$0xff]  }
 0xba9   :  { %7361 = vtanh.f32 %v10196_v44  ;;  %v10224_v11 = vld [vmem:[#allocation18 + $0xac] ss:$16 sps:$4 sm:$0xff]  }
 0xbaa   :  { %7363 = vtanh.f32 %v4837_v62 }
 0xbab   :  { %7365 = vpow2.f32 %v6573_v9  ;;  %v10227_v9 = vld [vmem:[#allocation18 + $0xa0] ss:$16 sps:$4 sm:$0xff]  }
 0xbb2   :  { %v7356_v47 = vpop.eup %7355 }
 0xbb3   :  { %v4872_v53 = vadd.f32 1.0, %v7356_v47  ;;  %v10230_v47 = vld [vmem:[#allocation18 + $0xa8] ss:$16 sps:$4 sm:$0xff]  }
 0xbb4   :  { %v7358_v38 = vpop.eup %7357 }
 0xbb5   :  { %v7360_v43 = vpop.eup %7359  ;;  %7367 = vrcp.f32 %v4872_v53  ;;  %v4873_v56 = vadd.f32 1.0, %v7358_v38  ;;  %v10234_v38 = vld [vmem:[#allocation18 + $0x84] ss:$16 sps:$4 sm:$0xff]  }
 0xbb6   :  { %v7362_v39 = vpop.eup %7361 }
 0xbb7   :  { %7369 = vrcp.f32 %v4873_v56  ;;  %v4862_v59 = vmul.f32 %v7362_v39, %v7360_v43  ;;  %v7364_v35 = vpop.eup %7363  ;;  %v10237_v43 = vld [vmem:[#allocation18 + $0x8c] ss:$16 sps:$4 sm:$0xff]   ;;  %v10242_v39 = vld [vmem:[#allocation18 + $0x80] ss:$16 sps:$4 sm:$0xff]  }
 0xbb8   :  { %v7366_v50 = vpop.eup %7365 }
 0xbb9   :  { %v4891_v16 = vpack.c.bf16 %v4862_v59, %v4862_v59  ;;  %v4874_v62 = vadd.f32 1.0, %v7366_v50  ;;  %v10245_v59 = vld [vmem:[#allocation18 + $0x88] ss:$16 sps:$4 sm:$0xff]  }
 0xbba   :  { %v10258_v50 = vld [vmem:[#allocation18 + $0x68] ss:$16 sps:$4 sm:$0xff]  }
 0xbbb   :  { %4925 = vmatmul.mubr.bf16.vlgmr.msra.gmra.mxu0 %v4891_v16  ;;  %4966 = vmatmul.mubr.bf16.vlgmr.msra.gmra.mxu1 %v4891_v16  ;;  %7371 = vrcp.f32 %v4874_v62  ;;  %v10252_v16 = vld [vmem:[#allocation18 + $0x6c] ss:$16 sps:$4 sm:$0xff]   ;;  %11220 = vst [vmem:[#allocation104_spill] sm:$0xff] %v10258_v50  ;;  %v10270_v62 = vld [vmem:[#allocation18 + $0x48] ss:$16 sps:$4 sm:$0xff]  }
 0xbbc   :  { %4984 = vmatpush1.bf16.msra.mxu0 %v10201_v20  ;;  %5025 = vmatpush1.bf16.msra.mxu1 %v10204_v27  ;;  %11218 = vst [vmem:[#allocation102_spill] sm:$0xff] %v10252_v16  ;;  %11224 = vst [vmem:[#allocation108_spill] sm:$0xff] %v10270_v62 }
 0xbbd   :  { %4985 = vmatprep.subr.bf16.mxu0 %v10207_v32  ;;  %5026 = vmatprep.subr.bf16.mxu1 %v10210_v24 }
 0xbbe   :  { %5015 = vmatprep.mubr.bf16.mxu0 %v10829_v28  ;;  %5056 = vmatprep.mubr.bf16.mxu1 %v10829_v28 }
 0xbc0   :  { %4986 = vmatpush1.bf16.msra.mxu0 %v10215_v14  ;;  %5027 = vmatpush1.bf16.msra.mxu1 %v10218_v49 }
 0xbc1   :  { %4987 = vmatprep.subr.bf16.mxu0 %v10221_v48  ;;  %5028 = vmatprep.subr.bf16.mxu1 %v10224_v11 }
 0xbc2   :  { %v7368_v15 = vpop.eup %7367 }
 0xbc3   :  { %v4883_v42 = vmul.f32 %v7368_v15, %v7364_v35  ;;  %v10255_v35 = vld [vmem:[#allocation18 + $0x60] ss:$16 sps:$4 sm:$0xff]   ;;  %v10261_v15 = vld [vmem:[#allocation18 + $0x44] ss:$16 sps:$4 sm:$0xff]  }
 0xbc4   :  { %v7370_v55 = vpop.eup %7369  ;;  %4988 = vmatpush1.bf16.msra.mxu0 %v10227_v9  ;;  %5029 = vmatpush1.bf16.msra.mxu1 %v10230_v47  ;;  %11219 = vst [vmem:[#allocation103_spill] sm:$0xff] %v10255_v35  ;;  %11221 = vst [vmem:[#allocation105_spill] sm:$0xff] %v10261_v15 }
 0xbc5   :  { %v4882_v53 = vmul.f32 %v7370_v55, %v10060_v57  ;;  %4989 = vmatprep.subr.bf16.mxu0 %v10234_v38  ;;  %5030 = vmatprep.subr.bf16.mxu1 %v10237_v43  ;;  %v10249_v57 = vld [vmem:[#allocation18 + $0x64] ss:$16 sps:$4 sm:$0xff]   ;;  %v10267_v55 = vld [vmem:[#allocation18 + $0x40] ss:$16 sps:$4 sm:$0xff]  }
 0xbc6   :  { %11223 = vst [vmem:[#allocation107_spill] sm:$0xff] %v10267_v55 }
 0xbc7   :  { %v10240_v56 = vadd.f32 %v4883_v42, %v4882_v53  ;;  %v10264_v42 = vld [vmem:[#allocation18 + $0x4c] ss:$16 sps:$4 sm:$0xff]   ;;  %v10273_v53 = vld [vmem:[#allocation18 + $0x24] ss:$16 sps:$4 sm:$0xff]  }
 0xbc8   :  { %4990 = vmatpush1.bf16.msra.mxu0 %v10242_v39  ;;  %5031 = vmatpush1.bf16.msra.mxu1 %v10245_v59  ;;  %11222 = vst [vmem:[#allocation106_spill] sm:$0xff] %v10264_v42  ;;  %11225 = vst [vmem:[#allocation110_spill] sm:$0xff] %v10273_v53 }
 0xbc9   :  { %7373 = vtanh.f32 %v10240_v56  ;;  %4991 = vmatprep.subr.bf16.mxu0 %v10249_v57  ;;  %5032 = vmatprep.subr.bf16.mxu1 %v10252_v16 }
 0xbcc   :  { %4992 = vmatpush1.bf16.msra.mxu0 %v10255_v35  ;;  %5033 = vmatpush1.bf16.msra.mxu1 %v10258_v50  ;;  %v10276_v50 = vld [vmem:[#allocation18 + $0x2c] ss:$16 sps:$4 sm:$0xff]   ;;  %v10285_v35 = vld [vmem:[#allocation18 + $0x4] ss:$16 sps:$4 sm:$0xff]  }
 0xbcd   :  { %4993 = vmatprep.subr.bf16.mxu0 %v10261_v15  ;;  %5034 = vmatprep.subr.bf16.mxu1 %v10264_v42  ;;  %11226 = vst [vmem:[#allocation112_spill] sm:$0xff] %v10276_v50  ;;  %v10279_v15 = vld [vmem:[#allocation18 + $0x20] ss:$16 sps:$4 sm:$0xff]   ;;  %v10282_v42 = vld [vmem:[#allocation18 + $0x28] ss:$16 sps:$4 sm:$0xff]  }
 0xbce   :  { %11227 = vst [vmem:[#allocation113_spill] sm:$0xff] %v10279_v15  ;;  %11228 = vst [vmem:[#allocation111_spill] sm:$0xff] %v10282_v42 }
 0xbd0   :  { %4994 = vmatpush1.bf16.msra.mxu0 %v10267_v55  ;;  %5035 = vmatpush1.bf16.msra.mxu1 %v10270_v62  ;;  %v7372_v55 = vpop.eup %7371  ;;  %v10288_v62 = vld [vmem:[#allocation18 + $0xc] ss:$16 sps:$4 sm:$0xff]  }
 0xbd1   :  { %4995 = vmatprep.subr.bf16.mxu0 %v10273_v53  ;;  %5036 = vmatprep.subr.bf16.mxu1 %v10276_v50  ;;  %v10291_v50 = vld [vmem:[#allocation18] ss:$16 sps:$4 sm:$0xff]  }
 0xbd4   :  { %4996 = vmatpush1.bf16.msra.mxu0 %v10279_v15  ;;  %5037 = vmatpush1.bf16.msra.mxu1 %v10282_v42  ;;  %v10294_v15 = vld [vmem:[#allocation18 + $0x8] ss:$16 sps:$4 sm:$0xff]  }
 0xbd5   :  { %4997 = vmatprep.subr.bf16.mxu0 %v10285_v35  ;;  %5038 = vmatprep.subr.bf16.mxu1 %v10288_v62 }
 0xbd6   :  { %v7374_v53 = vpop.eup %7373 }
 0xbd7   :  { %v4886_v16 = vmul.f32 %v7374_v53, %v7372_v55 }
 0xbd8   :  { %4998 = vmatpush1.bf16.msra.mxu0 %v10291_v50  ;;  %5039 = vmatpush1.bf16.msra.mxu1 %v10294_v15 }
 0xbd9   :  { %v4982_v42 = vpack.c.bf16 %v4886_v16, %v4886_v16  ;;  %5122 = vmatprep.subr.bf16.mxu0 %v10081_v63  ;;  %5163 = vmatprep.subr.bf16.mxu1 %v10084_v21  ;;  %v11229_v16 = vld [vmem:[#allocation118_spill] sm:$0xff] }
 0xbdb   :  { %5016 = vmatmul.mubr.bf16.vlgmr.msra.gmra.mxu0 %v4982_v42  ;;  %5057 = vmatmul.mubr.bf16.vlgmr.msra.gmra.mxu1 %v4982_v42  ;;  %v3270_v42 = vadd.f32 %v11229_v16, %v9910_v12 }
 0xbdc   :  { %5123 = vmatpush1.bf16.msra.mxu0 %v10087_v51  ;;  %5164 = vmatpush1.bf16.msra.mxu1 %v10090_v26 }
 0xbdd   :  { %5124 = vmatprep.subr.bf16.mxu0 %v10093_v58  ;;  %5165 = vmatprep.subr.bf16.mxu1 %v10096_v34 }
 0xbde   :  { %5154 = vmatprep.mubr.bf16.mxu0 %v10829_v28  ;;  %5195 = vmatprep.mubr.bf16.mxu1 %v10829_v28 }
 0xbe0   :  { %5125 = vmatpush1.bf16.msra.mxu0 %v10101_v1  ;;  %5166 = vmatpush1.bf16.msra.mxu1 %v10104_v29 }
 0xbe1   :  { %5126 = vmatprep.subr.bf16.mxu0 %v10107_v41  ;;  %5167 = vmatprep.subr.bf16.mxu1 %v10110_v10 }
 0xbe4   :  { %5127 = vmatpush1.bf16.msra.mxu0 %v10113_v52  ;;  %5168 = vmatpush1.bf16.msra.mxu1 %v10116_v40 }
 0xbe5   :  { %5128 = vmatprep.subr.bf16.mxu0 %v10119_v7  ;;  %5169 = vmatprep.subr.bf16.mxu1 %v10122_v37 }
 0xbe8   :  { %5129 = vmatpush1.bf16.msra.mxu0 %v10125_v31  ;;  %5170 = vmatpush1.bf16.msra.mxu1 %v10128_v18 }
 0xbe9   :  { %5130 = vmatprep.subr.bf16.mxu0 %v10131_v19  ;;  %5171 = vmatprep.subr.bf16.mxu1 %v10134_v54 }
 0xbec   :  { %5131 = vmatpush1.bf16.msra.mxu0 %v10137_v8  ;;  %5172 = vmatpush1.bf16.msra.mxu1 %v10140_v0 }
 0xbed   :  { %5132 = vmatprep.subr.bf16.mxu0 %v10143_v4  ;;  %5173 = vmatprep.subr.bf16.mxu1 %v10146_v46  ;;  %v11232_v4 = vld [vmem:[#allocation48_spill] sm:$0xff] }
 0xbee   :  { %v3343_v0 = vadd.f32 %v11232_v4, %v9941_v3 }
 0xbf0   :  { %5133 = vmatpush1.bf16.msra.mxu0 %v10149_v36  ;;  %5174 = vmatpush1.bf16.msra.mxu1 %v10152_v17 }
 0xbf1   :  { %5134 = vmatprep.subr.bf16.mxu0 %v10155_v2  ;;  %5175 = vmatprep.subr.bf16.mxu1 %v10158_v22 }
 0xbf4   :  { %5135 = vmatpush1.bf16.msra.mxu0 %v10161_v45  ;;  %5176 = vmatpush1.bf16.msra.mxu1 %v10164_v23  ;;  %v11230_v45 = vld [vmem:[#allocation50_spill] sm:$0xff] }
 0xbf5   :  { %5136 = vmatprep.subr.bf16.mxu0 %v10167_v25  ;;  %5177 = vmatprep.subr.bf16.mxu1 %v10170_v30  ;;  %v3272_v23 = vadd.f32 %v11230_v45, %v9919_v13 }
 0xbf8   :  { %5137 = vmatpush1.bf16.msra.mxu0 %v10173_v60  ;;  %5178 = vmatpush1.bf16.msra.mxu1 %v10176_v33 }
 0xbf9   :  { %5213 = vmatprep.subr.bf16.mxu0 %v10179_v5  ;;  %5254 = vmatprep.subr.bf16.mxu1 %v10182_v61  ;;  %v11231_v61 = vld [vmem:[#allocation51_spill] sm:$0xff] }
 0xbfa   :  { %v3345_v16 = vadd.f32 %v11231_v61, %v9938_v6 }
 0xc7b   :  { %v4926_v55 = vpop.f32.mrf.mxu0  ;;  %v4967_v53 = vpop.f32.mrf.mxu1 }
 0xc7c   :  { %v4974_v22 = vadd.f32 %v4926_v55, %v3270_v42  ;;  %v4976_v45 = vadd.f32 %v4967_v53, %v3343_v0 }
 0xc7d   :  { %v4928_v25 = vpop.f32.mrf.mxu0  ;;  %v4969_v2 = vpop.f32.mrf.mxu1 }
 0xc7e   :  { %v6574_v30 = vmul.f32 -1.442695, %v4974_v22  ;;  %v4975_v17 = vadd.f32 %v4928_v25, %v3272_v23  ;;  %v4977_v12 = vadd.f32 %v4969_v2, %v3345_v16 }
 0xc7f   :  { %v4930_v60 = vpop.f32.mrf.mxu0  ;;  %v4971_v36 = vpop.f32.mrf.mxu1 }
 0xc80   :  { %7375 = vpow2.f32 %v6574_v30  ;;  %v6575_v33 = vmul.f32 -1.442695, %v4975_v17  ;;  %v6576_v42 = vmul.f32 -1.442695, %v4977_v12  ;;  %v11233_v30 = vld [vmem:[#allocation57_spill] sm:$0xff]  ;;  %v11234_v12 = vld [vmem:[#allocation88_spill] sm:$0xff] }
 0xc81   :  { %v4931_v5 = vpop.f32.mrf.mxu0  ;;  %v4972_v46 = vpop.f32.mrf.mxu1 }
 0xc82   :  { %7377 = vpow2.f32 %v6575_v33 }
 0xc83   :  { %7379 = vtanh.f32 %v4976_v45 }
 0xc84   :  { %7381 = vpow2.f32 %v6576_v42 }
 0xc8d   :  { %v7376_v55 = vpop.eup %7375 }
 0xc8e   :  { %v5078_v13 = vadd.f32 1.0, %v7376_v55 }
 0xc8f   :  { %v7378_v22 = vpop.eup %7377 }
 0xc90   :  { %7383 = vrcp.f32 %v5078_v13  ;;  %v5079_v36 = vadd.f32 1.0, %v7378_v22  ;;  %v7380_v17 = vpop.eup %7379 }
 0xc91   :  { %v7382_v25 = vpop.eup %7381 }
 0xc92   :  { %7385 = vrcp.f32 %v5079_v36  ;;  %v5080_v16 = vadd.f32 1.0, %v7382_v25 }
 0xc9b   :  { %v5017_v46 = vpop.f32.mrf.mxu0  ;;  %v5058_v23 = vpop.f32.mrf.mxu1 }
 0xc9c   :  { %v5065_v60 = vadd.f32 %v5017_v46, %v11233_v30  ;;  %v11236_v30 = vld [vmem:[#allocation86_spill] sm:$0xff] }
 0xc9d   :  { %v7384_v2 = vpop.eup %7383  ;;  %v5019_v33 = vpop.f32.mrf.mxu0 }
 0xc9e   :  { %v5060_v5 = vpop.f32.mrf.mxu1  ;;  %v5089_v4 = vmul.f32 %v7384_v2, %v7380_v17  ;;  %v6577_v0 = vmul.f32 -1.442695, %v5065_v60  ;;  %v5066_v61 = vadd.f32 %v5019_v33, %v11234_v12  ;;  %v11235_v17 = vld [vmem:[#allocation89_spill] sm:$0xff]  ;;  %v5067_v60 = vadd.f32 %v5058_v23, %v11236_v30  ;;  %v11241_v30 = vld [vmem:[#allocation106_spill] sm:$0xff] }
 0xc9f   :  { %v7386_v53 = vpop.eup %7385  ;;  %v5021_v45 = vpop.f32.mrf.mxu0  ;;  %v5068_v46 = vadd.f32 %v5060_v5, %v11235_v17  ;;  %v11238_v17 = vld [vmem:[#allocation103_spill] sm:$0xff] }
 0xca0   :  { %v5062_v42 = vpop.f32.mrf.mxu1  ;;  %v5088_v13 = vmul.f32 %v7386_v53, %v10196_v44  ;;  %7387 = vpow2.f32 %v6577_v0  ;;  %v6578_v55 = vmul.f32 -1.442695, %v5066_v61 }
 0xca1   :  { %v5022_v22 = vpop.f32.mrf.mxu0  ;;  %v6579_v2 = vmul.f32 -1.442695, %v5068_v46  ;;  %v11240_v46 = vld [vmem:[#allocation105_spill] sm:$0xff] }
 0xca2   :  { %v5063_v36 = vpop.f32.mrf.mxu1  ;;  %v10344_v3 = vadd.f32 %v5089_v4, %v5088_v13  ;;  %7389 = vpow2.f32 %v6578_v55 }
 0xca3   :  { %7391 = vrcp.f32 %v5080_v16  ;;  %v11237_v36 = vld [vmem:[#allocation102_spill] sm:$0xff] }
 0xca4   :  { %7393 = vtanh.f32 %v10344_v3 }
 0xca5   :  { %7395 = vtanh.f32 %v5067_v60  ;;  %v11242_v60 = vld [vmem:[#allocation107_spill] sm:$0xff] }
 0xca6   :  { %7397 = vpow2.f32 %v6579_v2  ;;  %v11243_v2 = vld [vmem:[#allocation108_spill] sm:$0xff] }
 0xcad   :  { %v7388_v25 = vpop.eup %7387 }
 0xcae   :  { %v5102_v33 = vadd.f32 1.0, %v7388_v25  ;;  %v11244_v25 = vld [vmem:[#allocation110_spill] sm:$0xff] }
 0xcaf   :  { %v7390_v12 = vpop.eup %7389 }
 0xcb0   :  { %v7392_v44 = vpop.eup %7391  ;;  %7399 = vrcp.f32 %v5102_v33  ;;  %v5103_v0 = vadd.f32 1.0, %v7390_v12  ;;  %v11245_v33 = vld [vmem:[#allocation112_spill] sm:$0xff]  ;;  %v11246_v12 = vld [vmem:[#allocation113_spill] sm:$0xff] }
 0xcb1   :  { %v7394_v61 = vpop.eup %7393 }
 0xcb2   :  { %7401 = vrcp.f32 %v5103_v0  ;;  %v5092_v4 = vmul.f32 %v7394_v61, %v7392_v44  ;;  %v7396_v23 = vpop.eup %7395  ;;  %v11247_v44 = vld [vmem:[#allocation111_spill] sm:$0xff] }
 0xcb3   :  { %v7398_v5 = vpop.eup %7397 }
 0xcb4   :  { %v5121_v53 = vpack.c.bf16 %v5092_v4, %v5092_v4  ;;  %v5104_v13 = vadd.f32 1.0, %v7398_v5  ;;  %v11249_v5 = vld [vmem:[#allocation74_spill] sm:$0xff] }
 0xcb6   :  { %5155 = vmatmul.mubr.bf16.vlgmr.msra.gmra.mxu0 %v5121_v53  ;;  %5196 = vmatmul.mubr.bf16.vlgmr.msra.gmra.mxu1 %v5121_v53  ;;  %7403 = vrcp.f32 %v5104_v13  ;;  %v11253_v13 = vld [vmem:[#allocation31_spill] sm:$0xff] }
 0xcb7   :  { %5214 = vmatpush1.bf16.msra.mxu0 %v10201_v20  ;;  %5255 = vmatpush1.bf16.msra.mxu1 %v10204_v27 }
 0xcb8   :  { %5215 = vmatprep.subr.bf16.mxu0 %v10207_v32  ;;  %5256 = vmatprep.subr.bf16.mxu1 %v10210_v24 }
 0xcb9   :  { %5245 = vmatprep.mubr.bf16.mxu0 %v10829_v28  ;;  %5286 = vmatprep.mubr.bf16.mxu1 %v10829_v28 }
 0xcbb   :  { %5216 = vmatpush1.bf16.msra.mxu0 %v10215_v14  ;;  %5257 = vmatpush1.bf16.msra.mxu1 %v10218_v49 }
 0xcbc   :  { %5217 = vmatprep.subr.bf16.mxu0 %v10221_v48  ;;  %5258 = vmatprep.subr.bf16.mxu1 %v10224_v11 }
 0xcbd   :  { %v7400_v16 = vpop.eup %7399 }
 0xcbe   :  { %v5113_v45 = vmul.f32 %v7400_v16, %v7396_v23  ;;  %v11248_v23 = vld [vmem:[#allocation76_spill] sm:$0xff]  ;;  %v11250_v16 = vld [vmem:[#allocation69_spill] sm:$0xff] }
 0xcbf   :  { %v7402_v42 = vpop.eup %7401  ;;  %5218 = vmatpush1.bf16.msra.mxu0 %v10227_v9  ;;  %5259 = vmatpush1.bf16.msra.mxu1 %v10230_v47 }
 0xcc0   :  { %v5112_v55 = vmul.f32 %v7402_v42, %v10240_v56  ;;  %5219 = vmatprep.subr.bf16.mxu0 %v10234_v38  ;;  %5260 = vmatprep.subr.bf16.mxu1 %v10237_v43  ;;  %v11239_v56 = vld [vmem:[#allocation104_spill] sm:$0xff]  ;;  %v11252_v42 = vld [vmem:[#allocation75_spill] sm:$0xff] }
 0xcc2   :  { %v10364_v22 = vadd.f32 %v5113_v45, %v5112_v55  ;;  %v11251_v45 = vld [vmem:[#allocation77_spill] sm:$0xff]  ;;  %v11254_v55 = vld [vmem:[#allocation32_spill] sm:$0xff] }
 0xcc3   :  { %5220 = vmatpush1.bf16.msra.mxu0 %v10242_v39  ;;  %5261 = vmatpush1.bf16.msra.mxu1 %v10245_v59  ;;  %v7404_v0 = vpop.eup %7403 }
 0xcc4   :  { %7405 = vtanh.f32 %v10364_v22  ;;  %5221 = vmatprep.subr.bf16.mxu0 %v10249_v57  ;;  %5262 = vmatprep.subr.bf16.mxu1 %v11237_v36 }
 0xcc7   :  { %5222 = vmatpush1.bf16.msra.mxu0 %v11238_v17  ;;  %5263 = vmatpush1.bf16.msra.mxu1 %v11239_v56 }
 0xcc8   :  { %5223 = vmatprep.subr.bf16.mxu0 %v11240_v46  ;;  %5264 = vmatprep.subr.bf16.mxu1 %v11241_v30 }
 0xccb   :  { %5224 = vmatpush1.bf16.msra.mxu0 %v11242_v60  ;;  %5265 = vmatpush1.bf16.msra.mxu1 %v11243_v2 }
 0xccc   :  { %5225 = vmatprep.subr.bf16.mxu0 %v11244_v25  ;;  %5266 = vmatprep.subr.bf16.mxu1 %v11245_v33 }
 0xccf   :  { %5226 = vmatpush1.bf16.msra.mxu0 %v11246_v12  ;;  %5267 = vmatpush1.bf16.msra.mxu1 %v11247_v44 }
 0xcd0   :  { %5227 = vmatprep.subr.bf16.mxu0 %v10285_v35  ;;  %5268 = vmatprep.subr.bf16.mxu1 %v10288_v62 }
 0xcd1   :  { %v7406_v61 = vpop.eup %7405 }
 0xcd2   :  { %v5116_v4 = vmul.f32 %v7406_v61, %v7404_v0  ;;  %v11255_v0 = vld [vmem:[#allocation94_spill] sm:$0xff]  ;;  %v11256_v61 = vld [vmem:[#allocation95_spill] sm:$0xff] }
 0xcd3   :  { %5228 = vmatpush1.bf16.msra.mxu0 %v10291_v50  ;;  %5269 = vmatpush1.bf16.msra.mxu1 %v10294_v15 }
 0xcd4   :  { %v5212_v53 = vpack.c.bf16 %v5116_v4, %v5116_v4  ;;  %5352 = vmatprep.subr.bf16.mxu0 %v10081_v63  ;;  %5393 = vmatprep.subr.bf16.mxu1 %v10084_v21  ;;  %v11257_v4 = vld [vmem:[#allocation96_spill] sm:$0xff] }
 0xcd6   :  { %5246 = vmatmul.mubr.bf16.vlgmr.msra.gmra.mxu0 %v5212_v53  ;;  %5287 = vmatmul.mubr.bf16.vlgmr.msra.gmra.mxu1 %v5212_v53  ;;  %v11258_v53 = vld [vmem:[#allocation97_spill] sm:$0xff] }
 0xcd7   :  { %5353 = vmatpush1.bf16.msra.mxu0 %v10087_v51  ;;  %5394 = vmatpush1.bf16.msra.mxu1 %v10090_v26 }
 0xcd8   :  { %5354 = vmatprep.subr.bf16.mxu0 %v10093_v58  ;;  %5395 = vmatprep.subr.bf16.mxu1 %v10096_v34 }
 0xcd9   :  { %5384 = vmatprep.mubr.bf16.mxu0 %v10829_v28  ;;  %5425 = vmatprep.mubr.bf16.mxu1 %v10829_v28 }
 0xcdb   :  { %5355 = vmatpush1.bf16.msra.mxu0 %v10101_v1  ;;  %5396 = vmatpush1.bf16.msra.mxu1 %v10104_v29 }
 0xcdc   :  { %5356 = vmatprep.subr.bf16.mxu0 %v10107_v41  ;;  %5397 = vmatprep.subr.bf16.mxu1 %v10110_v10  ;;  %v11269_v10 = vld [vmem:[#allocation78_spill] sm:$0xff] }
 0xcdf   :  { %5357 = vmatpush1.bf16.msra.mxu0 %v10113_v52  ;;  %5398 = vmatpush1.bf16.msra.mxu1 %v10116_v40  ;;  %v11268_v52 = vld [vmem:[#allocation122_spill] sm:$0xff] }
 0xce0   :  { %5358 = vmatprep.subr.bf16.mxu0 %v10119_v7  ;;  %5399 = vmatprep.subr.bf16.mxu1 %v10122_v37  ;;  %v3349_v41 = vadd.f32 %v11269_v10, %v11268_v52 }
 0xce3   :  { %5359 = vmatpush1.bf16.msra.mxu0 %v10125_v31  ;;  %5400 = vmatpush1.bf16.msra.mxu1 %v10128_v18 }
 0xce4   :  { %5360 = vmatprep.subr.bf16.mxu0 %v10131_v19  ;;  %5401 = vmatprep.subr.bf16.mxu1 %v10134_v54  ;;  %v11266_v19 = vld [vmem:[#allocation80_spill] sm:$0xff] }
 0xce7   :  { %5361 = vmatpush1.bf16.msra.mxu0 %v10137_v8  ;;  %5402 = vmatpush1.bf16.msra.mxu1 %v11248_v23  ;;  %v11259_v23 = vld [vmem:[#allocation98_spill] sm:$0xff] }
 0xce8   :  { %5362 = vmatprep.subr.bf16.mxu0 %v11249_v5  ;;  %5403 = vmatprep.subr.bf16.mxu1 %v11250_v16  ;;  %v11260_v5 = vld [vmem:[#allocation99_spill] sm:$0xff]  ;;  %v11261_v16 = vld [vmem:[#allocation100_spill] sm:$0xff] }
 0xceb   :  { %5363 = vmatpush1.bf16.msra.mxu0 %v11251_v45  ;;  %5404 = vmatpush1.bf16.msra.mxu1 %v11252_v42  ;;  %v11262_v45 = vld [vmem:[#allocation101_spill] sm:$0xff]  ;;  %v11263_v42 = vld [vmem:[#allocation91_spill] sm:$0xff] }
 0xcec   :  { %5364 = vmatprep.subr.bf16.mxu0 %v11253_v13  ;;  %5405 = vmatprep.subr.bf16.mxu1 %v11254_v55  ;;  %v11264_v13 = vld [vmem:[#allocation49_spill] sm:$0xff] }
 0xced   :  { %v3276_v8 = vadd.f32 %v11264_v13, %v11263_v42 }
 0xcef   :  { %5365 = vmatpush1.bf16.msra.mxu0 %v11255_v0  ;;  %5406 = vmatpush1.bf16.msra.mxu1 %v11256_v61  ;;  %v11265_v0 = vld [vmem:[#allocation35_spill] sm:$0xff] }
 0xcf0   :  { %5366 = vmatprep.subr.bf16.mxu0 %v11257_v4  ;;  %5407 = vmatprep.subr.bf16.mxu1 %v11258_v53  ;;  %v3278_v61 = vadd.f32 %v11266_v19, %v11265_v0 }
 0xcf3   :  { %5367 = vmatpush1.bf16.msra.mxu0 %v11259_v23  ;;  %5408 = vmatpush1.bf16.msra.mxu1 %v11260_v5 }
 0xcf4   :  { %5443 = vmatprep.subr.bf16.mxu0 %v11261_v16  ;;  %5484 = vmatprep.subr.bf16.mxu1 %v11262_v45  ;;  %v11267_v45 = vld [vmem:[#allocation81_spill] sm:$0xff] }
 0xcf5   :  { %v3351_v13 = vadd.f32 %v11267_v45, %v9938_v6 }
 0xd76   :  { %v5156_v55 = vpop.f32.mrf.mxu0  ;;  %v5197_v54 = vpop.f32.mrf.mxu1 }
 0xd77   :  { %v5204_v18 = vadd.f32 %v5156_v55, %v3276_v8  ;;  %v5206_v19 = vadd.f32 %v5197_v54, %v3349_v41  ;;  %v11271_v54 = vld [vmem:[#allocation62_spill] sm:$0xff] }
 0xd78   :  { %v5158_v4 = vpop.f32.mrf.mxu0  ;;  %v5199_v31 = vpop.f32.mrf.mxu1 }
 0xd79   :  { %v6580_v53 = vmul.f32 -1.442695, %v5204_v18  ;;  %v5205_v37 = vadd.f32 %v5158_v4, %v3278_v61  ;;  %v5207_v42 = vadd.f32 %v5199_v31, %v3351_v13 }
 0xd7a   :  { %v5160_v23 = vpop.f32.mrf.mxu0  ;;  %v5201_v7 = vpop.f32.mrf.mxu1 }
 0xd7b   :  { %7407 = vpow2.f32 %v6580_v53  ;;  %v6581_v5 = vmul.f32 -1.442695, %v5205_v37  ;;  %v6582_v8 = vmul.f32 -1.442695, %v5207_v42 }
 0xd7c   :  { %v5161_v16 = vpop.f32.mrf.mxu0  ;;  %v5202_v40 = vpop.f32.mrf.mxu1 }
 0xd7d   :  { %7409 = vpow2.f32 %v6581_v5  ;;  %v11270_v16 = vld [vmem:[#allocation87_spill] sm:$0xff] }
 0xd7e   :  { %7411 = vtanh.f32 %v5206_v19 }
 0xd7f   :  { %7413 = vpow2.f32 %v6582_v8 }
 0xd88   :  { %v7408_v55 = vpop.eup %7407 }
 0xd89   :  { %v5308_v0 = vadd.f32 1.0, %v7408_v55 }
 0xd8a   :  { %v7410_v18 = vpop.eup %7409 }
 0xd8b   :  { %7415 = vrcp.f32 %v5308_v0  ;;  %v5309_v7 = vadd.f32 1.0, %v7410_v18  ;;  %v7412_v37 = vpop.eup %7411 }
 0xd8c   :  { %v7414_v5 = vpop.eup %7413 }
 0xd8d   :  { %7417 = vrcp.f32 %v5309_v7  ;;  %v5310_v13 = vadd.f32 1.0, %v7414_v5 }
 0xd96   :  { %v5247_v40 = vpop.f32.mrf.mxu0  ;;  %v5288_v23 = vpop.f32.mrf.mxu1 }
 0xd97   :  { %v5295_v45 = vadd.f32 %v5247_v40, %v11270_v16  ;;  %v11273_v16 = vld [vmem:[#allocation38_spill] sm:$0xff] }
 0xd98   :  { %v7416_v31 = vpop.eup %7415  ;;  %v5249_v61 = vpop.f32.mrf.mxu0 }
 0xd99   :  { %v5290_v4 = vpop.f32.mrf.mxu1  ;;  %v5319_v10 = vmul.f32 %v7416_v31, %v7412_v37  ;;  %v6583_v41 = vmul.f32 -1.442695, %v5295_v45  ;;  %v5296_v42 = vadd.f32 %v5249_v61, %v11271_v54  ;;  %v11272_v37 = vld [vmem:[#allocation60_spill] sm:$0xff]  ;;  %v5297_v45 = vadd.f32 %v5288_v23, %v11273_v16  ;;  %v11276_v16 = vld [vmem:[#allocation70_spill] sm:$0xff] }
 0xd9a   :  { %v7418_v53 = vpop.eup %7417  ;;  %v5251_v19 = vpop.f32.mrf.mxu0  ;;  %v5298_v40 = vadd.f32 %v5290_v4, %v11272_v37 }
 0xd9b   :  { %v5292_v8 = vpop.f32.mrf.mxu1  ;;  %v5318_v0 = vmul.f32 %v7418_v53, %v10344_v3  ;;  %7419 = vpow2.f32 %v6583_v41  ;;  %v6584_v55 = vmul.f32 -1.442695, %v5296_v42 }
 0xd9c   :  { %v5252_v18 = vpop.f32.mrf.mxu0  ;;  %v6585_v31 = vmul.f32 -1.442695, %v5298_v40 }
 0xd9d   :  { %v5293_v7 = vpop.f32.mrf.mxu1  ;;  %v10432_v52 = vadd.f32 %v5319_v10, %v5318_v0  ;;  %7421 = vpow2.f32 %v6584_v55 }
 0xd9e   :  { %7423 = vrcp.f32 %v5310_v13 }
 0xd9f   :  { %7425 = vtanh.f32 %v10432_v52 }
 0xda0   :  { %7427 = vtanh.f32 %v5297_v45  ;;  %v11281_v45 = vld [vmem:[#allocation44_spill] sm:$0xff] }
 0xda1   :  { %7429 = vpow2.f32 %v6585_v31  ;;  %v11282_v31 = vld [vmem:[#allocation47_spill] sm:$0xff] }
 0xda8   :  { %v7420_v5 = vpop.eup %7419 }
 0xda9   :  { %v5332_v61 = vadd.f32 1.0, %v7420_v5  ;;  %v11285_v5 = vld [vmem:[#allocation76_spill] sm:$0xff] }
 0xdaa   :  { %v7422_v54 = vpop.eup %7421 }
 0xdab   :  { %v7424_v3 = vpop.eup %7423  ;;  %7431 = vrcp.f32 %v5332_v61  ;;  %v5333_v41 = vadd.f32 1.0, %v7422_v54  ;;  %v11286_v61 = vld [vmem:[#allocation74_spill] sm:$0xff]  ;;  %v11287_v54 = vld [vmem:[#allocation69_spill] sm:$0xff] }
 0xdac   :  { %v7426_v42 = vpop.eup %7425 }
 0xdad   :  { %7433 = vrcp.f32 %v5333_v41  ;;  %v5322_v10 = vmul.f32 %v7426_v42, %v7424_v3  ;;  %v7428_v23 = vpop.eup %7427  ;;  %v11288_v3 = vld [vmem:[#allocation77_spill] sm:$0xff]  ;;  %v11289_v41 = vld [vmem:[#allocation75_spill] sm:$0xff] }
 0xdae   :  { %v7430_v4 = vpop.eup %7429  ;;  %v11290_v42 = vld [vmem:[#allocation31_spill] sm:$0xff] }
 0xdaf   :  { %v5351_v53 = vpack.c.bf16 %v5322_v10, %v5322_v10  ;;  %v5334_v0 = vadd.f32 1.0, %v7430_v4  ;;  %v11291_v10 = vld [vmem:[#allocation32_spill] sm:$0xff] }
 0xdb0   :  { %v11294_v4 = vld [vmem:[#allocation96_spill] sm:$0xff] }
 0xdb1   :  { %5385 = vmatmul.mubr.bf16.vlgmr.msra.gmra.mxu0 %v5351_v53  ;;  %5426 = vmatmul.mubr.bf16.vlgmr.msra.gmra.mxu1 %v5351_v53  ;;  %7435 = vrcp.f32 %v5334_v0  ;;  %v11292_v53 = vld [vmem:[#allocation94_spill] sm:$0xff]  ;;  %v11298_v0 = vld [vmem:[#allocation100_spill] sm:$0xff] }
 0xdb2   :  { %5444 = vmatpush1.bf16.msra.mxu0 %v10201_v20  ;;  %5485 = vmatpush1.bf16.msra.mxu1 %v10204_v27 }
 0xdb3   :  { %5445 = vmatprep.subr.bf16.mxu0 %v10207_v32  ;;  %5486 = vmatprep.subr.bf16.mxu1 %v10210_v24 }
 0xdb4   :  { %5475 = vmatprep.mubr.bf16.mxu0 %v10829_v28  ;;  %5516 = vmatprep.mubr.bf16.mxu1 %v10829_v28 }
 0xdb6   :  { %5446 = vmatpush1.bf16.msra.mxu0 %v10215_v14  ;;  %5487 = vmatpush1.bf16.msra.mxu1 %v10218_v49 }
 0xdb7   :  { %5447 = vmatprep.subr.bf16.mxu0 %v10221_v48  ;;  %5488 = vmatprep.subr.bf16.mxu1 %v10224_v11 }
 0xdb8   :  { %v7432_v13 = vpop.eup %7431 }
 0xdb9   :  { %v5343_v19 = vmul.f32 %v7432_v13, %v7428_v23  ;;  %v11293_v23 = vld [vmem:[#allocation95_spill] sm:$0xff]  ;;  %v11295_v13 = vld [vmem:[#allocation97_spill] sm:$0xff] }
 0xdba   :  { %v7434_v8 = vpop.eup %7433  ;;  %5448 = vmatpush1.bf16.msra.mxu0 %v10227_v9  ;;  %5489 = vmatpush1.bf16.msra.mxu1 %v10230_v47 }
 0xdbb   :  { %v5342_v55 = vmul.f32 %v7434_v8, %v10364_v22  ;;  %5449 = vmatprep.subr.bf16.mxu0 %v10234_v38  ;;  %5490 = vmatprep.subr.bf16.mxu1 %v10237_v43  ;;  %v11297_v8 = vld [vmem:[#allocation99_spill] sm:$0xff] }
 0xdbd   :  { %v10452_v18 = vadd.f32 %v5343_v19, %v5342_v55  ;;  %v11296_v19 = vld [vmem:[#allocation98_spill] sm:$0xff]  ;;  %v11299_v55 = vld [vmem:[#allocation101_spill] sm:$0xff] }
 0xdbe   :  { %5450 = vmatpush1.bf16.msra.mxu0 %v10242_v39  ;;  %5491 = vmatpush1.bf16.msra.mxu1 %v10245_v59  ;;  %v7436_v22 = vpop.eup %7435 }
 0xdbf   :  { %7437 = vtanh.f32 %v10452_v18  ;;  %5451 = vmatprep.subr.bf16.mxu0 %v10249_v57  ;;  %5492 = vmatprep.subr.bf16.mxu1 %v11237_v36 }
 0xdc2   :  { %5452 = vmatpush1.bf16.msra.mxu0 %v11238_v17  ;;  %5493 = vmatpush1.bf16.msra.mxu1 %v11239_v56 }
 0xdc3   :  { %5453 = vmatprep.subr.bf16.mxu0 %v11240_v46  ;;  %5494 = vmatprep.subr.bf16.mxu1 %v11241_v30 }
 0xdc6   :  { %5454 = vmatpush1.bf16.msra.mxu0 %v11242_v60  ;;  %5495 = vmatpush1.bf16.msra.mxu1 %v11243_v2 }
 0xdc7   :  { %5455 = vmatprep.subr.bf16.mxu0 %v11244_v25  ;;  %5496 = vmatprep.subr.bf16.mxu1 %v11245_v33 }
 0xdca   :  { %5456 = vmatpush1.bf16.msra.mxu0 %v11246_v12  ;;  %5497 = vmatpush1.bf16.msra.mxu1 %v11247_v44 }
 0xdcb   :  { %5457 = vmatprep.subr.bf16.mxu0 %v10285_v35  ;;  %5498 = vmatprep.subr.bf16.mxu1 %v10288_v62 }
 0xdcc   :  { %v7438_v7 = vpop.eup %7437 }
 0xdcd   :  { %v5346_v37 = vmul.f32 %v7438_v7, %v7436_v22  ;;  %v11300_v22 = vld [vmem:[#allocation91_spill] sm:$0xff] }
 0xdce   :  { %5458 = vmatpush1.bf16.msra.mxu0 %v10291_v50  ;;  %5499 = vmatpush1.bf16.msra.mxu1 %v10294_v15  ;;  %v11301_v7 = vld [vmem:[#allocation79_spill] sm:$0xff] }
 0xdcf   :  { %v5442_v40 = vpack.c.bf16 %v5346_v37, %v5346_v37  ;;  %5582 = vmatprep.subr.bf16.mxu0 %v10081_v63  ;;  %5623 = vmatprep.subr.bf16.mxu1 %v10084_v21  ;;  %v11274_v63 = vld [vmem:[#allocation109_spill] sm:$0xff]  ;;  %v3280_v37 = vadd.f32 %v11301_v7, %v11300_v22 }
 0xdd0   :  { %v11275_v21 = vld [vmem:[#allocation41_spill] sm:$0xff] }
 0xdd1   :  { %5476 = vmatmul.mubr.bf16.vlgmr.msra.gmra.mxu0 %v5442_v40  ;;  %5517 = vmatmul.mubr.bf16.vlgmr.msra.gmra.mxu1 %v5442_v40 }
 0xdd2   :  { %5583 = vmatpush1.bf16.msra.mxu0 %v10087_v51  ;;  %5624 = vmatpush1.bf16.msra.mxu1 %v10090_v26  ;;  %v11277_v51 = vld [vmem:[#allocation72_spill] sm:$0xff]  ;;  %v11278_v26 = vld [vmem:[#allocation73_spill] sm:$0xff] }
 0xdd3   :  { %5584 = vmatprep.subr.bf16.mxu0 %v10093_v58  ;;  %5625 = vmatprep.subr.bf16.mxu1 %v10096_v34  ;;  %v11279_v58 = vld [vmem:[#allocation71_spill] sm:$0xff]  ;;  %v11280_v34 = vld [vmem:[#allocation46_spill] sm:$0xff] }
 0xdd4   :  { %5614 = vmatprep.mubr.bf16.mxu0 %v10829_v28  ;;  %5655 = vmatprep.mubr.bf16.mxu1 %v10829_v28 }
 0xdd6   :  { %5585 = vmatpush1.bf16.msra.mxu0 %v10101_v1  ;;  %5626 = vmatpush1.bf16.msra.mxu1 %v10104_v29  ;;  %v11283_v1 = vld [vmem:[#allocation45_spill] sm:$0xff]  ;;  %v11284_v29 = vld [vmem:[#allocation68_spill] sm:$0xff] }
 0xdd7   :  { %5586 = vmatprep.subr.bf16.mxu0 %v11274_v63  ;;  %5627 = vmatprep.subr.bf16.mxu1 %v11275_v21  ;;  %v11302_v21 = vld [vmem:[#allocation35_spill] sm:$0xff] }
 0xdda   :  { %5587 = vmatpush1.bf16.msra.mxu0 %v11276_v16  ;;  %5628 = vmatpush1.bf16.msra.mxu1 %v11277_v51  ;;  %v11303_v16 = vld [vmem:[#allocation52_spill] sm:$0xff] }
 0xddb   :  { %5588 = vmatprep.subr.bf16.mxu0 %v11278_v26  ;;  %5629 = vmatprep.subr.bf16.mxu1 %v11279_v58  ;;  %v3282_v51 = vadd.f32 %v11303_v16, %v11302_v21 }
 0xdde   :  { %5589 = vmatpush1.bf16.msra.mxu0 %v11280_v34  ;;  %5630 = vmatpush1.bf16.msra.mxu1 %v11281_v45 }
 0xddf   :  { %5590 = vmatprep.subr.bf16.mxu0 %v11282_v31  ;;  %5631 = vmatprep.subr.bf16.mxu1 %v11283_v1 }
 0xde2   :  { %5591 = vmatpush1.bf16.msra.mxu0 %v11284_v29  ;;  %5632 = vmatpush1.bf16.msra.mxu1 %v11285_v5 }
 0xde3   :  { %5592 = vmatprep.subr.bf16.mxu0 %v11286_v61  ;;  %5633 = vmatprep.subr.bf16.mxu1 %v11287_v54 }
 0xde6   :  { %5593 = vmatpush1.bf16.msra.mxu0 %v11288_v3  ;;  %5634 = vmatpush1.bf16.msra.mxu1 %v11289_v41  ;;  %v11304_v3 = vld [vmem:[#allocation55_spill] sm:$0xff] }
 0xde7   :  { %5594 = vmatprep.subr.bf16.mxu0 %v11290_v42  ;;  %5635 = vmatprep.subr.bf16.mxu1 %v11291_v10  ;;  %v3355_v41 = vadd.f32 %v11304_v3, %v9938_v6  ;;  %v11305_v10 = vld [vmem:[#allocation122_spill] sm:$0xff] }
 0xdea   :  { %5595 = vmatpush1.bf16.msra.mxu0 %v11292_v53  ;;  %5636 = vmatpush1.bf16.msra.mxu1 %v11293_v23  ;;  %v11306_v53 = vld [vmem:[#allocation54_spill] sm:$0xff] }
 0xdeb   :  { %5596 = vmatprep.subr.bf16.mxu0 %v11294_v4  ;;  %5637 = vmatprep.subr.bf16.mxu1 %v11295_v13  ;;  %v3353_v23 = vadd.f32 %v11306_v53, %v11305_v10 }
 0xdee   :  { %5597 = vmatpush1.bf16.msra.mxu0 %v11296_v19  ;;  %5638 = vmatpush1.bf16.msra.mxu1 %v11297_v8 }
 0xdef   :  { %5673 = vmatprep.subr.bf16.mxu0 %v11298_v0  ;;  %5714 = vmatprep.subr.bf16.mxu1 %v11299_v55 }
 0xe71   :  { %v5386_v40 = vpop.f32.mrf.mxu0  ;;  %v5427_v63 = vpop.f32.mrf.mxu1 }
 0xe72   :  { %v5434_v26 = vadd.f32 %v5386_v40, %v3280_v37  ;;  %v5436_v4 = vadd.f32 %v5427_v63, %v3353_v23 }
 0xe73   :  { %v5388_v58 = vpop.f32.mrf.mxu0  ;;  %v5429_v34 = vpop.f32.mrf.mxu1 }
 0xe74   :  { %v6586_v45 = vmul.f32 -1.442695, %v5434_v26  ;;  %v5435_v31 = vadd.f32 %v5388_v58, %v3282_v51  ;;  %v5437_v42 = vadd.f32 %v5429_v34, %v3355_v41  ;;  %v11307_v51 = vld [vmem:[#allocation39_spill] sm:$0xff] }
 0xe75   :  { %v5390_v1 = vpop.f32.mrf.mxu0  ;;  %v5431_v29 = vpop.f32.mrf.mxu1 }
 0xe76   :  { %7439 = vpow2.f32 %v6586_v45  ;;  %v6587_v5 = vmul.f32 -1.442695, %v5435_v31  ;;  %v6588_v13 = vmul.f32 -1.442695, %v5437_v42  ;;  %v11308_v1 = vld [vmem:[#allocation61_spill] sm:$0xff] }
 0xe77   :  { %v5391_v61 = vpop.f32.mrf.mxu0  ;;  %v5432_v54 = vpop.f32.mrf.mxu1 }
 0xe78   :  { %7441 = vpow2.f32 %v6587_v5 }
 0xe79   :  { %7443 = vtanh.f32 %v5436_v4 }
 0xe7a   :  { %7445 = vpow2.f32 %v6588_v13  ;;  %v11309_v13 = vld [vmem:[#allocation92_spill] sm:$0xff] }
 0xe83   :  { %v7440_v19 = vpop.eup %7439 }
 0xe84   :  { %v5538_v8 = vadd.f32 1.0, %v7440_v19 }
 0xe85   :  { %v7442_v0 = vpop.eup %7441 }
 0xe86   :  { %7447 = vrcp.f32 %v5538_v8  ;;  %v5539_v55 = vadd.f32 1.0, %v7442_v0  ;;  %v7444_v7 = vpop.eup %7443  ;;  %v11310_v8 = vld [vmem:[#allocation63_spill] sm:$0xff] }
 0xe87   :  { %v7446_v16 = vpop.eup %7445 }
 0xe88   :  { %7449 = vrcp.f32 %v5539_v55  ;;  %v5540_v61 = vadd.f32 1.0, %v7446_v16 }
 0xe91   :  { %v5477_v37 = vpop.f32.mrf.mxu0  ;;  %v5518_v40 = vpop.f32.mrf.mxu1 }
 0xe92   :  { %v5525_v26 = vadd.f32 %v5477_v37, %v11307_v51  ;;  %v5527_v0 = vadd.f32 %v5518_v40, %v11310_v8 }
 0xe93   :  { %v7448_v58 = vpop.eup %7447  ;;  %v5479_v34 = vpop.f32.mrf.mxu0 }
 0xe94   :  { %v5520_v45 = vpop.f32.mrf.mxu1  ;;  %v5549_v31 = vmul.f32 %v7448_v58, %v7444_v7  ;;  %v6589_v63 = vmul.f32 -1.442695, %v5525_v26  ;;  %v5526_v29 = vadd.f32 %v5479_v34, %v11308_v1  ;;  %v7750_v1 = vld [vmem:[#allocation11 + $0x48] ss:$16 sps:$4 sm:$0xff]  }
 0xe95   :  { %v7450_v5 = vpop.eup %7449  ;;  %v5481_v54 = vpop.f32.mrf.mxu0  ;;  %v5528_v19 = vadd.f32 %v5520_v45, %v11309_v13  ;;  %v7760_v13 = vld [vmem:[#allocation18 + $0xec] ss:$16 sps:$4 sm:$0xff]  }
 0xe96   :  { %v5522_v3 = vpop.f32.mrf.mxu1  ;;  %v5548_v41 = vmul.f32 %v7450_v5, %v10432_v52  ;;  %7451 = vpow2.f32 %v6589_v63  ;;  %v6590_v42 = vmul.f32 -1.442695, %v5526_v29  ;;  %v7749_v63 = vld [vmem:[#allocation11 + $0x40] ss:$16 sps:$4 sm:$0xff]   ;;  %v7751_v29 = vld [vmem:[#allocation11 + $0x24] ss:$16 sps:$4 sm:$0xff]  }
 0xe97   :  { %v5482_v53 = vpop.f32.mrf.mxu0  ;;  %v6591_v55 = vmul.f32 -1.442695, %v5528_v19  ;;  %v7752_v5 = vld [vmem:[#allocation11 + $0x2c] ss:$16 sps:$4 sm:$0xff]   ;;  %v7754_v54 = vld [vmem:[#allocation11 + $0x28] ss:$16 sps:$4 sm:$0xff]  }
 0xe98   :  { %v5523_v23 = vpop.f32.mrf.mxu1  ;;  %v10520_v4 = vadd.f32 %v5549_v31, %v5548_v41  ;;  %7453 = vpow2.f32 %v6590_v42  ;;  %v7755_v3 = vld [vmem:[#allocation11 + $0x4] ss:$16 sps:$4 sm:$0xff]   ;;  %v7756_v41 = vld [vmem:[#allocation11 + $0xc] ss:$16 sps:$4 sm:$0xff]   ;;  %v7757_v42 = vld [vmem:[#allocation11] ss:$16 sps:$4 sm:$0xff]  }
 0xe99   :  { %7455 = vrcp.f32 %v5540_v61  ;;  %v7753_v61 = vld [vmem:[#allocation11 + $0x20] ss:$16 sps:$4 sm:$0xff]   ;;  %v7758_v53 = vld [vmem:[#allocation11 + $0x8] ss:$16 sps:$4 sm:$0xff]   ;;  %v7759_v23 = vld [vmem:[#allocation18 + $0xe4] ss:$16 sps:$4 sm:$0xff]  }
 0xe9a   :  { %7457 = vtanh.f32 %v10520_v4  ;;  %v11311_v19 = vld [vmem:[#allocation53_spill] sm:$0xff] }
 0xe9b   :  { %7459 = vtanh.f32 %v5527_v0  ;;  %v3286_v8 = vadd.f32 %v11311_v19, %v11300_v22 }
 0xe9c   :  { %7461 = vpow2.f32 %v6591_v55 }
 0xea3   :  { %v7452_v7 = vpop.eup %7451 }
 0xea4   :  { %v5562_v37 = vadd.f32 1.0, %v7452_v7  ;;  %v11312_v7 = vld [vmem:[#allocation82_spill] sm:$0xff] }
 0xea5   :  { %v7454_v16 = vpop.eup %7453 }
 0xea6   :  { %v7456_v52 = vpop.eup %7455  ;;  %7463 = vrcp.f32 %v5562_v37  ;;  %v5563_v51 = vadd.f32 1.0, %v7454_v16  ;;  %v3288_v37 = vadd.f32 %v11312_v7, %v11302_v21  ;;  %v7761_v7 = vld [vmem:[#allocation18 + $0xe0] ss:$16 sps:$4 sm:$0xff]  }
 0xea7   :  { %v7458_v26 = vpop.eup %7457 }
 0xea8   :  { %7465 = vrcp.f32 %v5563_v51  ;;  %v5552_v58 = vmul.f32 %v7458_v26, %v7456_v52  ;;  %v7460_v40 = vpop.eup %7459 }
 0xea9   :  { %v7462_v45 = vpop.eup %7461 }
 0xeaa   :  { %v5581_v34 = vpack.c.bf16 %v5552_v58, %v5552_v58 }
 0xeac   :  { %5615 = vmatmul.mubr.bf16.vlgmr.msra.gmra.mxu0 %v5581_v34  ;;  %5656 = vmatmul.mubr.bf16.vlgmr.msra.gmra.mxu1 %v5581_v34 }
 0xead   :  { %5674 = vmatpush1.bf16.msra.mxu0 %v10201_v20  ;;  %5715 = vmatpush1.bf16.msra.mxu1 %v10204_v27 }
 0xeae   :  { %5675 = vmatprep.subr.bf16.mxu0 %v10207_v32  ;;  %5716 = vmatprep.subr.bf16.mxu1 %v10210_v24  ;;  %v5564_v32 = vadd.f32 1.0, %v7462_v45 }
 0xeaf   :  { %5705 = vmatprep.mubr.bf16.mxu0 %v10829_v28  ;;  %5746 = vmatprep.mubr.bf16.mxu1 %v10829_v28 }
 0xeb0   :  { %7467 = vrcp.f32 %v5564_v32 }
 0xeb1   :  { %5676 = vmatpush1.bf16.msra.mxu0 %v10215_v14  ;;  %5717 = vmatpush1.bf16.msra.mxu1 %v10218_v49 }
 0xeb2   :  { %5677 = vmatprep.subr.bf16.mxu0 %v10221_v48  ;;  %5718 = vmatprep.subr.bf16.mxu1 %v10224_v11 }
 0xeb3   :  { %v7464_v20 = vpop.eup %7463 }
 0xeb4   :  { %v5573_v27 = vmul.f32 %v7464_v20, %v7460_v40 }
 0xeb5   :  { %v7466_v31 = vpop.eup %7465  ;;  %5678 = vmatpush1.bf16.msra.mxu0 %v10227_v9  ;;  %5719 = vmatpush1.bf16.msra.mxu1 %v10230_v47  ;;  %v7727_v47 = vld [vmem:[#allocation11 + $0xe4] ss:$16 sps:$4 sm:$0xff]  }
 0xeb6   :  { %v5572_v24 = vmul.f32 %v7466_v31, %v10452_v18  ;;  %5679 = vmatprep.subr.bf16.mxu0 %v10234_v38  ;;  %5720 = vmatprep.subr.bf16.mxu1 %v10237_v43  ;;  %v7728_v38 = vld [vmem:[#allocation11 + $0xec] ss:$16 sps:$4 sm:$0xff]   ;;  %v7729_v43 = vld [vmem:[#allocation11 + $0xe0] ss:$16 sps:$4 sm:$0xff]   ;;  %v11313_v31 = vld [vmem:[#allocation85_spill] sm:$0xff] }
 0xeb7   :  { %v7748_v18 = vld [vmem:[#allocation11 + $0x4c] ss:$16 sps:$4 sm:$0xff]   ;;  %v3361_v32 = vadd.f32 %v11313_v31, %v9938_v6 }
 0xeb8   :  { %v10540_v14 = vadd.f32 %v5573_v27, %v5572_v24 }
 0xeb9   :  { %5680 = vmatpush1.bf16.msra.mxu0 %v10242_v39  ;;  %5721 = vmatpush1.bf16.msra.mxu1 %v10245_v59  ;;  %v7730_v39 = vld [vmem:[#allocation11 + $0xe8] ss:$16 sps:$4 sm:$0xff]   ;;  %v7731_v59 = vld [vmem:[#allocation11 + $0xc4] ss:$16 sps:$4 sm:$0xff]  }
 0xeba   :  { %7469 = vtanh.f32 %v10540_v14  ;;  %5681 = vmatprep.subr.bf16.mxu0 %v10249_v57  ;;  %5722 = vmatprep.subr.bf16.mxu1 %v11237_v36  ;;  %v7732_v57 = vld [vmem:[#allocation11 + $0xcc] ss:$16 sps:$4 sm:$0xff]   ;;  %v7737_v36 = vld [vmem:[#allocation11 + $0xa0] ss:$16 sps:$4 sm:$0xff]  }
 0xebd   :  { %5682 = vmatpush1.bf16.msra.mxu0 %v11238_v17  ;;  %5723 = vmatpush1.bf16.msra.mxu1 %v11239_v56  ;;  %v7468_v49 = vpop.eup %7467  ;;  %v7738_v17 = vld [vmem:[#allocation11 + $0xa8] ss:$16 sps:$4 sm:$0xff]   ;;  %v7739_v56 = vld [vmem:[#allocation11 + $0x84] ss:$16 sps:$4 sm:$0xff]  }
 0xebe   :  { %5683 = vmatprep.subr.bf16.mxu0 %v11240_v46  ;;  %5724 = vmatprep.subr.bf16.mxu1 %v11241_v30  ;;  %v7740_v46 = vld [vmem:[#allocation11 + $0x8c] ss:$16 sps:$4 sm:$0xff]   ;;  %v7741_v30 = vld [vmem:[#allocation11 + $0x80] ss:$16 sps:$4 sm:$0xff]  }
 0xec1   :  { %5684 = vmatpush1.bf16.msra.mxu0 %v11242_v60  ;;  %5725 = vmatpush1.bf16.msra.mxu1 %v11243_v2  ;;  %v7742_v60 = vld [vmem:[#allocation11 + $0x88] ss:$16 sps:$4 sm:$0xff]   ;;  %v7743_v2 = vld [vmem:[#allocation11 + $0x64] ss:$16 sps:$4 sm:$0xff]  }
 0xec2   :  { %5685 = vmatprep.subr.bf16.mxu0 %v11244_v25  ;;  %5726 = vmatprep.subr.bf16.mxu1 %v11245_v33  ;;  %v7744_v25 = vld [vmem:[#allocation11 + $0x6c] ss:$16 sps:$4 sm:$0xff]   ;;  %v7745_v33 = vld [vmem:[#allocation11 + $0x60] ss:$16 sps:$4 sm:$0xff]  }
 0xec5   :  { %5686 = vmatpush1.bf16.msra.mxu0 %v11246_v12  ;;  %5727 = vmatpush1.bf16.msra.mxu1 %v11247_v44  ;;  %v7746_v12 = vld [vmem:[#allocation11 + $0x68] ss:$16 sps:$4 sm:$0xff]   ;;  %v7747_v44 = vld [vmem:[#allocation11 + $0x44] ss:$16 sps:$4 sm:$0xff]  }
 0xec6   :  { %5687 = vmatprep.subr.bf16.mxu0 %v10285_v35  ;;  %5728 = vmatprep.subr.bf16.mxu1 %v10288_v62  ;;  %v7733_v35 = vld [vmem:[#allocation11 + $0xc0] ss:$16 sps:$4 sm:$0xff]   ;;  %v7736_v62 = vld [vmem:[#allocation11 + $0xac] ss:$16 sps:$4 sm:$0xff]  }
 0xec7   :  { %v7470_v48 = vpop.eup %7469 }
 0xec8   :  { %v5576_v11 = vmul.f32 %v7470_v48, %v7468_v49  ;;  %v11314_v49 = vld [vmem:[#allocation84_spill] sm:$0xff] }
 0xec9   :  { %5688 = vmatpush1.bf16.msra.mxu0 %v10291_v50  ;;  %5729 = vmatpush1.bf16.msra.mxu1 %v10294_v15  ;;  %v7734_v50 = vld [vmem:[#allocation11 + $0xc8] ss:$16 sps:$4 sm:$0xff]   ;;  %v7735_v15 = vld [vmem:[#allocation11 + $0xa4] ss:$16 sps:$4 sm:$0xff]   ;;  %v3359_v48 = vadd.f32 %v11314_v49, %v11305_v10  ;;  %v7770_v49 = vld [vmem:[#allocation18 + $0xa8] ss:$16 sps:$4 sm:$0xff]  }
 0xeca   :  { %v5672_v9 = vpack.c.bf16 %v5576_v11, %v5576_v11  ;;  %5812 = vmatprep.subr.bf16.mxu0 %v7727_v47  ;;  %5853 = vmatprep.subr.bf16.mxu1 %v7728_v38 }
 0xecc   :  { %5706 = vmatmul.mubr.bf16.vlgmr.msra.gmra.mxu0 %v5672_v9  ;;  %5747 = vmatmul.mubr.bf16.vlgmr.msra.gmra.mxu1 %v5672_v9 }
 0xecd   :  { %5813 = vmatpush1.bf16.msra.mxu0 %v7729_v43  ;;  %5854 = vmatpush1.bf16.msra.mxu1 %v7730_v39 }
 0xece   :  { %5814 = vmatprep.subr.bf16.mxu0 %v7731_v59  ;;  %5855 = vmatprep.subr.bf16.mxu1 %v7732_v57 }
 0xecf   :  { %5844 = vmatprep.mubr.bf16.mxu0 %v10829_v28  ;;  %5885 = vmatprep.mubr.bf16.mxu1 %v10829_v28 }
 0xed1   :  { %5815 = vmatpush1.bf16.msra.mxu0 %v7733_v35  ;;  %5856 = vmatpush1.bf16.msra.mxu1 %v7734_v50 }
 0xed2   :  { %5816 = vmatprep.subr.bf16.mxu0 %v7735_v15  ;;  %5857 = vmatprep.subr.bf16.mxu1 %v7736_v62  ;;  %v11315_v15 = vld [vmem:[#allocation90_spill] sm:$0xff] }
 0xed5   :  { %5817 = vmatpush1.bf16.msra.mxu0 %v7737_v36  ;;  %5858 = vmatpush1.bf16.msra.mxu1 %v7738_v17 }
 0xed6   :  { %5818 = vmatprep.subr.bf16.mxu0 %v7739_v56  ;;  %5859 = vmatprep.subr.bf16.mxu1 %v7740_v46 }
 0xed9   :  { %5819 = vmatpush1.bf16.msra.mxu0 %v7741_v30  ;;  %5860 = vmatpush1.bf16.msra.mxu1 %v7742_v60  ;;  %v11316_v60 = vld [vmem:[#allocation34_spill] sm:$0xff] }
 0xeda   :  { %5820 = vmatprep.subr.bf16.mxu0 %v7743_v2  ;;  %5861 = vmatprep.subr.bf16.mxu1 %v7744_v25 }
 0xedd   :  { %5821 = vmatpush1.bf16.msra.mxu0 %v7745_v33  ;;  %5862 = vmatpush1.bf16.msra.mxu1 %v7746_v12 }
 0xede   :  { %5822 = vmatprep.subr.bf16.mxu0 %v7747_v44  ;;  %5863 = vmatprep.subr.bf16.mxu1 %v7748_v18 }
 0xee1   :  { %5823 = vmatpush1.bf16.msra.mxu0 %v7749_v63  ;;  %5864 = vmatpush1.bf16.msra.mxu1 %v7750_v1 }
 0xee2   :  { %5824 = vmatprep.subr.bf16.mxu0 %v7751_v29  ;;  %5865 = vmatprep.subr.bf16.mxu1 %v7752_v5 }
 0xee5   :  { %5825 = vmatpush1.bf16.msra.mxu0 %v7753_v61  ;;  %5866 = vmatpush1.bf16.msra.mxu1 %v7754_v54  ;;  %v11317_v61 = vld [vmem:[#allocation33_spill] sm:$0xff] }
 0xee6   :  { %5826 = vmatprep.subr.bf16.mxu0 %v7755_v3  ;;  %5867 = vmatprep.subr.bf16.mxu1 %v7756_v41  ;;  %v11318_v3 = vld [vmem:[#allocation93_spill] sm:$0xff] }
 0xee9   :  { %5827 = vmatpush1.bf16.msra.mxu0 %v7757_v42  ;;  %5868 = vmatpush1.bf16.msra.mxu1 %v7758_v53 }
 0xeea   :  { %5903 = vmatprep.subr.bf16.mxu0 %v7759_v23  ;;  %5944 = vmatprep.subr.bf16.mxu1 %v7760_v13 }
 0xf6c   :  { %v5616_v0 = vpop.f32.mrf.mxu0  ;;  %v5657_v55 = vpop.f32.mrf.mxu1 }
 0xf6d   :  { %v5664_v16 = vadd.f32 %v5616_v0, %v3286_v8  ;;  %v5666_v11 = vadd.f32 %v5657_v55, %v3359_v48  ;;  %v7771_v48 = vld [vmem:[#allocation18 + $0x84] ss:$16 sps:$4 sm:$0xff]  }
 0xf6e   :  { %v5618_v52 = vpop.f32.mrf.mxu0  ;;  %v5659_v51 = vpop.f32.mrf.mxu1 }
 0xf6f   :  { %v6592_v26 = vmul.f32 -1.442695, %v5664_v16  ;;  %v5665_v58 = vadd.f32 %v5618_v52, %v3288_v37  ;;  %v5667_v24 = vadd.f32 %v5659_v51, %v3361_v32  ;;  %v7762_v37 = vld [vmem:[#allocation18 + $0xe8] ss:$16 sps:$4 sm:$0xff]   ;;  %v7763_v16 = vld [vmem:[#allocation18 + $0xc4] ss:$16 sps:$4 sm:$0xff]  }
 0xf70   :  { %v5620_v34 = vpop.f32.mrf.mxu0  ;;  %v5661_v40 = vpop.f32.mrf.mxu1  ;;  %v7764_v52 = vld [vmem:[#allocation18 + $0xcc] ss:$16 sps:$4 sm:$0xff]  }
 0xf71   :  { %7471 = vpow2.f32 %v6592_v26  ;;  %v6593_v45 = vmul.f32 -1.442695, %v5665_v58  ;;  %v6594_v9 = vmul.f32 -1.442695, %v5667_v24  ;;  %v7765_v26 = vld [vmem:[#allocation18 + $0xc0] ss:$16 sps:$4 sm:$0xff]  }
 0xf72   :  { %v5621_v20 = vpop.f32.mrf.mxu0  ;;  %v5662_v27 = vpop.f32.mrf.mxu1  ;;  %v7766_v58 = vld [vmem:[#allocation18 + $0xc8] ss:$16 sps:$4 sm:$0xff]   ;;  %v7767_v40 = vld [vmem:[#allocation18 + $0xa4] ss:$16 sps:$4 sm:$0xff]   ;;  %v7769_v24 = vld [vmem:[#allocation18 + $0xa0] ss:$16 sps:$4 sm:$0xff]  }
 0xf73   :  { %7473 = vpow2.f32 %v6593_v45  ;;  %v7768_v45 = vld [vmem:[#allocation18 + $0xac] ss:$16 sps:$4 sm:$0xff]  }
 0xf74   :  { %7475 = vtanh.f32 %v5666_v11  ;;  %v7772_v11 = vld [vmem:[#allocation18 + $0x8c] ss:$16 sps:$4 sm:$0xff]  }
 0xf75   :  { %7477 = vpow2.f32 %v6594_v9 }
 0xf7e   :  { %v7472_v47 = vpop.eup %7471 }
 0xf7f   :  { %v5768_v38 = vadd.f32 1.0, %v7472_v47  ;;  %v7773_v47 = vld [vmem:[#allocation18 + $0x80] ss:$16 sps:$4 sm:$0xff]  }
 0xf80   :  { %v7474_v43 = vpop.eup %7473 }
 0xf81   :  { %7479 = vrcp.f32 %v5768_v38  ;;  %v5769_v39 = vadd.f32 1.0, %v7474_v43  ;;  %v7476_v59 = vpop.eup %7475  ;;  %v7774_v38 = vld [vmem:[#allocation18 + $0x88] ss:$16 sps:$4 sm:$0xff]   ;;  %v7775_v43 = vld [vmem:[#allocation18 + $0x64] ss:$16 sps:$4 sm:$0xff]  }
 0xf82   :  { %v7478_v50 = vpop.eup %7477 }
 0xf83   :  { %7481 = vrcp.f32 %v5769_v39  ;;  %v5770_v33 = vadd.f32 1.0, %v7478_v50  ;;  %v7776_v39 = vld [vmem:[#allocation18 + $0x6c] ss:$16 sps:$4 sm:$0xff]   ;;  %v7781_v50 = vld [vmem:[#allocation18 + $0x40] ss:$16 sps:$4 sm:$0xff]  }
 0xf8c   :  { %v5707_v57 = vpop.f32.mrf.mxu0  ;;  %v5748_v35 = vpop.f32.mrf.mxu1 }
 0xf8d   :  { %v5755_v62 = vadd.f32 %v5707_v57, %v11315_v15  ;;  %v5757_v41 = vadd.f32 %v5748_v35, %v11318_v3  ;;  %v7779_v57 = vld [vmem:[#allocation18 + $0x44] ss:$16 sps:$4 sm:$0xff]   ;;  %v7780_v35 = vld [vmem:[#allocation18 + $0x4c] ss:$16 sps:$4 sm:$0xff]   ;;  %v7782_v15 = vld [vmem:[#allocation18 + $0x48] ss:$16 sps:$4 sm:$0xff]  }
 0xf8e   :  { %v7480_v36 = vpop.eup %7479  ;;  %v5709_v17 = vpop.f32.mrf.mxu0  ;;  %v7012_v3 = vld [vmem:[%s10643_s14 + $0x10] sm:$0xff]  }
 0xf8f   :  { %v5750_v56 = vpop.f32.mrf.mxu1  ;;  %v5779_v46 = vmul.f32 %v7480_v36, %v7476_v59  ;;  %v6595_v30 = vmul.f32 -1.442695, %v5755_v62  ;;  %v5756_v2 = vadd.f32 %v5709_v17, %v11316_v60  ;;  %v7777_v59 = vld [vmem:[#allocation18 + $0x60] ss:$16 sps:$4 sm:$0xff]   ;;  %v7783_v62 = vld [vmem:[#allocation18 + $0x24] ss:$16 sps:$4 sm:$0xff]  }
 0xf90   :  { %v7482_v25 = vpop.eup %7481  ;;  %v5711_v12 = vpop.f32.mrf.mxu0  ;;  %v5758_v54 = vadd.f32 %v5750_v56, %v11317_v61  ;;  %v7784_v36 = vld [vmem:[#allocation18 + $0x2c] ss:$16 sps:$4 sm:$0xff]   ;;  %v7785_v17 = vld [vmem:[#allocation18 + $0x20] ss:$16 sps:$4 sm:$0xff]   ;;  %v7786_v56 = vld [vmem:[#allocation18 + $0x28] ss:$16 sps:$4 sm:$0xff]  }
 0xf91   :  { %v5752_v44 = vpop.f32.mrf.mxu1  ;;  %v5778_v18 = vmul.f32 %v7482_v25, %v10520_v4  ;;  %7483 = vpow2.f32 %v6595_v30  ;;  %v6596_v63 = vmul.f32 -1.442695, %v5756_v2  ;;  %v7787_v30 = vld [vmem:[#allocation18 + $0x4] ss:$16 sps:$4 sm:$0xff]   ;;  %v7788_v60 = vld [vmem:[#allocation18 + $0xc] ss:$16 sps:$4 sm:$0xff]  }
 0xf92   :  { %v5712_v1 = vpop.f32.mrf.mxu0  ;;  %v6597_v42 = vmul.f32 -1.442695, %v5758_v54  ;;  %v7790_v12 = vld [vmem:[#allocation18 + $0x8] ss:$16 sps:$4 sm:$0xff]   ;;  %v7011_v54 = vld [vmem:[%s10643_s14 + $0x18] sm:$0xff]  }
 0xf93   :  { %v5753_v29 = vpop.f32.mrf.mxu1  ;;  %v10574_v5 = vadd.f32 %v5779_v46, %v5778_v18  ;;  %7485 = vpow2.f32 %v6596_v63  ;;  %v7007_v18 = vld [vmem:[%s10643_s14 + $0x38] sm:$0xff]   ;;  %v8041_v63 = vmov 0.0   ;;  %v7008_v1 = vld [vmem:[%s10643_s14 + $0x30] sm:$0xff]   ;;  %v7010_v61 = vld [vmem:[%s10643_s14 + $0x20] sm:$0xff]  }
 0xf94   :  { %7487 = vrcp.f32 %v5770_v33  ;;  %v7789_v33 = vld [vmem:[#allocation18] ss:$16 sps:$4 sm:$0xff]  }
 0xf95   :  { %7489 = vtanh.f32 %v10574_v5  ;;  %v7009_v29 = vld [vmem:[%s10643_s14 + $0x28] sm:$0xff]  }
 0xf96   :  { %7491 = vtanh.f32 %v5757_v41  ;;  %v7013_v41 = vld [vmem:[%s10643_s14 + $0x8] sm:$0xff]  }
 0xf97   :  { %7493 = vpow2.f32 %v6597_v42  ;;  %v7014_v42 = vld [vmem:[%s10643_s14] sm:$0xff]  }
 0xf9e   :  { %v7484_v53 = vpop.eup %7483 }
 0xf9f   :  { %v5792_v23 = vadd.f32 1.0, %v7484_v53  ;;  %v7015_v53 = vld [vmem:[#allocation21 + $0x38] sm:$0xff]  }
 0xfa0   :  { %v7486_v13 = vpop.eup %7485 }
 0xfa1   :  { %v7488_v4 = vpop.eup %7487  ;;  %7495 = vrcp.f32 %v5792_v23  ;;  %v5793_v19 = vadd.f32 1.0, %v7486_v13  ;;  %v7016_v23 = vld [vmem:[#allocation21 + $0x30] sm:$0xff]   ;;  %v7017_v13 = vld [vmem:[#allocation21 + $0x28] sm:$0xff]  }
 0xfa2   :  { %v7490_v8 = vpop.eup %7489 }
 0xfa3   :  { %7497 = vrcp.f32 %v5793_v19  ;;  %v5782_v0 = vmul.f32 %v7490_v8, %v7488_v4  ;;  %v7492_v51 = vpop.eup %7491  ;;  %v7018_v4 = vld [vmem:[#allocation21 + $0x20] sm:$0xff]   ;;  %v7019_v19 = vld [vmem:[#allocation21 + $0x18] sm:$0xff]   ;;  %v7020_v8 = vld [vmem:[#allocation21 + $0x10] sm:$0xff]  }
 0xfa4   :  { %v7494_v34 = vpop.eup %7493 }
 0xfa5   :  { %v5811_v55 = vpack.c.bf16 %v5782_v0, %v5782_v0  ;;  %v5794_v32 = vadd.f32 1.0, %v7494_v34  ;;  %v7021_v0 = vld [vmem:[#allocation21 + $0x8] sm:$0xff]  }
 0xfa7   :  { %5845 = vmatmul.mubr.bf16.vlgmr.msra.gmra.mxu0 %v5811_v55  ;;  %5886 = vmatmul.mubr.bf16.vlgmr.msra.gmra.mxu1 %v5811_v55  ;;  %7499 = vrcp.f32 %v5794_v32  ;;  %v7022_v55 = vld [vmem:[#allocation21] sm:$0xff]  }
 0xfa8   :  { %5904 = vmatpush1.bf16.msra.mxu0 %v7761_v7  ;;  %5945 = vmatpush1.bf16.msra.mxu1 %v7762_v37  ;;  %v11319_v7 = vld [vmem:[#allocation83_spill] sm:$0xff] }
 0xfa9   :  { %5905 = vmatprep.subr.bf16.mxu0 %v7763_v16  ;;  %5946 = vmatprep.subr.bf16.mxu1 %v7764_v52  ;;  %v3290_v37 = vadd.f32 %v11319_v7, %v11300_v22 }
 0xfaa   :  { %5935 = vmatprep.mubr.bf16.mxu0 %v10829_v28  ;;  %5976 = vmatprep.mubr.bf16.mxu1 %v10829_v28 }
 0xfac   :  { %5906 = vmatpush1.bf16.msra.mxu0 %v7765_v26  ;;  %5947 = vmatpush1.bf16.msra.mxu1 %v7766_v58 }
 0xfad   :  { %5907 = vmatprep.subr.bf16.mxu0 %v7767_v40  ;;  %5948 = vmatprep.subr.bf16.mxu1 %v7768_v45 }
 0xfae   :  { %v7496_v20 = vpop.eup %7495 }
 0xfaf   :  { %v5803_v27 = vmul.f32 %v7496_v20, %v7492_v51  ;;  %v11320_v51 = vld [vmem:[#allocation66_spill] sm:$0xff] }
 0xfb0   :  { %v7498_v31 = vpop.eup %7497  ;;  %5908 = vmatpush1.bf16.msra.mxu0 %v7769_v24  ;;  %5949 = vmatpush1.bf16.msra.mxu1 %v7770_v49  ;;  %v3292_v26 = vadd.f32 %v11320_v51, %v11302_v21 }
 0xfb1   :  { %v5802_v28 = vmul.f32 %v7498_v31, %v10540_v14  ;;  %5909 = vmatprep.subr.bf16.mxu0 %v7771_v48  ;;  %5950 = vmatprep.subr.bf16.mxu1 %v7772_v11  ;;  %v7778_v14 = vld [vmem:[#allocation18 + $0x68] ss:$16 sps:$4 sm:$0xff]   ;;  %v11322_v11 = vld [vmem:[#allocation37_spill] sm:$0xff] }
 0xfb3   :  { %v10582_v9 = vadd.f32 %v5803_v27, %v5802_v28  ;;  %v11321_v28 = vld [vmem:[#allocation64_spill] sm:$0xff] }
 0xfb4   :  { %5910 = vmatpush1.bf16.msra.mxu0 %v7773_v47  ;;  %5951 = vmatpush1.bf16.msra.mxu1 %v7774_v38  ;;  %v7500_v46 = vpop.eup %7499  ;;  %v3365_v22 = vadd.f32 %v11321_v28, %v9938_v6  ;;  %v3363_v47 = vadd.f32 %v11322_v11, %v11305_v10  ;;  %v6620_v28 = vld [vmem:[%s10645_s16] ss:$0 sm:$0xff] }
 0xfb5   :  { %7501 = vtanh.f32 %v10582_v9  ;;  %5911 = vmatprep.subr.bf16.mxu0 %v7775_v43  ;;  %5952 = vmatprep.subr.bf16.mxu1 %v7776_v39 }
 0xfb8   :  { %5912 = vmatpush1.bf16.msra.mxu0 %v7777_v59  ;;  %5953 = vmatpush1.bf16.msra.mxu1 %v7778_v14 }
 0xfb9   :  { %5913 = vmatprep.subr.bf16.mxu0 %v7779_v57  ;;  %5954 = vmatprep.subr.bf16.mxu1 %v7780_v35 }
 0xfbc   :  { %5914 = vmatpush1.bf16.msra.mxu0 %v7781_v50  ;;  %5955 = vmatpush1.bf16.msra.mxu1 %v7782_v15 }
 0xfbd   :  { %5915 = vmatprep.subr.bf16.mxu0 %v7783_v62  ;;  %5956 = vmatprep.subr.bf16.mxu1 %v7784_v36  ;;  %v11323_v62 = vld [vmem:[#allocation36_spill] sm:$0xff] }
 0xfc0   :  { %5916 = vmatpush1.bf16.msra.mxu0 %v7785_v17  ;;  %5957 = vmatpush1.bf16.msra.mxu1 %v7786_v56 }
 0xfc1   :  { %5917 = vmatprep.subr.bf16.mxu0 %v7787_v30  ;;  %5958 = vmatprep.subr.bf16.mxu1 %v7788_v60  ;;  %v11324_v30 = vld [vmem:[#allocation120_spill] sm:$0xff] }
 0xfc2   :  { %v7502_v2 = vpop.eup %7501 }
 0xfc3   :  { %v5806_v25 = vmul.f32 %v7502_v2, %v7500_v46 }
 0xfc4   :  { %5918 = vmatpush1.bf16.msra.mxu0 %v7789_v33  ;;  %5959 = vmatpush1.bf16.msra.mxu1 %v7790_v12 }
 0xfc5   :  { %v5902_v44 = vpack.c.bf16 %v5806_v25, %v5806_v25  ;;  %6659 = vmatprep.subr.bf16.mxu1 %v8041_v63  ;;  %6639 = vmatprep.subr.bf16.mxu0 %v8041_v63 }
 0xfc7   :  { %5936 = vmatmul.mubr.bf16.vlgmr.msra.gmra.mxu0 %v5902_v44  ;;  %5977 = vmatmul.mubr.bf16.vlgmr.msra.gmra.mxu1 %v5902_v44 }
 0xfc8   :  { %6660 = vmatpush3.bf16.msra.mxu1 %v7007_v18  ;;  %6675 = vmatprep.mubr.msk.bf16.mxu1 %vm8042_vm4, %v8041_v63 }
 0xfc9   :  { %6661 = vmatprep.subr.bf16.mxu1 %v8041_v63  ;;  %6655 = vmatprep.mubr.msk.bf16.mxu0 %vm8042_vm4, %v8041_v63 }
 0xfca   :  { %6640 = vmatpush3.bf16.msra.mxu0 %v7015_v53 }
 0xfcb   :  { %6641 = vmatprep.subr.bf16.mxu0 %v8041_v63 }
 0xfcc   :  { %6662 = vmatpush3.bf16.msra.mxu1 %v7008_v1 }
 0xfcd   :  { %6663 = vmatprep.subr.bf16.mxu1 %v8041_v63 }
 0xfce   :  { %6642 = vmatpush3.bf16.msra.mxu0 %v7016_v23 }
 0xfcf   :  { %6643 = vmatprep.subr.bf16.mxu0 %v8041_v63 }
 0xfd0   :  { %6664 = vmatpush3.bf16.msra.mxu1 %v7009_v29 }
 0xfd1   :  { %6665 = vmatprep.subr.bf16.mxu1 %v8041_v63 }
 0xfd2   :  { %6644 = vmatpush3.bf16.msra.mxu0 %v7017_v13 }
 0xfd3   :  { %6645 = vmatprep.subr.bf16.mxu0 %v8041_v63 }
 0xfd4   :  { %6666 = vmatpush3.bf16.msra.mxu1 %v7010_v61  ;;  %v11325_v61 = vld [vmem:[#allocation121_spill] sm:$0xff] }
 0xfd5   :  { %6667 = vmatprep.subr.bf16.mxu1 %v8041_v63 }
 0xfd6   :  { %6646 = vmatpush3.bf16.msra.mxu0 %v7018_v4 }
 0xfd7   :  { %6647 = vmatprep.subr.bf16.mxu0 %v8041_v63 }
 0xfd8   :  { %6668 = vmatpush3.bf16.msra.mxu1 %v7011_v54 }
 0xfd9   :  { %6669 = vmatprep.subr.bf16.mxu1 %v8041_v63 }
 0xfda   :  { %6648 = vmatpush3.bf16.msra.mxu0 %v7019_v19 }
 0xfdb   :  { %6649 = vmatprep.subr.bf16.mxu0 %v8041_v63 }
 0xfdc   :  { %6670 = vmatpush3.bf16.msra.mxu1 %v7012_v3  ;;  %v11326_v3 = vld [vmem:[#allocation119_spill] sm:$0xff] }
 0xfdd   :  { %6671 = vmatprep.subr.bf16.mxu1 %v8041_v63 }
 0xfde   :  { %6650 = vmatpush3.bf16.msra.mxu0 %v7020_v8 }
 0xfdf   :  { %6651 = vmatprep.subr.bf16.mxu0 %v8041_v63 }
 0xfe0   :  { %6672 = vmatpush3.bf16.msra.mxu1 %v7013_v41 }
 0xfe1   :  { %6673 = vmatprep.subr.bf16.mxu1 %v8041_v63 }
 0xfe2   :  { %6652 = vmatpush3.bf16.msra.mxu0 %v7021_v0 }
 0xfe3   :  { %6653 = vmatprep.subr.bf16.mxu0 %v8041_v63 }
 0xfe4   :  { %6674 = vmatpush3.bf16.msra.mxu1 %v7014_v42 }
 0xfe6   :  { %6654 = vmatpush3.bf16.msra.mxu0 %v7022_v55 }
0x1067   :  { %v5846_v16 = vpop.f32.mrf.mxu0  ;;  %v5887_v52 = vpop.f32.mrf.mxu1 }
0x1068   :  { %v5894_v58 = vadd.f32 %v5846_v16, %v3290_v37  ;;  %v5896_v21 = vadd.f32 %v5887_v52, %v3363_v47 }
0x1069   :  { %v5848_v34 = vpop.f32.mrf.mxu0  ;;  %v5889_v40 = vpop.f32.mrf.mxu1 }
0x106a   :  { %v6598_v45 = vmul.f32 -1.442695, %v5894_v58  ;;  %v5895_v20 = vadd.f32 %v5848_v34, %v3292_v26  ;;  %v5897_v48 = vadd.f32 %v5889_v40, %v3365_v22 }
0x106b   :  { %v5850_v27 = vpop.f32.mrf.mxu0  ;;  %v5891_v31 = vpop.f32.mrf.mxu1 }
0x106c   :  { %7503 = vpow2.f32 %v6598_v45  ;;  %v6599_v32 = vmul.f32 -1.442695, %v5895_v20  ;;  %v6600_v38 = vmul.f32 -1.442695, %v5897_v48 }
0x106d   :  { %v5851_v24 = vpop.f32.mrf.mxu0  ;;  %v5892_v49 = vpop.f32.mrf.mxu1 }
0x106e   :  { %7505 = vpow2.f32 %v6599_v32 }
0x106f   :  { %7507 = vtanh.f32 %v5896_v21 }
0x1070   :  { %7509 = vpow2.f32 %v6600_v38 }
0x1079   :  { %v7504_v43 = vpop.eup %7503 }
0x107a   :  { %v5998_v39 = vadd.f32 1.0, %v7504_v43 }
0x107b   :  { %v7506_v59 = vpop.eup %7505 }
0x107c   :  { %7511 = vrcp.f32 %v5998_v39  ;;  %v5999_v14 = vadd.f32 1.0, %v7506_v59  ;;  %v7508_v57 = vpop.eup %7507 }
0x107d   :  { %v7510_v15 = vpop.eup %7509 }
0x107e   :  { %7513 = vrcp.f32 %v5999_v14  ;;  %v6000_v25 = vadd.f32 1.0, %v7510_v15 }
0x1087   :  { %v5937_v35 = vpop.f32.mrf.mxu0  ;;  %v5978_v50 = vpop.f32.mrf.mxu1 }
0x1088   :  { %v5985_v6 = vadd.f32 %v5937_v35, %v11323_v62  ;;  %v5987_v41 = vadd.f32 %v5978_v50, %v11326_v3 }
0x1089   :  { %v7512_v36 = vpop.eup %7511  ;;  %v5939_v17 = vpop.f32.mrf.mxu0 }
0x108a   :  { %v5980_v56 = vpop.f32.mrf.mxu1  ;;  %v6009_v10 = vmul.f32 %v7512_v36, %v7508_v57  ;;  %v6601_v46 = vmul.f32 -1.442695, %v5985_v6  ;;  %v5986_v60 = vadd.f32 %v5939_v17, %v11324_v30 }
0x108b   :  { %v7514_v2 = vpop.eup %7513  ;;  %v5941_v33 = vpop.f32.mrf.mxu0  ;;  %v5988_v54 = vadd.f32 %v5980_v56, %v11325_v61 }
0x108c   :  { %v5982_v12 = vpop.f32.mrf.mxu1  ;;  %v6008_v44 = vmul.f32 %v7514_v2, %v10574_v5  ;;  %7515 = vpow2.f32 %v6601_v46  ;;  %v6602_v18 = vmul.f32 -1.442695, %v5986_v60 }
0x108d   :  { %v5942_v63 = vpop.f32.mrf.mxu0  ;;  %v6603_v42 = vmul.f32 -1.442695, %v5988_v54 }
0x108e   :  { %v5983_v1 = vpop.f32.mrf.mxu1  ;;  %v6010_v29 = vadd.f32 %v6009_v10, %v6008_v44  ;;  %7517 = vpow2.f32 %v6602_v18 }
0x108f   :  { %7519 = vrcp.f32 %v6000_v25 }
0x1090   :  { %7521 = vtanh.f32 %v6010_v29 }
0x1091   :  { %7523 = vtanh.f32 %v5987_v41 }
0x1092   :  { %7525 = vpow2.f32 %v6603_v42 }
0x1099   :  { %v7516_v53 = vpop.eup %7515 }
0x109a   :  { %v6022_v23 = vadd.f32 1.0, %v7516_v53 }
0x109b   :  { %v7518_v13 = vpop.eup %7517 }
0x109c   :  { %v7520_v4 = vpop.eup %7519  ;;  %7527 = vrcp.f32 %v6022_v23  ;;  %v6023_v5 = vadd.f32 1.0, %v7518_v13 }
0x109d   :  { %v7522_v19 = vpop.eup %7521 }
0x109e   :  { %7529 = vrcp.f32 %v6023_v5  ;;  %v6012_v8 = vmul.f32 %v7522_v19, %v7520_v4  ;;  %v7524_v55 = vpop.eup %7523 }
0x109f   :  { %v7526_v7 = vpop.eup %7525 }
0x10a0   :  { %v6037_v0 = vpack.c.bf16 %v6012_v8, %v6012_v8  ;;  %v6024_v51 = vadd.f32 1.0, %v7526_v7 }
0x10a2   :  { %6676 = vmatmul.mubr.bf16.vlgmr.msra.gmra.mxu1 %v6037_v0  ;;  %7531 = vrcp.f32 %v6024_v51 }
0x10a9   :  { %v7528_v37 = vpop.eup %7527 }
0x10aa   :  { %v6033_v16 = vmul.f32 %v7528_v37, %v7524_v55 }
0x10ab   :  { %v7530_v52 = vpop.eup %7529 }
0x10ac   :  { %v6032_v26 = vmul.f32 %v7530_v52, %v10582_v9 }
0x10ae   :  { %v6034_v58 = vadd.f32 %v6033_v16, %v6032_v26 }
0x10af   :  { %v7532_v34 = vpop.eup %7531 }
0x10b0   :  { %7533 = vtanh.f32 %v6034_v58 }
0x10bd   :  { %v7534_v40 = vpop.eup %7533 }
0x10be   :  { %v6036_v45 = vmul.f32 %v7534_v40, %v7532_v34 }
0x10c0   :  { %v6054_v20 = vpack.c.bf16 %v6036_v45, %v6036_v45 }
0x10c2   :  { %6656 = vmatmul.mubr.bf16.vlgmr.msra.gmra.mxu0 %v6054_v20 }
0x1162   :  { %v6241_v27 = vpop.f32.mrf.mxu1 }
0x1164   :  { %v6677_v31 = vpop.f32.mrf.mxu1 }
0x1166   :  { %v6244_v32 = vpop.f32.mrf.mxu1 }
0x1168   :  { %v6678_v24 = vpop.f32.mrf.mxu1 }
0x1182   :  { %v6153_v49 = vpop.f32.mrf.mxu0 }
0x1183   :  { %v6242_v9 = vadd.f32 %v6241_v27, %v6153_v49 }
0x1184   :  { %v6657_v22 = vpop.f32.mrf.mxu0 }
0x1185   :  { %v6254_v48 = vadd.f32 %v6620_v28, %v6242_v9 }
0x1186   :  { %v6156_v11 = vpop.f32.mrf.mxu0 }
0x1187   :  { %6255 = vst [vmem:[#allocation23] sm:$0xff] %v6254_v48 }
0x1188   :  { %v6658_v47 = vpop.f32.mrf.mxu0 }
0x1189   :  { %8002 = shalt.err (!%p7999_p12)
}
0x118a   :  { %6265 = dma.vmem_to_hbm [thread:$0]  %s6263_s19, 128, %s10646_s17, [#allocation8]  }
0x118b   :  { %8023 = dma.done.wait [#allocation8], 128  }
0x118c   :  { %8024 = vsyncadd [#allocation8], 4294967168 }
0x118d   :  { %6269 = vsyncpa [#allocation7], 1 }
0x118e   :  { %6270 = vsyncpa [#allocation10], 1 }
0x118f   :  { %6271 = vsyncpa [#allocation13], 1 }
0x1190   :  { %6272 = vsyncpa [#allocation16], 1 }
0x1191   :  { %6273 = vsyncpa [#allocation19], 1 }
0x1192   :  { %6274 = vsyncpa [#allocation22], 1 }
0x1193   :  { %6275 = vsyncpa [#allocation8], 1 }

</bundles_post_ra>
